<compile_context>
chip_gen: v7x
topology: tpu7x:2x2x1
jax: 0.10.0
libtpu: 0.0.40
codegen_flags: <defaults>
</compile_context>

<pallas_src>
import jax
import jax.numpy as jnp
from jax.experimental import pallas as pl
from jax.experimental.pallas import tpu as pltpu


def pool_att_ff_kernel(x_ref, w1_ref, b1_ref, w2_ref, w3_ref, b3_ref, o_ref):
    bb, t, d = x_ref.shape                      # (Bblk, T, D), static ints
    xf = x_ref[...].reshape(bb * t, d)          # bf16, flatten batch+time for one matmul

    # linear1 on the MXU: bf16 operands, f32 accumulation.  Dropout = identity (eval).
    h = jnp.dot(xf, w1_ref[...], preferred_element_type=jnp.float32)   # (Bblk*T, 2D)
    h = jnp.maximum(h + b1_ref[...], 0.0)

    # linear2 (out_features = 1): VPU multiply + lane reduction (keeps the MXU free).
    # b2 is omitted: adding a constant to all logits is a no-op under softmax.
    h3 = h.reshape(bb, t, h.shape[-1])          # split leading dim (layout-preserving)
    logits = jnp.sum(h3 * w2_ref[...], axis=-1)                        # (Bblk, T), T in lanes

    # softmax over T (== dim=2 after the PyTorch transpose), per batch element.
    m = jnp.max(logits, axis=-1, keepdims=True)                        # (Bblk, 1)
    e = jnp.exp(logits - m)
    denom = jnp.sum(e, axis=-1, keepdims=True)                         # (Bblk, 1)
    att = e * pl.reciprocal(denom, approx=True)                        # (Bblk, T) f32

    # attention-weighted pooling: pooled[b, :] = sum_t att[b, t] * x[b, t, :].
    # Static loop over the small T axis, re-reading (Bblk, D) slices from the VMEM
    # ref, so no full f32 copy of the x block is ever materialized.
    pooled = jnp.zeros((bb, d), jnp.float32)
    for ti in range(t):
        pooled = pooled + att[:, ti:ti + 1] * x_ref[:, ti, :].astype(jnp.float32)

    # linear3 (out_features = 1): VPU multiply + lane reduction, scalar bias from SMEM.
    out = jnp.sum(pooled * w3_ref[...], axis=-1, keepdims=True)        # (Bblk, 1)
    o_ref[...] = out + b3_ref[0, 0]


def _vmem_budgets():
    """Returns (per-step block budget for bb sizing, vmem_limit_bytes) by TPU gen."""
    kind = ""
    try:
        kind = jax.devices()[0].device_kind.lower()
    except Exception:
        pass
    if "v7" in kind:
        # v7x: 64 MiB physical VMEM per TensorCore -> stay well under it.
        return 20 * 1024 * 1024, 48 * 1024 * 1024
    if "v5" in kind or "v6" in kind:
        # v5e / v6e: 128 MiB physical VMEM; raise well past the scoped default.
        return 40 * 1024 * 1024, 96 * 1024 * 1024
    # Unknown / emulated device: conservative (safe for 64 MiB VMEM parts).
    return 20 * 1024 * 1024, 48 * 1024 * 1024


def _pick_block_b(B, T, D, H, block_budget):
    """Batch elements per grid step (always a multiple of 8)."""
    LANE = 128
    pD = max(LANE, pl.cdiv(D, LANE) * LANE)     # minor dims pad to 128 lanes in VMEM
    pH = max(LANE, pl.cdiv(H, LANE) * LANE)
    pT = max(LANE, pl.cdiv(T, LANE) * LANE)
    # Lane-padding-aware VMEM bytes per batch element per step:
    per_b = (
        2 * T * pD * 2        # bf16 x block, double-buffered by the pipeline
        + 2 * T * pH * 4      # f32 h after linear1 + one same-sized elementwise temp
        + 3 * pT * 4          # logits / exp / att rows, (bb, T) f32
        + 4 * pD * 4          # pooled accumulator + per-T pooling temps, (bb, D) f32
    )
    cap = max(8, block_budget // max(per_b, 1))
    # HBM-bound: target >= ~1 MiB of real x bytes per grid step so the ~0.35 us fixed
    # per-step cost is amortized (tile sweep: 512-class tiles reach ~85% of HBM BW).
    target = max(256, pl.cdiv(1 << 20, max(T * D * 2, 1)))
    bb = min(target, cap)
    if bb >= B:
        # Whole batch fits in one step; split into two steps when B is large enough so
        # both v7x TensorCores get work under dimension_semantics=("parallel",).
        bb = pl.cdiv(B, 2) if B >= 16 else B
    bb = max(8, pl.cdiv(bb, 8) * 8)             # sublane-align: (bb, 1) out block legal
    return bb


def pool_att_ff(x, w1, b1, w2, b2, w3, b3, *, block_b=None):
    """Attention-pooling head.

    x  : (B, T, D) float32 activations.
    w1 : (D, 2D) = linear1.weight.T     b1 : (1, 2D)
    w2 : (1, 2D) = linear2.weight       b2 : (1, 1)   (unused: softmax is shift-invariant)
    w3 : (1, D)  = linear3.weight       b3 : (1, 1)
    Returns (B, 1) float32.
    """
    del b2  # mathematically a no-op before the softmax; saves a DMA + a VPU add
    B, T, D = x.shape
    H = w1.shape[1]

    block_budget, vmem_limit = _vmem_budgets()
    bb = _pick_block_b(B, T, D, H, block_budget) if block_b is None else block_b
    Bp = pl.cdiv(B, bb) * bb
    if Bp != B:
        x = jnp.pad(x, ((0, Bp - B), (0, 0), (0, 0)))   # padded rows sliced off below

    # bf16 operands for the MXU matmul (f32 accumulation in-kernel); halves the x DMA.
    x_b = x.astype(jnp.bfloat16)
    w1_b = w1.astype(jnp.bfloat16)
    b1 = b1.reshape(1, H).astype(jnp.float32)
    w2 = w2.reshape(1, H).astype(jnp.float32)
    w3 = w3.reshape(1, D).astype(jnp.float32)
    b3 = b3.reshape(1, 1).astype(jnp.float32)

    grid = (Bp // bb,)
    flops = (2 * Bp * T * D * H + 2 * Bp * T * H + 6 * Bp * T
             + 2 * Bp * T * D + 2 * Bp * D)
    bytes_accessed = Bp * T * D * 2 + D * H * 2 + (2 * H + D + 1) * 4 + Bp * 4

    out = pl.pallas_call(
        pool_att_ff_kernel,
        out_shape=jax.ShapeDtypeStruct((Bp, 1), jnp.float32),
        grid_spec=pltpu.PrefetchScalarGridSpec(
            num_scalar_prefetch=0,
            grid=grid,
            in_specs=[
                pl.BlockSpec((bb, T, D), lambda b: (b, 0, 0)),        # x    (bf16)
                pl.BlockSpec((D, H), lambda b: (0, 0)),               # W1   (bf16)
                pl.BlockSpec((1, H), lambda b: (0, 0)),               # b1
                pl.BlockSpec((1, H), lambda b: (0, 0)),               # W2 row
                pl.BlockSpec((1, D), lambda b: (0, 0)),               # W3 row
                pl.BlockSpec(memory_space=pltpu.MemorySpace.SMEM),    # b3 scalar (SMEM)
            ],
            out_specs=pl.BlockSpec((bb, 1), lambda b: (b, 0)),
        ),
        compiler_params=pltpu.CompilerParams(
            dimension_semantics=("parallel",),
            vmem_limit_bytes=vmem_limit),
        cost_estimate=pl.CostEstimate(
            flops=flops, transcendentals=Bp * T, bytes_accessed=bytes_accessed),
    )(x_b, w1_b, b1, w2, w3, b3)

    return out[:B]


def reference(x, w1, b1, w2, b2, w3, b3):
    """Pure-JAX float32 reference of the PyTorch forward (eval mode)."""
    h = jax.nn.relu(x @ w1 + b1)                              # (B, T, 2D)
    att = jnp.einsum("bth,h->bt", h, w2[0]) + b2[0, 0]        # (B, T)   == linear2
    att = jax.nn.softmax(att, axis=-1)                        # softmax over T
    pooled = jnp.einsum("bt,btd->bd", att, x)                 # bmm(att, x).squeeze(1)
    return pooled @ w3[0][:, None] + b3[0, 0]                 # (B, 1)   == linear3


if __name__ == "__main__":
    # Small config: D = dim_head_in; dropout inactive at inference.
    B, T, D = 16, 16, 32
    H = 2 * D

    key = jax.random.PRNGKey(0)
    kx, k1, kb1, k2, kb2, k3, kb3 = jax.random.split(key, 7)

    x = jax.random.normal(kx, (B, T, D), dtype=jnp.float32)

    # Deterministic synthetic params (torch Linear shapes, pre-arranged for the kernel).
    w1 = jax.random.normal(k1, (D, H), dtype=jnp.float32) * 0.1    # linear1.weight.T
    b1 = jax.random.normal(kb1, (1, H), dtype=jnp.float32) * 0.1   # linear1.bias
    w2 = jax.random.normal(k2, (1, H), dtype=jnp.float32) * 0.1    # linear2.weight (row)
    b2 = jax.random.normal(kb2, (1, 1), dtype=jnp.float32) * 0.1   # linear2.bias (no-op)
    w3 = jax.random.normal(k3, (1, D), dtype=jnp.float32) * 0.1    # linear3.weight (row)
    b3 = jax.random.normal(kb3, (1, 1), dtype=jnp.float32) * 0.1   # linear3.bias

    out = jax.block_until_ready(pool_att_ff(x, w1, b1, w2, b2, w3, b3))
    ref = reference(x, w1, b1, w2, b2, w3, b3)

    assert out.shape == (B, 1), out.shape
    # Tolerance reflects the intentional bf16 cast of the linear1 / pooling operands
    # (f32 accumulation); full-f32 semantics are otherwise preserved.
    assert jnp.allclose(out, ref, atol=3e-2, rtol=3e-2), (out, ref)

    # TODO(synk): dropout is treated as identity (inference mode); training-mode
    # stochastic dropout would use pltpu.prng_seed + pltpu.prng_random_bits.
    print("KERNEL_OK")
</pallas_src>

<mosaic_0001>
module attributes {stable_mosaic.version = 11 : i64} {
  func.func @pool_att_ff_kernel(%arg0: i32, %arg1: memref<8x16x32xbf16, #tpu.memory_space<vmem>>, %arg2: memref<32x64xbf16, #tpu.memory_space<vmem>>, %arg3: memref<1x64xf32, #tpu.memory_space<vmem>>, %arg4: memref<1x64xf32, #tpu.memory_space<vmem>>, %arg5: memref<1x32xf32, #tpu.memory_space<vmem>>, %arg6: memref<1x1xf32, #tpu.memory_space<smem>>, %arg7: memref<8x1xf32, #tpu.memory_space<vmem>>) attributes {dimension_semantics = [#tpu.dimension_semantics<parallel>], iteration_bounds = array<i64: 2>, scalar_prefetch = 0 : i64, scratch_operands = 0 : i64, tpu.core_type = #tpu.core_type<tc>, window_params = [{transform_indices = @transform_0, window_bounds = array<i64: 8, 16, 32>}, {pipeline_mode = #tpu.pipeline_mode<synchronous>, transform_indices = @transform_1, window_bounds = array<i64: 32, 64>}, {pipeline_mode = #tpu.pipeline_mode<synchronous>, transform_indices = @transform_2, window_bounds = array<i64: 1, 64>}, {pipeline_mode = #tpu.pipeline_mode<synchronous>, transform_indices = @transform_3, window_bounds = array<i64: 1, 64>}, {pipeline_mode = #tpu.pipeline_mode<synchronous>, transform_indices = @transform_4, window_bounds = array<i64: 1, 32>}, {transform_indices = @transform_5, window_bounds = array<i64: 1, 1>}, {transform_indices = @transform_6, window_bounds = array<i64: 8, 1>}]} {
    %c0 = arith.constant 0 : index
    %c0_0 = arith.constant 0 : index
    %c0_1 = arith.constant 0 : index
    %0 = vector.load %arg1[%c0, %c0_0, %c0_1] : memref<8x16x32xbf16, #tpu.memory_space<vmem>>, vector<8x16x32xbf16>
    %1 = vector.shape_cast %0 : vector<8x16x32xbf16> to vector<128x32xbf16>
    %c0_2 = arith.constant 0 : index
    %c0_3 = arith.constant 0 : index
    %2 = vector.load %arg2[%c0_2, %c0_3] : memref<32x64xbf16, #tpu.memory_space<vmem>>, vector<32x64xbf16>
    %cst = arith.constant dense<0.000000e+00> : vector<128x64xf32>
    %3 = tpu.matmul %1, %2, %cst {dimension_numbers = #tpu.dot_dimension_numbers<[1], [0], [0], [1], [0, 0, 1, 1], [], []>} : vector<128x32xbf16>, vector<32x64xbf16>, vector<128x64xf32> -> vector<128x64xf32>
    %c0_4 = arith.constant 0 : index
    %c0_5 = arith.constant 0 : index
    %4 = vector.load %arg3[%c0_4, %c0_5] : memref<1x64xf32, #tpu.memory_space<vmem>>, vector<1x64xf32>
    %5 = vector.broadcast %4 : vector<1x64xf32> to vector<128x64xf32>
    %6 = arith.addf %3, %5 : vector<128x64xf32>
    %cst_6 = arith.constant 0.000000e+00 : f32
    %7 = vector.broadcast %cst_6 : f32 to vector<128x64xf32>
    %8 = arith.maximumf %6, %7 : vector<128x64xf32>
    %9 = vector.shape_cast %8 : vector<128x64xf32> to vector<8x16x64xf32>
    %c0_7 = arith.constant 0 : index
    %c0_8 = arith.constant 0 : index
    %10 = vector.load %arg4[%c0_7, %c0_8] : memref<1x64xf32, #tpu.memory_space<vmem>>, vector<1x64xf32>
    %11 = vector.shape_cast %10 : vector<1x64xf32> to vector<1x1x64xf32>
    %12 = vector.broadcast %11 : vector<1x1x64xf32> to vector<8x16x64xf32>
    %13 = arith.mulf %9, %12 : vector<8x16x64xf32>
    %cst_9 = arith.constant dense<0.000000e+00> : vector<8x16xf32>
    %14 = vector.multi_reduction <add>, %13, %cst_9 [2] : vector<8x16x64xf32> to vector<8x16xf32>
    %cst_10 = arith.constant dense<0xFF800000> : vector<8xf32>
    %15 = vector.multi_reduction <maximumf>, %14, %cst_10 [1] : vector<8x16xf32> to vector<8xf32>
    %16 = vector.shape_cast %15 : vector<8xf32> to vector<8x1xf32>
    %17 = vector.broadcast %16 : vector<8x1xf32> to vector<8x16xf32>
    %18 = arith.subf %14, %17 : vector<8x16xf32>
    %19 = math.exp %18 : vector<8x16xf32>
    %cst_11 = arith.constant dense<0.000000e+00> : vector<8xf32>
    %20 = vector.multi_reduction <add>, %19, %cst_11 [1] : vector<8x16xf32> to vector<8xf32>
    %21 = vector.shape_cast %20 : vector<8xf32> to vector<8x1xf32>
    %22 = tpu.reciprocal %21 {approx = true} : vector<8x1xf32> -> vector<8x1xf32>
    %23 = vector.broadcast %22 : vector<8x1xf32> to vector<8x16xf32>
    %24 = arith.mulf %19, %23 : vector<8x16xf32>
    %cst_12 = arith.constant 0.000000e+00 : f32
    %25 = vector.broadcast %cst_12 : f32 to vector<8x32xf32>
    %26 = vector.extract_strided_slice %24 {offsets = [0, 0], sizes = [8, 1], strides = [1, 1]} : vector<8x16xf32> to vector<8x1xf32>
    %c0_13 = arith.constant 0 : index
    %c0_14 = arith.constant 0 : index
    %c0_15 = arith.constant 0 : index
    %27 = vector.load %arg1[%c0_13, %c0_14, %c0_15] : memref<8x16x32xbf16, #tpu.memory_space<vmem>>, vector<8x1x32xbf16>
    %28 = vector.shape_cast %27 : vector<8x1x32xbf16> to vector<8x32xbf16>
    %29 = arith.extf %28 : vector<8x32xbf16> to vector<8x32xf32>
    %30 = vector.broadcast %26 : vector<8x1xf32> to vector<8x32xf32>
    %31 = arith.mulf %30, %29 : vector<8x32xf32>
    %32 = arith.addf %25, %31 : vector<8x32xf32>
    %33 = vector.extract_strided_slice %24 {offsets = [0, 1], sizes = [8, 1], strides = [1, 1]} : vector<8x16xf32> to vector<8x1xf32>
    %c0_16 = arith.constant 0 : index
    %c1 = arith.constant 1 : index
    %c0_17 = arith.constant 0 : index
    %34 = vector.load %arg1[%c0_16, %c1, %c0_17] : memref<8x16x32xbf16, #tpu.memory_space<vmem>>, vector<8x1x32xbf16>
    %35 = vector.shape_cast %34 : vector<8x1x32xbf16> to vector<8x32xbf16>
    %36 = arith.extf %35 : vector<8x32xbf16> to vector<8x32xf32>
    %37 = vector.broadcast %33 : vector<8x1xf32> to vector<8x32xf32>
    %38 = arith.mulf %37, %36 : vector<8x32xf32>
    %39 = arith.addf %32, %38 : vector<8x32xf32>
    %40 = vector.extract_strided_slice %24 {offsets = [0, 2], sizes = [8, 1], strides = [1, 1]} : vector<8x16xf32> to vector<8x1xf32>
    %c0_18 = arith.constant 0 : index
    %c2 = arith.constant 2 : index
    %c0_19 = arith.constant 0 : index
    %41 = vector.load %arg1[%c0_18, %c2, %c0_19] : memref<8x16x32xbf16, #tpu.memory_space<vmem>>, vector<8x1x32xbf16>
    %42 = vector.shape_cast %41 : vector<8x1x32xbf16> to vector<8x32xbf16>
    %43 = arith.extf %42 : vector<8x32xbf16> to vector<8x32xf32>
    %44 = vector.broadcast %40 : vector<8x1xf32> to vector<8x32xf32>
    %45 = arith.mulf %44, %43 : vector<8x32xf32>
    %46 = arith.addf %39, %45 : vector<8x32xf32>
    %47 = vector.extract_strided_slice %24 {offsets = [0, 3], sizes = [8, 1], strides = [1, 1]} : vector<8x16xf32> to vector<8x1xf32>
    %c0_20 = arith.constant 0 : index
    %c3 = arith.constant 3 : index
    %c0_21 = arith.constant 0 : index
    %48 = vector.load %arg1[%c0_20, %c3, %c0_21] : memref<8x16x32xbf16, #tpu.memory_space<vmem>>, vector<8x1x32xbf16>
    %49 = vector.shape_cast %48 : vector<8x1x32xbf16> to vector<8x32xbf16>
    %50 = arith.extf %49 : vector<8x32xbf16> to vector<8x32xf32>
    %51 = vector.broadcast %47 : vector<8x1xf32> to vector<8x32xf32>
    %52 = arith.mulf %51, %50 : vector<8x32xf32>
    %53 = arith.addf %46, %52 : vector<8x32xf32>
    %54 = vector.extract_strided_slice %24 {offsets = [0, 4], sizes = [8, 1], strides = [1, 1]} : vector<8x16xf32> to vector<8x1xf32>
    %c0_22 = arith.constant 0 : index
    %c4 = arith.constant 4 : index
    %c0_23 = arith.constant 0 : index
    %55 = vector.load %arg1[%c0_22, %c4, %c0_23] : memref<8x16x32xbf16, #tpu.memory_space<vmem>>, vector<8x1x32xbf16>
    %56 = vector.shape_cast %55 : vector<8x1x32xbf16> to vector<8x32xbf16>
    %57 = arith.extf %56 : vector<8x32xbf16> to vector<8x32xf32>
    %58 = vector.broadcast %54 : vector<8x1xf32> to vector<8x32xf32>
    %59 = arith.mulf %58, %57 : vector<8x32xf32>
    %60 = arith.addf %53, %59 : vector<8x32xf32>
    %61 = vector.extract_strided_slice %24 {offsets = [0, 5], sizes = [8, 1], strides = [1, 1]} : vector<8x16xf32> to vector<8x1xf32>
    %c0_24 = arith.constant 0 : index
    %c5 = arith.constant 5 : index
    %c0_25 = arith.constant 0 : index
    %62 = vector.load %arg1[%c0_24, %c5, %c0_25] : memref<8x16x32xbf16, #tpu.memory_space<vmem>>, vector<8x1x32xbf16>
    %63 = vector.shape_cast %62 : vector<8x1x32xbf16> to vector<8x32xbf16>
    %64 = arith.extf %63 : vector<8x32xbf16> to vector<8x32xf32>
    %65 = vector.broadcast %61 : vector<8x1xf32> to vector<8x32xf32>
    %66 = arith.mulf %65, %64 : vector<8x32xf32>
    %67 = arith.addf %60, %66 : vector<8x32xf32>
    %68 = vector.extract_strided_slice %24 {offsets = [0, 6], sizes = [8, 1], strides = [1, 1]} : vector<8x16xf32> to vector<8x1xf32>
    %c0_26 = arith.constant 0 : index
    %c6 = arith.constant 6 : index
    %c0_27 = arith.constant 0 : index
    %69 = vector.load %arg1[%c0_26, %c6, %c0_27] : memref<8x16x32xbf16, #tpu.memory_space<vmem>>, vector<8x1x32xbf16>
    %70 = vector.shape_cast %69 : vector<8x1x32xbf16> to vector<8x32xbf16>
    %71 = arith.extf %70 : vector<8x32xbf16> to vector<8x32xf32>
    %72 = vector.broadcast %68 : vector<8x1xf32> to vector<8x32xf32>
    %73 = arith.mulf %72, %71 : vector<8x32xf32>
    %74 = arith.addf %67, %73 : vector<8x32xf32>
    %75 = vector.extract_strided_slice %24 {offsets = [0, 7], sizes = [8, 1], strides = [1, 1]} : vector<8x16xf32> to vector<8x1xf32>
    %c0_28 = arith.constant 0 : index
    %c7 = arith.constant 7 : index
    %c0_29 = arith.constant 0 : index
    %76 = vector.load %arg1[%c0_28, %c7, %c0_29] : memref<8x16x32xbf16, #tpu.memory_space<vmem>>, vector<8x1x32xbf16>
    %77 = vector.shape_cast %76 : vector<8x1x32xbf16> to vector<8x32xbf16>
    %78 = arith.extf %77 : vector<8x32xbf16> to vector<8x32xf32>
    %79 = vector.broadcast %75 : vector<8x1xf32> to vector<8x32xf32>
    %80 = arith.mulf %79, %78 : vector<8x32xf32>
    %81 = arith.addf %74, %80 : vector<8x32xf32>
    %82 = vector.extract_strided_slice %24 {offsets = [0, 8], sizes = [8, 1], strides = [1, 1]} : vector<8x16xf32> to vector<8x1xf32>
    %c0_30 = arith.constant 0 : index
    %c8 = arith.constant 8 : index
    %c0_31 = arith.constant 0 : index
    %83 = vector.load %arg1[%c0_30, %c8, %c0_31] : memref<8x16x32xbf16, #tpu.memory_space<vmem>>, vector<8x1x32xbf16>
    %84 = vector.shape_cast %83 : vector<8x1x32xbf16> to vector<8x32xbf16>
    %85 = arith.extf %84 : vector<8x32xbf16> to vector<8x32xf32>
    %86 = vector.broadcast %82 : vector<8x1xf32> to vector<8x32xf32>
    %87 = arith.mulf %86, %85 : vector<8x32xf32>
    %88 = arith.addf %81, %87 : vector<8x32xf32>
    %89 = vector.extract_strided_slice %24 {offsets = [0, 9], sizes = [8, 1], strides = [1, 1]} : vector<8x16xf32> to vector<8x1xf32>
    %c0_32 = arith.constant 0 : index
    %c9 = arith.constant 9 : index
    %c0_33 = arith.constant 0 : index
    %90 = vector.load %arg1[%c0_32, %c9, %c0_33] : memref<8x16x32xbf16, #tpu.memory_space<vmem>>, vector<8x1x32xbf16>
    %91 = vector.shape_cast %90 : vector<8x1x32xbf16> to vector<8x32xbf16>
    %92 = arith.extf %91 : vector<8x32xbf16> to vector<8x32xf32>
    %93 = vector.broadcast %89 : vector<8x1xf32> to vector<8x32xf32>
    %94 = arith.mulf %93, %92 : vector<8x32xf32>
    %95 = arith.addf %88, %94 : vector<8x32xf32>
    %96 = vector.extract_strided_slice %24 {offsets = [0, 10], sizes = [8, 1], strides = [1, 1]} : vector<8x16xf32> to vector<8x1xf32>
    %c0_34 = arith.constant 0 : index
    %c10 = arith.constant 10 : index
    %c0_35 = arith.constant 0 : index
    %97 = vector.load %arg1[%c0_34, %c10, %c0_35] : memref<8x16x32xbf16, #tpu.memory_space<vmem>>, vector<8x1x32xbf16>
    %98 = vector.shape_cast %97 : vector<8x1x32xbf16> to vector<8x32xbf16>
    %99 = arith.extf %98 : vector<8x32xbf16> to vector<8x32xf32>
    %100 = vector.broadcast %96 : vector<8x1xf32> to vector<8x32xf32>
    %101 = arith.mulf %100, %99 : vector<8x32xf32>
    %102 = arith.addf %95, %101 : vector<8x32xf32>
    %103 = vector.extract_strided_slice %24 {offsets = [0, 11], sizes = [8, 1], strides = [1, 1]} : vector<8x16xf32> to vector<8x1xf32>
    %c0_36 = arith.constant 0 : index
    %c11 = arith.constant 11 : index
    %c0_37 = arith.constant 0 : index
    %104 = vector.load %arg1[%c0_36, %c11, %c0_37] : memref<8x16x32xbf16, #tpu.memory_space<vmem>>, vector<8x1x32xbf16>
    %105 = vector.shape_cast %104 : vector<8x1x32xbf16> to vector<8x32xbf16>
    %106 = arith.extf %105 : vector<8x32xbf16> to vector<8x32xf32>
    %107 = vector.broadcast %103 : vector<8x1xf32> to vector<8x32xf32>
    %108 = arith.mulf %107, %106 : vector<8x32xf32>
    %109 = arith.addf %102, %108 : vector<8x32xf32>
    %110 = vector.extract_strided_slice %24 {offsets = [0, 12], sizes = [8, 1], strides = [1, 1]} : vector<8x16xf32> to vector<8x1xf32>
    %c0_38 = arith.constant 0 : index
    %c12 = arith.constant 12 : index
    %c0_39 = arith.constant 0 : index
    %111 = vector.load %arg1[%c0_38, %c12, %c0_39] : memref<8x16x32xbf16, #tpu.memory_space<vmem>>, vector<8x1x32xbf16>
    %112 = vector.shape_cast %111 : vector<8x1x32xbf16> to vector<8x32xbf16>
    %113 = arith.extf %112 : vector<8x32xbf16> to vector<8x32xf32>
    %114 = vector.broadcast %110 : vector<8x1xf32> to vector<8x32xf32>
    %115 = arith.mulf %114, %113 : vector<8x32xf32>
    %116 = arith.addf %109, %115 : vector<8x32xf32>
    %117 = vector.extract_strided_slice %24 {offsets = [0, 13], sizes = [8, 1], strides = [1, 1]} : vector<8x16xf32> to vector<8x1xf32>
    %c0_40 = arith.constant 0 : index
    %c13 = arith.constant 13 : index
    %c0_41 = arith.constant 0 : index
    %118 = vector.load %arg1[%c0_40, %c13, %c0_41] : memref<8x16x32xbf16, #tpu.memory_space<vmem>>, vector<8x1x32xbf16>
    %119 = vector.shape_cast %118 : vector<8x1x32xbf16> to vector<8x32xbf16>
    %120 = arith.extf %119 : vector<8x32xbf16> to vector<8x32xf32>
    %121 = vector.broadcast %117 : vector<8x1xf32> to vector<8x32xf32>
    %122 = arith.mulf %121, %120 : vector<8x32xf32>
    %123 = arith.addf %116, %122 : vector<8x32xf32>
    %124 = vector.extract_strided_slice %24 {offsets = [0, 14], sizes = [8, 1], strides = [1, 1]} : vector<8x16xf32> to vector<8x1xf32>
    %c0_42 = arith.constant 0 : index
    %c14 = arith.constant 14 : index
    %c0_43 = arith.constant 0 : index
    %125 = vector.load %arg1[%c0_42, %c14, %c0_43] : memref<8x16x32xbf16, #tpu.memory_space<vmem>>, vector<8x1x32xbf16>
    %126 = vector.shape_cast %125 : vector<8x1x32xbf16> to vector<8x32xbf16>
    %127 = arith.extf %126 : vector<8x32xbf16> to vector<8x32xf32>
    %128 = vector.broadcast %124 : vector<8x1xf32> to vector<8x32xf32>
    %129 = arith.mulf %128, %127 : vector<8x32xf32>
    %130 = arith.addf %123, %129 : vector<8x32xf32>
    %131 = vector.extract_strided_slice %24 {offsets = [0, 15], sizes = [8, 1], strides = [1, 1]} : vector<8x16xf32> to vector<8x1xf32>
    %c0_44 = arith.constant 0 : index
    %c15 = arith.constant 15 : index
    %c0_45 = arith.constant 0 : index
    %132 = vector.load %arg1[%c0_44, %c15, %c0_45] : memref<8x16x32xbf16, #tpu.memory_space<vmem>>, vector<8x1x32xbf16>
    %133 = vector.shape_cast %132 : vector<8x1x32xbf16> to vector<8x32xbf16>
    %134 = arith.extf %133 : vector<8x32xbf16> to vector<8x32xf32>
    %135 = vector.broadcast %131 : vector<8x1xf32> to vector<8x32xf32>
    %136 = arith.mulf %135, %134 : vector<8x32xf32>
    %137 = arith.addf %130, %136 : vector<8x32xf32>
    %c0_46 = arith.constant 0 : index
    %c0_47 = arith.constant 0 : index
    %138 = vector.load %arg5[%c0_46, %c0_47] : memref<1x32xf32, #tpu.memory_space<vmem>>, vector<1x32xf32>
    %139 = vector.broadcast %138 : vector<1x32xf32> to vector<8x32xf32>
    %140 = arith.mulf %137, %139 : vector<8x32xf32>
    %cst_48 = arith.constant dense<0.000000e+00> : vector<8xf32>
    %141 = vector.multi_reduction <add>, %140, %cst_48 [1] : vector<8x32xf32> to vector<8xf32>
    %142 = vector.shape_cast %141 : vector<8xf32> to vector<8x1xf32>
    %c0_49 = arith.constant 0 : index
    %c0_50 = arith.constant 0 : index
    %143 = memref.load %arg6[%c0_49, %c0_50] : memref<1x1xf32, #tpu.memory_space<smem>>
    %144 = vector.broadcast %143 : f32 to vector<8x1xf32>
    %145 = arith.addf %142, %144 : vector<8x1xf32>
    %c0_51 = arith.constant 0 : index
    %c0_52 = arith.constant 0 : index
    %146 = vector.load %arg7[%c0_51, %c0_52] : memref<8x1xf32, #tpu.memory_space<vmem>>, vector<8x1xf32>
    tpu.vector_store %arg7[%c0_51, %c0_52], %145 {strides = array<i32>} : memref<8x1xf32, #tpu.memory_space<vmem>>, vector<8x1xf32>,
    return
  }
  func.func @transform_0(%arg0: i32) -> (i32, i32, i32) {
    %c0_i32 = arith.constant 0 : i32
    %c0_i32_0 = arith.constant 0 : i32
    %c0_i32_1 = arith.constant 0 : i32
    return %arg0, %c0_i32, %c0_i32_0 : i32, i32, i32
  }
  func.func @transform_1(%arg0: i32) -> (i32, i32) {
    %c0_i32 = arith.constant 0 : i32
    %c0_i32_0 = arith.constant 0 : i32
    %c0_i32_1 = arith.constant 0 : i32
    return %c0_i32, %c0_i32_0 : i32, i32
  }
  func.func @transform_2(%arg0: i32) -> (i32, i32) {
    %c0_i32 = arith.constant 0 : i32
    %c0_i32_0 = arith.constant 0 : i32
    %c0_i32_1 = arith.constant 0 : i32
    return %c0_i32, %c0_i32_0 : i32, i32
  }
  func.func @transform_3(%arg0: i32) -> (i32, i32) {
    %c0_i32 = arith.constant 0 : i32
    %c0_i32_0 = arith.constant 0 : i32
    %c0_i32_1 = arith.constant 0 : i32
    return %c0_i32, %c0_i32_0 : i32, i32
  }
  func.func @transform_4(%arg0: i32) -> (i32, i32) {
    %c0_i32 = arith.constant 0 : i32
    %c0_i32_0 = arith.constant 0 : i32
    %c0_i32_1 = arith.constant 0 : i32
    return %c0_i32, %c0_i32_0 : i32, i32
  }
  func.func @transform_5(%arg0: i32) -> (i32, i32) {
    %c0_i32 = arith.constant 0 : i32
    %c0_i32_0 = arith.constant 0 : i32
    %c0_i32_1 = arith.constant 0 : i32
    return %c0_i32, %c0_i32_0 : i32, i32
  }
  func.func @transform_6(%arg0: i32) -> (i32, i32) {
    %c0_i32 = arith.constant 0 : i32
    %c0_i32_0 = arith.constant 0 : i32
    return %arg0, %c0_i32 : i32, i32
  }
}

</mosaic_0001>

<bundles_post_ra>
// kernel: tpu_custom_call.1
= control target key start
LH: loop header
LB: loop body
LE: loop exit
PB: predicated region body
PF: predicated region fallthrough
CT: control target
= control target key end

     0   :  { %s10544_s0 = inlined_call_operand.hbm [shape: bf16[16,16,32], index: 0, kind: input, shape index: {}]   ;;  %s10545_s1 = inlined_call_operand.hbm [shape: bf16[32,64], index: 1, kind: input, shape index: {}]   ;;  %s10546_s2 = inlined_call_operand.vmem [shape: f32[1,64], index: 2, kind: input, shape index: {}]   ;;  %s10547_s3 = inlined_call_operand.vmem [shape: f32[1,64], index: 3, kind: input, shape index: {}]   ;;  %s10548_s4 = inlined_call_operand.vmem [shape: f32[1,32], index: 4, kind: input, shape index: {}]   ;;  %s10549_s5 = inlined_call_operand.<no memory space> [shape: f32[1,1], index: 5, kind: input, shape index: {}]   ;;  %s10550_s6 = inlined_call_operand.vmem [shape: f32[16,1], index: 6, kind: output, shape index: {}]  }
   0x1   :  { %11 = sst [smem:[#allocation2]] %s10549_s5 }
   0x2   :  { %12 = vsyncpa [#allocation4], 0 }
   0x3   :  { %14 = vsyncpa [#allocation4 + $0x1], 0 }
   0x4   :  { %15 = vsyncpa [#allocation6], 0  ;;  %s6398_s23 = smov 0   ;;  %s6400_s24 = smov 0  }
   0x5   :  { %s6402_s25 = smov 0   ;;  %s6404_s26 = smov 0  }
   0x6 LB: > { %s6417_s5 = sadd.s32 4294967295, %s6353_s26   ;;  %p41_p0 = scmp.ne.s32.totalorder %s6345_s24, %s6341_s23  ;;  %s6353_s26 = sphi %s6404_s26, %s11881_s26   ;;  %s6349_s25 = sphi %s6402_s25, %s11880_s25   ;;  %s6345_s24 = sphi %s6400_s24, %s11879_s24   ;;  %s6341_s23 = sphi %s6398_s23, %s11878_s23  }
   0x7   : > { %p10551_p1 = scmp.eq.s32.totalorder %s6417_s5, 0  ;;  %p6088_p2 = scmp.ge.s32.totalorder %s6353_s26, 1 }
   0x8   : > { %p183_p3 = scmp.lt.s32.totalorder %s6353_s26, 3  ;;  %s6355_s29 = smov [#allocation5]  }
   0x9   : > { %p6425_p4 = por %p10551_p1, %p41_p0  ;;  %s195_s30 = sshll.u32 %s6355_s29, 4  ;;  %s196_s30 = int_to_ptr.vmem [resolvable:$true] %s195_s30 }
   0xa   : > { %p6429_p5 = pnand %p6088_p2, %p183_p3  ;;  %s6442_s8 = sadd.s32 1, %s6353_s26  }
   0xb   : > { %s10686_s27 = scalar_select %p6425_p4, 1, 0 }
   0xc   : > { %s10687_s28 = scalar_select %p6429_p5, 1, 0 }
   0xd   : > { %p6164_p6 = pneg %p6429_p5  ;;  %s28_s9 = sadd.s32 1, %s6349_s25 }
   0xe   : > { %s25_s10 = ssub.s32 %s6353_s26, %s6442_s8  ;;  %s6257_s13 = scalar_lea.hbm %s10545_s1, 256 }
   0xf   : > { %p6437_p7 = pnand %p6164_p6, %p10551_p1  ;;  %p6258_p8 = scmp.ne.s32.totalorder %s10545_s1, %s6257_s13 }
  0x10   : > { %p6264_p12 = scmp.lt.u32.totalorder %s6257_s13, %s10545_s1 }
  0x11   : > { %p6259_p9 = pneg %p6437_p7 }
  0x13   : > { %p6260_p10 = pnand %p6259_p9, %p6258_p8 }
  0x15   : > { %p6261_p11 = pneg %p6260_p10 }
  0x17   : > { %p6266_p13 = pnand %p6264_p12, %p6261_p11 }
  0x19   : > { %6269 = shalt.err (!%p6266_p13)
}
  0x1a   : > { %s6270_s18 = scalar_lea.vmem %s196_s30, 256  ;;  %p6278_p6 = scmp.lt.s32.totalorder %s196_s30, %s196_s30 }
  0x1b   : > { %p6271_p0 = scmp.ne.s32.totalorder %s196_s30, %s6270_s18  ;;  %p6279_p1 = scmp.lt.s32.totalorder %s6270_s18, %s6270_s18 }
  0x1d   : > { %p6273_p2 = pnand %p6271_p0, %p6259_p9  ;;  %p6280_p4 = por %p6279_p1, %p6278_p6 }
  0x1f   : > { %p6274_p3 = pneg %p6273_p2 }
  0x21   : > { %p6281_p5 = pnand %p6280_p4, %p6274_p3 }
  0x23   : > { %6284 = shalt.err (!%p6281_p5)
}
  0x24   : > { %s6356_s19 = smov 64   ;;  %s6357_s20 = smov 4  }
  0x25   : > { %6167 = dma.hbm_to_vmem [thread:$0]  (!%p6437_p7), %s10545_s1, 256, %s196_s30, [#allocation6], %s6356_s19, %s6356_s19, %s6357_s20  }
  0x26   : > { %p26_p1 = scmp.eq.s32.totalorder %s25_s10, 0  ;;  %p35_p4 = scmp.ne.s32.totalorder %s6349_s25, %s6345_s24 }
  0x27   : > { %p36_p5 = scmp.eq.s32.totalorder %s6353_s26, 0  ;;  %p6173_p8 = scmp.lt.s32.totalorder %s6353_s26, 2 }
  0x28   : > { %s6471_s23 = scalar_select %p26_p1, %s6349_s25, %s28_s9  }
  0x29   : > { %p37_p9 = por %p36_p5, %p35_p4  ;;  %s221_s29 = sand.u32 1, %s6349_s25  }
  0x2a   : > { %s6091_s11 = sshll.u32 %s221_s29, 6  ;;  %s6123_s12 = sshll.u32 %s6353_s26, 10 }
  0x2b   : > { %s6478_s7 = scalar_lea.hbm %s10544_s0, %s6123_s12  ;;  %s225_s30 = scalar_lea.vmem [#allocation3], %s6091_s11 }
  0x2c   : > { %s233_s10 = sshll.u32 %s225_s30, 4  ;;  %p6482_p7 = pnand %p6173_p8, %p37_p9  ;;  %s6480_s10 = int_to_ptr.vmem [resolvable:$true] %s233_s10 }
  0x2d   : > { %s6486_s26 = scalar_lea.sflag [#allocation4], %s221_s29  ;;  %s6285_s15 = scalar_lea.hbm %s6478_s7, 1024 }
  0x2e   : > { %p6286_p10 = scmp.ne.s32.totalorder %s6478_s7, %s6285_s15  ;;  %p6287_p11 = pneg %p6482_p7 }
  0x2f   : > { %s6290_s18 = scalar_lea.hbm %s10544_s0, 2048  ;;  %p6291_p0 = scmp.lt.u32.totalorder %s6478_s7, %s10544_s0 }
  0x30   : > { %p6288_p12 = pnand %p6287_p11, %p6286_p10  ;;  %p6292_p2 = scmp.lt.u32.totalorder %s6290_s18, %s6285_s15 }
  0x31   : > { %p6294_p6 = scmp.lt.u32.totalorder %s6285_s15, %s6478_s7 }
  0x32   : > { %p6289_p13 = pneg %p6288_p12  ;;  %p6293_p3 = por %p6292_p2, %p6291_p0 }
  0x34   : > { %p6295_p1 = por %p6294_p6, %p6293_p3 }
  0x36   : > { %p6296_p4 = pnand %p6295_p1, %p6289_p13 }
  0x38   : > { %6299 = shalt.err (!%p6296_p4)
}
  0x39   : > { %s6300_s29 = scalar_lea.vmem %s6480_s10, 1024  ;;  %s6358_s11 = smov [#allocation3]  }
  0x3a   : > { %p6301_p5 = scmp.ne.s32.totalorder %s6480_s10, %s6300_s29  ;;  %s6305_s12 = sshll.u32 %s6358_s11, 4  ;;  %s6306_s12 = int_to_ptr.vmem [resolvable:$false] %s6305_s12 }
  0x3b   : > { %s6307_s13 = scalar_lea.vmem %s6306_s12, 2048  ;;  %p6308_p10 = scmp.lt.s32.totalorder %s6480_s10, %s6306_s12 }
  0x3c   : > { %p6303_p8 = pnand %p6301_p5, %p6287_p11  ;;  %p6309_p12 = scmp.lt.s32.totalorder %s6307_s13, %s6300_s29 }
  0x3e   : > { %p6304_p9 = pneg %p6303_p8  ;;  %p6310_p0 = por %p6309_p12, %p6308_p10 }
  0x40   : > { %p6311_p2 = pnand %p6310_p0, %p6304_p9 }
  0x42   : > { %6314 = shalt.err (!%p6311_p2)
}
  0x43   : > { %6171 = dma.hbm_to_vmem [thread:$0]  (!%p6482_p7), %s6478_s7, 1024, %s6480_s10, %s6486_s26, %s6356_s19, %s6356_s19, %s6357_s20  }
  0x44   : > { %p10690_p11 = scmp.ne.s32.totalorder %s10687_s28, 0 }
  0x46   : > { %245 = sbr.rel (%p10690_p11) target bundleno = 1854 (0x73e), region = 44 }
  0x4d   : > { %s247_s14 = sand.u32 1, %s6345_s24   ;;  %p10691_p13 = scmp.ne.s32.totalorder %s10686_s27, 0 }
  0x4e   : > { %s6096_s30 = sshll.u32 %s247_s14, 6  ;;  %s248_s15 = scalar_lea.sflag [#allocation4], %s247_s14 }
  0x4f   : > { %s6520_s16 = scalar_lea.vmem [#allocation3], %s6096_s30 }
  0x50   : > { %6332 = dma.done.wait (%p10691_p13), %s248_s15, 1024  }
  0x51   : > { %6334 = vsyncadd (%p10691_p13), %s248_s15, 4294966272  ;;  %p10692_p3 = scmp.eq.s32.totalorder %s6417_s5, 0 }
  0x53   : > { %6336 = dma.done.wait (%p10692_p3), [#allocation6], 256   ;;  %p10693_p7 = pmov %p10692_p3 }
  0x54   : > { %v10554_v0 = vlaneseq  ;;  %v6213_v2 = vld [vmem:[#allocation5] sm:$0xff]   ;;  %v6214_v6 = vld [vmem:[#allocation5 + $0x8] sm:$0xff]   ;;  %vm368_vm0 = vcmask 261120   ;;  %v6219_v12 = vld [vmem:[%s6520_s16 + $0x10] sm:$0xff]   ;;  %vm529_vm1 = vcmask 523264   ;;  %vm605_vm2 = vcmask 130112  }
  0x55   : > { %6338 = vsyncadd (%p10693_p7), [#allocation6], 4294967040  ;;  %v6537_v4 = vld [vmem:[%s6520_s16] sm:$0x1]  ;;  %6134 = vmatprep.subr.bf16.mxu0 %v6213_v2  ;;  %6154 = vmatprep.subr.bf16.mxu1 %v6213_v2  ;;  %v6217_v10 = vld [vmem:[%s6520_s16 + $0x8] sm:$0xff]   ;;  %vm670_vm3 = vcmask 1041409  }
  0x56   : > { %v6531_v1 = vshrl.u32 %v10554_v0, 7  ;;  %v991_v5 = vunpack.c.l.bf16 %v6537_v4  ;;  %6135 = vmatpush3.bf16.msra.mxu0 %v6213_v2  ;;  %6156 = vmatpush3.bf16.msra.mxu1 %v6213_v2  ;;  %v6215_v7 = vld [vmem:[%s6520_s16] sm:$0xff]   ;;  %v6218_v11 = vld [vmem:[%s6520_s16 + $0x28] sm:$0xff]   ;;  %v985_v13 = vld [vmem:[%s6520_s16 + $0x10] sm:$0x1]  ;;  %vm672_vm4 = vcmask 1042434  }
  0x57   : > { %6136 = vmatprep.subr.bf16.mxu0 %v6214_v6  ;;  %6155 = vmatprep.subr.bf16.mxu1 %v6214_v6  ;;  %v6216_v9 = vld [vmem:[%s6520_s16 + $0x20] sm:$0xff]   ;;  %v993_v14 = vunpack.c.l.bf16 %v985_v13  ;;  %v6221_v15 = vld [vmem:[%s6520_s16 + $0x30] sm:$0xff]   ;;  %v984_v16 = vld [vmem:[%s6520_s16 + $0x8] sm:$0x1]  ;;  %vm674_vm5 = vcmask 1043459   ;;  %vm676_vm6 = vcmask 1044484  }
  0x58   : > { %10694 = vst [vmem:[#allocation9_spill] sm:$0xff] %v6531_v1  ;;  %v6534_v3 = vsub.s32 0, %v6531_v1  ;;  %6138 = vmatprep.mubr.msk.bf16.mxu0 %vm368_vm0, %v6215_v7  ;;  %6146 = vmatprep.mubr.msk.bf16.mxu1 %vm368_vm0, %v6216_v9  ;;  %v986_v18 = vld [vmem:[%s6520_s16 + $0x18] sm:$0x1]  ;;  %v987_v19 = vld [vmem:[%s6520_s16 + $0x20] sm:$0x1]  ;;  %v992_v22 = vunpack.c.l.bf16 %v984_v16 }
  0x59   : > { %v994_v20 = vunpack.c.l.bf16 %v986_v18  ;;  %v995_v21 = vunpack.c.l.bf16 %v987_v19  ;;  %v6220_v23 = vld [vmem:[%s6520_s16 + $0x18] sm:$0xff]   ;;  %v988_v28 = vld [vmem:[%s6520_s16 + $0x28] sm:$0x1]  ;;  %v989_v31 = vld [vmem:[%s6520_s16 + $0x30] sm:$0x1]  ;;  %v6574_v37 = vsub.s32 1, %v6531_v1 }
  0x5a   : > { %v1042_v8 = vrot.slane %v991_v5, %v6534_v3  ;;  %6137 = vmatpush3.bf16.msra.mxu0 %v6214_v6  ;;  %6157 = vmatpush3.bf16.msra.mxu1 %v6214_v6  ;;  %v1080_v17 = vrot.slane %v993_v14, %v6534_v3  ;;  %v6222_v25 = vld [vmem:[%s6520_s16 + $0x38] sm:$0xff]   ;;  %v1061_v27 = vrot.slane %v992_v22, %v6534_v3  ;;  %v996_v29 = vunpack.c.l.bf16 %v988_v28  ;;  %v6587_v46 = vld [vmem:[%s6520_s16] sm:$0x2]  ;;  %v6599_v50 = vld [vmem:[%s6520_s16 + $0x8] sm:$0x2]  ;;  %p284_p6 = scmp.lt.s32.totalorder %s6417_s5, 1 }
  0x5b   : > { %v1099_v24 = vrot.slane %v994_v20, %v6534_v3  ;;  %v1118_v26 = vrot.slane %v995_v21, %v6534_v3  ;;  %v997_v32 = vunpack.c.l.bf16 %v989_v31  ;;  %v990_v34 = vld [vmem:[%s6520_s16 + $0x38] sm:$0x1]  ;;  %10695 = vst [vmem:[#allocation10_spill] sm:$0xff] %v6574_v37  ;;  %v1322_v38 = vrot.slane %v991_v5, %v6574_v37  ;;  %v6612_v54 = vld [vmem:[%s6520_s16 + $0x10] sm:$0x2]  ;;  %s6007_s9 = sld [smem:[#allocation2]] }
  0x5c   : > { %1044 = vbcast.lane.b32.xlu1 %v1042_v8, 256  ;;  %1082 = vbcast.lane.b32.xlu0 %v1080_v17, 256  ;;  %v1137_v30 = vrot.slane %v996_v29, %v6534_v3  ;;  %v998_v35 = vunpack.c.l.bf16 %v990_v34  ;;  %v1341_v39 = vrot.slane %v992_v22, %v6574_v37  ;;  %v1360_v40 = vrot.slane %v993_v14, %v6574_v37  ;;  %v6629_v60 = vld [vmem:[%s6520_s16 + $0x18] sm:$0x2]  ;;  %v6646_v6 = vld [vmem:[%s6520_s16 + $0x20] sm:$0x2] }
  0x5d   : > { %6139 = vmatmul.mubr.msk.bf16.vlgmr.msra.gmra.mrb[0].mxu0 %vm368_vm0, %v6217_v10  ;;  %6147 = vmatmul.mubr.msk.bf16.vlgmr.msra.gmra.mrb[0].mxu1 %vm368_vm0, %v6218_v11  ;;  %v1156_v33 = vrot.slane %v997_v32, %v6534_v3  ;;  %v1379_v41 = vrot.slane %v994_v20, %v6574_v37  ;;  %v1398_v42 = vrot.slane %v995_v21, %v6574_v37  ;;  %v6590_v47 = vsub.s32 2, %v6531_v1  ;;  %v6661_v13 = vld [vmem:[%s6520_s16 + $0x28] sm:$0x2]  ;;  %v6676_v20 = vld [vmem:[%s6520_s16 + $0x30] sm:$0x2]  ;;  %s11883_s5 = smov (!%p284_p6, %s6417_s5), 1 }
  0x5e   : > { %6142 = vmatprep.mubr.msk.bf16.mxu0 %vm368_vm0, %v6219_v12  ;;  %6150 = vmatprep.mubr.msk.bf16.mxu1 %vm368_vm0, %v6221_v15  ;;  %v1175_v36 = vrot.slane %v998_v35, %v6534_v3  ;;  %v1417_v43 = vrot.slane %v996_v29, %v6574_v37  ;;  %v1436_v44 = vrot.slane %v997_v32, %v6574_v37  ;;  %v1575_v48 = vunpack.c.l.bf16 %v6587_v46  ;;  %s6098_s26 = sshll.u32 %s11883_s5, 3 }
  0x5f   : > { %v1455_v45 = vrot.slane %v998_v35, %v6574_v37  ;;  %10696 = vst [vmem:[#allocation11_spill] sm:$0xff] %v6590_v47  ;;  %v10561_v51 = vunpack.c.l.bf16 %v6599_v50  ;;  %v10560_v56 = vunpack.c.l.bf16 %v6612_v54  ;;  %v10559_v63 = vunpack.c.l.bf16 %v6629_v60  ;;  %s287_s21 = scalar_lea.vmem %s10550_s6, %s6098_s26 }
  0x60   : > { %1048 = vbcast.lane.b32.xlu1 %v1042_v8, 264  ;;  %1109 = vbcast.lane.b32.xlu0 %v1099_v24, 272  ;;  %v6596_v49 = vrot.slane %v1575_v48, %v6590_v47  ;;  %v10558_v9 = vunpack.c.l.bf16 %v6646_v6  ;;  %v10557_v16 = vunpack.c.l.bf16 %v6661_v13  ;;  %vm678_vm7 = vcmask 1045509  }
  0x61   : > { %v6609_v53 = vrot.slane %v10561_v51, %v6590_v47  ;;  %v6626_v59 = vrot.slane %v10560_v56, %v6590_v47  ;;  %v1683_v5 = vrot.slane %v10559_v63, %v6590_v47  ;;  %vm680_vm8 = vcmask 1046534  }
  0x62   : > { %v1702_v12 = vrot.slane %v10558_v9, %v6590_v47  ;;  %v1721_v19 = vrot.slane %v10557_v16, %v6590_v47  ;;  %vm682_vm9 = vcmask 1047559   ;;  %vm685_vm10 = vcmask 130048  }
  0x63   : > { %vm5854_vm11 = vcmask 195712   ;;  %vm5861_vm12 = vcmask 261312   ;;  %vm6010_vm13 = vcmask 7168  }
  0x64   : > { %1052 = vbcast.lane.b32.xlu1 %v1042_v8, 272  ;;  %1120 = vbcast.lane.b32.xlu0 %v1118_v26, 256 }
  0x65   : > { %6143 = vmatmul.mubr.msk.bf16.gmra.mrb[4].mxu0 %vm368_vm0, %v6220_v23  ;;  %6151 = vmatmul.mubr.msk.bf16.gmra.mrb[4].mxu1 %vm368_vm0, %v6222_v25  ;;  %v10556_v23 = vunpack.c.l.bf16 %v6676_v20 }
  0x68   : > { %1056 = vbcast.lane.b32.xlu1 %v1042_v8, 280  ;;  %1128 = vbcast.lane.b32.xlu0 %v1118_v26, 272 }
  0x6c   : > { %1063 = vbcast.lane.b32.xlu1 %v1061_v27, 256  ;;  %1139 = vbcast.lane.b32.xlu0 %v1137_v30, 256 }
  0x70   : > { %1067 = vbcast.lane.b32.xlu1 %v1061_v27, 264  ;;  %1147 = vbcast.lane.b32.xlu0 %v1137_v30, 272 }
  0x74   : > { %1071 = vbcast.lane.b32.xlu1 %v1061_v27, 272  ;;  %1158 = vbcast.lane.b32.xlu0 %v1156_v33, 256 }
  0x78   : > { %1075 = vbcast.lane.b32.xlu1 %v1061_v27, 280  ;;  %1166 = vbcast.lane.b32.xlu0 %v1156_v33, 272  ;;  %v6693_v27 = vld [vmem:[%s6520_s16 + $0x38] sm:$0x2] }
  0x7c   : > { %1086 = vbcast.lane.b32.xlu1 %v1080_v17, 264  ;;  %1177 = vbcast.lane.b32.xlu0 %v1175_v36, 256 }
  0x80   : > { %1090 = vbcast.lane.b32.xlu1 %v1080_v17, 272  ;;  %1185 = vbcast.lane.b32.xlu0 %v1175_v36, 272 }
  0x84   : > { %1094 = vbcast.lane.b32.xlu1 %v1080_v17, 280  ;;  %1324 = vbcast.lane.b32.xlu0 %v1322_v38, 256 }
  0x88   : > { %1101 = vbcast.lane.b32.xlu1 %v1099_v24, 256  ;;  %1332 = vbcast.lane.b32.xlu0 %v1322_v38, 272 }
  0x8c   : > { %1105 = vbcast.lane.b32.xlu1 %v1099_v24, 264  ;;  %1343 = vbcast.lane.b32.xlu0 %v1341_v39, 256 }
  0x90   : > { %1113 = vbcast.lane.b32.xlu1 %v1099_v24, 280  ;;  %1351 = vbcast.lane.b32.xlu0 %v1341_v39, 272 }
  0x94   : > { %1124 = vbcast.lane.b32.xlu1 %v1118_v26, 264  ;;  %1362 = vbcast.lane.b32.xlu0 %v1360_v40, 256 }
  0x98   : > { %1132 = vbcast.lane.b32.xlu1 %v1118_v26, 280  ;;  %1370 = vbcast.lane.b32.xlu0 %v1360_v40, 272  ;;  %v1740_v26 = vrot.slane %v10556_v23, %v6590_v47 }
  0x9c   : > { %1143 = vbcast.lane.b32.xlu1 %v1137_v30, 264  ;;  %1381 = vbcast.lane.b32.xlu0 %v1379_v41, 256 }
  0xa0   : > { %1151 = vbcast.lane.b32.xlu1 %v1137_v30, 280  ;;  %1389 = vbcast.lane.b32.xlu0 %v1379_v41, 272  ;;  %v10555_v30 = vunpack.c.l.bf16 %v6693_v27 }
  0xa4   : > { %1162 = vbcast.lane.b32.xlu1 %v1156_v33, 264  ;;  %1400 = vbcast.lane.b32.xlu0 %v1398_v42, 256 }
  0xa8   : > { %1170 = vbcast.lane.b32.xlu1 %v1156_v33, 280  ;;  %1408 = vbcast.lane.b32.xlu0 %v1398_v42, 272  ;;  %v1759_v33 = vrot.slane %v10555_v30, %v6590_v47 }
  0xac   : > { %1181 = vbcast.lane.b32.xlu1 %v1175_v36, 264  ;;  %1419 = vbcast.lane.b32.xlu0 %v1417_v43, 256 }
  0xb0   : > { %1189 = vbcast.lane.b32.xlu1 %v1175_v36, 280  ;;  %1427 = vbcast.lane.b32.xlu0 %v1417_v43, 272  ;;  %v6714_v36 = vsub.s32 3, %v6531_v1 }
  0xb2   : > { %10719 = vst [vmem:[#allocation34_spill] sm:$0xff] %v6714_v36 }
  0xb4   : > { %1328 = vbcast.lane.b32.xlu1 %v1322_v38, 264  ;;  %1438 = vbcast.lane.b32.xlu0 %v1436_v44, 256 }
  0xb8   : > { %1336 = vbcast.lane.b32.xlu1 %v1322_v38, 280  ;;  %1446 = vbcast.lane.b32.xlu0 %v1436_v44, 272 }
  0xbc   : > { %1347 = vbcast.lane.b32.xlu1 %v1341_v39, 264  ;;  %1457 = vbcast.lane.b32.xlu0 %v1455_v45, 256 }
  0xc0   : > { %1355 = vbcast.lane.b32.xlu1 %v1341_v39, 280  ;;  %1465 = vbcast.lane.b32.xlu0 %v1455_v45, 272  ;;  %v6722_v39 = vrot.slane %v1575_v48, %v6714_v36 }
  0xc4   : > { %1366 = vbcast.lane.b32.xlu1 %v1360_v40, 264  ;;  %1628 = vbcast.lane.b32.xlu0 %v6596_v49, 256 }
  0xc8   : > { %1374 = vbcast.lane.b32.xlu1 %v1360_v40, 280  ;;  %1636 = vbcast.lane.b32.xlu0 %v6596_v49, 272 }
  0xcc   : > { %1385 = vbcast.lane.b32.xlu1 %v1379_v41, 264  ;;  %1647 = vbcast.lane.b32.xlu0 %v6609_v53, 256 }
  0xce   : > { %v6603_v52 = vpop.permute.xlu1 %1044  ;;  %v6618_v57 = vpop.permute.xlu0 %1082 }
  0xcf   : > { %10697 = vst [vmem:[#allocation12_spill] sm:$0xff] %v6603_v52  ;;  %10699 = vst [vmem:[#allocation14_spill] sm:$0xff] %v6618_v57  ;;  %v7308_v57 = vld [vmem:[%s6520_s16 + $0x38] sm:$0x8] }
  0xd0   : > { %1393 = vbcast.lane.b32.xlu1 %v1379_v41, 280  ;;  %1655 = vbcast.lane.b32.xlu0 %v6609_v53, 272 }
  0xd2   : > { %v6614_v55 = vpop.permute.xlu1 %1048  ;;  %v6631_v61 = vpop.permute.xlu0 %1109 }
  0xd3   : > { %10698 = vst [vmem:[#allocation13_spill] sm:$0xff] %v6614_v55  ;;  %10701 = vst [vmem:[#allocation16_spill] sm:$0xff] %v6631_v61 }
  0xd4   : > { %1404 = vbcast.lane.b32.xlu1 %v1398_v42, 264  ;;  %1666 = vbcast.lane.b32.xlu0 %v6626_v59, 256 }
  0xd6   : > { %v6620_v58 = vpop.permute.xlu1 %1052  ;;  %v6637_v2 = vpop.permute.xlu0 %1120 }
  0xd7   : > { %10700 = vst [vmem:[#allocation15_spill] sm:$0xff] %v6620_v58  ;;  %10703 = vst [vmem:[#allocation18_spill] sm:$0xff] %v6637_v2  ;;  %v7011_v2 = vld [vmem:[%s6520_s16 + $0x38] sm:$0x4] }
  0xd8   : > { %1412 = vbcast.lane.b32.xlu1 %v1398_v42, 280  ;;  %1674 = vbcast.lane.b32.xlu0 %v6626_v59, 272 }
  0xda   : > { %v6633_v62 = vpop.permute.xlu1 %1056  ;;  %v6648_v7 = vpop.permute.xlu0 %1128 }
  0xdb   : > { %10702 = vst [vmem:[#allocation17_spill] sm:$0xff] %v6633_v62  ;;  %10704 = vst [vmem:[#allocation19_spill] sm:$0xff] %v6648_v7 }
  0xdc   : > { %1423 = vbcast.lane.b32.xlu1 %v1417_v43, 264  ;;  %1685 = vbcast.lane.b32.xlu0 %v1683_v5, 256 }
  0xde   : > { %v6639_v4 = vpop.permute.xlu1 %1063  ;;  %v6653_v10 = vpop.permute.xlu0 %1139 }
  0xdf   : > { %10706 = vst [vmem:[#allocation21_spill] sm:$0xff] %v6653_v10 }
  0xe0   : > { %1431 = vbcast.lane.b32.xlu1 %v1417_v43, 280  ;;  %1693 = vbcast.lane.b32.xlu0 %v1683_v5, 272 }
  0xe2   : > { %v6650_v8 = vpop.permute.xlu1 %1067  ;;  %v6663_v14 = vpop.permute.xlu0 %1147 }
  0xe3   : > { %10705 = vst [vmem:[#allocation20_spill] sm:$0xff] %v6650_v8  ;;  %10707 = vst [vmem:[#allocation22_spill] sm:$0xff] %v6663_v14 }
  0xe4   : > { %1442 = vbcast.lane.b32.xlu1 %v1436_v44, 264  ;;  %1704 = vbcast.lane.b32.xlu0 %v1702_v12, 256 }
  0xe6   : > { %v6655_v11 = vpop.permute.xlu1 %1071  ;;  %v6668_v17 = vpop.permute.xlu0 %1158 }
  0xe7   : > { %10709 = vst [vmem:[#allocation24_spill] sm:$0xff] %v6668_v17 }
  0xe8   : > { %1450 = vbcast.lane.b32.xlu1 %v1436_v44, 280  ;;  %1712 = vbcast.lane.b32.xlu0 %v1702_v12, 272 }
  0xea   : > { %v6665_v15 = vpop.permute.xlu1 %1075  ;;  %v6678_v21 = vpop.permute.xlu0 %1166 }
  0xeb   : > { %10708 = vst [vmem:[#allocation23_spill] sm:$0xff] %v6665_v15  ;;  %10710 = vst [vmem:[#allocation25_spill] sm:$0xff] %v6678_v21 }
  0xec   : > { %1461 = vbcast.lane.b32.xlu1 %v1455_v45, 264  ;;  %1723 = vbcast.lane.b32.xlu0 %v1721_v19, 256 }
  0xee   : > { %v6670_v18 = vpop.permute.xlu1 %1086  ;;  %v6684_v24 = vpop.permute.xlu0 %1177 }
  0xef   : > { %10712 = vst [vmem:[#allocation27_spill] sm:$0xff] %v6684_v24 }
  0xf0   : > { %1469 = vbcast.lane.b32.xlu1 %v1455_v45, 280  ;;  %1731 = vbcast.lane.b32.xlu0 %v1721_v19, 272 }
  0xf2   : > { %v6680_v22 = vpop.permute.xlu1 %1090  ;;  %v6695_v28 = vpop.permute.xlu0 %1185 }
  0xf3   : > { %10711 = vst [vmem:[#allocation26_spill] sm:$0xff] %v6680_v22  ;;  %10713 = vst [vmem:[#allocation28_spill] sm:$0xff] %v6695_v28 }
  0xf4   : > { %1632 = vbcast.lane.b32.xlu1 %v6596_v49, 264  ;;  %1742 = vbcast.lane.b32.xlu0 %v1740_v26, 256 }
  0xf6   : > { %v6686_v25 = vpop.permute.xlu1 %1094  ;;  %v6701_v31 = vpop.permute.xlu0 %1324 }
  0xf7   : > { %10715 = vst [vmem:[#allocation30_spill] sm:$0xff] %v6701_v31  ;;  %v6776_v31 = vld [vmem:[%s10547_s3] ss:$0 sm:$0xff] }
  0xf8   : > { %1640 = vbcast.lane.b32.xlu1 %v6596_v49, 280  ;;  %1750 = vbcast.lane.b32.xlu0 %v1740_v26, 272 }
  0xfa   : > { %v6697_v29 = vpop.permute.xlu1 %1101  ;;  %v6709_v34 = vpop.permute.xlu0 %1332 }
  0xfb   : > { %10714 = vst [vmem:[#allocation29_spill] sm:$0xff] %v6697_v29  ;;  %10717 = vst [vmem:[#allocation32_spill] sm:$0xff] %v6709_v34 }
  0xfc   : > { %1651 = vbcast.lane.b32.xlu1 %v6609_v53, 264  ;;  %1761 = vbcast.lane.b32.xlu0 %v1759_v33, 256 }
  0xfe   : > { %v6703_v32 = vpop.permute.xlu1 %1105  ;;  %v6725_v40 = vpop.permute.xlu0 %1343 }
  0xff   : > { %10716 = vst [vmem:[#allocation31_spill] sm:$0xff] %v6703_v32 }
 0x100   : > { %1659 = vbcast.lane.b32.xlu1 %v6609_v53, 280  ;;  %1769 = vbcast.lane.b32.xlu0 %v1759_v33, 272 }
 0x102   : > { %v6711_v35 = vpop.permute.xlu1 %1113  ;;  %v6730_v42 = vpop.permute.xlu0 %1351 }
 0x103   : > { %10718 = vst [vmem:[#allocation33_spill] sm:$0xff] %v6711_v35 }
 0x104   : > { %1670 = vbcast.lane.b32.xlu1 %v6626_v59, 264  ;;  %1908 = vbcast.lane.b32.xlu0 %v6722_v39, 256 }
 0x106   : > { %v6717_v38 = vpop.permute.xlu1 %1124  ;;  %v6737_v45 = vpop.permute.xlu0 %1362 }
 0x107   : > { %10720 = vst [vmem:[#allocation35_spill] sm:$0xff] %v6717_v38  ;;  %10724 = vst [vmem:[#allocation39_spill] sm:$0xff] %v6737_v45 }
 0x108   : > { %1678 = vbcast.lane.b32.xlu1 %v6626_v59, 280  ;;  %1916 = vbcast.lane.b32.xlu0 %v6722_v39, 272 }
 0x10a   : > { %v6727_v41 = vpop.permute.xlu1 %1132  ;;  %v6741_v48 = vpop.permute.xlu0 %1370 }
 0x10b   : > { %10721 = vst [vmem:[#allocation36_spill] sm:$0xff] %v6727_v41  ;;  %10726 = vst [vmem:[#allocation41_spill] sm:$0xff] %v6741_v48 }
 0x10c   : > { %1689 = vbcast.lane.b32.xlu1 %v1683_v5, 264 }
 0x10e   : > { %v6732_v43 = vpop.permute.xlu1 %1143  ;;  %v6747_v59 = vpop.permute.xlu0 %1381 }
 0x10f   : > { %10722 = vst [vmem:[#allocation37_spill] sm:$0xff] %v6732_v43  ;;  %10729 = vst [vmem:[#allocation44_spill] sm:$0xff] %v6747_v59 }
 0x110   : > { %1697 = vbcast.lane.b32.xlu1 %v1683_v5, 280 }
 0x112   : > { %v6735_v44 = vpop.permute.xlu1 %1151  ;;  %v6751_v5 = vpop.permute.xlu0 %1389 }
 0x113   : > { %10723 = vst [vmem:[#allocation38_spill] sm:$0xff] %v6735_v44  ;;  %10731 = vst [vmem:[#allocation46_spill] sm:$0xff] %v6751_v5 }
 0x114   : > { %1708 = vbcast.lane.b32.xlu1 %v1702_v12, 264 }
 0x116   : > { %v6739_v46 = vpop.permute.xlu1 %1162 }
 0x117   : > { %10725 = vst [vmem:[#allocation40_spill] sm:$0xff] %v6739_v46 }
 0x118   : > { %1716 = vbcast.lane.b32.xlu1 %v1702_v12, 280  ;;  %v6757_v12 = vpop.permute.xlu0 %1400 }
 0x119   : > { %10734 = vst [vmem:[#allocation49_spill] sm:$0xff] %v6757_v12 }
 0x11a   : > { %v6743_v49 = vpop.permute.xlu1 %1170 }
 0x11b   : > { %10727 = vst [vmem:[#allocation42_spill] sm:$0xff] %v6743_v49 }
 0x11c   : > { %1727 = vbcast.lane.b32.xlu1 %v1721_v19, 264  ;;  %v6761_v9 = vpop.permute.xlu0 %1408 }
 0x11d   : > { %10736 = vst [vmem:[#allocation51_spill] sm:$0xff] %v6761_v9 }
 0x11e   : > { %v6745_v53 = vpop.permute.xlu1 %1181 }
 0x11f   : > { %10728 = vst [vmem:[#allocation43_spill] sm:$0xff] %v6745_v53 }
 0x120   : > { %1735 = vbcast.lane.b32.xlu1 %v1721_v19, 280  ;;  %v6766_v19 = vld [vmem:[%s10546_s2] ss:$0 sm:$0xff]  ;;  %v6783_v24 = vpop.permute.xlu0 %1419 }
 0x121   : > { %10738 = vst [vmem:[#allocation53_spill] sm:$0xff] %v6783_v24 }
 0x122   : > { %v6749_v0 = vpop.permute.xlu1 %1189 }
 0x123   : > { %10730 = vst [vmem:[#allocation45_spill] sm:$0xff] %v6749_v0 }
 0x124   : > { %1746 = vbcast.lane.b32.xlu1 %v1740_v26, 264 }
 0x126   : > { %v6753_v30 = vpop.permute.xlu1 %1328 }
 0x127   : > { %10732 = vst [vmem:[#allocation47_spill] sm:$0xff] %v6753_v30 }
 0x128   : > { %1754 = vbcast.lane.b32.xlu1 %v1740_v26, 280 }
 0x12a   : > { %v6755_v23 = vpop.permute.xlu1 %1336 }
 0x12b   : > { %10733 = vst [vmem:[#allocation48_spill] sm:$0xff] %v6755_v23 }
 0x12c   : > { %1765 = vbcast.lane.b32.xlu1 %v1759_v33, 264 }
 0x12e   : > { %v6759_v16 = vpop.permute.xlu1 %1347 }
 0x12f   : > { %10735 = vst [vmem:[#allocation50_spill] sm:$0xff] %v6759_v16 }
 0x130   : > { %1773 = vbcast.lane.b32.xlu1 %v1759_v33, 280  ;;  %v6140_v63 = vpop.f32.mrb[0].mxu0  ;;  %v6148_v26 = vpop.f32.mrb[0].mxu1 }
 0x131   : > { %v427_v51 = vpop.f32.mrb[1].mxu0  ;;  %v468_v34 = vadd.f32 %v6148_v26, %v6766_v19  ;;  %v459_v15 = vpop.f32.mrb[1].mxu1 }
 0x132   : > { %v6768_v56 = vpop.permute.xlu1 %1355  ;;  %v428_v58 = vadd.f32 %v6766_v19, %v427_v51  ;;  %v6141_v33 = vpop.f32.mrb[2].mxu0 }
 0x133   : > { %10737 = vst [vmem:[#allocation52_spill] sm:$0xff] %v6768_v56  ;;  %v6149_v52 = vpop.f32.mrb[2].mxu1  ;;  %v430_v16 = vpop.f32.mrb[3].mxu0  ;;  %v500_v8 = vmax.f32 %v468_v34, 0.0  ;;  %v460_v56 = vadd.f32 %v6766_v19, %v459_v15 }
 0x134   : > { %1912 = vbcast.lane.b32.xlu1 %v6722_v39, 264  ;;  %v490_v28 = vmax.f32 %v428_v58, 0.0  ;;  %v462_v23 = vpop.f32.mrb[3].mxu1  ;;  %v431_v55 = vadd.f32 %v6766_v19, %v430_v16  ;;  %v6796_v16 = vpop.permute.xlu0 %1427 }
 0x135   : > { %v523_v62 = vmul.f32 %v6776_v31, %v500_v8  ;;  %v498_v30 = vmax.f32 %v460_v56, 0.0  ;;  %10739 = vst [vmem:[#allocation54_spill] sm:$0xff] %v6796_v16 }
 0x136   : > { %v513_v26 = vmul.f32 %v6776_v31, %v490_v28  ;;  %v6781_v51 = vpop.permute.xlu1 %1366  ;;  %v491_v49 = vmax.f32 %v431_v55, 0.0 }
 0x137   : > { %v560_v21 = vsel %vm529_vm1, %v523_v62, 0.0  ;;  %v521_v56 = vmul.f32 %v6776_v31, %v498_v30 }
 0x138   : > { %v6144_v0 = vpop.f32.mrb[4].mxu0  ;;  %561 = vadd.xlane.f32.xlu0 %v560_v21  ;;  %v6152_v34 = vpop.f32.mrb[4].mxu1  ;;  %v530_v15 = vsel %vm529_vm1, %v513_v26, 0.0  ;;  %v514_v10 = vmul.f32 %v6776_v31, %v491_v49 }
 0x139   : > { %v443_v58 = vpop.f32.mrb[5].mxu0  ;;  %v452_v17 = vadd.f32 %v6144_v0, %v6766_v19  ;;  %v475_v53 = vpop.f32.mrb[5].mxu1  ;;  %v484_v26 = vadd.f32 %v6152_v34, %v6766_v19  ;;  %v554_v0 = vsel %vm529_vm1, %v521_v56, 0.0  ;;  %v436_v56 = vadd.f32 %v6140_v63, %v6766_v19 }
 0x13a   : > { %v6145_v8 = vpop.f32.mrb[6].mxu0  ;;  %v6153_v14 = vpop.f32.mrb[6].mxu1  ;;  %v533_v7 = vsel %vm529_vm1, %v514_v10, 0.0  ;;  %v439_v10 = vadd.f32 %v6141_v33, %v6766_v19  ;;  %v471_v63 = vadd.f32 %v6149_v52, %v6766_v19  ;;  %v463_v33 = vadd.f32 %v6766_v19, %v462_v23 }
 0x13b   : > { %v6789_v28 = vpop.f32.mrb[7].mxu0  ;;  %v6792_v24 = vpop.f32.mrb[7].mxu1  ;;  %v496_v21 = vmax.f32 %v452_v17, 0.0  ;;  %v504_v46 = vmax.f32 %v484_v26, 0.0  ;;  %v476_v26 = vadd.f32 %v6766_v19, %v475_v53 }
 0x13c   : > { %531 = vadd.xlane.f32.xlu0 %v530_v15  ;;  %v6794_v62 = vpop.permute.xlu1 %1374  ;;  %v6804_v30 = vpop.permute.xlu0 %1438  ;;  %v444_v15 = vadd.f32 %v6766_v19, %v443_v58  ;;  %v492_v58 = vmax.f32 %v436_v56, 0.0 }
 0x13d   : > { %v519_v55 = vmul.f32 %v6776_v31, %v496_v21  ;;  %10741 = vst [vmem:[#allocation56_spill] sm:$0xff] %v6804_v30  ;;  %v527_v17 = vmul.f32 %v6776_v31, %v504_v46  ;;  %v502_v46 = vmax.f32 %v476_v26, 0.0 }
 0x13e   : > { %v494_v49 = vmax.f32 %v444_v15, 0.0  ;;  %v515_v53 = vmul.f32 %v6776_v31, %v492_v58  ;;  %v493_v15 = vmax.f32 %v439_v10, 0.0 }
 0x13f   : > { %v548_v34 = vsel %vm529_vm1, %v519_v55, 0.0  ;;  %v572_v30 = vsel %vm529_vm1, %v527_v17, 0.0 }
 0x140   : > { %555 = vadd.xlane.f32.xlu0 %v554_v0  ;;  %v6802_v9 = vpop.permute.xlu1 %1385  ;;  %v6814_v21 = vpop.permute.xlu0 %1446  ;;  %v516_v56 = vmul.f32 %v6776_v31, %v493_v15 }
 0x141   : > { %10740 = vst [vmem:[#allocation55_spill] sm:$0xff] %v6802_v9  ;;  %10743 = vst [vmem:[#allocation58_spill] sm:$0xff] %v6814_v21 }
 0x142   : > { %v539_v23 = vsel %vm529_vm1, %v516_v56, 0.0 }
 0x144   : > { %534 = vadd.xlane.f32.xlu0 %v533_v7  ;;  %v6812_v0 = vpop.permute.xlu1 %1393  ;;  %v517_v7 = vmul.f32 %v6776_v31, %v494_v49  ;;  %v6823_v16 = vpop.permute.xlu0 %1457  ;;  %v501_v49 = vmax.f32 %v471_v63, 0.0 }
 0x145   : > { %10742 = vst [vmem:[#allocation57_spill] sm:$0xff] %v6812_v0  ;;  %10745 = vst [vmem:[#allocation60_spill] sm:$0xff] %v6823_v16 }
 0x146   : > { %v542_v17 = vsel %vm529_vm1, %v517_v7, 0.0  ;;  %v524_v10 = vmul.f32 %v6776_v31, %v501_v49  ;;  %v455_v7 = vadd.f32 %v6145_v8, %v6766_v19  ;;  %v447_v8 = vadd.f32 %v6766_v19, %v6789_v28 }
 0x147   : > { %v10753_v28 = vunpack.c.l.bf16 %v6599_v50  ;;  %v10756_v50 = vunpack.c.l.bf16 %v6612_v54 }
 0x148   : > { %549 = vadd.xlane.f32.xlu0 %v548_v34  ;;  %v6819_v55 = vpop.permute.xlu1 %1404  ;;  %v525_v34 = vmul.f32 %v6776_v31, %v502_v46  ;;  %v6833_v58 = vpop.permute.xlu0 %1465  ;;  %v499_v46 = vmax.f32 %v463_v33, 0.0 }
 0x149   : > { %10744 = vst [vmem:[#allocation59_spill] sm:$0xff] %v6819_v55  ;;  %10747 = vst [vmem:[#allocation62_spill] sm:$0xff] %v6833_v58  ;;  %v6921_v58 = vld [vmem:[%s6520_s16] sm:$0x4] }
 0x14a   : > { %v566_v26 = vsel %vm529_vm1, %v525_v34, 0.0  ;;  %v522_v63 = vmul.f32 %v6776_v31, %v499_v46  ;;  %v487_v34 = vadd.f32 %v6153_v14, %v6766_v19  ;;  %v10794_v61 = vunpack.c.l.bf16 %v6921_v58 }
 0x14c   : > { %573 = vadd.xlane.f32.xlu0 %v572_v30  ;;  %v536_v30 = vsel %vm529_vm1, %v515_v53, 0.0  ;;  %v6831_v52 = vpop.permute.xlu1 %1412  ;;  %v497_v53 = vmax.f32 %v455_v7, 0.0  ;;  %v505_v33 = vmax.f32 %v487_v34, 0.0  ;;  %v557_v56 = vsel %vm529_vm1, %v522_v63, 0.0 }
 0x14d   : > { %10746 = vst [vmem:[#allocation61_spill] sm:$0xff] %v6831_v52  ;;  %v495_v7 = vmax.f32 %v447_v8, 0.0  ;;  %v1925_v63 = vrot.slane %v10753_v28, %v6714_v36 }
 0x14e   : > { %v520_v49 = vmul.f32 %v6776_v31, %v497_v53  ;;  %v528_v14 = vmul.f32 %v6776_v31, %v505_v33 }
 0x14f   : > { %v518_v34 = vmul.f32 %v6776_v31, %v495_v7  ;;  %v1944_v7 = vrot.slane %v10756_v50, %v6714_v36 }
 0x150   : > { %543 = vadd.xlane.f32.xlu0 %v542_v17  ;;  %v6838_v15 = vpop.permute.xlu1 %1423  ;;  %v6842_v17 = vpop.permute.xlu0 %1628  ;;  %v575_v8 = vsel %vm529_vm1, %v528_v14, 0.0 }
 0x151   : > { %10748 = vst [vmem:[#allocation63_spill] sm:$0xff] %v6838_v15  ;;  %10749 = vst [vmem:[#allocation64_spill] sm:$0xff] %v6842_v17 }
 0x154   : > { %567 = vadd.xlane.f32.xlu0 %v566_v26  ;;  %v6849_v26 = vpop.permute.xlu1 %1431  ;;  %v6851_v46 = vpop.permute.xlu0 %1636 }
 0x155   : > { %10750 = vst [vmem:[#allocation65_spill] sm:$0xff] %v6849_v26  ;;  %10751 = vst [vmem:[#allocation66_spill] sm:$0xff] %v6851_v46 }
 0x158   : > { %537 = vadd.xlane.f32.xlu1 %v536_v30  ;;  %v563_v30 = vsel %vm529_vm1, %v524_v10, 0.0  ;;  %v479_v10 = vadd.f32 %v6766_v19, %v6792_v24  ;;  %v6857_v53 = vpop.permute.xlu1 %1442  ;;  %v545_v19 = vsel %vm529_vm1, %v518_v34, 0.0 }
 0x159   : > { %10752 = vst [vmem:[#allocation67_spill] sm:$0xff] %v6857_v53 }
 0x15c   : > { %540 = vadd.xlane.f32.xlu1 %v539_v23  ;;  %v551_v23 = vsel %vm529_vm1, %v520_v49, 0.0  ;;  %v6868_v49 = vpop.permute.xlu1 %1450 }
 0x15d   : > { %10754 = vst [vmem:[#allocation68_spill] sm:$0xff] %v6868_v49 }
 0x160   : > { %564 = vadd.xlane.f32.xlu1 %v563_v30  ;;  %v503_v30 = vmax.f32 %v479_v10, 0.0  ;;  %v6876_v14 = vpop.permute.xlu1 %1461 }
 0x161   : > { %10757 = vst [vmem:[#allocation70_spill] sm:$0xff] %v6876_v14 }
 0x162   : > { %v526_v24 = vmul.f32 %v6776_v31, %v503_v30  ;;  %v10759_v31 = vunpack.c.l.bf16 %v6629_v60 }
 0x164   : > { %558 = vadd.xlane.f32.xlu1 %v557_v56  ;;  %v6863_v56 = vpop.permute.xlu0 %1647  ;;  %v569_v10 = vsel %vm529_vm1, %v526_v24, 0.0  ;;  %v1963_v28 = vrot.slane %v10759_v31, %v6714_v36  ;;  %v6883_v34 = vpop.permute.xlu1 %1469 }
 0x165   : > { %10760 = vst [vmem:[#allocation72_spill] sm:$0xff] %v6883_v34 }
 0x168   : > { %552 = vadd.xlane.f32.xlu1 %v551_v23  ;;  %v6870_v33 = vpop.permute.xlu0 %1655  ;;  %v6887_v54 = vpop.permute.xlu1 %1632 }
 0x169   : > { %10755 = vst [vmem:[#allocation69_spill] sm:$0xff] %v6870_v33  ;;  %10762 = vst [vmem:[#allocation74_spill] sm:$0xff] %v6887_v54 }
 0x16a   : > { %1927 = vbcast.lane.b32.xlu0 %v1925_v63, 256 }
 0x16c   : > { %576 = vadd.xlane.f32.xlu1 %v575_v8  ;;  %v6878_v23 = vpop.permute.xlu0 %1666  ;;  %v10763_v8 = vunpack.c.l.bf16 %v6646_v6  ;;  %v6895_v50 = vpop.permute.xlu1 %1640 }
 0x16d   : > { %10758 = vst [vmem:[#allocation71_spill] sm:$0xff] %v6878_v23  ;;  %10765 = vst [vmem:[#allocation76_spill] sm:$0xff] %v6895_v50 }
 0x16e   : > { %1935 = vbcast.lane.b32.xlu0 %v1925_v63, 272  ;;  %v1982_v24 = vrot.slane %v10763_v8, %v6714_v36 }
 0x170   : > { %546 = vadd.xlane.f32.xlu1 %v545_v19  ;;  %v6885_v30 = vpop.permute.xlu0 %1674  ;;  %v6902_v46 = vpop.permute.xlu1 %1651 }
 0x171   : > { %10761 = vst [vmem:[#allocation73_spill] sm:$0xff] %v6885_v30  ;;  %10768 = vst [vmem:[#allocation78_spill] sm:$0xff] %v6902_v46 }
 0x172   : > { %1946 = vbcast.lane.b32.xlu0 %v1944_v7, 256 }
 0x174   : > { %570 = vadd.xlane.f32.xlu1 %v569_v10  ;;  %v6892_v19 = vpop.permute.xlu0 %1685  ;;  %v10767_v10 = vunpack.c.l.bf16 %v6661_v13  ;;  %v6909_v17 = vpop.permute.xlu1 %1659 }
 0x175   : > { %10764 = vst [vmem:[#allocation75_spill] sm:$0xff] %v6892_v19  ;;  %10771 = vst [vmem:[#allocation80_spill] sm:$0xff] %v6909_v17 }
 0x176   : > { %1954 = vbcast.lane.b32.xlu0 %v1944_v7, 272  ;;  %v2001_v31 = vrot.slane %v10767_v10, %v6714_v36 }
 0x178   : > { %v6897_v60 = vpop.permute.xlu0 %1693  ;;  %v6913_v13 = vpop.permute.xlu1 %1670 }
 0x179   : > { %10766 = vst [vmem:[#allocation77_spill] sm:$0xff] %v6897_v60 }
 0x17a   : > { %1965 = vbcast.lane.b32.xlu0 %v1963_v28, 256 }
 0x17c   : > { %v6904_v6 = vpop.permute.xlu0 %1704 }
 0x17d   : > { %10769 = vst [vmem:[#allocation79_spill] sm:$0xff] %v6904_v6 }
 0x17e   : > { %1973 = vbcast.lane.b32.xlu0 %v1963_v28, 272 }
 0x180   : > { %v6911_v50 = vpop.permute.xlu0 %1712 }
 0x181   : > { %10772 = vst [vmem:[#allocation81_spill] sm:$0xff] %v6911_v50 }
 0x182   : > { %1984 = vbcast.lane.b32.xlu0 %v1982_v24, 256 }
 0x184   : > { %v6918_v46 = vpop.permute.xlu0 %1723 }
 0x185   : > { %1920 = vbcast.lane.b32.xlu1 %v6722_v39, 280  ;;  %v10770_v39 = vunpack.c.l.bf16 %v6676_v20  ;;  %10774 = vst [vmem:[#allocation82_spill] sm:$0xff] %v6918_v46  ;;  %v6924_v20 = vsub.s32 4, %v6531_v1  ;;  %v6961_v46 = vld [vmem:[%s6520_s16 + $0x18] sm:$0x4] }
 0x186   : > { %1992 = vbcast.lane.b32.xlu0 %v1982_v24, 272  ;;  %v10802_v55 = vunpack.c.l.bf16 %v6961_v46 }
 0x187   : > { %v2020_v8 = vrot.slane %v10770_v39, %v6714_v36  ;;  %v6927_v39 = vpop.permute.xlu1 %1678 }
 0x188   : > { %10775 = vst [vmem:[#allocation83_spill] sm:$0xff] %v6927_v39  ;;  %v6929_v17 = vpop.permute.xlu0 %1731 }
 0x189   : > { %1931 = vbcast.lane.b32.xlu1 %v1925_v63, 264  ;;  %10776 = vst [vmem:[#allocation84_spill] sm:$0xff] %v6929_v17 }
 0x18a   : > { %2003 = vbcast.lane.b32.xlu0 %v2001_v31, 256 }
 0x18c   : > { %v6940_v16 = vpop.permute.xlu0 %1742 }
 0x18d   : > { %1939 = vbcast.lane.b32.xlu1 %v1925_v63, 280  ;;  %v10773_v63 = vunpack.c.l.bf16 %v6693_v27  ;;  %10778 = vst [vmem:[#allocation86_spill] sm:$0xff] %v6940_v16 }
 0x18e   : > { %2011 = vbcast.lane.b32.xlu0 %v2001_v31, 272 }
 0x18f   : > { %v2039_v10 = vrot.slane %v10773_v63, %v6714_v36  ;;  %v6935_v63 = vld [vmem:[%s6520_s16 + $0x8] sm:$0x4] }
 0x190   : > { %v10563_v54 = vunpack.c.l.bf16 %v6935_v63  ;;  %v6950_v14 = vpop.permute.xlu0 %1750 }
 0x191   : > { %1950 = vbcast.lane.b32.xlu1 %v1944_v7, 264  ;;  %10780 = vst [vmem:[#allocation88_spill] sm:$0xff] %v6950_v14 }
 0x192   : > { %2022 = vbcast.lane.b32.xlu0 %v2020_v8, 256  ;;  %v2229_v21 = vrot.slane %v10563_v54, %v6924_v20 }
 0x194   : > { %v6958_v54 = vpop.permute.xlu0 %1761 }
 0x195   : > { %1958 = vbcast.lane.b32.xlu1 %v1944_v7, 280  ;;  %v10562_v7 = vunpack.c.l.bf16 %v6921_v58  ;;  %10782 = vst [vmem:[#allocation90_spill] sm:$0xff] %v6958_v54 }
 0x196   : > { %2030 = vbcast.lane.b32.xlu0 %v2020_v8, 272 }
 0x197   : > { %v2210_v27 = vrot.slane %v10562_v7, %v6924_v20  ;;  %v6948_v7 = vld [vmem:[%s6520_s16 + $0x10] sm:$0x4] }
 0x198   : > { %v6966_v49 = vpop.permute.xlu0 %1769 }
 0x199   : > { %1969 = vbcast.lane.b32.xlu1 %v1963_v28, 264  ;;  %10784 = vst [vmem:[#allocation92_spill] sm:$0xff] %v6966_v49 }
 0x19a   : > { %2041 = vbcast.lane.b32.xlu0 %v2039_v10, 256 }
 0x19c   : > { %v6977_v50 = vpop.permute.xlu0 %1908 }
 0x19d   : > { %1977 = vbcast.lane.b32.xlu1 %v1963_v28, 280  ;;  %v6937_v28 = vpop.permute.xlu1 %1689  ;;  %10786 = vst [vmem:[#allocation94_spill] sm:$0xff] %v6977_v50 }
 0x19e   : > { %2049 = vbcast.lane.b32.xlu0 %v2039_v10, 272  ;;  %10777 = vst [vmem:[#allocation85_spill] sm:$0xff] %v6937_v28 }
 0x1a0   : > { %v6987_v26 = vpop.permute.xlu0 %1916 }
 0x1a1   : > { %1988 = vbcast.lane.b32.xlu1 %v1982_v24, 264  ;;  %v6945_v34 = vpop.permute.xlu1 %1697  ;;  %10788 = vst [vmem:[#allocation96_spill] sm:$0xff] %v6987_v26 }
 0x1a2   : > { %2212 = vbcast.lane.b32.xlu0 %v2210_v27, 256  ;;  %10779 = vst [vmem:[#allocation87_spill] sm:$0xff] %v6945_v34 }
 0x1a5   : > { %1996 = vbcast.lane.b32.xlu1 %v1982_v24, 280  ;;  %v10564_v24 = vunpack.c.l.bf16 %v6948_v7  ;;  %v6953_v17 = vpop.permute.xlu1 %1708 }
 0x1a6   : > { %2220 = vbcast.lane.b32.xlu0 %v2210_v27, 272  ;;  %10781 = vst [vmem:[#allocation89_spill] sm:$0xff] %v6953_v17  ;;  %v10799_v17 = vunpack.c.l.bf16 %v6948_v7 }
 0x1a7   : > { %v2248_v16 = vrot.slane %v10564_v24, %v6924_v20  ;;  %v6972_v24 = vld [vmem:[%s6520_s16 + $0x20] sm:$0x4] }
 0x1a9   : > { %2007 = vbcast.lane.b32.xlu1 %v2001_v31, 264  ;;  %v6964_v14 = vpop.permute.xlu1 %1716 }
 0x1aa   : > { %2231 = vbcast.lane.b32.xlu0 %v2229_v21, 256  ;;  %10783 = vst [vmem:[#allocation91_spill] sm:$0xff] %v6964_v14 }
 0x1ad   : > { %2015 = vbcast.lane.b32.xlu1 %v2001_v31, 280  ;;  %v10565_v31 = vunpack.c.l.bf16 %v6961_v46  ;;  %v6974_v54 = vpop.permute.xlu1 %1727 }
 0x1ae   : > { %2239 = vbcast.lane.b32.xlu0 %v2229_v21, 272  ;;  %10785 = vst [vmem:[#allocation93_spill] sm:$0xff] %v6974_v54 }
 0x1af   : > { %v2267_v53 = vrot.slane %v10565_v31, %v6924_v20  ;;  %v6985_v31 = vld [vmem:[%s6520_s16 + $0x28] sm:$0x4] }
 0x1b1   : > { %2026 = vbcast.lane.b32.xlu1 %v2020_v8, 264  ;;  %v6982_v6 = vpop.permute.xlu1 %1735 }
 0x1b2   : > { %2250 = vbcast.lane.b32.xlu0 %v2248_v16, 256  ;;  %10787 = vst [vmem:[#allocation95_spill] sm:$0xff] %v6982_v6  ;;  %v6998_v6 = vld [vmem:[%s6520_s16 + $0x30] sm:$0x4] }
 0x1b5   : > { %2034 = vbcast.lane.b32.xlu1 %v2020_v8, 280  ;;  %v10566_v8 = vunpack.c.l.bf16 %v6972_v24  ;;  %v6990_v44 = vpop.permute.xlu1 %1746 }
 0x1b6   : > { %2258 = vbcast.lane.b32.xlu0 %v2248_v16, 272  ;;  %10789 = vst [vmem:[#allocation97_spill] sm:$0xff] %v6990_v44 }
 0x1b7   : > { %v2286_v49 = vrot.slane %v10566_v8, %v6924_v20 }
 0x1b9   : > { %2045 = vbcast.lane.b32.xlu1 %v2039_v10, 264  ;;  %v7003_v26 = vpop.permute.xlu1 %1754 }
 0x1ba   : > { %2269 = vbcast.lane.b32.xlu0 %v2267_v53, 256  ;;  %10790 = vst [vmem:[#allocation98_spill] sm:$0xff] %v7003_v26 }
 0x1bd   : > { %2053 = vbcast.lane.b32.xlu1 %v2039_v10, 280  ;;  %v10567_v10 = vunpack.c.l.bf16 %v6985_v31 }
 0x1be   : > { %2277 = vbcast.lane.b32.xlu0 %v2267_v53, 272 }
 0x1bf   : > { %v2305_v8 = vrot.slane %v10567_v10, %v6924_v20  ;;  %v7013_v10 = vpop.permute.xlu1 %1765 }
 0x1c0   : > { %10791 = vst [vmem:[#allocation99_spill] sm:$0xff] %v7013_v10  ;;  %v7028_v10 = vsub.s32 5, %v6531_v1 }
 0x1c1   : > { %2216 = vbcast.lane.b32.xlu1 %v2210_v27, 264 }
 0x1c2   : > { %2288 = vbcast.lane.b32.xlu0 %v2286_v49, 256  ;;  %v2490_v14 = vrot.slane %v10794_v61, %v7028_v10  ;;  %v2528_v59 = vrot.slane %v10799_v17, %v7028_v10  ;;  %v2547_v38 = vrot.slane %v10802_v55, %v7028_v10 }
 0x1c3   : > { %v7023_v60 = vpop.permute.xlu1 %1773 }
 0x1c4   : > { %10792 = vst [vmem:[#allocation100_spill] sm:$0xff] %v7023_v60 }
 0x1c5   : > { %2224 = vbcast.lane.b32.xlu1 %v2210_v27, 280  ;;  %v6992_v50 = vpop.xlane.xlu0 %561  ;;  %v10568_v27 = vunpack.c.l.bf16 %v6998_v6 }
 0x1c6   : > { %2296 = vbcast.lane.b32.xlu0 %v2286_v49, 272 }
 0x1c7   : > { %v2324_v44 = vrot.slane %v10568_v27, %v6924_v20 }
 0x1c9   : > { %2235 = vbcast.lane.b32.xlu1 %v2229_v21, 264  ;;  %v7000_v54 = vpop.xlane.xlu0 %531 }
 0x1ca   : > { %2307 = vbcast.lane.b32.xlu0 %v2305_v8, 256 }
 0x1cd   : > { %2243 = vbcast.lane.b32.xlu1 %v2229_v21, 280  ;;  %v7005_v12 = vpop.xlane.xlu0 %555  ;;  %v10569_v21 = vunpack.c.l.bf16 %v7011_v2 }
 0x1ce   : > { %2315 = vbcast.lane.b32.xlu0 %v2305_v8, 272 }
 0x1cf   : > { %v2343_v26 = vrot.slane %v10569_v21, %v6924_v20 }
 0x1d1   : > { %2254 = vbcast.lane.b32.xlu1 %v2248_v16, 264  ;;  %v7015_v15 = vpop.xlane.xlu0 %534 }
 0x1d2   : > { %2326 = vbcast.lane.b32.xlu0 %v2324_v44, 256 }
 0x1d5   : > { %2262 = vbcast.lane.b32.xlu1 %v2248_v16, 280  ;;  %v7018_v43 = vpop.xlane.xlu0 %549  ;;  %v7030_v16 = vpop.permute.xlu1 %1912 }
 0x1d6   : > { %2334 = vbcast.lane.b32.xlu0 %v2324_v44, 272  ;;  %10793 = vst [vmem:[#allocation101_spill] sm:$0xff] %v7030_v16  ;;  %v10796_v16 = vunpack.c.l.bf16 %v6935_v63 }
 0x1d8   : > { %v2509_v52 = vrot.slane %v10796_v16, %v7028_v10 }
 0x1d9   : > { %2273 = vbcast.lane.b32.xlu1 %v2267_v53, 264  ;;  %v7025_v27 = vpop.xlane.xlu0 %573 }
 0x1da   : > { %2345 = vbcast.lane.b32.xlu0 %v2343_v26, 256 }
 0x1dd   : > { %2281 = vbcast.lane.b32.xlu1 %v2267_v53, 280  ;;  %v7032_v5 = vpop.xlane.xlu0 %543 }
 0x1de   : > { %2353 = vbcast.lane.b32.xlu0 %v2343_v26, 272 }
 0x1e1   : > { %2292 = vbcast.lane.b32.xlu1 %v2286_v49, 264  ;;  %v7039_v60 = vpop.xlane.xlu0 %567 }
 0x1e2   : > { %2492 = vbcast.lane.b32.xlu0 %v2490_v14, 256 }
 0x1e5   : > { %v7037_v21 = vpop.xlane.xlu1 %537  ;;  %2300 = vbcast.lane.b32.xlu1 %v2286_v49, 280  ;;  %v7043_v19 = vpop.permute.xlu0 %1927 }
 0x1e6   : > { %10795 = vst [vmem:[#allocation102_spill] sm:$0xff] %v7043_v19  ;;  %2500 = vbcast.lane.b32.xlu0 %v2490_v14, 272 }
 0x1e9   : > { %v7041_v53 = vpop.xlane.xlu1 %540  ;;  %2311 = vbcast.lane.b32.xlu1 %v2305_v8, 264  ;;  %v7050_v58 = vpop.permute.xlu0 %1935 }
 0x1ea   : > { %10797 = vst [vmem:[#allocation103_spill] sm:$0xff] %v7050_v58  ;;  %2511 = vbcast.lane.b32.xlu0 %v2509_v52, 256 }
 0x1ed   : > { %v7048_v41 = vpop.xlane.xlu1 %564  ;;  %2319 = vbcast.lane.b32.xlu1 %v2305_v8, 280  ;;  %v7054_v49 = vpop.permute.xlu0 %1946 }
 0x1ee   : > { %10798 = vst [vmem:[#allocation104_spill] sm:$0xff] %v7054_v49  ;;  %2519 = vbcast.lane.b32.xlu0 %v2509_v52, 272 }
 0x1f1   : > { %v7052_v61 = vpop.xlane.xlu1 %558  ;;  %2330 = vbcast.lane.b32.xlu1 %v2324_v44, 264  ;;  %v7061_v63 = vpop.permute.xlu0 %1954 }
 0x1f2   : > { %10800 = vst [vmem:[#allocation105_spill] sm:$0xff] %v7061_v63  ;;  %2530 = vbcast.lane.b32.xlu0 %v2528_v59, 256 }
 0x1f5   : > { %v7059_v29 = vpop.xlane.xlu1 %552  ;;  %2338 = vbcast.lane.b32.xlu1 %v2324_v44, 280  ;;  %v7065_v8 = vpop.permute.xlu0 %1965 }
 0x1f6   : > { %10801 = vst [vmem:[#allocation106_spill] sm:$0xff] %v7065_v8  ;;  %2538 = vbcast.lane.b32.xlu0 %v2528_v59, 272  ;;  %v10805_v8 = vunpack.c.l.bf16 %v6972_v24 }
 0x1f8   : > { %v2566_v63 = vrot.slane %v10805_v8, %v7028_v10 }
 0x1f9   : > { %v7063_v16 = vpop.xlane.xlu1 %576  ;;  %2349 = vbcast.lane.b32.xlu1 %v2343_v26, 264  ;;  %v7072_v7 = vpop.permute.xlu0 %1973 }
 0x1fa   : > { %10803 = vst [vmem:[#allocation107_spill] sm:$0xff] %v7072_v7  ;;  %2549 = vbcast.lane.b32.xlu0 %v2547_v38, 256 }
 0x1fd   : > { %v7070_v30 = vpop.xlane.xlu1 %546  ;;  %2357 = vbcast.lane.b32.xlu1 %v2343_v26, 280  ;;  %v7076_v44 = vpop.permute.xlu0 %1984 }
 0x1fe   : > { %10804 = vst [vmem:[#allocation108_spill] sm:$0xff] %v7076_v44  ;;  %2557 = vbcast.lane.b32.xlu0 %v2547_v38, 272  ;;  %v10810_v44 = vunpack.c.l.bf16 %v6985_v31  ;;  %v10816_v31 = vunpack.c.l.bf16 %v6998_v6 }
 0x200   : > { %v7092_v7 = vrot.slane %v10810_v44, %v7028_v10  ;;  %v7110_v44 = vrot.slane %v10816_v31, %v7028_v10 }
 0x201   : > { %v7074_v17 = vpop.xlane.xlu1 %570  ;;  %2496 = vbcast.lane.b32.xlu1 %v2490_v14, 264  ;;  %v7081_v34 = vpop.permute.xlu0 %1992 }
 0x202   : > { %10806 = vst [vmem:[#allocation109_spill] sm:$0xff] %v7081_v34  ;;  %2568 = vbcast.lane.b32.xlu0 %v2566_v63, 256 }
 0x205   : > { %v7083_v46 = vpop.permute.xlu1 %1920  ;;  %2504 = vbcast.lane.b32.xlu1 %v2490_v14, 280  ;;  %v7085_v55 = vpop.permute.xlu0 %2003 }
 0x206   : > { %10807 = vst [vmem:[#allocation110_spill] sm:$0xff] %v7083_v46  ;;  %10808 = vst [vmem:[#allocation111_spill] sm:$0xff] %v7085_v55  ;;  %2576 = vbcast.lane.b32.xlu0 %v2566_v63, 272 }
 0x209   : > { %v7087_v26 = vpop.permute.xlu1 %1931  ;;  %2515 = vbcast.lane.b32.xlu1 %v2509_v52, 264  ;;  %v7094_v48 = vpop.permute.xlu0 %2011 }
 0x20a   : > { %10809 = vst [vmem:[#allocation112_spill] sm:$0xff] %v7087_v26  ;;  %10811 = vst [vmem:[#allocation113_spill] sm:$0xff] %v7094_v48  ;;  %2587 = vbcast.lane.b32.xlu0 %v7092_v7, 256  ;;  %v10814_v26 = vlaneseq }
 0x20c   : > { %v7104_v46 = vand.u32 127, %v10814_v26 }
 0x20d   : > { %v7096_v24 = vpop.permute.xlu1 %1939  ;;  %2523 = vbcast.lane.b32.xlu1 %v2509_v52, 280  ;;  %v7099_v14 = vpop.permute.xlu0 %2022 }
 0x20e   : > { %10812 = vst [vmem:[#allocation114_spill] sm:$0xff] %v7096_v24  ;;  %10813 = vst [vmem:[#allocation115_spill] sm:$0xff] %v7099_v14  ;;  %2595 = vbcast.lane.b32.xlu0 %v7092_v7, 272  ;;  %v600_v24 = vadd.s32 4294967288, %v7104_v46  ;;  %v7127_v6 = vsub.s32 %v7104_v46, %v6531_v1 }
 0x20f   : > { %10815 = vst [vmem:[#allocation116_spill] sm:$0xff] %v7104_v46 }
 0x210   : > { %v7119_v14 = vsub.s32 %v600_v24, %v6531_v1  ;;  %10822 = vst [vmem:[#allocation122_spill] sm:$0xff] %v7127_v6  ;;  %v610_v24 = vrot.slane %v7037_v21, %v7127_v6  ;;  %v599_v22 = vrot.slane %v7000_v54, %v7127_v6 }
 0x211   : > { %v7101_v8 = vpop.permute.xlu1 %1950  ;;  %2534 = vbcast.lane.b32.xlu1 %v2528_v59, 264  ;;  %v7113_v52 = vpop.permute.xlu0 %2030 }
 0x212   : > { %10817 = vst [vmem:[#allocation117_spill] sm:$0xff] %v7113_v52  ;;  %2606 = vbcast.lane.b32.xlu0 %v7110_v44, 256  ;;  %10819 = vst [vmem:[#allocation119_spill] sm:$0xff] %v7119_v14  ;;  %v614_v31 = vrot.slane %v7041_v53, %v7119_v14  ;;  %v604_v52 = vrot.slane %v7015_v15, %v7119_v14  ;;  %v632_v23 = vrot.slane %v7059_v29, %v7119_v14 }
 0x214   : > { %v615_v0 = vsel %vm605_vm2, %v614_v31, %v610_v24  ;;  %v606_v49 = vsel %vm605_vm2, %v604_v52, %v599_v22  ;;  %v637_v52 = vrot.slane %v7005_v12, %v7127_v6  ;;  %v659_v24 = vrot.slane %v7074_v17, %v7119_v14 }
 0x215   : > { %v7115_v48 = vpop.permute.xlu1 %1958  ;;  %2542 = vbcast.lane.b32.xlu1 %v2528_v59, 280  ;;  %v7121_v26 = vpop.permute.xlu0 %2041  ;;  %v623_v59 = vrot.slane %v7070_v30, %v7119_v14 }
 0x216   : > { %10818 = vst [vmem:[#allocation118_spill] sm:$0xff] %v7115_v48  ;;  %10820 = vst [vmem:[#allocation120_spill] sm:$0xff] %v7121_v26  ;;  %v619_v26 = vrot.slane %v7032_v5, %v7127_v6 }
 0x218   : > { %v624_v35 = vsel %vm605_vm2, %v623_v59, %v619_v26  ;;  %v641_v26 = vrot.slane %v7052_v61, %v7119_v14 }
 0x219   : > { %v7123_v55 = vpop.permute.xlu1 %1969  ;;  %2553 = vbcast.lane.b32.xlu1 %v2547_v38, 264  ;;  %v7139_v34 = vpop.permute.xlu0 %2049 }
 0x21a   : > { %10821 = vst [vmem:[#allocation121_spill] sm:$0xff] %v7123_v55  ;;  %10823 = vst [vmem:[#allocation123_spill] sm:$0xff] %v7139_v34  ;;  %v671_v55 = vsel %vm670_vm3, %v615_v0, %v606_v49 }
 0x21b   : > { %v673_v31 = vsel %vm672_vm4, %v624_v35, %v671_v55  ;;  %v650_v35 = vrot.slane %v7048_v41, %v7119_v14  ;;  %v642_v55 = vsel %vm605_vm2, %v641_v26, %v637_v52 }
 0x21d   : > { %v7141_v46 = vpop.permute.xlu1 %1977  ;;  %2561 = vbcast.lane.b32.xlu1 %v2547_v38, 280  ;;  %v7151_v34 = vpop.permute.xlu0 %2212  ;;  %v628_v38 = vrot.slane %v7018_v43, %v7127_v6 }
 0x21e   : > { %10824 = vst [vmem:[#allocation124_spill] sm:$0xff] %v7141_v46  ;;  %10825 = vst [vmem:[#allocation125_spill] sm:$0xff] %v7151_v34 }
 0x21f   : > { %v633_v22 = vsel %vm605_vm2, %v632_v23, %v628_v38  ;;  %v646_v23 = vrot.slane %v6992_v50, %v7127_v6 }
 0x220   : > { %v675_v49 = vsel %vm674_vm5, %v633_v22, %v673_v31  ;;  %v655_v31 = vrot.slane %v7039_v60, %v7127_v6 }
 0x221   : > { %v7153_v46 = vpop.permute.xlu1 %1988  ;;  %2572 = vbcast.lane.b32.xlu1 %v2566_v63, 264  ;;  %v7163_v0 = vpop.permute.xlu0 %2220  ;;  %v677_v38 = vsel %vm676_vm6, %v642_v55, %v675_v49  ;;  %v651_v26 = vsel %vm605_vm2, %v650_v35, %v646_v23  ;;  %v668_v49 = vrot.slane %v7063_v16, %v7119_v14 }
 0x222   : > { %10826 = vst [vmem:[#allocation126_spill] sm:$0xff] %v7153_v46  ;;  %10827 = vst [vmem:[#allocation127_spill] sm:$0xff] %v7163_v0  ;;  %v660_v52 = vsel %vm605_vm2, %v659_v24, %v655_v31  ;;  %v679_v0 = vsel %vm678_vm7, %v651_v26, %v677_v38 }
 0x223   : > { %v681_v35 = vsel %vm680_vm8, %v660_v52, %v679_v0  ;;  %v10837_v0 = vunpack.c.l.bf16 %v7011_v2  ;;  %v7213_v52 = vld [vmem:[%s6520_s16] sm:$0x8] }
 0x225   : > { %v7166_v59 = vpop.permute.xlu1 %1996  ;;  %2580 = vbcast.lane.b32.xlu1 %v2566_v63, 280  ;;  %v7178_v22 = vpop.permute.xlu0 %2231 }
 0x226   : > { %10828 = vst [vmem:[#allocation128_spill] sm:$0xff] %v7166_v59  ;;  %10829 = vst [vmem:[#allocation129_spill] sm:$0xff] %v7178_v22 }
 0x229   : > { %v7180_v63 = vpop.permute.xlu1 %2007  ;;  %2591 = vbcast.lane.b32.xlu1 %v7092_v7, 264  ;;  %v7188_v55 = vpop.permute.xlu0 %2239 }
 0x22a   : > { %10830 = vst [vmem:[#allocation130_spill] sm:$0xff] %v7180_v63  ;;  %10831 = vst [vmem:[#allocation131_spill] sm:$0xff] %v7188_v55  ;;  %v664_v63 = vrot.slane %v7025_v27, %v7127_v6 }
 0x22c   : > { %v669_v24 = vsel %vm605_vm2, %v668_v49, %v664_v63  ;;  %v2623_v63 = vrot.slane %v10837_v0, %v7028_v10 }
 0x22d   : > { %v7190_v34 = vpop.permute.xlu1 %2015  ;;  %2599 = vbcast.lane.b32.xlu1 %v7092_v7, 280  ;;  %v7197_v23 = vpop.permute.xlu0 %2250  ;;  %v683_v38 = vsel %vm682_vm9, %v669_v24, %v681_v35  ;;  %v7220_v24 = vsub.s32 6, %v6531_v1 }
 0x22e   : > { %10832 = vst [vmem:[#allocation132_spill] sm:$0xff] %v7190_v34  ;;  %10833 = vst [vmem:[#allocation133_spill] sm:$0xff] %v7197_v23  ;;  %v686_v7 = vsel %vm685_vm10, %v683_v38, -inf  ;;  %v10572_v38 = vunpack.c.l.bf16 %v7213_v52 }
 0x230   : > { %v2794_v2 = vrot.slane %v10572_v38, %v7220_v24  ;;  %v7244_v38 = vld [vmem:[%s6520_s16 + $0x10] sm:$0x8] }
 0x231   : > { %v7200_v31 = vpop.permute.xlu1 %2026  ;;  %2610 = vbcast.lane.b32.xlu1 %v7110_v44, 264  ;;  %687 = vmax.xlane.f32.xlu0 %v686_v7  ;;  %v7204_v26 = vpop.permute.xlu0 %2258 }
 0x232   : > { %10834 = vst [vmem:[#allocation134_spill] sm:$0xff] %v7200_v31  ;;  %10835 = vst [vmem:[#allocation135_spill] sm:$0xff] %v7204_v26 }
 0x235   : > { %v7206_v34 = vpop.permute.xlu1 %2034  ;;  %2618 = vbcast.lane.b32.xlu1 %v7110_v44, 280  ;;  %v7217_v35 = vpop.permute.xlu0 %2269 }
 0x236   : > { %10836 = vst [vmem:[#allocation136_spill] sm:$0xff] %v7206_v34  ;;  %10839 = vst [vmem:[#allocation138_spill] sm:$0xff] %v7217_v35  ;;  %v7231_v34 = vld [vmem:[%s6520_s16 + $0x8] sm:$0x8] }
 0x237   : > { %v10573_v31 = vunpack.c.l.bf16 %v7231_v34 }
 0x239   : > { %v7215_v49 = vpop.permute.xlu1 %2045  ;;  %2629 = vbcast.lane.b32.xlu1 %v2623_v63, 264  ;;  %v7228_v0 = vpop.permute.xlu0 %2277 }
 0x23a   : > { %10838 = vst [vmem:[#allocation137_spill] sm:$0xff] %v7215_v49  ;;  %10841 = vst [vmem:[#allocation140_spill] sm:$0xff] %v7228_v0 }
 0x23d   : > { %v7223_v7 = vpop.permute.xlu1 %2053  ;;  %2637 = vbcast.lane.b32.xlu1 %v2623_v63, 280  ;;  %v7238_v35 = vpop.permute.xlu0 %2288 }
 0x23e   : > { %10840 = vst [vmem:[#allocation139_spill] sm:$0xff] %v7223_v7  ;;  %10844 = vst [vmem:[#allocation143_spill] sm:$0xff] %v7238_v35  ;;  %v2813_v7 = vrot.slane %v10573_v31, %v7220_v24  ;;  %v7258_v35 = vld [vmem:[%s6520_s16 + $0x18] sm:$0x8] }
 0x241   : > { %v7233_v49 = vpop.permute.xlu1 %2216  ;;  %2800 = vbcast.lane.b32.xlu1 %v2794_v2, 264  ;;  %v7250_v46 = vpop.permute.xlu0 %2296 }
 0x242   : > { %10842 = vst [vmem:[#allocation141_spill] sm:$0xff] %v7233_v49  ;;  %v10574_v49 = vunpack.c.l.bf16 %v7244_v38  ;;  %10846 = vst [vmem:[#allocation145_spill] sm:$0xff] %v7250_v46 }
 0x244   : > { %v2832_v31 = vrot.slane %v10574_v49, %v7220_v24  ;;  %v7271_v49 = vld [vmem:[%s6520_s16 + $0x20] sm:$0x8] }
 0x245   : > { %v7236_v59 = vpop.permute.xlu1 %2224  ;;  %2808 = vbcast.lane.b32.xlu1 %v2794_v2, 280 }
 0x246   : > { %10843 = vst [vmem:[#allocation142_spill] sm:$0xff] %v7236_v59 }
 0x247   : > { %2614 = vbcast.lane.b32.xlu0 %v7110_v44, 272  ;;  %v10575_v44 = vunpack.c.l.bf16 %v7258_v35 }
 0x249   : > { %v7246_v0 = vpop.permute.xlu1 %2235  ;;  %2819 = vbcast.lane.b32.xlu1 %v2813_v7, 264 }
 0x24a   : > { %10845 = vst [vmem:[#allocation144_spill] sm:$0xff] %v7246_v0  ;;  %v7260_v0 = vpop.permute.xlu0 %2307 }
 0x24b   : > { %2625 = vbcast.lane.b32.xlu0 %v2623_v63, 256  ;;  %10848 = vst [vmem:[#allocation147_spill] sm:$0xff] %v7260_v0  ;;  %v6359_v0 = vmov 0  }
 0x24c   : > { %6211 = vset.pattern.permute.xlu1 %v6359_v0  ;;  %6212 = vset.pattern.permute.xlu0 %v6359_v0 }
 0x24d   : > { %2827 = vbcast.lane.b32.xlu1 %v2813_v7, 280  ;;  %v7252_v59 = vpop.permute.xlu1 %2243 }
 0x24e   : > { %10847 = vst [vmem:[#allocation146_spill] sm:$0xff] %v7252_v59  ;;  %v2851_v59 = vrot.slane %v10575_v44, %v7220_v24  ;;  %v7268_v46 = vpop.permute.xlu0 %2315 }
 0x24f   : > { %2633 = vbcast.lane.b32.xlu0 %v2623_v63, 272  ;;  %10849 = vst [vmem:[#allocation148_spill] sm:$0xff] %v7268_v46  ;;  %v10576_v63 = vunpack.c.l.bf16 %v7271_v49  ;;  %v7282_v46 = vld [vmem:[%s6520_s16 + $0x28] sm:$0x8] }
 0x251   : > { %2838 = vbcast.lane.b32.xlu1 %v2832_v31, 264  ;;  %v7263_v26 = vpop.permute.xlu1 %2254  ;;  %v2870_v44 = vrot.slane %v10576_v63, %v7220_v24  ;;  %v7295_v63 = vld [vmem:[%s6520_s16 + $0x30] sm:$0x8] }
 0x252   : > { %v7276_v55 = vpop.permute.xlu0 %2326 }
 0x253   : > { %2796 = vbcast.lane.b32.xlu0 %v2794_v2, 256  ;;  %10851 = vst [vmem:[#allocation150_spill] sm:$0xff] %v7276_v55 }
 0x255   : > { %2846 = vbcast.lane.b32.xlu1 %v2832_v31, 280  ;;  %v7273_v23 = vpop.permute.xlu1 %2262 }
 0x256   : > { %10850 = vst [vmem:[#allocation149_spill] sm:$0xff] %v7273_v23  ;;  %v7287_v23 = vpop.permute.xlu0 %2334 }
 0x257   : > { %2804 = vbcast.lane.b32.xlu0 %v2794_v2, 272  ;;  %v10577_v2 = vunpack.c.l.bf16 %v7282_v46  ;;  %10853 = vst [vmem:[#allocation152_spill] sm:$0xff] %v7287_v23 }
 0x259   : > { %2857 = vbcast.lane.b32.xlu1 %v2851_v59, 264  ;;  %v7284_v28 = vpop.permute.xlu1 %2273  ;;  %v2889_v55 = vrot.slane %v10577_v2, %v7220_v24 }
 0x25a   : > { %10852 = vst [vmem:[#allocation151_spill] sm:$0xff] %v7284_v28  ;;  %v7297_v45 = vpop.permute.xlu0 %2345 }
 0x25b   : > { %2815 = vbcast.lane.b32.xlu0 %v2813_v7, 256  ;;  %10855 = vst [vmem:[#allocation154_spill] sm:$0xff] %v7297_v45 }
 0x25d   : > { %2865 = vbcast.lane.b32.xlu1 %v2851_v59, 280  ;;  %v7289_v0 = vpop.permute.xlu1 %2281 }
 0x25e   : > { %10854 = vst [vmem:[#allocation153_spill] sm:$0xff] %v7289_v0  ;;  %v7305_v0 = vpop.permute.xlu0 %2353 }
 0x25f   : > { %2823 = vbcast.lane.b32.xlu0 %v2813_v7, 272  ;;  %v10578_v7 = vunpack.c.l.bf16 %v7295_v63  ;;  %10857 = vst [vmem:[#allocation156_spill] sm:$0xff] %v7305_v0 }
 0x261   : > { %2876 = vbcast.lane.b32.xlu1 %v2870_v44, 264  ;;  %v7300_v28 = vpop.permute.xlu1 %2292  ;;  %v2908_v23 = vrot.slane %v10578_v7, %v7220_v24 }
 0x262   : > { %10856 = vst [vmem:[#allocation155_spill] sm:$0xff] %v7300_v28  ;;  %v7313_v45 = vpop.permute.xlu0 %2492 }
 0x263   : > { %2834 = vbcast.lane.b32.xlu0 %v2832_v31, 256  ;;  %10859 = vst [vmem:[#allocation158_spill] sm:$0xff] %v7313_v45 }
 0x265   : > { %2884 = vbcast.lane.b32.xlu1 %v2870_v44, 280  ;;  %v7310_v2 = vpop.permute.xlu1 %2300 }
 0x266   : > { %10858 = vst [vmem:[#allocation157_spill] sm:$0xff] %v7310_v2  ;;  %v7323_v0 = vpop.permute.xlu0 %2500 }
 0x267   : > { %2842 = vbcast.lane.b32.xlu0 %v2832_v31, 272  ;;  %v10579_v31 = vunpack.c.l.bf16 %v7308_v57  ;;  %10861 = vst [vmem:[#allocation160_spill] sm:$0xff] %v7323_v0 }
 0x269   : > { %2895 = vbcast.lane.b32.xlu1 %v2889_v55, 264  ;;  %v7318_v28 = vrot.slane %v10579_v31, %v7220_v24  ;;  %v7320_v7 = vpop.permute.xlu1 %2311 }
 0x26a   : > { %10860 = vst [vmem:[#allocation159_spill] sm:$0xff] %v7320_v7 }
 0x26b   : > { %2853 = vbcast.lane.b32.xlu0 %v2851_v59, 256 }
 0x26d   : > { %2903 = vbcast.lane.b32.xlu1 %v2889_v55, 280  ;;  %v7325_v2 = vpop.permute.xlu1 %2319 }
 0x26e   : > { %10862 = vst [vmem:[#allocation161_spill] sm:$0xff] %v7325_v2 }
 0x26f   : > { %2861 = vbcast.lane.b32.xlu0 %v2851_v59, 272  ;;  %v7327_v59 = vpop.permute.xlu0 %2511 }
 0x270   : > { %10863 = vst [vmem:[#allocation162_spill] sm:$0xff] %v7327_v59 }
 0x271   : > { %2914 = vbcast.lane.b32.xlu1 %v2908_v23, 264  ;;  %v7329_v45 = vpop.permute.xlu1 %2330 }
 0x272   : > { %10864 = vst [vmem:[#allocation163_spill] sm:$0xff] %v7329_v45 }
 0x273   : > { %2872 = vbcast.lane.b32.xlu0 %v2870_v44, 256  ;;  %v7331_v58 = vpop.permute.xlu0 %2519 }
 0x274   : > { %10865 = vst [vmem:[#allocation164_spill] sm:$0xff] %v7331_v58 }
 0x275   : > { %2922 = vbcast.lane.b32.xlu1 %v2908_v23, 280  ;;  %v7333_v31 = vpop.permute.xlu1 %2338 }
 0x276   : > { %10866 = vst [vmem:[#allocation165_spill] sm:$0xff] %v7333_v31 }
 0x277   : > { %2880 = vbcast.lane.b32.xlu0 %v2870_v44, 272  ;;  %v7335_v7 = vpop.permute.xlu0 %2530 }
 0x278   : > { %10867 = vst [vmem:[#allocation166_spill] sm:$0xff] %v7335_v7 }
 0x279   : > { %2933 = vbcast.lane.b32.xlu1 %v7318_v28, 264  ;;  %v7338_v44 = vpop.permute.xlu1 %2349 }
 0x27a   : > { %10868 = vst [vmem:[#allocation167_spill] sm:$0xff] %v7338_v44 }
 0x27b   : > { %2891 = vbcast.lane.b32.xlu0 %v2889_v55, 256  ;;  %v7341_v0 = vpop.permute.xlu0 %2538 }
 0x27c   : > { %10869 = vst [vmem:[#allocation168_spill] sm:$0xff] %v7341_v0 }
 0x27d   : > { %v7343_v2 = vpop.permute.xlu1 %2357 }
 0x27e   : > { %10870 = vst [vmem:[#allocation169_spill] sm:$0xff] %v7343_v2 }
 0x27f   : > { %2899 = vbcast.lane.b32.xlu0 %v2889_v55, 272  ;;  %v7345_v55 = vpop.permute.xlu0 %2549 }
 0x280   : > { %10871 = vst [vmem:[#allocation170_spill] sm:$0xff] %v7345_v55 }
 0x281   : > { %v7347_v45 = vpop.permute.xlu1 %2496 }
 0x282   : > { %10872 = vst [vmem:[#allocation171_spill] sm:$0xff] %v7347_v45 }
 0x283   : > { %2910 = vbcast.lane.b32.xlu0 %v2908_v23, 256  ;;  %v7349_v58 = vpop.permute.xlu0 %2557 }
 0x284   : > { %10873 = vst [vmem:[#allocation172_spill] sm:$0xff] %v7349_v58 }
 0x285   : > { %v7351_v31 = vpop.permute.xlu1 %2504 }
 0x286   : > { %10874 = vst [vmem:[#allocation173_spill] sm:$0xff] %v7351_v31 }
 0x287   : > { %2918 = vbcast.lane.b32.xlu0 %v2908_v23, 272  ;;  %v7353_v23 = vpop.permute.xlu0 %2568 }
 0x288   : > { %10875 = vst [vmem:[#allocation174_spill] sm:$0xff] %v7353_v23 }
 0x289   : > { %v7355_v7 = vpop.permute.xlu1 %2515 }
 0x28a   : > { %10876 = vst [vmem:[#allocation175_spill] sm:$0xff] %v7355_v7 }
 0x28b   : > { %2929 = vbcast.lane.b32.xlu0 %v7318_v28, 256  ;;  %v7357_v59 = vpop.permute.xlu0 %2576 }
 0x28c   : > { %10877 = vst [vmem:[#allocation176_spill] sm:$0xff] %v7357_v59 }
 0x28d   : > { %v7359_v44 = vpop.permute.xlu1 %2523 }
 0x28e   : > { %10878 = vst [vmem:[#allocation177_spill] sm:$0xff] %v7359_v44 }
 0x28f   : > { %2937 = vbcast.lane.b32.xlu0 %v7318_v28, 272  ;;  %v7361_v48 = vpop.permute.xlu0 %2587 }
 0x290   : > { %10879 = vst [vmem:[#allocation178_spill] sm:$0xff] %v7361_v48 }
 0x291   : > { %v7363_v0 = vpop.permute.xlu1 %2534 }
 0x292   : > { %10880 = vst [vmem:[#allocation179_spill] sm:$0xff] %v7363_v0 }
 0x293   : > { %v7365_v2 = vpop.permute.xlu0 %2595 }
 0x294   : > { %10881 = vst [vmem:[#allocation180_spill] sm:$0xff] %v7365_v2 }
 0x295   : > { %v7367_v55 = vpop.permute.xlu1 %2542 }
 0x296   : > { %10882 = vst [vmem:[#allocation181_spill] sm:$0xff] %v7367_v55 }
 0x297   : > { %v7369_v45 = vpop.permute.xlu0 %2606 }
 0x298   : > { %10883 = vst [vmem:[#allocation182_spill] sm:$0xff] %v7369_v45 }
 0x299   : > { %v7371_v58 = vpop.permute.xlu1 %2553 }
 0x29a   : > { %10884 = vst [vmem:[#allocation183_spill] sm:$0xff] %v7371_v58 }
 0x29d   : > { %v7378_v9 = vpop.permute.xlu1 %2561 }
 0x29e   : > { %10885 = vst [vmem:[#allocation184_spill] sm:$0xff] %v7378_v9 }
 0x2be   : > { %v688_v31 = vpop.xlane.xlu0 %687 }
 0x2bf   : > { %v693_v23 = vrot.slane %v688_v31, %v6534_v3  ;;  %v697_v7 = vrot.slane %v688_v31, %v6574_v37  ;;  %v7381_v2 = vrot.slane %v688_v31, %v7028_v10  ;;  %v701_v58 = vrot.slane %v688_v31, %v6590_v47 }
 0x2c1   : > { %v730_v59 = vsub.f32 %v7000_v54, %v693_v23  ;;  %v731_v44 = vsub.f32 %v7015_v15, %v693_v23  ;;  %v732_v48 = vsub.f32 %v7037_v21, %v697_v7  ;;  %v733_v32 = vsub.f32 %v7041_v53, %v697_v7  ;;  %v7393_v23 = vpop.permute.xlu1 %2572 }
 0x2c2   : > { %v7386_v54 = vsub.s32 7, %v6531_v1  ;;  %v7389_v15 = vrot.slane %v688_v31, %v7220_v24  ;;  %v740_v21 = vsub.f32 %v6992_v50, %v7381_v2  ;;  %10887 = vst [vmem:[#allocation186_spill] sm:$0xff] %v7393_v23  ;;  %v705_v7 = vrot.slane %v688_v31, %v6714_v36 }
 0x2c3   : > { %v746_v55 = vmul.f32 1.442695, %v730_v59  ;;  %v748_v45 = vmul.f32 1.442695, %v731_v44  ;;  %v750_v22 = vmul.f32 1.442695, %v732_v48  ;;  %v734_v59 = vsub.f32 %v7032_v5, %v701_v58 }
 0x2c4   : > { %10886 = vst [vmem:[#allocation185_spill] sm:$0xff] %v7386_v54  ;;  %v752_v44 = vmul.f32 1.442695, %v733_v32  ;;  %v7397_v53 = vrot.slane %v688_v31, %v7386_v54  ;;  %v766_v48 = vmul.f32 1.442695, %v740_v21 }
 0x2c5   : > { %6223 = vpow2.f32 %v746_v55  ;;  %v735_v55 = vsub.f32 %v7070_v30, %v701_v58  ;;  %v754_v1 = vmul.f32 1.442695, %v734_v59  ;;  %v7403_v50 = vpop.permute.xlu1 %2580 }
 0x2c6   : > { %6225 = vpow2.f32 %v748_v45  ;;  %v742_v45 = vsub.f32 %v7039_v60, %v7389_v15  ;;  %10888 = vst [vmem:[#allocation187_spill] sm:$0xff] %v7403_v50  ;;  %v744_v32 = vsub.f32 %v7025_v27, %v7397_v53  ;;  %v736_v60 = vsub.f32 %v7018_v43, %v705_v7 }
 0x2c7   : > { %6227 = vpow2.f32 %v750_v22  ;;  %v756_v21 = vmul.f32 1.442695, %v735_v55  ;;  %v709_v27 = vrot.slane %v688_v31, %v6924_v20 }
 0x2c8   : > { %6229 = vpow2.f32 %v752_v44  ;;  %v770_v5 = vmul.f32 1.442695, %v742_v45  ;;  %v774_v58 = vmul.f32 1.442695, %v744_v32  ;;  %v737_v44 = vsub.f32 %v7059_v29, %v705_v7 }
 0x2c9   : > { %6231 = vpow2.f32 %v766_v48  ;;  %v7416_v59 = vpop.permute.xlu1 %2591  ;;  %v758_v45 = vmul.f32 1.442695, %v736_v60  ;;  %v738_v43 = vsub.f32 %v7005_v12, %v709_v27  ;;  %v739_v7 = vsub.f32 %v7052_v61, %v709_v27 }
 0x2ca   : > { %6233 = vpow2.f32 %v754_v1  ;;  %10891 = vst [vmem:[#allocation190_spill] sm:$0xff] %v7416_v59  ;;  %v760_v55 = vmul.f32 1.442695, %v737_v44  ;;  %v10897_v61 = vunpack.c.l.bf16 %v7213_v52  ;;  %v745_v52 = vsub.f32 %v7063_v16, %v7397_v53 }
 0x2cb   : > { %6235 = vpow2.f32 %v770_v5  ;;  %v762_v5 = vmul.f32 1.442695, %v738_v43  ;;  %v764_v44 = vmul.f32 1.442695, %v739_v7  ;;  %v7452_v43 = vpop.permute.xlu0 %2614 }
 0x2cc   : > { %6237 = vpow2.f32 %v756_v21  ;;  %v3074_v27 = vrot.slane %v10897_v61, %v7386_v54  ;;  %10898 = vst [vmem:[#allocation196_spill] sm:$0xff] %v7452_v43  ;;  %v776_v61 = vmul.f32 1.442695, %v745_v52 }
 0x2cd   : > { %6239 = vpow2.f32 %v774_v58  ;;  %v7427_v32 = vpop.permute.xlu1 %2599  ;;  %v741_v58 = vsub.f32 %v7048_v41, %v7381_v2 }
 0x2ce   : > { %6241 = vpow2.f32 %v758_v45  ;;  %10893 = vst [vmem:[#allocation192_spill] sm:$0xff] %v7427_v32 }
 0x2cf   : > { %v7405_v23 = vpop.eup %6223  ;;  %6243 = vpow2.f32 %v760_v55  ;;  %v743_v55 = vsub.f32 %v7074_v17, %v7389_v15  ;;  %v10901_v17 = vunpack.c.l.bf16 %v7231_v34  ;;  %v10906_v34 = vunpack.c.l.bf16 %v7244_v38 }
 0x2d0   : > { %10889 = vst [vmem:[#allocation188_spill] sm:$0xff] %v7405_v23  ;;  %v7409_v22 = vpop.eup %6225  ;;  %795 = vperm.xlu1 %6211, %v7405_v23   ;;  %6245 = vpow2.f32 %v762_v5  ;;  %v7464_v5 = vpop.permute.xlu0 %2625 }
 0x2d1   : > { %10890 = vst [vmem:[#allocation189_spill] sm:$0xff] %v7409_v22  ;;  %798 = vperm.xlu0 %6212, %v7409_v22   ;;  %v7414_v30 = vpop.eup %6227  ;;  %v7439_v12 = vpop.permute.xlu1 %2610  ;;  %6247 = vpow2.f32 %v764_v44  ;;  %v768_v22 = vmul.f32 1.442695, %v741_v58  ;;  %v772_v7 = vmul.f32 1.442695, %v743_v55  ;;  %10900 = vst [vmem:[#allocation198_spill] sm:$0xff] %v7464_v5  ;;  %v3093_v15 = vrot.slane %v10901_v17, %v7386_v54 }
 0x2d2   : > { %v7421_v48 = vpop.eup %6229  ;;  %10895 = vst [vmem:[#allocation194_spill] sm:$0xff] %v7439_v12 }
 0x2d3   : > { %v7424_v1 = vpop.eup %6231  ;;  %6249 = vpow2.f32 %v768_v22  ;;  %v3112_v22 = vrot.slane %v10906_v34, %v7386_v54 }
 0x2d4   : > { %801 = vperm.xlu1 %6211, %v7414_v30   ;;  %10892 = vst [vmem:[#allocation191_spill] sm:$0xff] %v7424_v1  ;;  %v7430_v31 = vpop.eup %6233  ;;  %6251 = vpow2.f32 %v772_v7  ;;  %v7476_v16 = vpop.permute.xlu0 %2633 }
 0x2d5   : > { %825 = vperm.xlu0 %6212, %v7424_v1   ;;  %v7433_v29 = vpop.eup %6235  ;;  %v7457_v41 = vpop.permute.xlu1 %2618  ;;  %10904 = vst [vmem:[#allocation201_spill] sm:$0xff] %v7476_v16  ;;  %6253 = vpow2.f32 %v776_v61  ;;  %v10911_v61 = vunpack.c.l.bf16 %v7258_v35 }
 0x2d6   : > { %10894 = vst [vmem:[#allocation193_spill] sm:$0xff] %v7433_v29  ;;  %v7437_v60 = vpop.eup %6237  ;;  %10899 = vst [vmem:[#allocation197_spill] sm:$0xff] %v7457_v41 }
 0x2d7   : > { %v7442_v21 = vpop.eup %6239  ;;  %v3131_v16 = vrot.slane %v10911_v61, %v7386_v54 }
 0x2d8   : > { %804 = vperm.xlu1 %6211, %v7421_v48   ;;  %10896 = vst [vmem:[#allocation195_spill] sm:$0xff] %v7442_v21  ;;  %v7450_v45 = vpop.eup %6241  ;;  %v7487_v52 = vpop.permute.xlu0 %2796 }
 0x2d9   : > { %831 = vperm.xlu0 %6212, %v7433_v29   ;;  %v7459_v2 = vpop.eup %6243  ;;  %v7471_v44 = vpop.permute.xlu1 %2629  ;;  %10908 = vst [vmem:[#allocation204_spill] sm:$0xff] %v7487_v52 }
 0x2da   : > { %v7469_v58 = vpop.eup %6245  ;;  %10902 = vst [vmem:[#allocation199_spill] sm:$0xff] %v7471_v44 }
 0x2db   : > { %v7474_v43 = vpop.eup %6247 }
 0x2dc   : > { %807 = vperm.xlu1 %6211, %v7430_v31   ;;  %10903 = vst [vmem:[#allocation200_spill] sm:$0xff] %v7474_v43  ;;  %v7499_v34 = vpop.permute.xlu0 %2804 }
 0x2dd   : > { %837 = vperm.xlu0 %6212, %v7442_v21   ;;  %v7479_v53 = vpop.permute.xlu1 %2637  ;;  %v7484_v55 = vpop.eup %6249  ;;  %10913 = vst [vmem:[#allocation208_spill] sm:$0xff] %v7499_v34 }
 0x2de   : > { %10905 = vst [vmem:[#allocation202_spill] sm:$0xff] %v7479_v53  ;;  %10907 = vst [vmem:[#allocation203_spill] sm:$0xff] %v7484_v55  ;;  %v7489_v7 = vpop.eup %6251 }
 0x2df   : > { %10909 = vst [vmem:[#allocation205_spill] sm:$0xff] %v7489_v7  ;;  %v7497_v38 = vpop.eup %6253 }
 0x2e0   : > { %810 = vperm.xlu1 %6211, %v7437_v60   ;;  %10912 = vst [vmem:[#allocation207_spill] sm:$0xff] %v7497_v38  ;;  %v7505_v52 = vpop.permute.xlu0 %2815 }
 0x2e1   : > { %3076 = vbcast.lane.b32.xlu0 %v3074_v27, 256  ;;  %v7491_v17 = vpop.permute.xlu1 %2800  ;;  %10915 = vst [vmem:[#allocation210_spill] sm:$0xff] %v7505_v52 }
 0x2e2   : > { %10910 = vst [vmem:[#allocation206_spill] sm:$0xff] %v7491_v17  ;;  %v10916_v17 = vunpack.c.l.bf16 %v7271_v49 }
 0x2e4   : > { %813 = vperm.xlu1 %6211, %v7450_v45   ;;  %v3150_v53 = vrot.slane %v10916_v17, %v7386_v54  ;;  %v7512_v61 = vpop.permute.xlu0 %2823  ;;  %v10923_v17 = vunpack.c.l.bf16 %v7295_v63 }
 0x2e5   : > { %3084 = vbcast.lane.b32.xlu0 %v3074_v27, 272  ;;  %v7502_v5 = vpop.permute.xlu1 %2808  ;;  %10918 = vst [vmem:[#allocation212_spill] sm:$0xff] %v7512_v61 }
 0x2e6   : > { %10914 = vst [vmem:[#allocation209_spill] sm:$0xff] %v7502_v5 }
 0x2e8   : > { %816 = vperm.xlu1 %6211, %v7459_v2   ;;  %v7519_v23 = vpop.permute.xlu0 %2834 }
 0x2e9   : > { %3095 = vbcast.lane.b32.xlu0 %v3093_v15, 256  ;;  %v7510_v35 = vpop.permute.xlu1 %2819  ;;  %10921 = vst [vmem:[#allocation214_spill] sm:$0xff] %v7519_v23 }
 0x2ea   : > { %10917 = vst [vmem:[#allocation211_spill] sm:$0xff] %v7510_v35 }
 0x2ec   : > { %819 = vperm.xlu1 %6211, %v7469_v58   ;;  %v7526_v35 = vpop.permute.xlu0 %2842 }
 0x2ed   : > { %3103 = vbcast.lane.b32.xlu0 %v3093_v15, 272  ;;  %v7514_v34 = vpop.permute.xlu1 %2827  ;;  %10924 = vst [vmem:[#allocation216_spill] sm:$0xff] %v7526_v35 }
 0x2ee   : > { %10919 = vst [vmem:[#allocation213_spill] sm:$0xff] %v7514_v34 }
 0x2f0   : > { %822 = vperm.xlu1 %6211, %v7474_v43  }
 0x2f1   : > { %3114 = vbcast.lane.b32.xlu0 %v3112_v22, 256  ;;  %v7521_v49 = vpop.permute.xlu1 %2838 }
 0x2f2   : > { %10922 = vst [vmem:[#allocation215_spill] sm:$0xff] %v7521_v49 }
 0x2f4   : > { %828 = vperm.xlu1 %6211, %v7484_v55  }
 0x2f5   : > { %3122 = vbcast.lane.b32.xlu0 %v3112_v22, 272  ;;  %v7528_v34 = vpop.permute.xlu1 %2846 }
 0x2f6   : > { %10925 = vst [vmem:[#allocation217_spill] sm:$0xff] %v7528_v34 }
 0x2f8   : > { %834 = vperm.xlu1 %6211, %v7489_v7  }
 0x2f9   : > { %3133 = vbcast.lane.b32.xlu0 %v3131_v16, 256  ;;  %v7535_v44 = vpop.permute.xlu1 %2857 }
 0x2fa   : > { %10928 = vst [vmem:[#allocation219_spill] sm:$0xff] %v7535_v44 }
 0x2fc   : > { %840 = vperm.xlu1 %6211, %v7497_v38   ;;  %v7538_v38 = vld [vmem:[%s6520_s16 + $0x4] sm:$0x1] }
 0x2fd   : > { %3141 = vbcast.lane.b32.xlu0 %v3131_v16, 272  ;;  %v10587_v63 = vunpack.c.l.bf16 %v7538_v38  ;;  %v10946_v23 = vunpack.c.l.bf16 %v7538_v38 }
 0x2ff   : > { %v3658_v44 = vrot.slane %v10946_v23, %v6574_v37 }
 0x300   : > { %2941 = vbcast.lane.b32.xlu1 %v7318_v28, 280  ;;  %v10920_v28 = vunpack.c.l.bf16 %v7282_v46  ;;  %v7530_v46 = vpop.permute.xlu0 %2853 }
 0x301   : > { %3152 = vbcast.lane.b32.xlu0 %v3150_v53, 256  ;;  %10926 = vst [vmem:[#allocation218_spill] sm:$0xff] %v7530_v46 }
 0x302   : > { %v3169_v5 = vrot.slane %v10920_v28, %v7386_v54  ;;  %v10927_v28 = vunpack.c.l.bf16 %v7308_v57  ;;  %v3378_v57 = vrot.slane %v10587_v63, %v6534_v3  ;;  %v7562_v63 = vld [vmem:[%s6520_s16 + $0x14] sm:$0x1] }
 0x304   : > { %3080 = vbcast.lane.b32.xlu1 %v3074_v27, 264 }
 0x305   : > { %3160 = vbcast.lane.b32.xlu0 %v3150_v53, 272 }
 0x308   : > { %3088 = vbcast.lane.b32.xlu1 %v3074_v27, 280  ;;  %v3188_v27 = vrot.slane %v10923_v17, %v7386_v54  ;;  %v7541_v17 = vpop.permute.xlu0 %2861 }
 0x309   : > { %3171 = vbcast.lane.b32.xlu0 %v3169_v5, 256  ;;  %10929 = vst [vmem:[#allocation220_spill] sm:$0xff] %v7541_v17 }
 0x30c   : > { %3099 = vbcast.lane.b32.xlu1 %v3093_v15, 264  ;;  %v7551_v41 = vpop.permute.xlu0 %2872 }
 0x30d   : > { %3179 = vbcast.lane.b32.xlu0 %v3169_v5, 272  ;;  %10931 = vst [vmem:[#allocation222_spill] sm:$0xff] %v7551_v41  ;;  %v10591_v41 = vunpack.c.l.bf16 %v7562_v63 }
 0x310   : > { %3107 = vbcast.lane.b32.xlu1 %v3093_v15, 280  ;;  %v3207_v15 = vrot.slane %v10927_v28, %v7386_v54  ;;  %v7549_v28 = vld [vmem:[%s6520_s16 + $0xc] sm:$0x1]  ;;  %v7559_v7 = vpop.permute.xlu0 %2880 }
 0x311   : > { %3190 = vbcast.lane.b32.xlu0 %v3188_v27, 256  ;;  %v10589_v12 = vunpack.c.l.bf16 %v7549_v28  ;;  %10933 = vst [vmem:[#allocation224_spill] sm:$0xff] %v7559_v7  ;;  %v7575_v7 = vld [vmem:[%s6520_s16 + $0x1c] sm:$0x1] }
 0x312   : > { %v10592_v59 = vunpack.c.l.bf16 %v7575_v7 }
 0x314   : > { %3118 = vbcast.lane.b32.xlu1 %v3112_v22, 264  ;;  %v7567_v29 = vpop.permute.xlu0 %2891 }
 0x315   : > { %3198 = vbcast.lane.b32.xlu0 %v3188_v27, 272  ;;  %10935 = vst [vmem:[#allocation226_spill] sm:$0xff] %v7567_v29  ;;  %v3435_v29 = vrot.slane %v10592_v59, %v6534_v3  ;;  %v7599_v59 = vld [vmem:[%s6520_s16 + $0x2c] sm:$0x1] }
 0x318   : > { %3126 = vbcast.lane.b32.xlu1 %v3112_v22, 280  ;;  %v7543_v22 = vpop.permute.xlu1 %2865  ;;  %v7578_v55 = vpop.permute.xlu0 %2899 }
 0x319   : > { %3209 = vbcast.lane.b32.xlu0 %v3207_v15, 256  ;;  %10930 = vst [vmem:[#allocation221_spill] sm:$0xff] %v7543_v22  ;;  %10937 = vst [vmem:[#allocation228_spill] sm:$0xff] %v7578_v55 }
 0x31c   : > { %3137 = vbcast.lane.b32.xlu1 %v3131_v16, 264  ;;  %v7554_v21 = vpop.permute.xlu1 %2876 }
 0x31d   : > { %3217 = vbcast.lane.b32.xlu0 %v3207_v15, 272  ;;  %10932 = vst [vmem:[#allocation223_spill] sm:$0xff] %v7554_v21 }
 0x320   : > { %3145 = vbcast.lane.b32.xlu1 %v3131_v16, 280  ;;  %v3397_v16 = vrot.slane %v10589_v12, %v6534_v3  ;;  %v7564_v32 = vpop.permute.xlu1 %2884 }
 0x321   : > { %3380 = vbcast.lane.b32.xlu0 %v3378_v57, 256  ;;  %10934 = vst [vmem:[#allocation225_spill] sm:$0xff] %v7564_v32 }
 0x324   : > { %3156 = vbcast.lane.b32.xlu1 %v3150_v53, 264  ;;  %v7572_v12 = vpop.permute.xlu1 %2895 }
 0x325   : > { %3388 = vbcast.lane.b32.xlu0 %v3378_v57, 272  ;;  %10936 = vst [vmem:[#allocation227_spill] sm:$0xff] %v7572_v12  ;;  %v7588_v12 = vpop.permute.xlu0 %2910 }
 0x326   : > { %10939 = vst [vmem:[#allocation230_spill] sm:$0xff] %v7588_v12  ;;  %v10594_v12 = vunpack.c.l.bf16 %v7599_v59 }
 0x328   : > { %3164 = vbcast.lane.b32.xlu1 %v3150_v53, 280  ;;  %v3416_v53 = vrot.slane %v10591_v41, %v6534_v3  ;;  %v7586_v41 = vld [vmem:[%s6520_s16 + $0x24] sm:$0x1] }
 0x329   : > { %3399 = vbcast.lane.b32.xlu0 %v3397_v16, 256  ;;  %v10593_v17 = vunpack.c.l.bf16 %v7586_v41  ;;  %v7596_v55 = vpop.permute.xlu0 %2918 }
 0x32a   : > { %10941 = vst [vmem:[#allocation232_spill] sm:$0xff] %v7596_v55  ;;  %v7612_v55 = vld [vmem:[%s6520_s16 + $0x34] sm:$0x1] }
 0x32c   : > { %3175 = vbcast.lane.b32.xlu1 %v3169_v5, 264 }
 0x32d   : > { %3407 = vbcast.lane.b32.xlu0 %v3397_v16, 272  ;;  %v7604_v50 = vpop.permute.xlu0 %2929 }
 0x32e   : > { %10943 = vst [vmem:[#allocation234_spill] sm:$0xff] %v7604_v50 }
 0x330   : > { %3183 = vbcast.lane.b32.xlu1 %v3169_v5, 280  ;;  %v7580_v5 = vpop.permute.xlu1 %2903 }
 0x331   : > { %3418 = vbcast.lane.b32.xlu0 %v3416_v53, 256  ;;  %10938 = vst [vmem:[#allocation229_spill] sm:$0xff] %v7580_v5 }
 0x334   : > { %3194 = vbcast.lane.b32.xlu1 %v3188_v27, 264  ;;  %v7591_v32 = vpop.permute.xlu1 %2914 }
 0x335   : > { %3426 = vbcast.lane.b32.xlu0 %v3416_v53, 272  ;;  %10940 = vst [vmem:[#allocation231_spill] sm:$0xff] %v7591_v32  ;;  %v7615_v32 = vpop.permute.xlu0 %2937 }
 0x336   : > { %10945 = vst [vmem:[#allocation236_spill] sm:$0xff] %v7615_v32 }
 0x338   : > { %3202 = vbcast.lane.b32.xlu1 %v3188_v27, 280  ;;  %v3454_v27 = vrot.slane %v10593_v17, %v6534_v3  ;;  %v7601_v5 = vpop.permute.xlu1 %2922 }
 0x339   : > { %3437 = vbcast.lane.b32.xlu0 %v3435_v29, 256  ;;  %10942 = vst [vmem:[#allocation233_spill] sm:$0xff] %v7601_v5  ;;  %v10596_v5 = vunpack.c.l.bf16 %v7612_v55 }
 0x33c   : > { %3213 = vbcast.lane.b32.xlu1 %v3207_v15, 264  ;;  %v7609_v17 = vpop.permute.xlu1 %2933 }
 0x33d   : > { %3445 = vbcast.lane.b32.xlu0 %v3435_v29, 272  ;;  %10944 = vst [vmem:[#allocation235_spill] sm:$0xff] %v7609_v17 }
 0x340   : > { %3221 = vbcast.lane.b32.xlu1 %v3207_v15, 280  ;;  %v3473_v15 = vrot.slane %v10594_v12, %v6534_v3  ;;  %v7621_v12 = vld [vmem:[%s6520_s16 + $0x3c] sm:$0x1] }
 0x341   : > { %3456 = vbcast.lane.b32.xlu0 %v3454_v27, 256  ;;  %v10597_v17 = vunpack.c.l.bf16 %v7621_v12 }
 0x344   : > { %3384 = vbcast.lane.b32.xlu1 %v3378_v57, 264 }
 0x345   : > { %3464 = vbcast.lane.b32.xlu0 %v3454_v27, 272 }
 0x348   : > { %3392 = vbcast.lane.b32.xlu1 %v3378_v57, 280  ;;  %v3492_v57 = vrot.slane %v10596_v5, %v6534_v3 }
 0x349   : > { %3475 = vbcast.lane.b32.xlu0 %v3473_v15, 256 }
 0x34c   : > { %3403 = vbcast.lane.b32.xlu1 %v3397_v16, 264 }
 0x34d   : > { %3483 = vbcast.lane.b32.xlu0 %v3473_v15, 272 }
 0x34f   : > { %v796_v46 = vpop.permute.xlu1 %795 }
 0x350   : > { %3411 = vbcast.lane.b32.xlu1 %v3397_v16, 280  ;;  %v799_v50 = vpop.permute.xlu0 %798  ;;  %v3511_v16 = vrot.slane %v10597_v17, %v6534_v3 }
 0x351   : > { %3494 = vbcast.lane.b32.xlu0 %v3492_v57, 256  ;;  %v849_v39 = vrot.slane %v799_v50, %v7119_v14 }
 0x353   : > { %v802_v21 = vpop.permute.xlu1 %801 }
 0x354   : > { %3422 = vbcast.lane.b32.xlu1 %v3416_v53, 264  ;;  %v826_v35 = vpop.permute.xlu0 %825 }
 0x355   : > { %3502 = vbcast.lane.b32.xlu0 %v3492_v57, 272 }
 0x357   : > { %v805_v1 = vpop.permute.xlu1 %804 }
 0x358   : > { %3430 = vbcast.lane.b32.xlu1 %v3416_v53, 280  ;;  %v832_v22 = vpop.permute.xlu0 %831  ;;  %v858_v23 = vrot.slane %v805_v1, %v7119_v14 }
 0x359   : > { %3513 = vbcast.lane.b32.xlu0 %v3511_v16, 256 }
 0x35b   : > { %v808_v32 = vpop.permute.xlu1 %807 }
 0x35c   : > { %3441 = vbcast.lane.b32.xlu1 %v3435_v29, 264  ;;  %v838_v9 = vpop.permute.xlu0 %837 }
 0x35d   : > { %3521 = vbcast.lane.b32.xlu0 %v3511_v16, 272 }
 0x35f   : > { %v811_v5 = vpop.permute.xlu1 %810 }
 0x360   : > { %3449 = vbcast.lane.b32.xlu1 %v3435_v29, 280  ;;  %v7630_v53 = vpop.permute.xlu0 %3076 }
 0x361   : > { %10947 = vst [vmem:[#allocation237_spill] sm:$0xff] %v7630_v53  ;;  %3660 = vbcast.lane.b32.xlu0 %v3658_v44, 256  ;;  %v867_v53 = vrot.slane %v811_v5, %v7119_v14 }
 0x363   : > { %v814_v61 = vpop.permute.xlu1 %813 }
 0x364   : > { %3460 = vbcast.lane.b32.xlu1 %v3454_v27, 264  ;;  %v7632_v52 = vpop.permute.xlu0 %3084 }
 0x365   : > { %3668 = vbcast.lane.b32.xlu0 %v3658_v44, 272  ;;  %10948 = vst [vmem:[#allocation238_spill] sm:$0xff] %v7632_v52  ;;  %v854_v52 = vrot.slane %v802_v21, %v7127_v6 }
 0x367   : > { %v817_v34 = vpop.permute.xlu1 %816  ;;  %v859_v1 = vsel %vm605_vm2, %v858_v23, %v854_v52 }
 0x368   : > { %3468 = vbcast.lane.b32.xlu1 %v3454_v27, 280  ;;  %v7634_v29 = vpop.permute.xlu0 %3095  ;;  %v845_v27 = vrot.slane %v796_v46, %v7127_v6 }
 0x369   : > { %10949 = vst [vmem:[#allocation239_spill] sm:$0xff] %v7634_v29  ;;  %v863_v29 = vrot.slane %v808_v32, %v7127_v6  ;;  %v890_v32 = vrot.slane %v826_v35, %v7127_v6 }
 0x36b   : > { %v820_v17 = vpop.permute.xlu1 %819  ;;  %v868_v46 = vsel %vm605_vm2, %v867_v53, %v863_v29 }
 0x36c   : > { %3479 = vbcast.lane.b32.xlu1 %v3473_v15, 264  ;;  %v7637_v0 = vpop.permute.xlu0 %3103  ;;  %v881_v50 = vrot.slane %v820_v17, %v7127_v6  ;;  %v908_v17 = vrot.slane %v838_v9, %v7127_v6 }
 0x36d   : > { %10950 = vst [vmem:[#allocation240_spill] sm:$0xff] %v7637_v0  ;;  %v872_v0 = vrot.slane %v814_v61, %v7127_v6 }
 0x36f   : > { %v823_v33 = vpop.permute.xlu1 %822 }
 0x370   : > { %3487 = vbcast.lane.b32.xlu1 %v3473_v15, 280  ;;  %v876_v15 = vrot.slane %v817_v34, %v7119_v14  ;;  %v885_v19 = vrot.slane %v823_v33, %v7119_v14  ;;  %v850_v34 = vsel %vm605_vm2, %v849_v39, %v845_v27  ;;  %v7655_v5 = vpop.permute.xlu0 %3114 }
 0x371   : > { %10951 = vst [vmem:[#allocation241_spill] sm:$0xff] %v7655_v5  ;;  %v914_v61 = vsel %vm670_vm3, %v859_v1, %v850_v34  ;;  %v11147_v5 = vld [vmem:[#allocation55_spill] sm:$0xff] }
 0x372   : > { %v877_v33 = vsel %vm605_vm2, %v876_v15, %v872_v0  ;;  %v886_v53 = vsel %vm605_vm2, %v885_v19, %v881_v50  ;;  %v915_v39 = vsel %vm672_vm4, %v868_v46, %v914_v61 }
 0x373   : > { %v829_v49 = vpop.permute.xlu1 %828  ;;  %v916_v0 = vsel %vm674_vm5, %v877_v33, %v915_v39  ;;  %v10961_v33 = vunpack.c.l.bf16 %v7562_v63  ;;  %v10967_v63 = vunpack.c.l.bf16 %v7586_v41 }
 0x374   : > { %3498 = vbcast.lane.b32.xlu1 %v3492_v57, 264  ;;  %v7673_v27 = vpop.permute.xlu0 %3122 }
 0x375   : > { %10954 = vst [vmem:[#allocation244_spill] sm:$0xff] %v7673_v27 }
 0x377   : > { %v835_v38 = vpop.permute.xlu1 %834 }
 0x378   : > { %3506 = vbcast.lane.b32.xlu1 %v3492_v57, 280  ;;  %v894_v57 = vrot.slane %v829_v49, %v7119_v14  ;;  %v903_v21 = vrot.slane %v835_v38, %v7119_v14  ;;  %v899_v49 = vrot.slane %v832_v22, %v7127_v6  ;;  %v7683_v50 = vpop.permute.xlu0 %3133 }
 0x379   : > { %10957 = vst [vmem:[#allocation246_spill] sm:$0xff] %v7683_v50 }
 0x37a   : > { %v895_v35 = vsel %vm605_vm2, %v894_v57, %v890_v32  ;;  %v904_v38 = vsel %vm605_vm2, %v903_v21, %v899_v49  ;;  %v10956_v57 = vunpack.c.l.bf16 %v7549_v28  ;;  %v10963_v49 = vunpack.c.l.bf16 %v7575_v7 }
 0x37b   : > { %v841_v43 = vpop.permute.xlu1 %840 }
 0x37c   : > { %3517 = vbcast.lane.b32.xlu1 %v3511_v16, 264  ;;  %v912_v52 = vrot.slane %v841_v43, %v7119_v14  ;;  %v917_v43 = vsel %vm676_vm6, %v886_v53, %v916_v0  ;;  %v3677_v46 = vrot.slane %v10956_v57, %v6574_v37  ;;  %v7689_v32 = vpop.permute.xlu0 %3141  ;;  %v3715_v53 = vrot.slane %v10963_v49, %v6574_v37 }
 0x37d   : > { %v918_v19 = vsel %vm678_vm7, %v895_v35, %v917_v43  ;;  %10960 = vst [vmem:[#allocation249_spill] sm:$0xff] %v7689_v32  ;;  %v3734_v0 = vrot.slane %v10967_v63, %v6574_v37  ;;  %v10976_v57 = vunpack.c.l.bf16 %v7612_v55 }
 0x37e   : > { %v913_v23 = vsel %vm605_vm2, %v912_v52, %v908_v17  ;;  %v919_v9 = vsel %vm680_vm8, %v904_v38, %v918_v19  ;;  %v3696_v52 = vrot.slane %v10961_v33, %v6574_v37  ;;  %v10972_v19 = vunpack.c.l.bf16 %v7599_v59 }
 0x37f   : > { %v7661_v29 = vpop.permute.xlu1 %2941  ;;  %v920_v15 = vsel %vm682_vm9, %v913_v23, %v919_v9 }
 0x380   : > { %10952 = vst [vmem:[#allocation242_spill] sm:$0xff] %v7661_v29  ;;  %3525 = vbcast.lane.b32.xlu1 %v3511_v16, 280  ;;  %v922_v1 = vsel %vm685_vm10, %v920_v15, 0.0  ;;  %v7696_v28 = vpop.permute.xlu0 %3152  ;;  %v3753_v9 = vrot.slane %v10972_v19, %v6574_v37  ;;  %v7742_v19 = vld [vmem:[%s6520_s16 + $0x4] sm:$0x2] }
 0x381   : > { %10962 = vst [vmem:[#allocation250_spill] sm:$0xff] %v7696_v28  ;;  %v10603_v55 = vunpack.c.l.bf16 %v7742_v19 }
 0x383   : > { %v7670_v22 = vpop.permute.xlu1 %3080 }
 0x384   : > { %10953 = vst [vmem:[#allocation243_spill] sm:$0xff] %v7670_v22  ;;  %3664 = vbcast.lane.b32.xlu1 %v3658_v44, 264  ;;  %923 = vadd.xlane.f32.xlu0 %v922_v1  ;;  %v7705_v39 = vpop.permute.xlu0 %3160 }
 0x385   : > { %10965 = vst [vmem:[#allocation252_spill] sm:$0xff] %v7705_v39  ;;  %v7829_v39 = vld [vmem:[%s6520_s16 + $0x3c] sm:$0x2] }
 0x387   : > { %v7677_v16 = vpop.permute.xlu1 %3088 }
 0x388   : > { %10955 = vst [vmem:[#allocation245_spill] sm:$0xff] %v7677_v16  ;;  %3672 = vbcast.lane.b32.xlu1 %v3658_v44, 280  ;;  %v7712_v38 = vpop.permute.xlu0 %3171 }
 0x389   : > { %10968 = vst [vmem:[#allocation254_spill] sm:$0xff] %v7712_v38 }
 0x38b   : > { %v7685_v21 = vpop.permute.xlu1 %3099 }
 0x38c   : > { %10958 = vst [vmem:[#allocation247_spill] sm:$0xff] %v7685_v21  ;;  %3683 = vbcast.lane.b32.xlu1 %v3677_v46, 264  ;;  %v7718_v23 = vpop.permute.xlu0 %3179 }
 0x38d   : > { %10971 = vst [vmem:[#allocation257_spill] sm:$0xff] %v7718_v23 }
 0x38f   : > { %v7687_v34 = vpop.permute.xlu1 %3107 }
 0x390   : > { %10959 = vst [vmem:[#allocation248_spill] sm:$0xff] %v7687_v34  ;;  %3691 = vbcast.lane.b32.xlu1 %v3677_v46, 280  ;;  %v7725_v41 = vpop.permute.xlu0 %3190 }
 0x391   : > { %10974 = vst [vmem:[#allocation259_spill] sm:$0xff] %v7725_v41 }
 0x393   : > { %v7694_v44 = vpop.permute.xlu1 %3118 }
 0x394   : > { %3702 = vbcast.lane.b32.xlu1 %v3696_v52, 264  ;;  %v7734_v59 = vpop.permute.xlu0 %3198 }
 0x395   : > { %10978 = vst [vmem:[#allocation262_spill] sm:$0xff] %v7734_v59 }
 0x397   : > { %v7698_v61 = vpop.permute.xlu1 %3126 }
 0x398   : > { %3710 = vbcast.lane.b32.xlu1 %v3696_v52, 280  ;;  %v7744_v6 = vpop.permute.xlu0 %3209 }
 0x399   : > { %10981 = vst [vmem:[#allocation264_spill] sm:$0xff] %v7744_v6 }
 0x39a   : > { %3679 = vbcast.lane.b32.xlu0 %v3677_v46, 256 }
 0x39b   : > { %v7703_v17 = vpop.permute.xlu1 %3137 }
 0x39c   : > { %10964 = vst [vmem:[#allocation251_spill] sm:$0xff] %v7703_v17  ;;  %3721 = vbcast.lane.b32.xlu1 %v3715_v53, 264 }
 0x39e   : > { %3687 = vbcast.lane.b32.xlu0 %v3677_v46, 272  ;;  %v3772_v46 = vrot.slane %v10976_v57, %v6574_v37  ;;  %v7749_v57 = vpop.permute.xlu0 %3217 }
 0x39f   : > { %v7707_v35 = vpop.permute.xlu1 %3145  ;;  %10983 = vst [vmem:[#allocation266_spill] sm:$0xff] %v7749_v57 }
 0x3a0   : > { %10966 = vst [vmem:[#allocation253_spill] sm:$0xff] %v7707_v35  ;;  %3729 = vbcast.lane.b32.xlu1 %v3715_v53, 280 }
 0x3a2   : > { %3698 = vbcast.lane.b32.xlu0 %v3696_v52, 256  ;;  %v7760_v34 = vpop.permute.xlu0 %3380 }
 0x3a3   : > { %v7714_v43 = vpop.permute.xlu1 %3156  ;;  %10985 = vst [vmem:[#allocation268_spill] sm:$0xff] %v7760_v34 }
 0x3a4   : > { %10969 = vst [vmem:[#allocation255_spill] sm:$0xff] %v7714_v43  ;;  %3740 = vbcast.lane.b32.xlu1 %v3734_v0, 264 }
 0x3a6   : > { %3706 = vbcast.lane.b32.xlu0 %v3696_v52, 272  ;;  %v10980_v52 = vunpack.c.l.bf16 %v7621_v12  ;;  %v3962_v12 = vrot.slane %v10603_v55, %v6590_v47  ;;  %v7768_v55 = vld [vmem:[%s6520_s16 + $0x14] sm:$0x2]  ;;  %v7770_v16 = vpop.permute.xlu0 %3388 }
 0x3a7   : > { %v7716_v7 = vpop.permute.xlu1 %3164  ;;  %10987 = vst [vmem:[#allocation270_spill] sm:$0xff] %v7770_v16 }
 0x3a8   : > { %10970 = vst [vmem:[#allocation256_spill] sm:$0xff] %v7716_v7  ;;  %3748 = vbcast.lane.b32.xlu1 %v3734_v0, 280  ;;  %v3791_v63 = vrot.slane %v10980_v52, %v6574_v37  ;;  %v7755_v52 = vld [vmem:[%s6520_s16 + $0xc] sm:$0x2] }
 0x3aa   : > { %3717 = vbcast.lane.b32.xlu0 %v3715_v53, 256 }
 0x3ab   : > { %v7723_v15 = vpop.permute.xlu1 %3175 }
 0x3ac   : > { %10973 = vst [vmem:[#allocation258_spill] sm:$0xff] %v7723_v15  ;;  %3759 = vbcast.lane.b32.xlu1 %v3753_v9, 264 }
 0x3ae   : > { %3725 = vbcast.lane.b32.xlu0 %v3715_v53, 272 }
 0x3af   : > { %v7727_v1 = vpop.permute.xlu1 %3183 }
 0x3b0   : > { %10975 = vst [vmem:[#allocation260_spill] sm:$0xff] %v7727_v1  ;;  %3767 = vbcast.lane.b32.xlu1 %v3753_v9, 280 }
 0x3b2   : > { %3736 = vbcast.lane.b32.xlu0 %v3734_v0, 256 }
 0x3b3   : > { %v7732_v33 = vpop.permute.xlu1 %3194 }
 0x3b4   : > { %10977 = vst [vmem:[#allocation261_spill] sm:$0xff] %v7732_v33  ;;  %3778 = vbcast.lane.b32.xlu1 %v3772_v46, 264 }
 0x3b6   : > { %3744 = vbcast.lane.b32.xlu0 %v3734_v0, 272  ;;  %v10604_v0 = vunpack.c.l.bf16 %v7755_v52 }
 0x3b7   : > { %v7736_v49 = vpop.permute.xlu1 %3202 }
 0x3b8   : > { %10979 = vst [vmem:[#allocation263_spill] sm:$0xff] %v7736_v49  ;;  %3786 = vbcast.lane.b32.xlu1 %v3772_v46, 280  ;;  %v3981_v21 = vrot.slane %v10604_v0, %v6590_v47  ;;  %v7779_v0 = vld [vmem:[%s6520_s16 + $0x1c] sm:$0x2] }
 0x3ba   : > { %3755 = vbcast.lane.b32.xlu0 %v3753_v9, 256 }
 0x3bb   : > { %v7747_v53 = vpop.permute.xlu1 %3213 }
 0x3bc   : > { %3797 = vbcast.lane.b32.xlu1 %v3791_v63, 264  ;;  %10982 = vst [vmem:[#allocation265_spill] sm:$0xff] %v7747_v53 }
 0x3be   : > { %3763 = vbcast.lane.b32.xlu0 %v3753_v9, 272  ;;  %v10605_v9 = vunpack.c.l.bf16 %v7768_v55 }
 0x3bf   : > { %v7757_v14 = vpop.permute.xlu1 %3221 }
 0x3c0   : > { %3805 = vbcast.lane.b32.xlu1 %v3791_v63, 280  ;;  %10984 = vst [vmem:[#allocation267_spill] sm:$0xff] %v7757_v14  ;;  %v4000_v34 = vrot.slane %v10605_v9, %v6590_v47  ;;  %v7792_v9 = vld [vmem:[%s6520_s16 + $0x24] sm:$0x2] }
 0x3c2   : > { %3774 = vbcast.lane.b32.xlu0 %v3772_v46, 256 }
 0x3c3   : > { %v7765_v57 = vpop.permute.xlu1 %3384 }
 0x3c4   : > { %3968 = vbcast.lane.b32.xlu1 %v3962_v12, 264  ;;  %10986 = vst [vmem:[#allocation269_spill] sm:$0xff] %v7765_v57  ;;  %v7781_v57 = vpop.permute.xlu0 %3399 }
 0x3c6   : > { %3782 = vbcast.lane.b32.xlu0 %v3772_v46, 272  ;;  %v10606_v46 = vunpack.c.l.bf16 %v7779_v0 }
 0x3c7   : > { %v7773_v6 = vpop.permute.xlu1 %3392 }
 0x3c8   : > { %3976 = vbcast.lane.b32.xlu1 %v3962_v12, 280  ;;  %10988 = vst [vmem:[#allocation271_spill] sm:$0xff] %v7773_v6  ;;  %v7786_v22 = vpop.permute.xlu0 %3407  ;;  %v4019_v6 = vrot.slane %v10606_v46, %v6590_v47  ;;  %v7805_v46 = vld [vmem:[%s6520_s16 + $0x2c] sm:$0x2] }
 0x3ca   : > { %3793 = vbcast.lane.b32.xlu0 %v3791_v63, 256 }
 0x3cb   : > { %v7784_v16 = vpop.permute.xlu1 %3403 }
 0x3cc   : > { %3987 = vbcast.lane.b32.xlu1 %v3981_v21, 264  ;;  %10989 = vst [vmem:[#allocation272_spill] sm:$0xff] %v7784_v16  ;;  %v7797_v14 = vpop.permute.xlu0 %3418 }
 0x3cd   : > { %10991 = vst [vmem:[#allocation274_spill] sm:$0xff] %v7797_v14  ;;  %v11146_v14 = vld [vmem:[#allocation31_spill] sm:$0xff] }
 0x3ce   : > { %3801 = vbcast.lane.b32.xlu0 %v3791_v63, 272  ;;  %v10607_v63 = vunpack.c.l.bf16 %v7792_v9 }
 0x3cf   : > { %v7794_v59 = vpop.permute.xlu1 %3411 }
 0x3d0   : > { %3995 = vbcast.lane.b32.xlu1 %v3981_v21, 280  ;;  %10990 = vst [vmem:[#allocation273_spill] sm:$0xff] %v7794_v59  ;;  %v4038_v16 = vrot.slane %v10607_v63, %v6590_v47  ;;  %v7807_v41 = vpop.permute.xlu0 %3426  ;;  %v7816_v63 = vld [vmem:[%s6520_s16 + $0x34] sm:$0x2] }
 0x3d1   : > { %10992 = vst [vmem:[#allocation275_spill] sm:$0xff] %v7807_v41 }
 0x3d2   : > { %3964 = vbcast.lane.b32.xlu0 %v3962_v12, 256 }
 0x3d3   : > { %v7802_v29 = vpop.permute.xlu1 %3422 }
 0x3d4   : > { %4006 = vbcast.lane.b32.xlu1 %v4000_v34, 264  ;;  %v7818_v23 = vpop.permute.xlu0 %3437 }
 0x3d5   : > { %10993 = vst [vmem:[#allocation276_spill] sm:$0xff] %v7818_v23 }
 0x3d6   : > { %3972 = vbcast.lane.b32.xlu0 %v3962_v12, 272  ;;  %v10608_v12 = vunpack.c.l.bf16 %v7805_v46 }
 0x3d7   : > { %v7810_v59 = vpop.permute.xlu1 %3430 }
 0x3d8   : > { %4014 = vbcast.lane.b32.xlu1 %v4000_v34, 280  ;;  %v4057_v53 = vrot.slane %v10608_v12, %v6590_v47  ;;  %v7823_v38 = vpop.permute.xlu0 %3445 }
 0x3d9   : > { %10995 = vst [vmem:[#allocation278_spill] sm:$0xff] %v7823_v38 }
 0x3da   : > { %3983 = vbcast.lane.b32.xlu0 %v3981_v21, 256 }
 0x3db   : > { %v7821_v49 = vpop.permute.xlu1 %3441 }
 0x3dc   : > { %4025 = vbcast.lane.b32.xlu1 %v4019_v6, 264  ;;  %10994 = vst [vmem:[#allocation277_spill] sm:$0xff] %v7821_v49  ;;  %v7834_v1 = vpop.permute.xlu0 %3456 }
 0x3dd   : > { %10997 = vst [vmem:[#allocation280_spill] sm:$0xff] %v7834_v1 }
 0x3de   : > { %3991 = vbcast.lane.b32.xlu0 %v3981_v21, 272  ;;  %v10609_v21 = vunpack.c.l.bf16 %v7816_v63 }
 0x3df   : > { %v7831_v12 = vpop.permute.xlu1 %3449 }
 0x3e0   : > { %4033 = vbcast.lane.b32.xlu1 %v4019_v6, 280  ;;  %v4076_v33 = vrot.slane %v10609_v21, %v6590_v47  ;;  %10996 = vst [vmem:[#allocation279_spill] sm:$0xff] %v7831_v12  ;;  %v7841_v21 = vpop.permute.xlu0 %3464 }
 0x3e1   : > { %10999 = vst [vmem:[#allocation282_spill] sm:$0xff] %v7841_v21 }
 0x3e2   : > { %4002 = vbcast.lane.b32.xlu0 %v4000_v34, 256 }
 0x3e3   : > { %v7839_v15 = vpop.permute.xlu1 %3460 }
 0x3e4   : > { %4044 = vbcast.lane.b32.xlu1 %v4038_v16, 264  ;;  %10998 = vst [vmem:[#allocation281_spill] sm:$0xff] %v7839_v15  ;;  %v7848_v32 = vpop.permute.xlu0 %3475 }
 0x3e5   : > { %11002 = vst [vmem:[#allocation284_spill] sm:$0xff] %v7848_v32 }
 0x3e6   : > { %4010 = vbcast.lane.b32.xlu0 %v4000_v34, 272  ;;  %v10610_v34 = vunpack.c.l.bf16 %v7829_v39 }
 0x3e7   : > { %v7843_v38 = vpop.permute.xlu1 %3468 }
 0x3e8   : > { %4052 = vbcast.lane.b32.xlu1 %v4038_v16, 280  ;;  %v4095_v28 = vrot.slane %v10610_v34, %v6590_v47  ;;  %11000 = vst [vmem:[#allocation283_spill] sm:$0xff] %v7843_v38  ;;  %v7852_v34 = vpop.permute.xlu0 %3483 }
 0x3e9   : > { %11004 = vst [vmem:[#allocation286_spill] sm:$0xff] %v7852_v34 }
 0x3ea   : > { %4021 = vbcast.lane.b32.xlu0 %v4019_v6, 256 }
 0x3eb   : > { %v7850_v7 = vpop.permute.xlu1 %3479 }
 0x3ec   : > { %4063 = vbcast.lane.b32.xlu1 %v4057_v53, 264  ;;  %11003 = vst [vmem:[#allocation285_spill] sm:$0xff] %v7850_v7 }
 0x3ee   : > { %4029 = vbcast.lane.b32.xlu0 %v4019_v6, 272  ;;  %v11001_v6 = vunpack.c.l.bf16 %v7742_v19  ;;  %v7859_v19 = vpop.permute.xlu0 %3494 }
 0x3ef   : > { %v7857_v38 = vpop.permute.xlu1 %3487  ;;  %11007 = vst [vmem:[#allocation288_spill] sm:$0xff] %v7859_v19 }
 0x3f0   : > { %4071 = vbcast.lane.b32.xlu1 %v4057_v53, 280  ;;  %v4242_v1 = vrot.slane %v11001_v6, %v6714_v36  ;;  %11006 = vst [vmem:[#allocation287_spill] sm:$0xff] %v7857_v38 }
 0x3f2   : > { %4040 = vbcast.lane.b32.xlu0 %v4038_v16, 256  ;;  %v7866_v34 = vpop.permute.xlu0 %3502 }
 0x3f3   : > { %v7864_v32 = vpop.permute.xlu1 %3498  ;;  %11010 = vst [vmem:[#allocation290_spill] sm:$0xff] %v7866_v34 }
 0x3f4   : > { %4082 = vbcast.lane.b32.xlu1 %v4076_v33, 264  ;;  %11009 = vst [vmem:[#allocation289_spill] sm:$0xff] %v7864_v32 }
 0x3f6   : > { %4048 = vbcast.lane.b32.xlu0 %v4038_v16, 272  ;;  %v11005_v16 = vunpack.c.l.bf16 %v7755_v52  ;;  %v7873_v19 = vpop.permute.xlu0 %3513 }
 0x3f7   : > { %v7868_v52 = vpop.permute.xlu1 %3506  ;;  %11013 = vst [vmem:[#allocation292_spill] sm:$0xff] %v7873_v19 }
 0x3f8   : > { %4090 = vbcast.lane.b32.xlu1 %v4076_v33, 280  ;;  %v4261_v21 = vrot.slane %v11005_v16, %v6714_v36  ;;  %11011 = vst [vmem:[#allocation291_spill] sm:$0xff] %v7868_v52 }
 0x3fa   : > { %4059 = vbcast.lane.b32.xlu0 %v4057_v53, 256 }
 0x3fc   : > { %4101 = vbcast.lane.b32.xlu1 %v4095_v28, 264 }
 0x3fe   : > { %4067 = vbcast.lane.b32.xlu0 %v4057_v53, 272  ;;  %v11008_v53 = vunpack.c.l.bf16 %v7768_v55  ;;  %v7875_v55 = vpop.permute.xlu1 %3517 }
 0x3ff   : > { %11014 = vst [vmem:[#allocation293_spill] sm:$0xff] %v7875_v55 }
 0x400   : > { %4109 = vbcast.lane.b32.xlu1 %v4095_v28, 280  ;;  %v4280_v6 = vrot.slane %v11008_v53, %v6714_v36  ;;  %v7877_v53 = vpop.permute.xlu0 %3521 }
 0x401   : > { %11015 = vst [vmem:[#allocation294_spill] sm:$0xff] %v7877_v53 }
 0x402   : > { %4078 = vbcast.lane.b32.xlu0 %v4076_v33, 256  ;;  %v7882_v52 = vpop.permute.xlu1 %3525 }
 0x403   : > { %11017 = vst [vmem:[#allocation295_spill] sm:$0xff] %v7882_v52 }
 0x404   : > { %4248 = vbcast.lane.b32.xlu1 %v4242_v1, 264 }
 0x406   : > { %4086 = vbcast.lane.b32.xlu0 %v4076_v33, 272  ;;  %v11012_v33 = vunpack.c.l.bf16 %v7779_v0  ;;  %v7884_v0 = vpop.permute.xlu0 %3660  ;;  %v7889_v19 = vpop.permute.xlu1 %3664 }
 0x407   : > { %11018 = vst [vmem:[#allocation296_spill] sm:$0xff] %v7884_v0  ;;  %11020 = vst [vmem:[#allocation297_spill] sm:$0xff] %v7889_v19 }
 0x408   : > { %4256 = vbcast.lane.b32.xlu1 %v4242_v1, 280  ;;  %v4299_v16 = vrot.slane %v11012_v33, %v6714_v36 }
 0x40a   : > { %4097 = vbcast.lane.b32.xlu0 %v4095_v28, 256  ;;  %v7891_v53 = vpop.permute.xlu0 %3668 }
 0x40b   : > { %11021 = vst [vmem:[#allocation298_spill] sm:$0xff] %v7891_v53 }
 0x40c   : > { %4267 = vbcast.lane.b32.xlu1 %v4261_v21, 264 }
 0x40e   : > { %4105 = vbcast.lane.b32.xlu0 %v4095_v28, 272  ;;  %v11016_v28 = vunpack.c.l.bf16 %v7792_v9  ;;  %v7893_v9 = vpop.permute.xlu1 %3672 }
 0x40f   : > { %11022 = vst [vmem:[#allocation299_spill] sm:$0xff] %v7893_v9 }
 0x410   : > { %4275 = vbcast.lane.b32.xlu1 %v4261_v21, 280  ;;  %v4318_v34 = vrot.slane %v11016_v28, %v6714_v36 }
 0x411   : > { %v7895_v28 = vpop.xlane.xlu0 %923 }
 0x412   : > { %4244 = vbcast.lane.b32.xlu0 %v4242_v1, 256  ;;  %6255 = vrcp.f32 %v7895_v28 }
 0x414   : > { %4286 = vbcast.lane.b32.xlu1 %v4280_v6, 264 }
 0x415   : > { %v7899_v0 = vpop.permute.xlu0 %3679 }
 0x416   : > { %4252 = vbcast.lane.b32.xlu0 %v4242_v1, 272  ;;  %v11019_v1 = vunpack.c.l.bf16 %v7805_v46 }
 0x418   : > { %4294 = vbcast.lane.b32.xlu1 %v4280_v6, 280  ;;  %v4337_v33 = vrot.slane %v11019_v1, %v6714_v36 }
 0x419   : > { %v7903_v1 = vpop.permute.xlu0 %3687 }
 0x41a   : > { %4263 = vbcast.lane.b32.xlu0 %v4261_v21, 256 }
 0x41c   : > { %4305 = vbcast.lane.b32.xlu1 %v4299_v16, 264 }
 0x41d   : > { %v7907_v53 = vpop.permute.xlu0 %3698 }
 0x41e   : > { %4271 = vbcast.lane.b32.xlu0 %v4261_v21, 272  ;;  %v7897_v21 = vpop.permute.xlu1 %3683  ;;  %11025 = vst [vmem:[#allocation302_spill] sm:$0xff] %v7907_v53 }
 0x41f   : > { %11023 = vst [vmem:[#allocation300_spill] sm:$0xff] %v7897_v21 }
 0x420   : > { %4313 = vbcast.lane.b32.xlu1 %v4299_v16, 280 }
 0x421   : > { %v7911_v19 = vpop.permute.xlu0 %3706 }
 0x422   : > { %4282 = vbcast.lane.b32.xlu0 %v4280_v6, 256  ;;  %v7901_v46 = vpop.permute.xlu1 %3691  ;;  %11026 = vst [vmem:[#allocation303_spill] sm:$0xff] %v7911_v19 }
 0x423   : > { %11024 = vst [vmem:[#allocation301_spill] sm:$0xff] %v7901_v46 }
 0x424   : > { %4324 = vbcast.lane.b32.xlu1 %v4318_v34, 264 }
 0x425   : > { %v7915_v21 = vpop.permute.xlu0 %3717 }
 0x426   : > { %4290 = vbcast.lane.b32.xlu0 %v4280_v6, 272  ;;  %v7905_v6 = vpop.permute.xlu1 %3702  ;;  %11028 = vst [vmem:[#allocation305_spill] sm:$0xff] %v7915_v21 }
 0x428   : > { %4332 = vbcast.lane.b32.xlu1 %v4318_v34, 280 }
 0x429   : > { %v7919_v46 = vpop.permute.xlu0 %3725 }
 0x42a   : > { %4301 = vbcast.lane.b32.xlu0 %v4299_v16, 256  ;;  %v7909_v9 = vpop.permute.xlu1 %3710  ;;  %11030 = vst [vmem:[#allocation307_spill] sm:$0xff] %v7919_v46 }
 0x42c   : > { %4343 = vbcast.lane.b32.xlu1 %v4337_v33, 264 }
 0x42d   : > { %v7923_v55 = vpop.permute.xlu0 %3736 }
 0x42e   : > { %4309 = vbcast.lane.b32.xlu0 %v4299_v16, 272  ;;  %v7913_v16 = vpop.permute.xlu1 %3721  ;;  %11032 = vst [vmem:[#allocation309_spill] sm:$0xff] %v7923_v55 }
 0x42f   : > { %11027 = vst [vmem:[#allocation304_spill] sm:$0xff] %v7913_v16 }
 0x430   : > { %4351 = vbcast.lane.b32.xlu1 %v4337_v33, 280 }
 0x431   : > { %v7927_v38 = vpop.permute.xlu0 %3744 }
 0x432   : > { %4320 = vbcast.lane.b32.xlu0 %v4318_v34, 256  ;;  %v7917_v52 = vpop.permute.xlu1 %3729  ;;  %11034 = vst [vmem:[#allocation311_spill] sm:$0xff] %v7927_v38 }
 0x433   : > { %11029 = vst [vmem:[#allocation306_spill] sm:$0xff] %v7917_v52 }
 0x435   : > { %v7931_v7 = vpop.permute.xlu0 %3755 }
 0x436   : > { %4328 = vbcast.lane.b32.xlu0 %v4318_v34, 272  ;;  %v7921_v34 = vpop.permute.xlu1 %3740  ;;  %11036 = vst [vmem:[#allocation313_spill] sm:$0xff] %v7931_v7 }
 0x437   : > { %11031 = vst [vmem:[#allocation308_spill] sm:$0xff] %v7921_v34 }
 0x439   : > { %v7935_v50 = vpop.permute.xlu0 %3763 }
 0x43a   : > { %4339 = vbcast.lane.b32.xlu0 %v4337_v33, 256  ;;  %v7925_v32 = vpop.permute.xlu1 %3748  ;;  %11038 = vst [vmem:[#allocation315_spill] sm:$0xff] %v7935_v50 }
 0x43b   : > { %11033 = vst [vmem:[#allocation310_spill] sm:$0xff] %v7925_v32 }
 0x43d   : > { %v7939_v15 = vpop.permute.xlu0 %3774 }
 0x43e   : > { %4347 = vbcast.lane.b32.xlu0 %v4337_v33, 272  ;;  %v7929_v33 = vpop.permute.xlu1 %3759  ;;  %11040 = vst [vmem:[#allocation317_spill] sm:$0xff] %v7939_v15 }
 0x43f   : > { %11035 = vst [vmem:[#allocation312_spill] sm:$0xff] %v7929_v33 }
 0x441   : > { %v7943_v34 = vpop.permute.xlu0 %3782 }
 0x442   : > { %v7933_v23 = vpop.permute.xlu1 %3767  ;;  %11042 = vst [vmem:[#allocation319_spill] sm:$0xff] %v7943_v34 }
 0x443   : > { %11037 = vst [vmem:[#allocation314_spill] sm:$0xff] %v7933_v23 }
 0x445   : > { %v7947_v32 = vpop.permute.xlu0 %3793 }
 0x446   : > { %v7937_v21 = vpop.permute.xlu1 %3778  ;;  %11044 = vst [vmem:[#allocation321_spill] sm:$0xff] %v7947_v32 }
 0x447   : > { %11039 = vst [vmem:[#allocation316_spill] sm:$0xff] %v7937_v21 }
 0x449   : > { %v7951_v33 = vpop.permute.xlu0 %3801 }
 0x44a   : > { %v7941_v46 = vpop.permute.xlu1 %3786  ;;  %11046 = vst [vmem:[#allocation323_spill] sm:$0xff] %v7951_v33  ;;  %v11057_v33 = vunpack.c.l.bf16 %v7816_v63 }
 0x44b   : > { %11041 = vst [vmem:[#allocation318_spill] sm:$0xff] %v7941_v46 }
 0x44d   : > { %v7955_v23 = vpop.permute.xlu0 %3964 }
 0x44e   : > { %v7945_v55 = vpop.permute.xlu1 %3797  ;;  %11048 = vst [vmem:[#allocation325_spill] sm:$0xff] %v7955_v23  ;;  %v4356_v23 = vrot.slane %v11057_v33, %v6714_v36  ;;  %v11066_v33 = vunpack.c.l.bf16 %v7829_v39  ;;  %v8008_v39 = vld [vmem:[%s6520_s16 + $0x4] sm:$0x4] }
 0x44f   : > { %11043 = vst [vmem:[#allocation320_spill] sm:$0xff] %v7945_v55 }
 0x450   : > { %4362 = vbcast.lane.b32.xlu1 %v4356_v23, 264  ;;  %4358 = vbcast.lane.b32.xlu0 %v4356_v23, 256 }
 0x451   : > { %v7959_v21 = vpop.permute.xlu0 %3972 }
 0x452   : > { %v7949_v38 = vpop.permute.xlu1 %3805  ;;  %11050 = vst [vmem:[#allocation327_spill] sm:$0xff] %v7959_v21 }
 0x453   : > { %11045 = vst [vmem:[#allocation322_spill] sm:$0xff] %v7949_v38 }
 0x454   : > { %4370 = vbcast.lane.b32.xlu1 %v4356_v23, 280  ;;  %4366 = vbcast.lane.b32.xlu0 %v4356_v23, 272 }
 0x455   : > { %v7963_v46 = vpop.permute.xlu0 %3983 }
 0x456   : > { %v7953_v7 = vpop.permute.xlu1 %3968  ;;  %11052 = vst [vmem:[#allocation329_spill] sm:$0xff] %v7963_v46 }
 0x457   : > { %11047 = vst [vmem:[#allocation324_spill] sm:$0xff] %v7953_v7 }
 0x459   : > { %v7967_v55 = vpop.permute.xlu0 %3991 }
 0x45a   : > { %v7957_v50 = vpop.permute.xlu1 %3976  ;;  %11054 = vst [vmem:[#allocation331_spill] sm:$0xff] %v7967_v55 }
 0x45b   : > { %11049 = vst [vmem:[#allocation326_spill] sm:$0xff] %v7957_v50 }
 0x45d   : > { %v7971_v38 = vpop.permute.xlu0 %4002 }
 0x45e   : > { %v7961_v15 = vpop.permute.xlu1 %3987  ;;  %11056 = vst [vmem:[#allocation333_spill] sm:$0xff] %v7971_v38 }
 0x45f   : > { %11051 = vst [vmem:[#allocation328_spill] sm:$0xff] %v7961_v15 }
 0x461   : > { %v7978_v50 = vpop.permute.xlu0 %4010 }
 0x462   : > { %v7965_v34 = vpop.permute.xlu1 %3995  ;;  %11059 = vst [vmem:[#allocation335_spill] sm:$0xff] %v7978_v50  ;;  %v4375_v50 = vrot.slane %v11066_v33, %v6714_v36 }
 0x463   : > { %11053 = vst [vmem:[#allocation330_spill] sm:$0xff] %v7965_v34 }
 0x464   : > { %4381 = vbcast.lane.b32.xlu1 %v4375_v50, 264  ;;  %4377 = vbcast.lane.b32.xlu0 %v4375_v50, 256 }
 0x465   : > { %v7982_v46 = vpop.permute.xlu0 %4021 }
 0x466   : > { %v7969_v32 = vpop.permute.xlu1 %4006  ;;  %11061 = vst [vmem:[#allocation337_spill] sm:$0xff] %v7982_v46 }
 0x467   : > { %11055 = vst [vmem:[#allocation332_spill] sm:$0xff] %v7969_v32 }
 0x468   : > { %4389 = vbcast.lane.b32.xlu1 %v4375_v50, 280  ;;  %4385 = vbcast.lane.b32.xlu0 %v4375_v50, 272 }
 0x469   : > { %v7986_v38 = vpop.permute.xlu0 %4029 }
 0x46a   : > { %v7976_v7 = vpop.permute.xlu1 %4014  ;;  %11063 = vst [vmem:[#allocation339_spill] sm:$0xff] %v7986_v38 }
 0x46b   : > { %11058 = vst [vmem:[#allocation334_spill] sm:$0xff] %v7976_v7 }
 0x46d   : > { %v7990_v63 = vpop.permute.xlu0 %4040 }
 0x46e   : > { %v7980_v21 = vpop.permute.xlu1 %4025  ;;  %11065 = vst [vmem:[#allocation341_spill] sm:$0xff] %v7990_v63 }
 0x46f   : > { %11060 = vst [vmem:[#allocation336_spill] sm:$0xff] %v7980_v21 }
 0x471   : > { %v7997_v23 = vpop.permute.xlu0 %4048 }
 0x472   : > { %v7984_v32 = vpop.permute.xlu1 %4033  ;;  %11068 = vst [vmem:[#allocation343_spill] sm:$0xff] %v7997_v23  ;;  %v10611_v23 = vunpack.c.l.bf16 %v8008_v39 }
 0x473   : > { %11062 = vst [vmem:[#allocation338_spill] sm:$0xff] %v7984_v32  ;;  %v8016_v32 = vld [vmem:[%s6520_s16 + $0xc] sm:$0x4] }
 0x474   : > { %v4546_v50 = vrot.slane %v10611_v23, %v6924_v20 }
 0x475   : > { %v8001_v38 = vpop.permute.xlu0 %4059 }
 0x476   : > { %v7988_v55 = vpop.permute.xlu1 %4044  ;;  %11070 = vst [vmem:[#allocation345_spill] sm:$0xff] %v8001_v38  ;;  %4552 = vbcast.lane.b32.xlu1 %v4546_v50, 264  ;;  %v10612_v38 = vunpack.c.l.bf16 %v8016_v32  ;;  %4548 = vbcast.lane.b32.xlu0 %v4546_v50, 256 }
 0x477   : > { %11064 = vst [vmem:[#allocation340_spill] sm:$0xff] %v7988_v55 }
 0x479   : > { %v8005_v63 = vpop.permute.xlu0 %4067 }
 0x47a   : > { %v7995_v7 = vpop.permute.xlu1 %4052  ;;  %11072 = vst [vmem:[#allocation347_spill] sm:$0xff] %v8005_v63  ;;  %4560 = vbcast.lane.b32.xlu1 %v4546_v50, 280  ;;  %4556 = vbcast.lane.b32.xlu0 %v4546_v50, 272  ;;  %v8043_v50 = vld [vmem:[%s6520_s16 + $0x1c] sm:$0x4] }
 0x47b   : > { %11067 = vst [vmem:[#allocation342_spill] sm:$0xff] %v7995_v7 }
 0x47d   : > { %v8012_v7 = vpop.permute.xlu0 %4078 }
 0x47e   : > { %v7999_v46 = vpop.permute.xlu1 %4063  ;;  %11074 = vst [vmem:[#allocation349_spill] sm:$0xff] %v8012_v7  ;;  %v4565_v7 = vrot.slane %v10612_v38, %v6924_v20 }
 0x47f   : > { %11069 = vst [vmem:[#allocation344_spill] sm:$0xff] %v7999_v46 }
 0x480   : > { %4571 = vbcast.lane.b32.xlu1 %v4565_v7, 264  ;;  %4567 = vbcast.lane.b32.xlu0 %v4565_v7, 256 }
 0x481   : > { %v8024_v63 = vpop.permute.xlu0 %4086 }
 0x482   : > { %v8003_v55 = vpop.permute.xlu1 %4071  ;;  %11076 = vst [vmem:[#allocation351_spill] sm:$0xff] %v8024_v63 }
 0x483   : > { %11071 = vst [vmem:[#allocation346_spill] sm:$0xff] %v8003_v55 }
 0x484   : > { %4579 = vbcast.lane.b32.xlu1 %v4565_v7, 280  ;;  %4575 = vbcast.lane.b32.xlu0 %v4565_v7, 272  ;;  %v8056_v7 = vld [vmem:[%s6520_s16 + $0x24] sm:$0x4] }
 0x485   : > { %v8034_v23 = vpop.permute.xlu0 %4097 }
 0x486   : > { %v8010_v33 = vpop.permute.xlu1 %4082  ;;  %11078 = vst [vmem:[#allocation353_spill] sm:$0xff] %v8034_v23  ;;  %v10614_v23 = vunpack.c.l.bf16 %v8043_v50 }
 0x487   : > { %11073 = vst [vmem:[#allocation348_spill] sm:$0xff] %v8010_v33  ;;  %v8030_v33 = vld [vmem:[%s6520_s16 + $0x14] sm:$0x4] }
 0x488   : > { %v10613_v21 = vunpack.c.l.bf16 %v8030_v33 }
 0x489   : > { %v8045_v38 = vpop.permute.xlu0 %4105 }
 0x48a   : > { %v8022_v55 = vpop.permute.xlu1 %4090  ;;  %11080 = vst [vmem:[#allocation355_spill] sm:$0xff] %v8045_v38  ;;  %v10615_v38 = vunpack.c.l.bf16 %v8056_v7 }
 0x48b   : > { %11075 = vst [vmem:[#allocation350_spill] sm:$0xff] %v8022_v55  ;;  %v4584_v55 = vrot.slane %v10613_v21, %v6924_v20  ;;  %v4603_v21 = vrot.slane %v10614_v23, %v6924_v20 }
 0x48d   : > { %4590 = vbcast.lane.b32.xlu1 %v4584_v55, 264  ;;  %4586 = vbcast.lane.b32.xlu0 %v4584_v55, 256  ;;  %v8050_v34 = vpop.permute.xlu0 %4244 }
 0x48e   : > { %v8032_v46 = vpop.permute.xlu1 %4101  ;;  %11082 = vst [vmem:[#allocation357_spill] sm:$0xff] %v8050_v34  ;;  %v4622_v34 = vrot.slane %v10615_v38, %v6924_v20 }
 0x48f   : > { %11077 = vst [vmem:[#allocation352_spill] sm:$0xff] %v8032_v46 }
 0x491   : > { %4598 = vbcast.lane.b32.xlu1 %v4584_v55, 280  ;;  %4594 = vbcast.lane.b32.xlu0 %v4584_v55, 272  ;;  %v8061_v15 = vpop.permute.xlu0 %4252 }
 0x492   : > { %v8040_v63 = vpop.permute.xlu1 %4109  ;;  %11084 = vst [vmem:[#allocation359_spill] sm:$0xff] %v8061_v15 }
 0x493   : > { %11079 = vst [vmem:[#allocation354_spill] sm:$0xff] %v8040_v63 }
 0x495   : > { %4609 = vbcast.lane.b32.xlu1 %v4603_v21, 264  ;;  %4605 = vbcast.lane.b32.xlu0 %v4603_v21, 256  ;;  %v8071_v23 = vpop.permute.xlu0 %4263 }
 0x496   : > { %v8048_v46 = vpop.permute.xlu1 %4248  ;;  %11086 = vst [vmem:[#allocation361_spill] sm:$0xff] %v8071_v23 }
 0x497   : > { %11081 = vst [vmem:[#allocation356_spill] sm:$0xff] %v8048_v46  ;;  %v8067_v46 = vld [vmem:[%s6520_s16 + $0x2c] sm:$0x4] }
 0x498   : > { %v10616_v43 = vunpack.c.l.bf16 %v8067_v46 }
 0x499   : > { %4617 = vbcast.lane.b32.xlu1 %v4603_v21, 280  ;;  %4613 = vbcast.lane.b32.xlu0 %v4603_v21, 272  ;;  %v8080_v21 = vld [vmem:[%s6520_s16 + $0x34] sm:$0x4]  ;;  %v8082_v38 = vpop.permute.xlu0 %4271 }
 0x49a   : > { %v8059_v63 = vpop.permute.xlu1 %4256  ;;  %v4641_v15 = vrot.slane %v10616_v43, %v6924_v20  ;;  %11088 = vst [vmem:[#allocation363_spill] sm:$0xff] %v8082_v38  ;;  %v10617_v23 = vunpack.c.l.bf16 %v8080_v21 }
 0x49b   : > { %11083 = vst [vmem:[#allocation358_spill] sm:$0xff] %v8059_v63 }
 0x49c   : > { %v4660_v43 = vrot.slane %v10617_v23, %v6924_v20 }
 0x49d   : > { %4628 = vbcast.lane.b32.xlu1 %v4622_v34, 264  ;;  %4624 = vbcast.lane.b32.xlu0 %v4622_v34, 256  ;;  %v8087_v19 = vpop.permute.xlu0 %4282 }
 0x49e   : > { %v8069_v55 = vpop.permute.xlu1 %4267  ;;  %11090 = vst [vmem:[#allocation365_spill] sm:$0xff] %v8087_v19 }
 0x49f   : > { %11085 = vst [vmem:[#allocation360_spill] sm:$0xff] %v8069_v55 }
 0x4a1   : > { %4636 = vbcast.lane.b32.xlu1 %v4622_v34, 280  ;;  %4632 = vbcast.lane.b32.xlu0 %v4622_v34, 272  ;;  %v8098_v41 = vpop.permute.xlu0 %4290 }
 0x4a2   : > { %v8077_v63 = vpop.permute.xlu1 %4275  ;;  %11092 = vst [vmem:[#allocation367_spill] sm:$0xff] %v8098_v41 }
 0x4a3   : > { %11087 = vst [vmem:[#allocation362_spill] sm:$0xff] %v8077_v63  ;;  %v8093_v63 = vld [vmem:[%s6520_s16 + $0x3c] sm:$0x4] }
 0x4a4   : > { %v10618_v34 = vunpack.c.l.bf16 %v8093_v63 }
 0x4a5   : > { %4647 = vbcast.lane.b32.xlu1 %v4641_v15, 264  ;;  %4643 = vbcast.lane.b32.xlu0 %v4641_v15, 256  ;;  %v8105_v23 = vpop.permute.xlu0 %4301 }
 0x4a6   : > { %v8085_v55 = vpop.permute.xlu1 %4286  ;;  %v4679_v19 = vrot.slane %v10618_v34, %v6924_v20  ;;  %11094 = vst [vmem:[#allocation369_spill] sm:$0xff] %v8105_v23  ;;  %v11100_v23 = vunpack.c.l.bf16 %v8016_v32  ;;  %v11106_v32 = vunpack.c.l.bf16 %v8043_v50 }
 0x4a7   : > { %11089 = vst [vmem:[#allocation364_spill] sm:$0xff] %v8085_v55 }
 0x4a9   : > { %4655 = vbcast.lane.b32.xlu1 %v4641_v15, 280  ;;  %4651 = vbcast.lane.b32.xlu0 %v4641_v15, 272  ;;  %v11095_v15 = vunpack.c.l.bf16 %v8008_v39  ;;  %v8112_v41 = vpop.permute.xlu0 %4309 }
 0x4aa   : > { %v8096_v38 = vpop.permute.xlu1 %4294  ;;  %11097 = vst [vmem:[#allocation371_spill] sm:$0xff] %v8112_v41 }
 0x4ab   : > { %11091 = vst [vmem:[#allocation366_spill] sm:$0xff] %v8096_v38  ;;  %v4826_v38 = vrot.slane %v11095_v15, %v7028_v10 }
 0x4ad   : > { %4666 = vbcast.lane.b32.xlu1 %v4660_v43, 264  ;;  %4662 = vbcast.lane.b32.xlu0 %v4660_v43, 256 }
 0x4ae   : > { %v8103_v55 = vpop.permute.xlu1 %4305 }
 0x4af   : > { %11093 = vst [vmem:[#allocation368_spill] sm:$0xff] %v8103_v55  ;;  %v4845_v55 = vrot.slane %v11100_v23, %v7028_v10 }
 0x4b1   : > { %4674 = vbcast.lane.b32.xlu1 %v4660_v43, 280  ;;  %4670 = vbcast.lane.b32.xlu0 %v4660_v43, 272  ;;  %v8116_v43 = vpop.permute.xlu0 %4320 }
 0x4b2   : > { %v8110_v27 = vpop.permute.xlu1 %4313  ;;  %11099 = vst [vmem:[#allocation373_spill] sm:$0xff] %v8116_v43 }
 0x4b3   : > { %11096 = vst [vmem:[#allocation370_spill] sm:$0xff] %v8110_v27 }
 0x4b5   : > { %4685 = vbcast.lane.b32.xlu1 %v4679_v19, 264  ;;  %4681 = vbcast.lane.b32.xlu0 %v4679_v19, 256  ;;  %v8123_v15 = vpop.permute.xlu0 %4328 }
 0x4b6   : > { %v8114_v34 = vpop.permute.xlu1 %4324  ;;  %11102 = vst [vmem:[#allocation375_spill] sm:$0xff] %v8123_v15 }
 0x4b7   : > { %11098 = vst [vmem:[#allocation372_spill] sm:$0xff] %v8114_v34 }
 0x4b9   : > { %4693 = vbcast.lane.b32.xlu1 %v4679_v19, 280  ;;  %4689 = vbcast.lane.b32.xlu0 %v4679_v19, 272  ;;  %v11103_v19 = vunpack.c.l.bf16 %v8030_v33  ;;  %v8131_v34 = vpop.permute.xlu0 %4339  ;;  %v6256_v33 = vpop.eup %6255 }
 0x4ba   : > { %v8121_v39 = vpop.permute.xlu1 %4332  ;;  %11105 = vst [vmem:[#allocation377_spill] sm:$0xff] %v8131_v34  ;;  %v11111_v34 = vunpack.c.l.bf16 %v8056_v7  ;;  %v942_v27 = vrot.slane %v6256_v33, %v6714_v36 }
 0x4bb   : > { %11101 = vst [vmem:[#allocation374_spill] sm:$0xff] %v8121_v39  ;;  %v4864_v41 = vrot.slane %v11103_v19, %v7028_v10 }
 0x4bc   : > { %v4902_v50 = vrot.slane %v11111_v34, %v7028_v10  ;;  %v11114_v34 = vunpack.c.l.bf16 %v8067_v46 }
 0x4bd   : > { %4832 = vbcast.lane.b32.xlu1 %v4826_v38, 264  ;;  %4828 = vbcast.lane.b32.xlu0 %v4826_v38, 256  ;;  %v8138_v15 = vpop.permute.xlu0 %4347 }
 0x4be   : > { %v8129_v43 = vpop.permute.xlu1 %4343  ;;  %11108 = vst [vmem:[#allocation379_spill] sm:$0xff] %v8138_v15 }
 0x4bf   : > { %11104 = vst [vmem:[#allocation376_spill] sm:$0xff] %v8129_v43 }
 0x4c1   : > { %4840 = vbcast.lane.b32.xlu1 %v4826_v38, 280  ;;  %4836 = vbcast.lane.b32.xlu0 %v4826_v38, 272  ;;  %v4883_v38 = vrot.slane %v11106_v32, %v7028_v10  ;;  %v934_v32 = vrot.slane %v6256_v33, %v6574_v37 }
 0x4c2   : > { %v8136_v23 = vpop.permute.xlu1 %4351  ;;  %v8143_v19 = vpop.permute.xlu0 %4358 }
 0x4c3   : > { %11107 = vst [vmem:[#allocation378_spill] sm:$0xff] %v8136_v23  ;;  %11110 = vst [vmem:[#allocation381_spill] sm:$0xff] %v8143_v19 }
 0x4c5   : > { %4851 = vbcast.lane.b32.xlu1 %v4845_v55, 264  ;;  %4847 = vbcast.lane.b32.xlu0 %v4845_v55, 256 }
 0x4c6   : > { %v8140_v28 = vpop.permute.xlu1 %4362  ;;  %v8152_v23 = vpop.permute.xlu0 %4366 }
 0x4c7   : > { %11109 = vst [vmem:[#allocation380_spill] sm:$0xff] %v8140_v28  ;;  %11113 = vst [vmem:[#allocation383_spill] sm:$0xff] %v8152_v23  ;;  %v8155_v28 = vmul.f32 %v7414_v30, %v934_v32 }
 0x4c9   : > { %4859 = vbcast.lane.b32.xlu1 %v4845_v55, 280  ;;  %4855 = vbcast.lane.b32.xlu0 %v4845_v55, 272  ;;  %v938_v55 = vrot.slane %v6256_v33, %v6590_v47  ;;  %v8172_v30 = vrot.slane %v8155_v28, %v6574_v37  ;;  %v8199_v52 = vrot.slane %v8155_v28, %v6590_v47 }
 0x4ca   : > { %v8150_v15 = vpop.permute.xlu1 %4370 }
 0x4cb   : > { %11112 = vst [vmem:[#allocation382_spill] sm:$0xff] %v8150_v15  ;;  %11116 = vst [vmem:[#allocation385_spill] sm:$0xff] %v8172_v30  ;;  %v8213_v12 = vmul.f32 %v7437_v60, %v938_v55 }
 0x4cc   : > { %11121 = vst [vmem:[#allocation390_spill] sm:$0xff] %v8199_v52 }
 0x4cd   : > { %4870 = vbcast.lane.b32.xlu1 %v4864_v41, 264  ;;  %4866 = vbcast.lane.b32.xlu0 %v4864_v41, 256  ;;  %11126 = vst [vmem:[#allocation394_spill] sm:$0xff] %v8213_v12 }
 0x4d1   : > { %4878 = vbcast.lane.b32.xlu1 %v4864_v41, 280  ;;  %4874 = vbcast.lane.b32.xlu0 %v4864_v41, 272  ;;  %v971_v41 = vmul.f32 %v7430_v31, %v938_v55  ;;  %v4921_v31 = vrot.slane %v11114_v34, %v7028_v10  ;;  %v1507_v34 = vmul.f32 %v6725_v40, %v8172_v30 }
 0x4d2   : > { %v8205_v40 = vrot.slane %v6256_v33, %v6534_v3 }
 0x4d3   : > { %v8158_v19 = vrot.slane %v971_v41, %v6534_v3  ;;  %v8161_v7 = vrot.slane %v971_v41, %v6574_v37  ;;  %v8183_v46 = vrot.slane %v971_v41, %v6590_v47  ;;  %v8218_v35 = vrot.slane %v971_v41, %v6714_v36 }
 0x4d4   : > { %11123 = vst [vmem:[#allocation392_spill] sm:$0xff] %v8205_v40 }
 0x4d5   : > { %4889 = vbcast.lane.b32.xlu1 %v4883_v38, 264  ;;  %4885 = vbcast.lane.b32.xlu0 %v4883_v38, 256  ;;  %v1232_v23 = vmul.f32 %v6670_v18, %v8158_v19  ;;  %v1512_v43 = vmul.f32 %v6781_v51, %v8161_v7  ;;  %v946_v18 = vrot.slane %v6256_v33, %v6924_v20 }
 0x4d6   : > { %v8174_v15 = vpop.permute.xlu1 %4381  ;;  %v8180_v39 = vpop.permute.xlu0 %4377  ;;  %v8192_v51 = vrot.slane %v6256_v33, %v7028_v10  ;;  %v1234_v60 = vmul.f32 %v6686_v25, %v8158_v19  ;;  %v1514_v55 = vmul.f32 %v6794_v62, %v8161_v7  ;;  %v1509_v62 = vmul.f32 %v6730_v42, %v8172_v30  ;;  %v11132_v42 = vld [vmem:[#allocation200_spill] sm:$0xff] }
 0x4d7   : > { %11117 = vst [vmem:[#allocation386_spill] sm:$0xff] %v8174_v15  ;;  %11118 = vst [vmem:[#allocation387_spill] sm:$0xff] %v8180_v39  ;;  %v1544_v15 = vadd.f32 %v1512_v43, %v1232_v23  ;;  %v8195_v39 = vrot.slane %v6256_v33, %v7220_v24  ;;  %v11125_v23 = vunpack.c.l.bf16 %v8080_v21 }
 0x4d8   : > { %11119 = vst [vmem:[#allocation388_spill] sm:$0xff] %v8192_v51 }
 0x4d9   : > { %4897 = vbcast.lane.b32.xlu1 %v4883_v38, 280  ;;  %4893 = vbcast.lane.b32.xlu0 %v4883_v38, 272  ;;  %v8168_v38 = vrot.slane %v8155_v28, %v6534_v3  ;;  %11120 = vst [vmem:[#allocation389_spill] sm:$0xff] %v8195_v39  ;;  %v4940_v51 = vrot.slane %v11125_v23, %v7028_v10 }
 0x4da   : > { %v8207_v43 = vpop.permute.xlu1 %4389  ;;  %v1816_v39 = vmul.f32 %v6913_v13, %v8183_v46  ;;  %v8233_v23 = vmul.f32 %v7450_v45, %v942_v27  ;;  %v2096_v45 = vmul.f32 %v7101_v8, %v8218_v35 }
 0x4db   : > { %11115 = vst [vmem:[#allocation384_spill] sm:$0xff] %v8168_v38  ;;  %11124 = vst [vmem:[#allocation393_spill] sm:$0xff] %v8207_v43  ;;  %v8226_v43 = vrot.slane %v971_v41, %v6924_v20  ;;  %v1229_v25 = vmul.f32 %v6655_v11, %v8168_v38 }
 0x4dc   : > { %v1848_v13 = vadd.f32 %v1816_v39, %v1544_v15  ;;  %v1546_v39 = vadd.f32 %v1514_v55, %v1234_v60  ;;  %v8265_v15 = vmul.f32 %v11132_v42, %v946_v18  ;;  %v11138_v55 = vld [vmem:[#allocation83_spill] sm:$0xff] }
 0x4dd   : > { %4908 = vbcast.lane.b32.xlu1 %v4902_v50, 264  ;;  %4904 = vbcast.lane.b32.xlu0 %v4902_v50, 256  ;;  %v2400_v11 = vmul.f32 %v7263_v26, %v8226_v43  ;;  %v8279_v26 = vrot.slane %v8233_v23, %v6574_v37 }
 0x4de   : > { %11133 = vst [vmem:[#allocation200_spill] sm:$0xff] %v8265_v15  ;;  %v2128_v8 = vadd.f32 %v2096_v45, %v1848_v13  ;;  %v1818_v13 = vmul.f32 %v11138_v55, %v8183_v46  ;;  %v11139_v45 = vunpack.c.l.bf16 %v8093_v63  ;;  %v8307_v63 = vrot.slane %v8213_v12, %v6574_v37  ;;  %v11143_v55 = vld [vmem:[#allocation69_spill] sm:$0xff] }
 0x4df   : > { %v11145_v15 = vld [vmem:[#allocation129_spill] sm:$0xff]  ;;  %v1516_v16 = vmul.f32 %v11147_v5, %v8279_v26  ;;  %v8338_v5 = vrot.slane %v8155_v28, %v7386_v54 }
 0x4e0   : > { %v4959_v42 = vrot.slane %v11139_v45, %v7028_v10 }
 0x4e1   : > { %4916 = vbcast.lane.b32.xlu1 %v4902_v50, 280  ;;  %4912 = vbcast.lane.b32.xlu0 %v4902_v50, 272  ;;  %v1227_v50 = vmul.f32 %v6639_v4, %v8168_v38  ;;  %v8202_v4 = vrot.slane %v6256_v33, %v7386_v54  ;;  %v8223_v33 = vpop.permute.xlu0 %4385  ;;  %v11141_v38 = vld [vmem:[#allocation215_spill] sm:$0xff]  ;;  %11152 = vst [vmem:[#allocation129_spill] sm:$0xff] %v8338_v5 }
 0x4e2   : > { %11128 = vst [vmem:[#allocation396_spill] sm:$0xff] %v8223_v33  ;;  %v8271_v33 = vrot.slane %v8155_v28, %v6924_v20 }
 0x4e3   : > { %11122 = vst [vmem:[#allocation391_spill] sm:$0xff] %v8202_v4  ;;  %v8221_v4 = vmul.f32 %v7421_v48, %v934_v32  ;;  %v1539_v21 = vadd.f32 %v1507_v34, %v1227_v50  ;;  %v8236_v48 = vmul.f32 %v7459_v2, %v942_v27  ;;  %v8239_v32 = vmul.f32 %v7469_v58, %v946_v18  ;;  %v11137_v18 = vld [vmem:[#allocation102_spill] sm:$0xff] }
 0x4e4   : > { %v8245_v50 = vrot.slane %v8155_v28, %v6714_v36  ;;  %v8254_v2 = vrot.slane %v971_v41, %v7028_v10  ;;  %v8257_v58 = vrot.slane %v971_v41, %v7220_v24  ;;  %11135 = vst [vmem:[#allocation401_spill] sm:$0xff] %v8271_v33  ;;  %v2395_v53 = vmul.f32 %v11145_v15, %v8271_v33 }
 0x4e5   : > { %4927 = vbcast.lane.b32.xlu1 %v4921_v31, 264  ;;  %4923 = vbcast.lane.b32.xlu0 %v4921_v31, 256  ;;  %11127 = vst [vmem:[#allocation395_spill] sm:$0xff] %v8221_v4  ;;  %11129 = vst [vmem:[#allocation397_spill] sm:$0xff] %v8236_v48 }
 0x4e6   : > { %11130 = vst [vmem:[#allocation398_spill] sm:$0xff] %v8239_v32  ;;  %11131 = vst [vmem:[#allocation399_spill] sm:$0xff] %v8245_v50  ;;  %v2091_v60 = vmul.f32 %v11137_v18, %v8245_v50  ;;  %v2984_v40 = vmul.f32 %v11141_v38, %v8257_v58  ;;  %v8300_v18 = vrot.slane %v8213_v12, %v6534_v3 }
 0x4e7   : > { %v1813_v38 = vmul.f32 %v11143_v55, %v8199_v52  ;;  %v8346_v55 = vrot.slane %v8221_v4, %v6534_v3 }
 0x4e8   : > { %v8267_v34 = vpop.permute.xlu1 %4552  ;;  %v8330_v15 = vmul.f32 %v7802_v29, %v8300_v18 }
 0x4e9   : > { %4935 = vbcast.lane.b32.xlu1 %v4921_v31, 280  ;;  %4931 = vbcast.lane.b32.xlu0 %v4921_v31, 272  ;;  %v1811_v31 = vmul.f32 %v6863_v56, %v8199_v52  ;;  %v8260_v56 = vrot.slane %v971_v41, %v7386_v54  ;;  %11134 = vst [vmem:[#allocation400_spill] sm:$0xff] %v8267_v34  ;;  %v11140_v34 = vld [vmem:[#allocation179_spill] sm:$0xff]  ;;  %11153 = vst [vmem:[#allocation31_spill] sm:$0xff] %v8346_v55 }
 0x4ea   : > { %v8275_v41 = vrot.slane %v8233_v23, %v6534_v3  ;;  %v2680_v30 = vmul.f32 %v11140_v34, %v8254_v2  ;;  %v1850_v34 = vadd.f32 %v1818_v13, %v1546_v39  ;;  %v11150_v39 = vld [vmem:[#allocation118_spill] sm:$0xff]  ;;  %v11157_v52 = vld [vmem:[#allocation39_spill] sm:$0xff] }
 0x4eb   : > { %v1843_v27 = vadd.f32 %v1811_v31, %v1539_v21  ;;  %v8281_v21 = vpop.permute.xlu0 %4548  ;;  %v1541_v31 = vadd.f32 %v1509_v62, %v1229_v25  ;;  %v8303_v25 = vld [vmem:[%s6520_s16 + $0x4] sm:$0x8] }
 0x4ec   : > { %11136 = vst [vmem:[#allocation402_spill] sm:$0xff] %v8281_v21  ;;  %v8296_v21 = vmul.f32 %v7694_v44, %v8260_v56  ;;  %11142 = vst [vmem:[#allocation102_spill] sm:$0xff] %v8303_v25  ;;  %v8311_v45 = vpop.permute.xlu1 %4560  ;;  %v2432_v44 = vadd.f32 %v2400_v11, %v2128_v8  ;;  %v8342_v8 = vrot.slane %v8233_v23, %v6590_v47 }
 0x4ed   : > { %4946 = vbcast.lane.b32.xlu1 %v4940_v51, 264  ;;  %4942 = vbcast.lane.b32.xlu0 %v4940_v51, 256  ;;  %v2123_v62 = vadd.f32 %v2091_v60, %v1843_v27  ;;  %11144 = vst [vmem:[#allocation83_spill] sm:$0xff] %v8311_v45  ;;  %v8323_v27 = vrot.slane %v8155_v28, %v7028_v10  ;;  %v11156_v45 = vld [vmem:[#allocation14_spill] sm:$0xff] }
 0x4ee   : > { %v2098_v60 = vmul.f32 %v11150_v39, %v8218_v35  ;;  %v1845_v13 = vadd.f32 %v1813_v38, %v1541_v31  ;;  %v11154_v38 = vld [vmem:[#allocation103_spill] sm:$0xff]  ;;  %v1231_v12 = vmul.f32 %v11156_v45, %v8158_v19  ;;  %v1511_v47 = vmul.f32 %v11157_v52, %v8161_v7 }
 0x4ef   : > { %v8319_v32 = vpop.permute.xlu0 %4556  ;;  %11149 = vst [vmem:[#allocation215_spill] sm:$0xff] %v8323_v27  ;;  %v2427_v31 = vadd.f32 %v2395_v53, %v2123_v62  ;;  %v2093_v39 = vmul.f32 %v11154_v38, %v8245_v50  ;;  %v11159_v62 = vld [vmem:[#allocation162_spill] sm:$0xff]  ;;  %v8367_v45 = vmul.f32 %v7905_v6, %v8307_v63  ;;  %v8371_v52 = vrot.slane %v8221_v4, %v6574_v37 }
 0x4f0   : > { %11148 = vst [vmem:[#allocation179_spill] sm:$0xff] %v8319_v32  ;;  %v2130_v29 = vadd.f32 %v2098_v60, %v1850_v34  ;;  %v2712_v32 = vadd.f32 %v2680_v30, %v2432_v44  ;;  %v2675_v49 = vmul.f32 %v11159_v62, %v8323_v27  ;;  %v11160_v34 = vld [vmem:[#allocation149_spill] sm:$0xff]  ;;  %v11161_v30 = vunpack.c.l.bf16 %v8303_v25 }
 0x4f1   : > { %4954 = vbcast.lane.b32.xlu1 %v4940_v51, 280  ;;  %4950 = vbcast.lane.b32.xlu0 %v4940_v51, 272  ;;  %v1236_v51 = vmul.f32 %v11146_v14, %v8275_v41  ;;  %v8334_v14 = vrot.slane %v8155_v28, %v7220_v24  ;;  %v2402_v60 = vmul.f32 %v11160_v34, %v8226_v43  ;;  %v11163_v44 = vld [vmem:[#allocation85_spill] sm:$0xff]  ;;  %v11164_v34 = vld [vmem:[#allocation210_spill] sm:$0xff] }
 0x4f2   : > { %v8350_v11 = vpop.permute.xlu1 %4571  ;;  %v2125_v38 = vadd.f32 %v2093_v39, %v1845_v13  ;;  %11162 = vst [vmem:[#allocation103_spill] sm:$0xff] %v8371_v52  ;;  %v8377_v62 = vrot.slane %v8233_v23, %v6714_v36  ;;  %v8380_v13 = vld [vmem:[%s6520_s16 + $0xc] sm:$0x8]  ;;  %v2707_v39 = vadd.f32 %v2675_v49, %v2427_v31  ;;  %v3016_v50 = vadd.f32 %v2984_v40, %v2712_v32  ;;  %v11170_v32 = vld [vmem:[#allocation121_spill] sm:$0xff] }
 0x4f3   : > { %11151 = vst [vmem:[#allocation69_spill] sm:$0xff] %v8334_v14  ;;  %11155 = vst [vmem:[#allocation55_spill] sm:$0xff] %v8350_v11  ;;  %v1548_v28 = vadd.f32 %v1516_v16, %v1236_v51  ;;  %v8356_v53 = vpop.permute.xlu0 %4567  ;;  %v5130_v16 = vrot.slane %v11161_v30, %v7220_v24  ;;  %v1820_v51 = vmul.f32 %v11163_v44, %v8342_v8  ;;  %v11167_v44 = vld [vmem:[#allocation239_spill] sm:$0xff] }
 0x4f4   : > { %11158 = vst [vmem:[#allocation118_spill] sm:$0xff] %v8356_v53  ;;  %v2979_v30 = vmul.f32 %v11164_v34, %v8334_v14  ;;  %v2434_v6 = vadd.f32 %v2402_v60, %v2130_v29  ;;  %v11165_v53 = vld [vmem:[#allocation131_spill] sm:$0xff]  ;;  %v3259_v25 = vmul.f32 %v11167_v44, %v8338_v5  ;;  %v1543_v36 = vadd.f32 %v1511_v47, %v1231_v12  ;;  %v11173_v34 = vld [vmem:[#allocation164_spill] sm:$0xff] }
 0x4f5   : > { %4965 = vbcast.lane.b32.xlu1 %v4959_v42, 264  ;;  %4961 = vbcast.lane.b32.xlu0 %v4959_v42, 256  ;;  %v2397_v11 = vmul.f32 %v11165_v53, %v8271_v33  ;;  %v1852_v37 = vadd.f32 %v1820_v51, %v1548_v28  ;;  %v3563_v49 = vmul.f32 %v7781_v57, %v8346_v55  ;;  %v11171_v57 = vld [vmem:[#allocation71_spill] sm:$0xff] }
 0x4f6   : > { %v8386_v4 = vpop.permute.xlu1 %4579  ;;  %v8399_v40 = vmul.f32 %v7899_v0, %v8371_v52  ;;  %v2100_v28 = vmul.f32 %v11170_v32, %v8377_v62  ;;  %v8405_v47 = vrot.slane %v8233_v23, %v6924_v20  ;;  %v1815_v12 = vmul.f32 %v11171_v57, %v8183_v46 }
 0x4f7   : > { %11166 = vst [vmem:[#allocation14_spill] sm:$0xff] %v8386_v4  ;;  %v8390_v17 = vpop.permute.xlu0 %4575  ;;  %v2429_v29 = vadd.f32 %v2397_v11, %v2125_v38  ;;  %v3011_v60 = vadd.f32 %v2979_v30, %v2707_v39  ;;  %v11172_v38 = vld [vmem:[#allocation217_spill] sm:$0xff]  ;;  %v2677_v0 = vmul.f32 %v11173_v34, %v8323_v27  ;;  %v3266_v32 = vmul.f32 %v7698_v61, %v8260_v56 }
 0x4f8   : > { %11168 = vst [vmem:[#allocation39_spill] sm:$0xff] %v8390_v17  ;;  %v2986_v51 = vmul.f32 %v11172_v38, %v8257_v58  ;;  %v2132_v53 = vadd.f32 %v2100_v28, %v1852_v37  ;;  %v1847_v17 = vadd.f32 %v1815_v12, %v1543_v36  ;;  %v3570_v39 = vmul.f32 %v7810_v59, %v8300_v18  ;;  %v11178_v37 = vld [vmem:[#allocation104_spill] sm:$0xff]  ;;  %v11179_v28 = vld [vmem:[#allocation33_spill] sm:$0xff] }
 0x4f9   : > { %4973 = vbcast.lane.b32.xlu1 %v4959_v42, 280  ;;  %4969 = vbcast.lane.b32.xlu0 %v4959_v42, 272  ;;  %v11169_v42 = vld [vmem:[#allocation181_spill] sm:$0xff]  ;;  %v2709_v30 = vadd.f32 %v2677_v0, %v2429_v29  ;;  %v2095_v36 = vmul.f32 %v11178_v37, %v8218_v35  ;;  %v1238_v12 = vmul.f32 %v11179_v28, %v8275_v41  ;;  %v11184_v28 = vld [vmem:[#allocation240_spill] sm:$0xff] }
 0x4fa   : > { %v2682_v31 = vmul.f32 %v11169_v42, %v8254_v2  ;;  %v3296_v42 = vadd.f32 %v8296_v21, %v3016_v50  ;;  %v11177_v21 = vld [vmem:[#allocation151_spill] sm:$0xff]  ;;  %v11180_v59 = vld [vmem:[#allocation57_spill] sm:$0xff]  ;;  %v3291_v34 = vadd.f32 %v3259_v25, %v3011_v60  ;;  %v3261_v4 = vmul.f32 %v11184_v28, %v8338_v5 }
 0x4fb   : > { %v2404_v61 = vmul.f32 %v11177_v21, %v8405_v47  ;;  %v1518_v29 = vmul.f32 %v11180_v59, %v8279_v26  ;;  %v8438_v38 = vld [vmem:[%s6520_s16 + $0x14] sm:$0x8]  ;;  %v2127_v59 = vadd.f32 %v2095_v36, %v1847_v17  ;;  %v11186_v25 = vld [vmem:[#allocation183_spill] sm:$0xff]  ;;  %v8468_v28 = vrot.slane %v8233_v23, %v7386_v54 }
 0x4fc   : > { %v2714_v11 = vadd.f32 %v2682_v31, %v2434_v6  ;;  %v8424_v6 = vrot.slane %v8233_v23, %v7028_v10  ;;  %v11176_v31 = vunpack.c.l.bf16 %v8380_v13  ;;  %11181 = vst [vmem:[#allocation85_spill] sm:$0xff] %v8438_v38  ;;  %v3600_v37 = vadd.f32 %v8330_v15, %v3296_v42  ;;  %v11187_v15 = vld [vmem:[#allocation133_spill] sm:$0xff] }
 0x4fd   : > { %5136 = vbcast.lane.b32.xlu1 %v5130_v16, 264  ;;  %5132 = vbcast.lane.b32.xlu0 %v5130_v16, 256  ;;  %v2436_v27 = vadd.f32 %v2404_v61, %v2132_v53  ;;  %v1550_v42 = vadd.f32 %v1518_v29, %v1238_v12  ;;  %v11188_v53 = vld [vmem:[#allocation26_spill] sm:$0xff]  ;;  %v3595_v61 = vadd.f32 %v3563_v49, %v3291_v34 }
 0x4fe   : > { %v5149_v50 = vrot.slane %v11176_v31, %v7220_v24  ;;  %v3018_v0 = vadd.f32 %v2986_v51, %v2714_v11  ;;  %v3850_v31 = vmul.f32 %v7909_v9, %v8307_v63  ;;  %v2684_v60 = vmul.f32 %v11186_v25, %v8424_v6 }
 0x4ff   : > { %v8413_v44 = vpop.permute.xlu1 %4590  ;;  %v8418_v57 = vpop.permute.xlu0 %4586  ;;  %v8455_v9 = vrot.slane %v8233_v23, %v7220_v24  ;;  %v10648_v11 = vunpack.c.l.bf16 %v8438_v38  ;;  %v2399_v51 = vmul.f32 %v11187_v15, %v8226_v43  ;;  %v1233_v17 = vmul.f32 %v11188_v53, %v8158_v19 }
 0x500   : > { %11174 = vst [vmem:[#allocation162_spill] sm:$0xff] %v8413_v44  ;;  %11175 = vst [vmem:[#allocation149_spill] sm:$0xff] %v8418_v57  ;;  %v11182_v57 = vld [vmem:[#allocation212_spill] sm:$0xff]  ;;  %v3298_v36 = vadd.f32 %v3266_v32, %v3018_v0  ;;  %v3845_v12 = vmul.f32 %v7903_v1, %v8371_v52  ;;  %v2716_v19 = vadd.f32 %v2684_v60, %v2436_v27  ;;  %v11195_v0 = vld [vmem:[#allocation166_spill] sm:$0xff] }
 0x501   : > { %5144 = vbcast.lane.b32.xlu1 %v5130_v16, 280  ;;  %5140 = vbcast.lane.b32.xlu0 %v5130_v16, 272  ;;  %v2981_v21 = vmul.f32 %v11182_v57, %v8334_v14  ;;  %v11189_v57 = vld [vmem:[#allocation41_spill] sm:$0xff]  ;;  %v2431_v29 = vadd.f32 %v2399_v51, %v2127_v59  ;;  %v8479_v32 = vadd.f32 %v8367_v45, %v3600_v37  ;;  %v8493_v45 = vld [vmem:[%s6520_s16 + $0x1c] sm:$0x8]  ;;  %v11239_v52 = vld [vmem:[#allocation216_spill] sm:$0xff] }
 0x502   : > { %v8485_v34 = vrot.slane %v8236_v48, %v6534_v3  ;;  %v5168_v1 = vrot.slane %v10648_v11, %v7220_v24  ;;  %v2679_v59 = vmul.f32 %v11195_v0, %v8254_v2  ;;  %11196 = vst [vmem:[#allocation71_spill] sm:$0xff] %v8493_v45  ;;  %v8496_v37 = vadd.f32 %v8399_v40, %v3595_v61 }
 0x503   : > { %v8444_v44 = vpop.permute.xlu1 %4598  ;;  %v8449_v16 = vpop.permute.xlu0 %4594  ;;  %v3013_v33 = vadd.f32 %v2981_v21, %v2709_v30  ;;  %v1513_v30 = vmul.f32 %v11189_v57, %v8161_v7  ;;  %v3565_v21 = vmul.f32 %v7786_v22, %v8346_v55  ;;  %v11191_v7 = vld [vmem:[#allocation87_spill] sm:$0xff]  ;;  %11193 = vst [vmem:[#allocation121_spill] sm:$0xff] %v8479_v32  ;;  %v3602_v53 = vadd.f32 %v3570_v39, %v3298_v36  ;;  %v11204_v39 = vld [vmem:[#allocation277_spill] sm:$0xff]  ;;  %v11205_v36 = vld [vmem:[#allocation398_spill] sm:$0xff] }
 0x504   : > { %11183 = vst [vmem:[#allocation210_spill] sm:$0xff] %v8444_v44  ;;  %11185 = vst [vmem:[#allocation131_spill] sm:$0xff] %v8449_v16  ;;  %v1822_v15 = vmul.f32 %v11191_v7, %v8342_v8  ;;  %v11194_v22 = vld [vmem:[#allocation219_spill] sm:$0xff]  ;;  %v2711_v0 = vadd.f32 %v2679_v59, %v2431_v29  ;;  %v3572_v61 = vmul.f32 %v11204_v39, %v8485_v34  ;;  %v11208_v39 = vld [vmem:[#allocation304_spill] sm:$0xff] }
 0x505   : > { %5155 = vbcast.lane.b32.xlu1 %v5149_v50, 264  ;;  %5151 = vbcast.lane.b32.xlu0 %v5149_v50, 256  ;;  %v2988_v23 = vmul.f32 %v11194_v22, %v8455_v9  ;;  %v3293_v27 = vadd.f32 %v3261_v4, %v3013_v33  ;;  %v1545_v51 = vadd.f32 %v1513_v30, %v1233_v17  ;;  %v11198_v57 = vld [vmem:[#allocation251_spill] sm:$0xff]  ;;  %v11199_v22 = vld [vmem:[#allocation10_spill] sm:$0xff]  ;;  %v11202_v17 = vld [vmem:[#allocation73_spill] sm:$0xff] }
 0x506   : > { %v1854_v60 = vadd.f32 %v1822_v15, %v1550_v42  ;;  %11197 = vst [vmem:[#allocation217_spill] sm:$0xff] %v8496_v37  ;;  %v3268_v7 = vmul.f32 %v11198_v57, %v8468_v28  ;;  %v11201_v42 = vld [vmem:[#allocation124_spill] sm:$0xff]  ;;  %v1817_v30 = vmul.f32 %v11202_v17, %v8183_v46  ;;  %v8516_v15 = vrot.slane %v11205_v36, %v6534_v3  ;;  %v11230_v32 = vld [vmem:[#allocation279_spill] sm:$0xff] }
 0x507   : > { %v8470_v25 = vpop.permute.xlu1 %4609  ;;  %v8476_v49 = vpop.permute.xlu0 %4605  ;;  %v3020_v33 = vadd.f32 %v2988_v23, %v2716_v19  ;;  %v8520_v57 = vrot.slane %v11205_v36, %v11199_v22  ;;  %v3597_v29 = vadd.f32 %v3565_v21, %v3293_v27  ;;  %v11206_v23 = vld [vmem:[#allocation214_spill] sm:$0xff]  ;;  %v8525_v17 = vadd.f32 %v3850_v31, %v3602_v53  ;;  %v11213_v31 = vld [vmem:[#allocation105_spill] sm:$0xff] }
 0x508   : > { %11190 = vst [vmem:[#allocation239_spill] sm:$0xff] %v8470_v25  ;;  %11192 = vst [vmem:[#allocation181_spill] sm:$0xff] %v8476_v49  ;;  %v8502_v49 = vrot.slane %v8236_v48, %v11199_v22  ;;  %v2983_v46 = vmul.f32 %v11206_v23, %v8257_v58  ;;  %v11210_v25 = vld [vmem:[#allocation274_spill] sm:$0xff]  ;;  %v2097_v53 = vmul.f32 %v11213_v31, %v8218_v35  ;;  %v11220_v35 = vld [vmem:[#allocation184_spill] sm:$0xff] }
 0x509   : > { %5163 = vbcast.lane.b32.xlu1 %v5149_v50, 280  ;;  %5159 = vbcast.lane.b32.xlu0 %v5149_v50, 272  ;;  %v2102_v50 = vmul.f32 %v11201_v42, %v8377_v62  ;;  %v1849_v42 = vadd.f32 %v1817_v30, %v1545_v51  ;;  %11207 = vst [vmem:[#allocation104_spill] sm:$0xff] %v8525_v17  ;;  %v11215_v30 = vld [vmem:[#allocation302_spill] sm:$0xff]  ;;  %v11224_v17 = vld [vmem:[#allocation29_spill] sm:$0xff] }
 0x50a   : > { %v3852_v11 = vmul.f32 %v11208_v39, %v8502_v49  ;;  %v3567_v16 = vmul.f32 %v11210_v25, %v8300_v18  ;;  %v3300_v21 = vadd.f32 %v3268_v7, %v3020_v33  ;;  %v3015_v27 = vadd.f32 %v2983_v46, %v2711_v0  ;;  %v11217_v25 = vld [vmem:[#allocation59_spill] sm:$0xff] }
 0x50b   : > { %v8504_v4 = vpop.permute.xlu1 %4617  ;;  %v8510_v40 = vpop.permute.xlu0 %4613  ;;  %v2134_v59 = vadd.f32 %v2102_v50, %v1854_v60  ;;  %v11212_v60 = vld [vmem:[#allocation153_spill] sm:$0xff]  ;;  %v3847_v23 = vmul.f32 %v11215_v30, %v8307_v63  ;;  %v1520_v19 = vmul.f32 %v11217_v25, %v8520_v57  ;;  %v11218_v7 = vunpack.c.l.bf16 %v8493_v45  ;;  %v8555_v30 = vld [vmem:[%s6520_s16 + $0x24] sm:$0x8] }
 0x50c   : > { %11200 = vst [vmem:[#allocation164_spill] sm:$0xff] %v8504_v4  ;;  %11203 = vst [vmem:[#allocation151_spill] sm:$0xff] %v8510_v40  ;;  %v11209_v40 = vld [vmem:[#allocation241_spill] sm:$0xff]  ;;  %v2406_v51 = vmul.f32 %v11212_v60, %v8405_v47  ;;  %v8550_v0 = vadd.f32 %v3845_v12, %v3597_v29  ;;  %v2686_v60 = vmul.f32 %v11220_v35, %v8424_v6  ;;  %v11225_v12 = vld [vmem:[#allocation44_spill] sm:$0xff] }
 0x50d   : > { %5174 = vbcast.lane.b32.xlu1 %v5168_v1, 264  ;;  %5170 = vbcast.lane.b32.xlu0 %v5168_v1, 256  ;;  %v3263_v4 = vmul.f32 %v11209_v40, %v8260_v56  ;;  %v11216_v40 = vld [vmem:[#allocation35_spill] sm:$0xff]  ;;  %v5187_v33 = vrot.slane %v11218_v7, %v7220_v24  ;;  %v2129_v31 = vadd.f32 %v2097_v53, %v1849_v42  ;;  %v11294_v45 = vld [vmem:[#allocation65_spill] sm:$0xff] }
 0x50e   : > { %v1240_v39 = vmul.f32 %v11216_v40, %v8516_v15  ;;  %11219 = vst [vmem:[#allocation212_spill] sm:$0xff] %v8550_v0  ;;  %v2438_v46 = vadd.f32 %v2406_v51, %v2134_v59  ;;  %11221 = vst [vmem:[#allocation240_spill] sm:$0xff] %v8555_v30  ;;  %v11222_v40 = vld [vmem:[#allocation221_spill] sm:$0xff]  ;;  %v1235_v7 = vmul.f32 %v11224_v17, %v8275_v41  ;;  %v11228_v35 = vld [vmem:[#allocation135_spill] sm:$0xff] }
 0x50f   : > { %v8533_v44 = vpop.permute.xlu1 %4628  ;;  %v8539_v50 = vpop.permute.xlu0 %4624  ;;  %v1515_v29 = vmul.f32 %v11225_v12, %v8279_v26  ;;  %v3604_v51 = vadd.f32 %v3572_v61, %v3300_v21  ;;  %v3295_v42 = vadd.f32 %v3263_v4, %v3015_v27  ;;  %v8577_v0 = vmul.f32 %v11230_v32, %v8485_v34  ;;  %v11231_v17 = vld [vmem:[#allocation306_spill] sm:$0xff]  ;;  %v11233_v32 = vld [vmem:[#allocation89_spill] sm:$0xff] }
 0x510   : > { %11211 = vst [vmem:[#allocation33_spill] sm:$0xff] %v8533_v44  ;;  %11214 = vst [vmem:[#allocation57_spill] sm:$0xff] %v8539_v50  ;;  %v2990_v50 = vmul.f32 %v11222_v40, %v8455_v9  ;;  %v11223_v44 = vld [vmem:[#allocation11_spill] sm:$0xff]  ;;  %v2401_v40 = vmul.f32 %v11228_v35, %v8226_v43  ;;  %v8581_v37 = vmul.f32 %v11231_v17, %v8502_v49  ;;  %v11232_v27 = vld [vmem:[#allocation34_spill] sm:$0xff] }
 0x511   : > { %5182 = vbcast.lane.b32.xlu1 %v5168_v1, 280  ;;  %5178 = vbcast.lane.b32.xlu0 %v5168_v1, 272  ;;  %v8561_v25 = vrot.slane %v11205_v36, %v11223_v44  ;;  %v11227_v1 = vld [vmem:[#allocation253_spill] sm:$0xff]  ;;  %v1552_v12 = vadd.f32 %v1520_v19, %v1240_v39  ;;  %v2718_v61 = vadd.f32 %v2686_v60, %v2438_v46  ;;  %v11234_v19 = vld [vmem:[#allocation36_spill] sm:$0xff] }
 0x512   : > { %v3270_v53 = vmul.f32 %v11227_v1, %v8468_v28  ;;  %v2433_v21 = vadd.f32 %v2401_v40, %v2129_v31  ;;  %v8586_v1 = vrot.slane %v11205_v36, %v11232_v27  ;;  %v8590_v43 = vrot.slane %v11205_v36, %v6924_v20  ;;  %v11235_v4 = vld [vmem:[#allocation61_spill] sm:$0xff] }
 0x513   : > { %v8567_v59 = vpop.permute.xlu1 %4636  ;;  %v8573_v48 = vpop.permute.xlu0 %4632  ;;  %v1824_v35 = vmul.f32 %v11233_v32, %v8561_v25  ;;  %v1547_v17 = vadd.f32 %v1515_v29, %v1235_v7  ;;  %v1242_v39 = vmul.f32 %v11234_v19, %v8516_v15  ;;  %v1522_v46 = vmul.f32 %v11235_v4, %v8520_v57  ;;  %v11241_v7 = vld [vmem:[#allocation244_spill] sm:$0xff]  ;;  %v11242_v4 = vld [vmem:[#allocation75_spill] sm:$0xff] }
 0x514   : > { %11226 = vst [vmem:[#allocation183_spill] sm:$0xff] %v8567_v59  ;;  %11229 = vst [vmem:[#allocation133_spill] sm:$0xff] %v8573_v48  ;;  %v8600_v31 = vadd.f32 %v3852_v11, %v3604_v51  ;;  %v3599_v40 = vadd.f32 %v3567_v16, %v3295_v42  ;;  %v11238_v48 = vld [vmem:[#allocation168_spill] sm:$0xff]  ;;  %v2985_v55 = vmul.f32 %v11239_v52, %v8257_v58  ;;  %v11243_v11 = vunpack.c.l.bf16 %v8555_v30  ;;  %v11245_v58 = vld [vmem:[#allocation303_spill] sm:$0xff] }
 0x515   : > { %5193 = vbcast.lane.b32.xlu1 %v5187_v33, 264  ;;  %5189 = vbcast.lane.b32.xlu0 %v5187_v33, 256  ;;  %v2681_v59 = vmul.f32 %v11238_v48, %v8254_v2  ;;  %v3265_v29 = vmul.f32 %v11241_v7, %v8260_v56  ;;  %v1856_v19 = vadd.f32 %v1824_v35, %v1552_v12  ;;  %v11244_v48 = vld [vmem:[#allocation275_spill] sm:$0xff]  ;;  %v8622_v56 = vld [vmem:[%s6520_s16 + $0x2c] sm:$0x8]  ;;  %v11247_v12 = vld [vmem:[#allocation126_spill] sm:$0xff] }
 0x516   : > { %11237 = vst [vmem:[#allocation41_spill] sm:$0xff] %v8600_v31  ;;  %v1819_v5 = vmul.f32 %v11242_v4, %v8342_v8  ;;  %v5206_v16 = vrot.slane %v11243_v11, %v7220_v24  ;;  %v3022_v51 = vadd.f32 %v2990_v50, %v2718_v61  ;;  %v3569_v2 = vmul.f32 %v11244_v48, %v8300_v18  ;;  %v11248_v7 = vld [vmem:[#allocation155_spill] sm:$0xff] }
 0x517   : > { %v8598_v60 = vpop.permute.xlu1 %4647  ;;  %v8606_v32 = vpop.permute.xlu0 %4643  ;;  %v2713_v42 = vadd.f32 %v2681_v59, %v2433_v21  ;;  %v8619_v52 = vmul.f32 %v11245_v58, %v8307_v63  ;;  %11246 = vst [vmem:[#allocation219_spill] sm:$0xff] %v8622_v56  ;;  %v2104_v35 = vmul.f32 %v11247_v12, %v8586_v1  ;;  %v2408_v4 = vmul.f32 %v11248_v7, %v8590_v43  ;;  %v11252_v61 = vld [vmem:[#allocation191_spill] sm:$0xff]  ;;  %v11256_v7 = vld [vmem:[#allocation16_spill] sm:$0xff] }
 0x518   : > { %11236 = vst [vmem:[#allocation26_spill] sm:$0xff] %v8598_v60  ;;  %11240 = vst [vmem:[#allocation87_spill] sm:$0xff] %v8606_v32  ;;  %v1851_v32 = vadd.f32 %v1819_v5, %v1547_v17  ;;  %v1554_v11 = vadd.f32 %v1522_v46, %v1242_v39  ;;  %v8630_v59 = vadd.f32 %v3847_v23, %v3599_v40  ;;  %v11254_v17 = vld [vmem:[#allocation106_spill] sm:$0xff]  ;;  %v11255_v23 = vld [vmem:[#allocation91_spill] sm:$0xff] }
 0x519   : > { %5201 = vbcast.lane.b32.xlu1 %v5187_v33, 280  ;;  %5197 = vbcast.lane.b32.xlu0 %v5187_v33, 272  ;;  %v8634_v18 = vrot.slane %v11205_v36, %v7028_v10  ;;  %v8638_v63 = vrot.slane %v11205_v36, %v7220_v24  ;;  %v11251_v33 = vld [vmem:[#allocation388_spill] sm:$0xff]  ;;  %v2136_v5 = vadd.f32 %v2104_v35, %v1856_v19 }
 0x51a   : > { %11250 = vst [vmem:[#allocation251_spill] sm:$0xff] %v8630_v59  ;;  %v8642_v21 = vmul.f32 %v11252_v61, %v11251_v33  ;;  %v2099_v39 = vmul.f32 %v11254_v17, %v8377_v62  ;;  %v1826_v46 = vmul.f32 %v11255_v23, %v8561_v25  ;;  %v3302_v58 = vadd.f32 %v3270_v53, %v3022_v51  ;;  %v11257_v61 = vld [vmem:[#allocation46_spill] sm:$0xff]  ;;  %v11258_v35 = vld [vmem:[#allocation200_spill] sm:$0xff]  ;;  %v11261_v53 = vld [vmem:[#allocation223_spill] sm:$0xff] }
 0x51b   : > { %v8628_v50 = vpop.permute.xlu1 %4655  ;;  %v8644_v48 = vpop.permute.xlu0 %4651  ;;  %v3017_v12 = vadd.f32 %v2985_v55, %v2713_v42  ;;  %v1517_v60 = vmul.f32 %v11257_v61, %v8279_v26  ;;  %v8657_v19 = vrot.slane %v11205_v36, %v7386_v54  ;;  %v8661_v17 = vrot.slane %v11258_v35, %v6534_v3  ;;  %v11260_v55 = vld [vmem:[#allocation186_spill] sm:$0xff] }
 0x51c   : > { %11249 = vst [vmem:[#allocation166_spill] sm:$0xff] %v8628_v50  ;;  %11253 = vst [vmem:[#allocation10_spill] sm:$0xff] %v8644_v48  ;;  %v1237_v50 = vmul.f32 %v11256_v7, %v8275_v41  ;;  %v2131_v23 = vadd.f32 %v2099_v39, %v1851_v32  ;;  %v1858_v48 = vadd.f32 %v1826_v46, %v1554_v11  ;;  %v11263_v11 = vld [vmem:[#allocation138_spill] sm:$0xff]  ;;  %v11264_v46 = vld [vmem:[#allocation128_spill] sm:$0xff]  ;;  %v11265_v61 = vunpack.c.l.bf16 %v8622_v56 }
 0x51d   : > { %5212 = vbcast.lane.b32.xlu1 %v5206_v16, 264  ;;  %5208 = vbcast.lane.b32.xlu0 %v5206_v16, 256  ;;  %v2688_v41 = vmul.f32 %v11260_v55, %v8634_v18  ;;  %v2992_v26 = vmul.f32 %v11261_v53, %v8638_v63  ;;  %v8671_v51 = vrot.slane %v8642_v21, %v6534_v3 }
 0x51e   : > { %v8675_v36 = vrot.slane %v8642_v21, %v11199_v22  ;;  %v2440_v32 = vadd.f32 %v2408_v4, %v2136_v5  ;;  %v2403_v39 = vmul.f32 %v11263_v11, %v8405_v47  ;;  %v2106_v7 = vmul.f32 %v11264_v46, %v8586_v1  ;;  %v8692_v4 = vld [vmem:[%s6520_s16 + $0x34] sm:$0x8]  ;;  %v11267_v5 = vld [vmem:[#allocation255_spill] sm:$0xff] }
 0x51f   : > { %v8663_v40 = vpop.permute.xlu1 %4666  ;;  %v8677_v42 = vpop.permute.xlu0 %4662  ;;  %v5225_v55 = vrot.slane %v11265_v61, %v7220_v24  ;;  %v3606_v53 = vadd.f32 %v8577_v0, %v3302_v58  ;;  %v8689_v59 = vrot.slane %v11258_v35, %v11199_v22  ;;  %11266 = vst [vmem:[#allocation277_spill] sm:$0xff] %v8692_v4  ;;  %v3272_v11 = vmul.f32 %v11267_v5, %v8657_v19  ;;  %v11268_v46 = vld [vmem:[#allocation281_spill] sm:$0xff]  ;;  %v11270_v0 = vld [vmem:[#allocation308_spill] sm:$0xff] }
 0x520   : > { %11259 = vst [vmem:[#allocation124_spill] sm:$0xff] %v8663_v40  ;;  %11262 = vst [vmem:[#allocation73_spill] sm:$0xff] %v8677_v42  ;;  %v3297_v40 = vadd.f32 %v3265_v29, %v3017_v12  ;;  %v1549_v42 = vadd.f32 %v1517_v60, %v1237_v50  ;;  %v8698_v31 = vmul.f32 %v11268_v46, %v8661_v17  ;;  %v11271_v60 = vld [vmem:[#allocation77_spill] sm:$0xff]  ;;  %v11273_v12 = vld [vmem:[#allocation63_spill] sm:$0xff] }
 0x521   : > { %5220 = vbcast.lane.b32.xlu1 %v5206_v16, 280  ;;  %5216 = vbcast.lane.b32.xlu0 %v5206_v16, 272  ;;  %v2435_v14 = vadd.f32 %v2403_v39, %v2131_v23  ;;  %v2138_v61 = vadd.f32 %v2106_v7, %v1858_v48  ;;  %v8704_v29 = vmul.f32 %v11270_v0, %v8689_v59  ;;  %v11272_v50 = vld [vmem:[#allocation37_spill] sm:$0xff]  ;;  %v11275_v48 = vld [vmem:[#allocation170_spill] sm:$0xff] }
 0x522   : > { %v1821_v16 = vmul.f32 %v11271_v60, %v8342_v8  ;;  %v1244_v58 = vmul.f32 %v11272_v50, %v8671_v51  ;;  %v1524_v5 = vmul.f32 %v11273_v12, %v8675_v36  ;;  %v2720_v46 = vadd.f32 %v2688_v41, %v2440_v32  ;;  %v11276_v39 = vld [vmem:[#allocation157_spill] sm:$0xff] }
 0x523   : > { %v8700_v56 = vpop.permute.xlu1 %4674  ;;  %v8712_v35 = vpop.permute.xlu0 %4670  ;;  %v2683_v23 = vmul.f32 %v11275_v48, %v8424_v6  ;;  %v2410_v7 = vmul.f32 %v11276_v39, %v8590_v43  ;;  %v8720_v8 = vadd.f32 %v8581_v37, %v3606_v53  ;;  %v3601_v60 = vadd.f32 %v3569_v2, %v3297_v40  ;;  %v11278_v48 = vld [vmem:[#allocation18_spill] sm:$0xff]  ;;  %v11279_v39 = vld [vmem:[#allocation49_spill] sm:$0xff]  ;;  %v11283_v53 = vld [vmem:[#allocation107_spill] sm:$0xff] }
 0x524   : > { %11269 = vst [vmem:[#allocation398_spill] sm:$0xff] %v8700_v56  ;;  %11274 = vst [vmem:[#allocation214_spill] sm:$0xff] %v8712_v35  ;;  %v1853_v50 = vadd.f32 %v1821_v16, %v1549_v42  ;;  %v8724_v12 = vrot.slane %v8642_v21, %v11223_v44  ;;  %v1239_v56 = vmul.f32 %v11278_v48, %v8516_v15  ;;  %v11281_v37 = vld [vmem:[#allocation218_spill] sm:$0xff] }
 0x525   : > { %5231 = vbcast.lane.b32.xlu1 %v5225_v55, 264  ;;  %11277 = vst [vmem:[#allocation304_spill] sm:$0xff] %v8720_v8  ;;  %5227 = vbcast.lane.b32.xlu0 %v5225_v55, 256  ;;  %v2715_v41 = vadd.f32 %v2683_v23, %v2435_v14  ;;  %v2442_v32 = vadd.f32 %v2410_v7, %v2138_v61  ;;  %v11282_v40 = vld [vmem:[#allocation246_spill] sm:$0xff]  ;;  %v11285_v7 = vld [vmem:[#allocation276_spill] sm:$0xff] }
 0x526   : > { %v1519_v35 = vmul.f32 %v11279_v39, %v8520_v57  ;;  %v2987_v2 = vmul.f32 %v11281_v37, %v8455_v9  ;;  %v3267_v42 = vmul.f32 %v11282_v40, %v8468_v28  ;;  %v2101_v16 = vmul.f32 %v11283_v53, %v8377_v62  ;;  %v11286_v39 = vld [vmem:[#allocation187_spill] sm:$0xff]  ;;  %v11288_v40 = vld [vmem:[#allocation305_spill] sm:$0xff] }
 0x527   : > { %v8730_v30 = vpop.permute.xlu1 %4685  ;;  %v1556_v14 = vadd.f32 %v1524_v5, %v1244_v58  ;;  %v8738_v61 = vpop.permute.xlu0 %4681  ;;  %v3024_v23 = vadd.f32 %v2992_v26, %v2720_v46  ;;  %v3571_v48 = vmul.f32 %v11285_v7, %v8485_v34  ;;  %v2690_v0 = vmul.f32 %v11286_v39, %v8634_v18  ;;  %v11289_v58 = vld [vmem:[#allocation93_spill] sm:$0xff]  ;;  %v8758_v46 = vld [vmem:[%s6520_s16 + $0x3c] sm:$0x8] }
 0x528   : > { %11280 = vst [vmem:[#allocation241_spill] sm:$0xff] %v8730_v30  ;;  %11284 = vst [vmem:[#allocation274_spill] sm:$0xff] %v8738_v61  ;;  %v11287_v37 = vunpack.c.l.bf16 %v8692_v4  ;;  %v8749_v30 = vmul.f32 %v11288_v40, %v8502_v49  ;;  %v2133_v62 = vadd.f32 %v2101_v16, %v1853_v50  ;;  %v1828_v5 = vmul.f32 %v11289_v58, %v8724_v12  ;;  %v11292_v50 = vld [vmem:[#allocation140_spill] sm:$0xff]  ;;  %v11293_v58 = vld [vmem:[#allocation38_spill] sm:$0xff] }
 0x529   : > { %5239 = vbcast.lane.b32.xlu1 %v5225_v55, 280  ;;  %v8755_v26 = vrot.slane %v8642_v21, %v11232_v27  ;;  %5235 = vbcast.lane.b32.xlu0 %v5225_v55, 272  ;;  %v8761_v53 = vadd.f32 %v8619_v52, %v3601_v60  ;;  %v3019_v7 = vadd.f32 %v2987_v2, %v2715_v41  ;;  %v11296_v52 = vld [vmem:[#allocation225_spill] sm:$0xff]  ;;  %v11299_v2 = vld [vmem:[#allocation130_spill] sm:$0xff] }
 0x52a   : > { %v5244_v8 = vrot.slane %v11287_v37, %v7220_v24  ;;  %v2722_v39 = vadd.f32 %v2690_v0, %v2442_v32  ;;  %v1551_v37 = vadd.f32 %v1519_v35, %v1239_v56  ;;  %v2405_v16 = vmul.f32 %v11292_v50, %v8405_v47  ;;  %v11297_v56 = vld [vmem:[#allocation79_spill] sm:$0xff]  ;;  %v11298_v47 = vld [vmem:[#allocation256_spill] sm:$0xff] }
 0x52b   : > { %11290 = vst [vmem:[#allocation153_spill] sm:$0xff] %v8761_v53  ;;  %v8763_v61 = vpop.permute.xlu1 %4693  ;;  %v1860_v40 = vadd.f32 %v1828_v5, %v1556_v14  ;;  %v1246_v4 = vmul.f32 %v11293_v58, %v8671_v51  ;;  %v1526_v55 = vmul.f32 %v11294_v45, %v8675_v36  ;;  %v8771_v38 = vpop.permute.xlu0 %4689  ;;  %v3304_v27 = vadd.f32 %v3272_v11, %v3024_v23  ;;  %v11300_v5 = vld [vmem:[#allocation283_spill] sm:$0xff] }
 0x52c   : > { %11291 = vst [vmem:[#allocation105_spill] sm:$0xff] %v8763_v61  ;;  %11295 = vst [vmem:[#allocation302_spill] sm:$0xff] %v8771_v38  ;;  %v2994_v60 = vmul.f32 %v11296_v52, %v8638_v63  ;;  %v1823_v35 = vmul.f32 %v11297_v56, %v8561_v25  ;;  %v3274_v41 = vmul.f32 %v11298_v47, %v8657_v19  ;;  %v11302_v56 = vld [vmem:[#allocation310_spill] sm:$0xff]  ;;  %v11489_v61 = vld [vmem:[#allocation27_spill] sm:$0xff] }
 0x52d   : > { %5250 = vbcast.lane.b32.xlu1 %v5244_v8, 264  ;;  %v2437_v32 = vadd.f32 %v2405_v16, %v2133_v62  ;;  %v2108_v14 = vmul.f32 %v11299_v2, %v8755_v26  ;;  %v8784_v45 = vrot.slane %v8642_v21, %v6924_v20  ;;  %5246 = vbcast.lane.b32.xlu0 %v5244_v8, 256  ;;  %v11303_v62 = vld [vmem:[#allocation172_spill] sm:$0xff] }
 0x52e   : > { %v3299_v11 = vadd.f32 %v3267_v42, %v3019_v7  ;;  %v3026_v23 = vadd.f32 %v2994_v60, %v2722_v39  ;;  %v3578_v50 = vmul.f32 %v11300_v5, %v8661_v17  ;;  %v1855_v58 = vadd.f32 %v1823_v35, %v1551_v37  ;;  %v11305_v42 = vld [vmem:[#allocation220_spill] sm:$0xff] }
 0x52f   : > { %v8788_v52 = vpop.permute.xlu1 %4832  ;;  %v3858_v47 = vmul.f32 %v11302_v56, %v8689_v59  ;;  %v2685_v16 = vmul.f32 %v11303_v62, %v8424_v6  ;;  %v2140_v2 = vadd.f32 %v2108_v14, %v1860_v40  ;;  %v1558_v0 = vadd.f32 %v1526_v55, %v1246_v4  ;;  %v8794_v53 = vpop.permute.xlu0 %4828  ;;  %v11306_v39 = vld [vmem:[#allocation108_spill] sm:$0xff]  ;;  %v11308_v6 = vld [vmem:[#allocation159_spill] sm:$0xff]  ;;  %v11310_v14 = vld [vmem:[#allocation249_spill] sm:$0xff] }
 0x530   : > { %11301 = vst [vmem:[#allocation35_spill] sm:$0xff] %v8788_v52  ;;  %11304 = vst [vmem:[#allocation59_spill] sm:$0xff] %v8794_v53  ;;  %v3608_v38 = vadd.f32 %v8698_v31, %v3304_v27  ;;  %v2989_v7 = vmul.f32 %v11305_v42, %v8455_v9  ;;  %v2103_v37 = vmul.f32 %v11306_v39, %v8586_v1  ;;  %v11307_v60 = vunpack.c.l.bf16 %v8758_v46  ;;  %v11309_v27 = vld [vmem:[#allocation95_spill] sm:$0xff] }
 0x531   : > { %5258 = vbcast.lane.b32.xlu1 %v5244_v8, 280  ;;  %v2717_v5 = vadd.f32 %v2685_v16, %v2437_v32  ;;  %v2412_v40 = vmul.f32 %v11308_v6, %v8784_v45  ;;  %v8808_v4 = vrot.slane %v8642_v21, %v7028_v10  ;;  %v1830_v31 = vmul.f32 %v11309_v27, %v8724_v12  ;;  %v11312_v39 = vld [vmem:[#allocation19_spill] sm:$0xff]  ;;  %v11324_v27 = vld [vmem:[#allocation389_spill] sm:$0xff] }
 0x532   : > { %v5263_v35 = vrot.slane %v11307_v60, %v7220_v24  ;;  %5254 = vbcast.lane.b32.xlu0 %v5244_v8, 272  ;;  %v3603_v9 = vadd.f32 %v3571_v48, %v3299_v11  ;;  %v3306_v55 = vadd.f32 %v3274_v41, %v3026_v23  ;;  %v3269_v56 = vmul.f32 %v11310_v14, %v8468_v28  ;;  %v11313_v6 = vld [vmem:[#allocation51_spill] sm:$0xff]  ;;  %v11316_v48 = vld [vmem:[#allocation278_spill] sm:$0xff] }
 0x533   : > { %v2135_v62 = vadd.f32 %v2103_v37, %v1855_v58  ;;  %v8814_v42 = vpop.permute.xlu1 %4840  ;;  %v2444_v32 = vadd.f32 %v2412_v40, %v2140_v2  ;;  %v1862_v16 = vadd.f32 %v1830_v31, %v1558_v0  ;;  %v1241_v60 = vmul.f32 %v11312_v39, %v8516_v15  ;;  %v8820_v53 = vpop.permute.xlu0 %4836  ;;  %v11317_v28 = vld [vmem:[#allocation203_spill] sm:$0xff]  ;;  %v11320_v58 = vld [vmem:[#allocation190_spill] sm:$0xff] }
 0x534   : > { %11311 = vst [vmem:[#allocation184_spill] sm:$0xff] %v8814_v42  ;;  %v1521_v52 = vmul.f32 %v11313_v6, %v8520_v57  ;;  %11314 = vst [vmem:[#allocation221_spill] sm:$0xff] %v8820_v53  ;;  %v8823_v8 = vadd.f32 %v8704_v29, %v3608_v38  ;;  %v3573_v41 = vmul.f32 %v11316_v48, %v8485_v34  ;;  %v11319_v0 = vld [vmem:[#allocation143_spill] sm:$0xff]  ;;  %v11321_v38 = vld [vmem:[#allocation132_spill] sm:$0xff] }
 0x535   : > { %v8829_v11 = vmul.f32 %v11317_v28, %v11251_v33  ;;  %v2407_v23 = vmul.f32 %v11319_v0, %v8590_v43  ;;  %5269 = vbcast.lane.b32.xlu1 %v5263_v35, 264  ;;  %v3021_v15 = vadd.f32 %v2989_v7, %v2717_v5  ;;  %v2692_v57 = vmul.f32 %v11320_v58, %v8808_v4  ;;  %v11323_v33 = vld [vmem:[#allocation307_spill] sm:$0xff]  ;;  %v11325_v7 = vld [vmem:[#allocation193_spill] sm:$0xff]  ;;  %v11329_v0 = vld [vmem:[#allocation102_spill] sm:$0xff] }
 0x536   : > { %11315 = vst [vmem:[#allocation11_spill] sm:$0xff] %v8823_v8  ;;  %v8837_v2 = vrot.slane %v8642_v21, %v7220_v24  ;;  %v2110_v29 = vmul.f32 %v11321_v38, %v8755_v26  ;;  %5265 = vbcast.lane.b32.xlu0 %v5263_v35, 256  ;;  %v8842_v34 = vadd.f32 %v8749_v30, %v3603_v9  ;;  %v11328_v9 = vld [vmem:[#allocation174_spill] sm:$0xff]  ;;  %v11418_v8 = vld [vmem:[#allocation148_spill] sm:$0xff] }
 0x537   : > { %11318 = vst [vmem:[#allocation29_spill] sm:$0xff] %v8829_v11  ;;  %v3853_v37 = vmul.f32 %v11323_v33, %v8502_v49  ;;  %v2439_v40 = vadd.f32 %v2407_v23, %v2135_v62  ;;  %v8848_v5 = vmul.f32 %v11325_v7, %v11324_v27  ;;  %v8850_v31 = vpop.permute.xlu1 %4851  ;;  %v3610_v14 = vadd.f32 %v3578_v50, %v3306_v55  ;;  %v8852_v28 = vpop.permute.xlu0 %4847  ;;  %v11333_v23 = vld [vmem:[#allocation81_spill] sm:$0xff] }
 0x538   : > { %11322 = vst [vmem:[#allocation44_spill] sm:$0xff] %v8842_v34  ;;  %11326 = vst [vmem:[#allocation253_spill] sm:$0xff] %v8850_v31  ;;  %v2724_v39 = vadd.f32 %v2692_v57, %v2444_v32  ;;  %v2142_v6 = vadd.f32 %v2110_v29, %v1862_v16  ;;  %v1553_v48 = vadd.f32 %v1521_v52, %v1241_v60  ;;  %v11330_v50 = vunpack.c.l.bf16 %v11329_v0  ;;  %v11331_v32 = vld [vmem:[#allocation227_spill] sm:$0xff]  ;;  %v11337_v0 = vld [vmem:[#allocation258_spill] sm:$0xff] }
 0x539   : > { %11327 = vst [vmem:[#allocation135_spill] sm:$0xff] %v8852_v28  ;;  %v8856_v30 = vrot.slane %v8642_v21, %v7386_v54  ;;  %v8860_v49 = vrot.slane %v8829_v11, %v6534_v3  ;;  %v2687_v62 = vmul.f32 %v11328_v9, %v8634_v18  ;;  %5277 = vbcast.lane.b32.xlu1 %v5263_v35, 280  ;;  %v11332_v21 = vld [vmem:[#allocation161_spill] sm:$0xff] }
 0x53a   : > { %v8867_v55 = vrot.slane %v11330_v50, %v7386_v54  ;;  %v3301_v52 = vadd.f32 %v3269_v56, %v3021_v15  ;;  %v2996_v16 = vmul.f32 %v11331_v32, %v8837_v2  ;;  %v2414_v60 = vmul.f32 %v11332_v21, %v8784_v45  ;;  %5273 = vbcast.lane.b32.xlu0 %v5263_v35, 272  ;;  %v11339_v32 = vld [vmem:[#allocation222_spill] sm:$0xff] }
 0x53b   : > { %v1825_v58 = vmul.f32 %v11333_v23, %v8561_v25  ;;  %v8877_v57 = vrot.slane %v8829_v11, %v11199_v22  ;;  %v2719_v38 = vadd.f32 %v2687_v62, %v2439_v40  ;;  %v8881_v29 = vrot.slane %v8848_v5, %v6534_v3  ;;  %v8887_v15 = vpop.permute.xlu1 %4859  ;;  %v8891_v9 = vpop.permute.xlu0 %4855  ;;  %v11338_v62 = vld [vmem:[#allocation285_spill] sm:$0xff] }
 0x53c   : > { %v8885_v56 = vrot.slane %v8848_v5, %v11199_v22  ;;  %11334 = vst [vmem:[#allocation279_spill] sm:$0xff] %v8887_v15  ;;  %v8889_v33 = vadd.f32 %v3858_v47, %v3610_v14  ;;  %v3028_v7 = vadd.f32 %v2996_v16, %v2724_v39  ;;  %v2446_v25 = vadd.f32 %v2414_v60, %v2142_v6  ;;  %v11341_v6 = vld [vmem:[#allocation312_spill] sm:$0xff]  ;;  %v11343_v23 = vld [vmem:[#allocation109_spill] sm:$0xff] }
 0x53d   : > { %v1857_v35 = vadd.f32 %v1825_v58, %v1553_v48  ;;  %11336 = vst [vmem:[#allocation89_spill] sm:$0xff] %v8891_v9  ;;  %v3276_v40 = vmul.f32 %v11337_v0, %v8856_v30  ;;  %v3580_v50 = vmul.f32 %v11338_v62, %v8860_v49  ;;  %v2991_v21 = vmul.f32 %v11339_v32, %v8638_v63  ;;  %v11342_v16 = vld [vmem:[#allocation192_spill] sm:$0xff]  ;;  %v11344_v62 = vld [vmem:[#allocation250_spill] sm:$0xff] }
 0x53e   : > { %11335 = vst [vmem:[#allocation306_spill] sm:$0xff] %v8889_v33  ;;  %5416 = vbcast.lane.b32.xlu1 %v8867_v55, 264  ;;  %v11340_v47 = vunpack.c.l.bf16 %v8380_v13  ;;  %v3605_v39 = vadd.f32 %v3573_v41, %v3301_v52  ;;  %v3860_v48 = vmul.f32 %v11341_v6, %v8877_v57  ;;  %v2694_v60 = vmul.f32 %v11342_v16, %v8808_v4  ;;  %v11345_v13 = vld [vmem:[#allocation40_spill] sm:$0xff]  ;;  %v11346_v41 = vld [vmem:[#allocation67_spill] sm:$0xff] }
 0x53f   : > { %v2105_v58 = vmul.f32 %v11343_v23, %v8586_v1  ;;  %5412 = vbcast.lane.b32.xlu0 %v8867_v55, 256  ;;  %v3023_v0 = vadd.f32 %v2991_v21, %v2719_v38  ;;  %v3271_v32 = vmul.f32 %v11344_v62, %v8657_v19  ;;  %v1528_v52 = vmul.f32 %v11346_v41, %v8885_v56  ;;  %v8918_v42 = vpop.permute.xlu1 %4870  ;;  %v11348_v16 = vld [vmem:[#allocation280_spill] sm:$0xff]  ;;  %v8922_v23 = vpop.permute.xlu0 %4866  ;;  %v11350_v38 = vld [vmem:[#allocation309_spill] sm:$0xff] }
 0x540   : > { %v8903_v14 = vrot.slane %v11340_v47, %v7386_v54  ;;  %v1248_v47 = vmul.f32 %v11345_v13, %v8881_v29  ;;  %11347 = vst [vmem:[#allocation36_spill] sm:$0xff] %v8918_v42  ;;  %v3308_v6 = vadd.f32 %v3276_v40, %v3028_v7  ;;  %v3575_v15 = vmul.f32 %v11348_v16, %v8661_v17  ;;  %v11351_v13 = vld [vmem:[#allocation21_spill] sm:$0xff] }
 0x541   : > { %v2726_v9 = vadd.f32 %v2694_v60, %v2446_v25  ;;  %v2137_v1 = vadd.f32 %v2105_v58, %v1857_v35  ;;  %11349 = vst [vmem:[#allocation61_spill] sm:$0xff] %v8922_v23  ;;  %v3855_v21 = vmul.f32 %v11350_v38, %v8689_v59  ;;  %v8928_v62 = vrot.slane %v8848_v5, %v11223_v44  ;;  %v11352_v42 = vld [vmem:[#allocation53_spill] sm:$0xff]  ;;  %v11355_v60 = vld [vmem:[#allocation260_spill] sm:$0xff] }
 0x542   : > { %v1243_v41 = vmul.f32 %v11351_v13, %v8671_v51  ;;  %v1523_v7 = vmul.f32 %v11352_v42, %v8675_v36  ;;  %5435 = vbcast.lane.b32.xlu1 %v8903_v14, 264  ;;  %v8935_v40 = vadd.f32 %v3853_v37, %v3605_v39  ;;  %v11354_v25 = vld [vmem:[#allocation229_spill] sm:$0xff]  ;;  %v3278_v58 = vmul.f32 %v11355_v60, %v8856_v30  ;;  %v11357_v13 = vld [vmem:[#allocation287_spill] sm:$0xff]  ;;  %v11358_v42 = vld [vmem:[#allocation314_spill] sm:$0xff] }
 0x543   : > { %v2998_v35 = vmul.f32 %v11354_v25, %v8837_v2  ;;  %v11356_v16 = vld [vmem:[#allocation145_spill] sm:$0xff]  ;;  %5431 = vbcast.lane.b32.xlu0 %v8903_v14, 256  ;;  %v3303_v23 = vadd.f32 %v3271_v32, %v3023_v0  ;;  %v3582_v53 = vmul.f32 %v11357_v13, %v8860_v49  ;;  %v8948_v31 = vmul.f32 %v11358_v42, %v8877_v57  ;;  %v8950_v39 = vpop.permute.xlu1 %4878  ;;  %v11360_v60 = vld [vmem:[#allocation176_spill] sm:$0xff] }
 0x544   : > { %11353 = vst [vmem:[#allocation168_spill] sm:$0xff] %v8935_v40  ;;  %v2409_v38 = vmul.f32 %v11356_v16, %v8590_v43  ;;  %v1560_v37 = vadd.f32 %v1528_v52, %v1248_v47  ;;  %11359 = vst [vmem:[#allocation216_spill] sm:$0xff] %v8950_v39  ;;  %v3612_v25 = vadd.f32 %v3580_v50, %v3308_v6  ;;  %v8954_v43 = vpop.permute.xlu0 %4874  ;;  %v11362_v0 = vld [vmem:[#allocation97_spill] sm:$0xff]  ;;  %v11363_v16 = vld [vmem:[#allocation34_spill] sm:$0xff] }
 0x545   : > { %v3030_v28 = vadd.f32 %v2998_v35, %v2726_v9  ;;  %v2689_v33 = vmul.f32 %v11360_v60, %v8634_v18  ;;  %11361 = vst [vmem:[#allocation244_spill] sm:$0xff] %v8954_v43  ;;  %v1832_v32 = vmul.f32 %v11362_v0, %v8928_v62  ;;  %v8960_v13 = vrot.slane %v8848_v5, %v11363_v16  ;;  %v11364_v47 = vld [vmem:[#allocation85_spill] sm:$0xff]  ;;  %v11366_v52 = vld [vmem:[#allocation224_spill] sm:$0xff]  ;;  %v11368_v35 = vld [vmem:[#allocation42_spill] sm:$0xff] }
 0x546   : > { %v2441_v40 = vadd.f32 %v2409_v38, %v2137_v1  ;;  %v1555_v42 = vadd.f32 %v1523_v7, %v1243_v41  ;;  %5439 = vbcast.lane.b32.xlu1 %v8903_v14, 272  ;;  %v11365_v50 = vunpack.c.l.bf16 %v11364_v47  ;;  %v2993_v18 = vmul.f32 %v11366_v52, %v8638_v63  ;;  %v11367_v6 = vld [vmem:[#allocation252_spill] sm:$0xff] }
 0x547   : > { %v3273_v1 = vmul.f32 %v11367_v6, %v8657_v19  ;;  %v1250_v38 = vmul.f32 %v11368_v35, %v8881_v29  ;;  %v11369_v60 = vld [vmem:[#allocation68_spill] sm:$0xff]  ;;  %5420 = vbcast.lane.b32.xlu0 %v8867_v55, 272  ;;  %v3607_v41 = vadd.f32 %v3575_v15, %v3303_v23  ;;  %v1864_v7 = vadd.f32 %v1832_v32, %v1560_v37  ;;  %v8983_v52 = vpop.permute.xlu1 %4889  ;;  %v11373_v6 = vld [vmem:[#allocation282_spill] sm:$0xff]  ;;  %v11375_v15 = vld [vmem:[#allocation205_spill] sm:$0xff] }
 0x548   : > { %v8966_v9 = vrot.slane %v11365_v50, %v7386_v54  ;;  %v1530_v0 = vmul.f32 %v11369_v60, %v8885_v56  ;;  %v8979_v47 = vrot.slane %v8848_v5, %v6924_v20  ;;  %v11370_v50 = vld [vmem:[#allocation82_spill] sm:$0xff]  ;;  %11371 = vst [vmem:[#allocation75_spill] sm:$0xff] %v8983_v52  ;;  %v8985_v19 = vadd.f32 %v3860_v48, %v3612_v25  ;;  %v11374_v60 = vld [vmem:[#allocation311_spill] sm:$0xff]  ;;  %v8999_v37 = vpop.permute.xlu0 %4885 }
 0x549   : > { %v1827_v63 = vmul.f32 %v11370_v50, %v8724_v12  ;;  %v8989_v35 = vmul.f32 %v11373_v6, %v8661_v17  ;;  %v8993_v43 = vmul.f32 %v11374_v60, %v8689_v59  ;;  %v8997_v23 = vmul.f32 %v11375_v15, %v11324_v27  ;;  %11377 = vst [vmem:[#allocation126_spill] sm:$0xff] %v8999_v37  ;;  %v11378_v52 = vld [vmem:[#allocation134_spill] sm:$0xff]  ;;  %v11382_v27 = vld [vmem:[#allocation195_spill] sm:$0xff] }
 0x54a   : > { %11372 = vst [vmem:[#allocation275_spill] sm:$0xff] %v8985_v19  ;;  %v3310_v32 = vadd.f32 %v3278_v58, %v3030_v28  ;;  %v2721_v50 = vadd.f32 %v2689_v33, %v2441_v40  ;;  %v2112_v48 = vmul.f32 %v11378_v52, %v8960_v13  ;;  %5454 = vbcast.lane.b32.xlu1 %v8966_v9, 264  ;;  %v11379_v6 = vld [vmem:[#allocation22_spill] sm:$0xff]  ;;  %v11381_v19 = vld [vmem:[#allocation391_spill] sm:$0xff] }
 0x54b   : > { %11376 = vst [vmem:[#allocation303_spill] sm:$0xff] %v8997_v23  ;;  %v1859_v25 = vadd.f32 %v1827_v63, %v1555_v42  ;;  %v1562_v17 = vadd.f32 %v1530_v0, %v1250_v38  ;;  %v1245_v39 = vmul.f32 %v11379_v6, %v8671_v51  ;;  %v11380_v59 = vld [vmem:[#allocation54_spill] sm:$0xff]  ;;  %v9010_v15 = vmul.f32 %v11382_v27, %v11381_v19  ;;  %v11384_v40 = vld [vmem:[#allocation163_spill] sm:$0xff]  ;;  %v9019_v0 = vpop.permute.xlu1 %4897 }
 0x54c   : > { %v1525_v60 = vmul.f32 %v11380_v59, %v8675_v36  ;;  %5450 = vbcast.lane.b32.xlu0 %v8966_v9, 256  ;;  %v9013_v28 = vadd.f32 %v3855_v21, %v3607_v41  ;;  %v2144_v33 = vadd.f32 %v2112_v48, %v1864_v7  ;;  %v2416_v58 = vmul.f32 %v11384_v40, %v8979_v47  ;;  %v11385_v42 = vld [vmem:[#allocation111_spill] sm:$0xff]  ;;  %v11387_v41 = vld [vmem:[#allocation98_spill] sm:$0xff]  ;;  %v9035_v63 = vpop.permute.xlu0 %4893 }
 0x54d   : > { %v2107_v38 = vmul.f32 %v11385_v42, %v8755_v26  ;;  %11386 = vst [vmem:[#allocation388_spill] sm:$0xff] %v9019_v0  ;;  %v9023_v51 = vrot.slane %v8848_v5, %v7028_v10  ;;  %v9027_v36 = vrot.slane %v8848_v5, %v7220_v24  ;;  %v9031_v21 = vrot.slane %v8848_v5, %v7386_v54  ;;  %v11389_v59 = vld [vmem:[#allocation71_spill] sm:$0xff] }
 0x54e   : > { %11383 = vst [vmem:[#allocation155_spill] sm:$0xff] %v9013_v28  ;;  %v1834_v7 = vmul.f32 %v11387_v41, %v8928_v62  ;;  %11388 = vst [vmem:[#allocation191_spill] sm:$0xff] %v9035_v63  ;;  %v3614_v52 = vadd.f32 %v3582_v53, %v3310_v32  ;;  %v3025_v48 = vadd.f32 %v2993_v18, %v2721_v50  ;;  %5443 = vbcast.lane.b32.xlu1 %v8903_v14, 280  ;;  %v11400_v28 = vld [vmem:[#allocation43_spill] sm:$0xff] }
 0x54f   : > { %v2139_v6 = vadd.f32 %v2107_v38, %v1859_v25  ;;  %v11390_v27 = vunpack.c.l.bf16 %v11389_v59  ;;  %v1557_v0 = vadd.f32 %v1525_v60, %v1245_v39  ;;  %v9045_v5 = vrot.slane %v9010_v15, %v6534_v3  ;;  %v11391_v39 = vld [vmem:[#allocation147_spill] sm:$0xff]  ;;  %v9062_v50 = vpop.permute.xlu1 %4908  ;;  %v11393_v25 = vld [vmem:[#allocation194_spill] sm:$0xff]  ;;  %v11396_v38 = vld [vmem:[#allocation84_spill] sm:$0xff] }
 0x550   : > { %v1866_v42 = vadd.f32 %v1834_v7, %v1562_v17  ;;  %v9049_v41 = vrot.slane %v9010_v15, %v11199_v22  ;;  %5424 = vbcast.lane.b32.xlu0 %v8867_v55, 280  ;;  %v2448_v53 = vadd.f32 %v2416_v58, %v2144_v33  ;;  %v9054_v14 = vrot.slane %v8997_v23, %v6534_v3  ;;  %v11394_v60 = vld [vmem:[#allocation231_spill] sm:$0xff]  ;;  %v11395_v33 = vld [vmem:[#allocation136_spill] sm:$0xff]  ;;  %v9072_v59 = vpop.permute.xlu0 %4904 }
 0x551   : > { %v9041_v40 = vrot.slane %v11390_v27, %v7386_v54  ;;  %v9058_v18 = vrot.slane %v8997_v23, %v11199_v22  ;;  %v2411_v32 = vmul.f32 %v11391_v39, %v8784_v45  ;;  %11392 = vst [vmem:[#allocation106_spill] sm:$0xff] %v9062_v50  ;;  %v2696_v17 = vmul.f32 %v11393_v25, %v9023_v51  ;;  %v11399_v50 = vld [vmem:[#allocation261_spill] sm:$0xff]  ;;  %v11401_v23 = vld [vmem:[#allocation70_spill] sm:$0xff] }
 0x552   : > { %v3000_v55 = vmul.f32 %v11394_v60, %v9027_v36  ;;  %v2114_v58 = vmul.f32 %v11395_v33, %v8960_v13  ;;  %v1829_v7 = vmul.f32 %v11396_v38, %v8724_v12  ;;  %11397 = vst [vmem:[#allocation91_spill] sm:$0xff] %v9072_v59  ;;  %v9075_v27 = vadd.f32 %v8948_v31, %v3614_v52  ;;  %v11402_v31 = vld [vmem:[#allocation289_spill] sm:$0xff]  ;;  %v11403_v52 = vld [vmem:[#allocation178_spill] sm:$0xff] }
 0x553   : > { %v3305_v39 = vadd.f32 %v3273_v1, %v3025_v48  ;;  %v3280_v63 = vmul.f32 %v11399_v50, %v9031_v21  ;;  %v2443_v37 = vadd.f32 %v2411_v32, %v2139_v6  ;;  %5469 = vbcast.lane.b32.xlu1 %v9041_v40, 256  ;;  %v1252_v33 = vmul.f32 %v11400_v28, %v9045_v5  ;;  %v11404_v6 = vld [vmem:[#allocation165_spill] sm:$0xff] }
 0x554   : > { %11398 = vst [vmem:[#allocation16_spill] sm:$0xff] %v9075_v27  ;;  %v2146_v25 = vadd.f32 %v2114_v58, %v1866_v42  ;;  %v1861_v60 = vadd.f32 %v1829_v7, %v1557_v0  ;;  %v1532_v12 = vmul.f32 %v11401_v23, %v9049_v41  ;;  %5458 = vbcast.lane.b32.xlu0 %v8966_v9, 272  ;;  %v9091_v42 = vpop.permute.xlu1 %4916  ;;  %v11406_v0 = vld [vmem:[#allocation113_spill] sm:$0xff]  ;;  %v9103_v7 = vpop.permute.xlu0 %4912 }
 0x555   : > { %v2728_v38 = vadd.f32 %v2696_v17, %v2448_v53  ;;  %v3584_v1 = vmul.f32 %v11402_v31, %v9054_v14  ;;  %v2691_v48 = vmul.f32 %v11403_v52, %v8808_v4  ;;  %v2418_v32 = vmul.f32 %v11404_v6, %v8979_v47  ;;  %11405 = vst [vmem:[#allocation46_spill] sm:$0xff] %v9091_v42  ;;  %v11407_v53 = vld [vmem:[#allocation24_spill] sm:$0xff] }
 0x556   : > { %v2109_v28 = vmul.f32 %v11406_v0, %v8755_v26  ;;  %v9097_v23 = vrot.slane %v9010_v15, %v11223_v44  ;;  %v1247_v50 = vmul.f32 %v11407_v53, %v8881_v29  ;;  %v11408_v17 = vld [vmem:[#allocation56_spill] sm:$0xff]  ;;  %11409 = vst [vmem:[#allocation186_spill] sm:$0xff] %v9103_v7  ;;  %v3609_v31 = vadd.f32 %v8989_v35, %v3305_v39  ;;  %v11413_v53 = vld [vmem:[#allocation226_spill] sm:$0xff] }
 0x557   : > { %v1527_v58 = vmul.f32 %v11408_v17, %v8885_v56  ;;  %v11410_v52 = vld [vmem:[#allocation316_spill] sm:$0xff]  ;;  %v2723_v42 = vadd.f32 %v2691_v48, %v2443_v37  ;;  %5462 = vbcast.lane.b32.xlu1 %v8966_v9, 280  ;;  %v2995_v27 = vmul.f32 %v11413_v53, %v8837_v2  ;;  %v2450_v17 = vadd.f32 %v2418_v32, %v2146_v25  ;;  %v11414_v39 = vld [vmem:[#allocation254_spill] sm:$0xff]  ;;  %v11416_v48 = vld [vmem:[#allocation197_spill] sm:$0xff] }
 0x558   : > { %v9108_v6 = vmul.f32 %v11410_v52, %v9058_v18  ;;  %v11411_v26 = vld [vmem:[#allocation240_spill] sm:$0xff]  ;;  %v2141_v34 = vadd.f32 %v2109_v28, %v1861_v60  ;;  %v1564_v7 = vadd.f32 %v1532_v12, %v1252_v33  ;;  %5473 = vbcast.lane.b32.xlu0 %v9041_v40, 264  ;;  %v3032_v35 = vadd.f32 %v3000_v55, %v2728_v38  ;;  %v11419_v25 = vld [vmem:[#allocation99_spill] sm:$0xff]  ;;  %v9135_v12 = vpop.permute.xlu0 %4923  ;;  %v11422_v28 = vld [vmem:[#allocation313_spill] sm:$0xff] }
 0x559   : > { %v11412_v0 = vunpack.c.l.bf16 %v11411_v26  ;;  %v3275_v52 = vmul.f32 %v11414_v39, %v8856_v30  ;;  %v11415_v37 = vld [vmem:[#allocation284_spill] sm:$0xff]  ;;  %v2698_v26 = vmul.f32 %v11416_v48, %v9023_v51  ;;  %v2413_v53 = vmul.f32 %v11418_v8, %v8784_v45  ;;  %11420 = vst [vmem:[#allocation138_spill] sm:$0xff] %v9135_v12 }
 0x55a   : > { %v3579_v9 = vmul.f32 %v11415_v37, %v8860_v49  ;;  %v1836_v60 = vmul.f32 %v11419_v25, %v9097_v23  ;;  %v9133_v55 = vrot.slane %v9010_v15, %v11363_v16  ;;  %v1559_v33 = vadd.f32 %v1527_v58, %v1247_v50  ;;  %v11423_v37 = vld [vmem:[#allocation233_spill] sm:$0xff] }
 0x55b   : > { %v9114_v59 = vrot.slane %v11412_v0, %v7386_v54  ;;  %v9125_v0 = vpop.permute.xlu1 %4927  ;;  %v9138_v38 = vadd.f32 %v8993_v43, %v3609_v31  ;;  %v3027_v32 = vadd.f32 %v2995_v27, %v2723_v42  ;;  %v3859_v39 = vmul.f32 %v11422_v28, %v8877_v57  ;;  %v11425_v43 = vld [vmem:[#allocation263_spill] sm:$0xff]  ;;  %v11426_v42 = vld [vmem:[#allocation45_spill] sm:$0xff]  ;;  %v11427_v28 = vld [vmem:[#allocation72_spill] sm:$0xff] }
 0x55c   : > { %11417 = vst [vmem:[#allocation223_spill] sm:$0xff] %v9125_v0  ;;  %v3002_v45 = vmul.f32 %v11423_v37, %v9027_v36  ;;  %v2730_v8 = vadd.f32 %v2698_v26, %v2450_v17  ;;  %v2445_v48 = vadd.f32 %v2413_v53, %v2141_v34  ;;  %v1868_v25 = vadd.f32 %v1836_v60, %v1564_v7  ;;  %v11424_v0 = vld [vmem:[#allocation86_spill] sm:$0xff]  ;;  %v11429_v34 = vld [vmem:[#allocation180_spill] sm:$0xff]  ;;  %v11430_v17 = vld [vmem:[#allocation137_spill] sm:$0xff] }
 0x55d   : > { %11421 = vst [vmem:[#allocation128_spill] sm:$0xff] %v9138_v38  ;;  %5488 = vbcast.lane.b32.xlu1 %v9114_v59, 256  ;;  %v1831_v50 = vmul.f32 %v11424_v0, %v8928_v62  ;;  %5477 = vbcast.lane.b32.xlu0 %v9041_v40, 272  ;;  %v3312_v58 = vadd.f32 %v3280_v63, %v3032_v35  ;;  %v9164_v0 = vpop.permute.xlu0 %4931  ;;  %v11432_v60 = vld [vmem:[#allocation291_spill] sm:$0xff] }
 0x55e   : > { %v3282_v27 = vmul.f32 %v11425_v43, %v9031_v21  ;;  %v1254_v31 = vmul.f32 %v11426_v42, %v9045_v5  ;;  %v1534_v37 = vmul.f32 %v11427_v28, %v9049_v41  ;;  %v2693_v7 = vmul.f32 %v11429_v34, %v8808_v4  ;;  %11431 = vst [vmem:[#allocation281_spill] sm:$0xff] %v9164_v0  ;;  %v11433_v42 = vld [vmem:[#allocation318_spill] sm:$0xff]  ;;  %v11435_v4 = vld [vmem:[#allocation219_spill] sm:$0xff] }
 0x55f   : > { %v9154_v12 = vpop.permute.xlu1 %4935  ;;  %v2116_v26 = vmul.f32 %v11430_v17, %v9133_v55  ;;  %v9162_v63 = vrot.slane %v9010_v15, %v6924_v20  ;;  %v1863_v35 = vadd.f32 %v1831_v50, %v1559_v33  ;;  %v3307_v53 = vadd.f32 %v3275_v52, %v3027_v32  ;;  %v11437_v50 = vld [vmem:[#allocation115_spill] sm:$0xff] }
 0x560   : > { %11428 = vst [vmem:[#allocation255_spill] sm:$0xff] %v9154_v12  ;;  %v3586_v43 = vmul.f32 %v11432_v60, %v9054_v14  ;;  %v9170_v28 = vmul.f32 %v11433_v42, %v9058_v18  ;;  %v11436_v34 = vunpack.c.l.bf16 %v11435_v4  ;;  %v3034_v12 = vadd.f32 %v3002_v45, %v2730_v8  ;;  %v11438_v60 = vld [vmem:[#allocation228_spill] sm:$0xff]  ;;  %v11441_v4 = vld [vmem:[#allocation286_spill] sm:$0xff]  ;;  %v11442_v8 = vld [vmem:[#allocation167_spill] sm:$0xff] }
 0x561   : > { %5481 = vbcast.lane.b32.xlu1 %v9041_v40, 280  ;;  %v2725_v38 = vadd.f32 %v2693_v7, %v2445_v48  ;;  %v2148_v33 = vadd.f32 %v2116_v26, %v1868_v25  ;;  %v2111_v52 = vmul.f32 %v11437_v50, %v8960_v13  ;;  %5492 = vbcast.lane.b32.xlu0 %v9114_v59, 264  ;;  %v11444_v7 = vld [vmem:[#allocation315_spill] sm:$0xff] }
 0x562   : > { %11434 = vst [vmem:[#allocation308_spill] sm:$0xff] %v9170_v28  ;;  %v9176_v17 = vrot.slane %v11436_v34, %v7386_v54  ;;  %v3616_v32 = vadd.f32 %v3584_v1, %v3312_v58  ;;  %v2997_v42 = vmul.f32 %v11438_v60, %v8837_v2  ;;  %v11439_v28 = vld [vmem:[#allocation257_spill] sm:$0xff]  ;;  %v1566_v0 = vadd.f32 %v1534_v37, %v1254_v31  ;;  %v9195_v58 = vpop.permute.xlu0 %4942  ;;  %v11445_v31 = vld [vmem:[#allocation207_spill] sm:$0xff] }
 0x563   : > { %v3277_v40 = vmul.f32 %v11439_v28, %v8856_v30  ;;  %v9185_v11 = vpop.permute.xlu1 %4946  ;;  %v3581_v45 = vmul.f32 %v11441_v4, %v8860_v49  ;;  %v2420_v48 = vmul.f32 %v11442_v8, %v9162_v63  ;;  %v9193_v25 = vrot.slane %v9010_v15, %v7028_v10  ;;  %11443 = vst [vmem:[#allocation37_spill] sm:$0xff] %v9195_v58  ;;  %v11447_v49 = vld [vmem:[#allocation100_spill] sm:$0xff]  ;;  %v11452_v60 = vld [vmem:[#allocation199_spill] sm:$0xff] }
 0x564   : > { %11440 = vst [vmem:[#allocation77_spill] sm:$0xff] %v9185_v11  ;;  %v2143_v1 = vadd.f32 %v2111_v52, %v1863_v35  ;;  %v3611_v2 = vadd.f32 %v3579_v9, %v3307_v53  ;;  %v3861_v30 = vmul.f32 %v11444_v7, %v8877_v57  ;;  %v9201_v37 = vmul.f32 %v11445_v31, %v11381_v19  ;;  %v11448_v35 = vld [vmem:[#allocation150_spill] sm:$0xff]  ;;  %v9211_v9 = vld [vmem:[%s10548_s4] ss:$0 sm:$0xff]  ;;  %v11449_v53 = vld [vmem:[#allocation25_spill] sm:$0xff] }
 0x565   : > { %v1838_v26 = vmul.f32 %v11447_v49, %v9097_v23  ;;  %5507 = vbcast.lane.b32.xlu1 %v9176_v17, 256  ;;  %v3314_v28 = vadd.f32 %v3282_v27, %v3034_v12  ;;  %v3029_v34 = vadd.f32 %v2997_v42, %v2725_v38  ;;  %v2452_v50 = vadd.f32 %v2420_v48, %v2148_v33  ;;  %v11450_v38 = vld [vmem:[#allocation58_spill] sm:$0xff]  ;;  %v11453_v48 = vld [vmem:[#allocation392_spill] sm:$0xff] }
 0x566   : > { %11446 = vst [vmem:[#allocation63_spill] sm:$0xff] %v9201_v37  ;;  %v2415_v52 = vmul.f32 %v11448_v35, %v8979_v47  ;;  %5496 = vbcast.lane.b32.xlu0 %v9114_v59, 272  ;;  %v9216_v57 = vrot.slane %v9010_v15, %v7220_v24  ;;  %v1249_v12 = vmul.f32 %v11449_v53, %v8881_v29  ;;  %v11454_v7 = vld [vmem:[#allocation188_spill] sm:$0xff]  ;;  %v11460_v53 = vld [vmem:[#allocation182_spill] sm:$0xff] }
 0x567   : > { %v1870_v19 = vadd.f32 %v1838_v26, %v1566_v0  ;;  %v1529_v27 = vmul.f32 %v11450_v38, %v8885_v56  ;;  %v9222_v33 = vpop.permute.xlu1 %4954  ;;  %v2700_v42 = vmul.f32 %v11452_v60, %v9193_v25  ;;  %v9228_v4 = vrot.slane %v9010_v15, %v7386_v54  ;;  %v9234_v0 = vpop.permute.xlu0 %4950  ;;  %v11458_v26 = vld [vmem:[#allocation139_spill] sm:$0xff] }
 0x568   : > { %11451 = vst [vmem:[#allocation170_spill] sm:$0xff] %v9222_v33  ;;  %v2447_v8 = vadd.f32 %v2415_v52, %v2143_v1  ;;  %v9232_v31 = vmul.f32 %v11454_v7, %v11453_v48  ;;  %11455 = vst [vmem:[#allocation157_spill] sm:$0xff] %v9234_v0  ;;  %v9237_v29 = vadd.f32 %v9108_v6, %v3616_v32  ;;  %v11461_v6 = vld [vmem:[#allocation235_spill] sm:$0xff] }
 0x569   : > { %v9239_v56 = vadd.f32 %v3859_v39, %v3611_v2  ;;  %v9243_v49 = vrot.slane %v9201_v37, %v6534_v3  ;;  %v2118_v15 = vmul.f32 %v11458_v26, %v9133_v55  ;;  %5662 = vbcast.lane.b32.xlu1 %v9211_v9, 256  ;;  %v9248_v1 = vadd.f32 %v3586_v43, %v3314_v28  ;;  %v11463_v43 = vld [vmem:[#allocation265_spill] sm:$0xff] }
 0x56a   : > { %11456 = vst [vmem:[#allocation18_spill] sm:$0xff] %v9237_v29  ;;  %v3309_v35 = vadd.f32 %v3277_v40, %v3029_v34  ;;  %v2732_v52 = vadd.f32 %v2700_v42, %v2452_v50  ;;  %v2695_v38 = vmul.f32 %v11460_v53, %v9023_v51  ;;  %5511 = vbcast.lane.b32.xlu0 %v9176_v17, 264  ;;  %v11465_v26 = vld [vmem:[#allocation293_spill] sm:$0xff] }
 0x56b   : > { %11457 = vst [vmem:[#allocation49_spill] sm:$0xff] %v9239_v56  ;;  %11459 = vst [vmem:[#allocation218_spill] sm:$0xff] %v9248_v1  ;;  %v3004_v39 = vmul.f32 %v11461_v6, %v9216_v57  ;;  %v9257_v32 = vrot.slane %v9201_v37, %v11199_v22  ;;  %v2150_v2 = vadd.f32 %v2118_v15, %v1870_v19  ;;  %v9259_v7 = vpop.permute.xlu1 %4965  ;;  %v9271_v42 = vpop.permute.xlu0 %4961  ;;  %v11467_v15 = vld [vmem:[#allocation88_spill] sm:$0xff] }
 0x56c   : > { %v1561_v60 = vadd.f32 %v1529_v27, %v1249_v12  ;;  %11462 = vst [vmem:[#allocation246_spill] sm:$0xff] %v9259_v7  ;;  %v3284_v40 = vmul.f32 %v11463_v43, %v9228_v4  ;;  %v2727_v28 = vadd.f32 %v2695_v38, %v2447_v8  ;;  %v9265_v34 = vrot.slane %v9232_v31, %v6534_v3  ;;  %v11466_v12 = vld [vmem:[#allocation169_spill] sm:$0xff]  ;;  %v11470_v1 = vld [vmem:[#allocation320_spill] sm:$0xff] }
 0x56d   : > { %v9269_v50 = vrot.slane %v9232_v31, %v11199_v22  ;;  %11464 = vst [vmem:[#allocation107_spill] sm:$0xff] %v9271_v42  ;;  %v3588_v19 = vmul.f32 %v11465_v26, %v9243_v49  ;;  %v2422_v27 = vmul.f32 %v11466_v12, %v9162_v63  ;;  %v1833_v53 = vmul.f32 %v11467_v15, %v8928_v62  ;;  %v11468_v8 = vld [vmem:[#allocation277_spill] sm:$0xff]  ;;  %v11471_v26 = vld [vmem:[#allocation230_spill] sm:$0xff]  ;;  %v11472_v12 = vld [vmem:[#allocation259_spill] sm:$0xff] }
 0x56e   : > { %5500 = vbcast.lane.b32.xlu1 %v9114_v59, 280  ;;  %v11469_v38 = vunpack.c.l.bf16 %v11468_v8  ;;  %v3613_v43 = vadd.f32 %v3581_v45, %v3309_v35  ;;  %v3036_v33 = vadd.f32 %v3004_v39, %v2732_v52  ;;  %v3868_v0 = vmul.f32 %v11470_v1, %v9257_v32  ;;  %5666 = vbcast.lane.b32.xlu0 %v9211_v9, 264  ;;  %v11473_v59 = vld [vmem:[#allocation288_spill] sm:$0xff]  ;;  %v11476_v1 = vld [vmem:[#allocation13_spill] sm:$0xff]  ;;  %v11477_v39 = vld [vmem:[#allocation47_spill] sm:$0xff] }
 0x56f   : > { %v2999_v11 = vmul.f32 %v11471_v26, %v9027_v36  ;;  %v3279_v62 = vmul.f32 %v11472_v12, %v9031_v21  ;;  %v3583_v15 = vmul.f32 %v11473_v59, %v9054_v14  ;;  %v2454_v58 = vadd.f32 %v2422_v27, %v2150_v2  ;;  %v9302_v29 = vpop.permute.xlu0 %4969  ;;  %v11479_v12 = vld [vmem:[#allocation317_spill] sm:$0xff]  ;;  %v11480_v59 = vld [vmem:[#allocation202_spill] sm:$0xff] }
 0x570   : > { %v9283_v6 = vrot.slane %v11469_v38, %v7386_v54  ;;  %v1865_v8 = vadd.f32 %v1833_v53, %v1561_v60  ;;  %v9294_v38 = vpop.permute.xlu1 %4973  ;;  %v9296_v45 = vadd.f32 %v3861_v30, %v3613_v43  ;;  %v1224_v52 = vmul.f32 %v11476_v1, %v9265_v34  ;;  %11478 = vst [vmem:[#allocation305_spill] sm:$0xff] %v9302_v29  ;;  %v11481_v60 = vld [vmem:[#allocation242_spill] sm:$0xff]  ;;  %v11482_v30 = vld [vmem:[#allocation117_spill] sm:$0xff]  ;;  %v11483_v53 = vld [vmem:[#allocation267_spill] sm:$0xff] }
 0x571   : > { %11474 = vst [vmem:[#allocation276_spill] sm:$0xff] %v9294_v38  ;;  %v3031_v35 = vadd.f32 %v2999_v11, %v2727_v28  ;;  %v1504_v26 = vmul.f32 %v11477_v39, %v9269_v50  ;;  %v3863_v56 = vmul.f32 %v11479_v12, %v9058_v18  ;;  %v2702_v2 = vmul.f32 %v11480_v59, %v9193_v25  ;;  %v11484_v1 = vld [vmem:[#allocation295_spill] sm:$0xff] }
 0x572   : > { %11475 = vst [vmem:[#allocation187_spill] sm:$0xff] %v9296_v45  ;;  %v3006_v27 = vmul.f32 %v11481_v60, %v9216_v57  ;;  %v2113_v11 = vmul.f32 %v11482_v30, %v8960_v13  ;;  %5526 = vbcast.lane.b32.xlu1 %v9283_v6, 256  ;;  %v3316_v28 = vadd.f32 %v3284_v40, %v3036_v33  ;;  %v11485_v60 = vld [vmem:[#allocation322_spill] sm:$0xff]  ;;  %v11486_v33 = vld [vmem:[#allocation152_spill] sm:$0xff] }
 0x573   : > { %v3286_v43 = vmul.f32 %v11483_v53, %v9228_v4  ;;  %v9317_v39 = vmul.f32 %v11484_v1, %v9243_v49  ;;  %v9321_v12 = vrot.slane %v9232_v31, %v11223_v44  ;;  %5515 = vbcast.lane.b32.xlu0 %v9176_v17, 272  ;;  %v2734_v59 = vadd.f32 %v2702_v2, %v2454_v58  ;;  %v11488_v1 = vld [vmem:[#allocation196_spill] sm:$0xff]  ;;  %v9336_v7 = vpop.permute.xlu0 %5132 }
 0x574   : > { %v9326_v13 = vmul.f32 %v11485_v60, %v9257_v32  ;;  %v2145_v30 = vadd.f32 %v2113_v11, %v1865_v8  ;;  %v2417_v40 = vmul.f32 %v11486_v33, %v8979_v47  ;;  %v9330_v53 = vpop.permute.xlu1 %5136  ;;  %v3311_v45 = vadd.f32 %v3279_v62, %v3031_v35  ;;  %11490 = vst [vmem:[#allocation140_spill] sm:$0xff] %v9336_v7  ;;  %v11491_v8 = vld [vmem:[#allocation60_spill] sm:$0xff]  ;;  %v11492_v47 = vld [vmem:[#allocation17_spill] sm:$0xff]  ;;  %v11496_v33 = vld [vmem:[#allocation74_spill] sm:$0xff] }
 0x575   : > { %11487 = vst [vmem:[#allocation93_spill] sm:$0xff] %v9330_v53  ;;  %v2697_v29 = vmul.f32 %v11488_v1, %v9023_v51  ;;  %v1536_v38 = vadd.f32 %v1504_v26, %v1224_v52  ;;  %v1251_v42 = vmul.f32 %v11489_v61, %v9045_v5  ;;  %v9340_v58 = vrot.slane %v9232_v31, %v11363_v16  ;;  %v11493_v62 = vld [vmem:[#allocation48_spill] sm:$0xff]  ;;  %v11495_v26 = vld [vmem:[#allocation262_spill] sm:$0xff] }
 0x576   : > { %v1531_v2 = vmul.f32 %v11491_v8, %v9049_v41  ;;  %v1226_v11 = vmul.f32 %v11492_v47, %v9265_v34  ;;  %v1506_v35 = vmul.f32 %v11493_v62, %v9269_v50  ;;  %5670 = vbcast.lane.b32.xlu1 %v9211_v9, 272  ;;  %v3620_v51 = vadd.f32 %v3588_v19, %v3316_v28  ;;  %v11494_v61 = vld [vmem:[#allocation232_spill] sm:$0xff]  ;;  %v11497_v53 = vld [vmem:[#allocation290_spill] sm:$0xff]  ;;  %v11498_v19 = vld [vmem:[#allocation319_spill] sm:$0xff] }
 0x577   : > { %v3001_v52 = vmul.f32 %v11494_v61, %v9027_v36  ;;  %v9353_v60 = vmul.f32 %v11495_v26, %v9031_v21  ;;  %v1808_v1 = vmul.f32 %v11496_v33, %v9321_v12  ;;  %5530 = vbcast.lane.b32.xlu0 %v9283_v6, 264  ;;  %v3038_v8 = vadd.f32 %v3006_v27, %v2734_v59  ;;  %v9374_v27 = vpop.permute.xlu0 %5140  ;;  %v11501_v59 = vld [vmem:[#allocation101_spill] sm:$0xff] }
 0x578   : > { %v2449_v47 = vadd.f32 %v2417_v40, %v2145_v30  ;;  %v9360_v62 = vmul.f32 %v11497_v53, %v9054_v14  ;;  %v9364_v28 = vmul.f32 %v11498_v19, %v9058_v18  ;;  %v9366_v36 = vpop.permute.xlu1 %5144  ;;  %v9368_v61 = vadd.f32 %v3868_v0, %v3620_v51  ;;  %11500 = vst [vmem:[#allocation65_spill] sm:$0xff] %v9374_v27  ;;  %v11505_v51 = vld [vmem:[#allocation384_spill] sm:$0xff] }
 0x579   : > { %11499 = vst [vmem:[#allocation38_spill] sm:$0xff] %v9366_v36  ;;  %v3615_v21 = vadd.f32 %v3583_v15, %v3311_v45  ;;  %v1840_v26 = vadd.f32 %v1808_v1, %v1536_v38  ;;  %v9372_v33 = vrot.slane %v9232_v31, %v6924_v20  ;;  %v2088_v14 = vmul.f32 %v11501_v59, %v9340_v58  ;;  %v11503_v15 = vld [vmem:[#allocation28_spill] sm:$0xff]  ;;  %v11504_v45 = vld [vmem:[#allocation62_spill] sm:$0xff]  ;;  %v11507_v36 = vld [vmem:[#allocation385_spill] sm:$0xff] }
 0x57a   : > { %v1563_v30 = vadd.f32 %v1531_v2, %v1251_v42  ;;  %v1538_v40 = vadd.f32 %v1506_v35, %v1226_v11  ;;  %5534 = vbcast.lane.b32.xlu1 %v9283_v6, 272  ;;  %v11502_v18 = vunpack.c.l.bf16 %v8758_v46  ;;  %v1253_v38 = vmul.f32 %v11503_v15, %v9045_v5  ;;  %v11506_v1 = vld [vmem:[#allocation20_spill] sm:$0xff]  ;;  %v11508_v59 = vld [vmem:[#allocation50_spill] sm:$0xff] }
 0x57b   : > { %v1533_v53 = vmul.f32 %v11504_v45, %v9049_v41  ;;  %v1228_v19 = vmul.f32 %v11506_v1, %v11505_v51  ;;  %v1508_v42 = vmul.f32 %v11508_v59, %v11507_v36  ;;  %5519 = vbcast.lane.b32.xlu0 %v9176_v17, 280  ;;  %v3318_v2 = vadd.f32 %v3286_v43, %v3038_v8  ;;  %v11509_v46 = vld [vmem:[#allocation90_spill] sm:$0xff]  ;;  %v11512_v41 = vld [vmem:[#allocation189_spill] sm:$0xff]  ;;  %v9407_v43 = vpop.permute.xlu0 %5151 }
 0x57c   : > { %v9382_v0 = vrot.slane %v11502_v18, %v7386_v54  ;;  %v2729_v11 = vadd.f32 %v2697_v29, %v2449_v47  ;;  %v1835_v35 = vmul.f32 %v11509_v46, %v9097_v23  ;;  %v11510_v18 = vld [vmem:[#allocation76_spill] sm:$0xff]  ;;  %v9397_v5 = vpop.permute.xlu1 %5155  ;;  %v9399_v15 = vadd.f32 %v3863_v56, %v3615_v21  ;;  %v11513_v59 = vld [vmem:[#allocation141_spill] sm:$0xff]  ;;  %11514 = vst [vmem:[#allocation79_spill] sm:$0xff] %v9407_v43  ;;  %v11516_v46 = vld [vmem:[#allocation30_spill] sm:$0xff] }
 0x57d   : > { %v1810_v27 = vmul.f32 %v11510_v18, %v9321_v12  ;;  %11511 = vst [vmem:[#allocation225_spill] sm:$0xff] %v9397_v5  ;;  %v9403_v45 = vmul.f32 %v11512_v41, %v11453_v48  ;;  %v2120_v1 = vadd.f32 %v2088_v14, %v1840_v26  ;;  %v2392_v17 = vmul.f32 %v11513_v59, %v9372_v33  ;;  %v11515_v26 = vld [vmem:[#allocation12_spill] sm:$0xff] }
 0x57e   : > { %v9411_v29 = vrot.slane %v9232_v31, %v7028_v10  ;;  %v9415_v8 = vrot.slane %v9232_v31, %v7220_v24  ;;  %v1867_v56 = vadd.f32 %v1835_v35, %v1563_v30  ;;  %5549 = vbcast.lane.b32.xlu1 %v9382_v0, 264  ;;  %v1565_v48 = vadd.f32 %v1533_v53, %v1253_v38  ;;  %v11519_v53 = vld [vmem:[#allocation120_spill] sm:$0xff] }
 0x57f   : > { %v1842_v47 = vadd.f32 %v1810_v27, %v1538_v40  ;;  %v1540_v21 = vadd.f32 %v1508_v42, %v1228_v19  ;;  %v1223_v14 = vmul.f32 %v11515_v26, %v9265_v34  ;;  %v1503_v18 = vmul.f32 %v11516_v46, %v9269_v50  ;;  %5545 = vbcast.lane.b32.xlu0 %v9382_v0, 256  ;;  %v11517_v27 = vld [vmem:[#allocation110_spill] sm:$0xff]  ;;  %v11520_v42 = vld [vmem:[#allocation92_spill] sm:$0xff] }
 0x580   : > { %v3622_v41 = vadd.f32 %v9317_v39, %v3318_v2  ;;  %v3033_v59 = vadd.f32 %v3001_v52, %v2729_v11  ;;  %v9426_v5 = vrot.slane %v9232_v31, %v7386_v54  ;;  %v2090_v30 = vmul.f32 %v11517_v27, %v9340_v58  ;;  %v9430_v40 = vpop.permute.xlu1 %5163  ;;  %v11521_v26 = vld [vmem:[#allocation390_spill] sm:$0xff]  ;;  %v9438_v52 = vpop.permute.xlu0 %5159  ;;  %v11524_v31 = vld [vmem:[#allocation171_spill] sm:$0xff] }
 0x581   : > { %11518 = vst [vmem:[#allocation256_spill] sm:$0xff] %v9430_v40  ;;  %v2424_v38 = vadd.f32 %v2392_v17, %v2120_v1  ;;  %v2115_v19 = vmul.f32 %v11519_v53, %v9133_v55  ;;  %v1837_v35 = vmul.f32 %v11520_v42, %v9097_v23  ;;  %v11522_v46 = vld [vmem:[#allocation78_spill] sm:$0xff]  ;;  %11523 = vst [vmem:[#allocation130_spill] sm:$0xff] %v9438_v52  ;;  %v11526_v40 = vld [vmem:[#allocation243_spill] sm:$0xff] }
 0x582   : > { %v1812_v39 = vmul.f32 %v11522_v46, %v11521_v26  ;;  %v2672_v2 = vmul.f32 %v11524_v31, %v9411_v29  ;;  %v9444_v11 = vrot.slane %v9403_v45, %v6534_v3  ;;  %v9448_v1 = vrot.slane %v9403_v45, %v11199_v22  ;;  %5538 = vbcast.lane.b32.xlu1 %v9283_v6, 280  ;;  %v11525_v46 = vld [vmem:[#allocation206_spill] sm:$0xff] }
 0x583   : > { %v2122_v17 = vadd.f32 %v2090_v30, %v1842_v47  ;;  %v2147_v23 = vadd.f32 %v2115_v19, %v1867_v56  ;;  %v1869_v27 = vadd.f32 %v1837_v35, %v1565_v48  ;;  %v1535_v42 = vadd.f32 %v1503_v18, %v1223_v14  ;;  %5674 = vbcast.lane.b32.xlu0 %v9211_v9, 280  ;;  %v11527_v52 = vld [vmem:[#allocation154_spill] sm:$0xff]  ;;  %v11530_v56 = vld [vmem:[#allocation123_spill] sm:$0xff]  ;;  %v11532_v9 = vld [vmem:[#allocation112_spill] sm:$0xff] }
 0x584   : > { %v1844_v53 = vadd.f32 %v1812_v39, %v1540_v21  ;;  %v2976_v31 = vmul.f32 %v11525_v46, %v9415_v8  ;;  %v3256_v3 = vmul.f32 %v11526_v40, %v9426_v5  ;;  %v2419_v43 = vmul.f32 %v11527_v52, %v9162_v63  ;;  %v11528_v22 = vld [vmem:[#allocation142_spill] sm:$0xff]  ;;  %v9460_v30 = vpop.permute.xlu1 %5174  ;;  %v11531_v21 = vld [vmem:[#allocation399_spill] sm:$0xff]  ;;  %v11533_v18 = vld [vmem:[#allocation64_spill] sm:$0xff]  ;;  %v9468_v35 = vpop.permute.xlu0 %5170 }
 0x585   : > { %v2394_v47 = vmul.f32 %v11528_v22, %v9372_v33  ;;  %11529 = vst [vmem:[#allocation283_spill] sm:$0xff] %v9460_v30  ;;  %v2704_v6 = vadd.f32 %v2672_v2, %v2424_v38  ;;  %v2117_v48 = vmul.f32 %v11530_v56, %v9133_v55  ;;  %v2092_v14 = vmul.f32 %v11532_v9, %v11531_v21  ;;  %v11535_v52 = vld [vmem:[#allocation269_spill] sm:$0xff] }
 0x586   : > { %v1807_v19 = vmul.f32 %v11533_v18, %v9321_v12  ;;  %11534 = vst [vmem:[#allocation310_spill] sm:$0xff] %v9468_v35  ;;  %v9471_v40 = vadd.f32 %v9326_v13, %v3622_v41  ;;  %v3313_v39 = vadd.f32 %v9353_v60, %v3033_v59  ;;  %v3560_v46 = vmul.f32 %v11535_v52, %v9444_v11  ;;  %v11536_v9 = vld [vmem:[#allocation297_spill] sm:$0xff]  ;;  %v11537_v60 = vld [vmem:[#allocation198_spill] sm:$0xff] }
 0x587   : > { %v2426_v38 = vadd.f32 %v2394_v47, %v2122_v17  ;;  %5557 = vbcast.lane.b32.xlu1 %v9382_v0, 280  ;;  %v2451_v55 = vadd.f32 %v2419_v43, %v2147_v23  ;;  %v2149_v2 = vadd.f32 %v2117_v48, %v1869_v27  ;;  %v2124_v22 = vadd.f32 %v2092_v14, %v1844_v53  ;;  %v11538_v59 = vld [vmem:[#allocation173_spill] sm:$0xff]  ;;  %v11540_v23 = vld [vmem:[#allocation156_spill] sm:$0xff]  ;;  %v11543_v48 = vld [vmem:[#allocation94_spill] sm:$0xff] }
 0x588   : > { %v1839_v56 = vadd.f32 %v1807_v19, %v1535_v42  ;;  %5553 = vbcast.lane.b32.xlu0 %v9382_v0, 272  ;;  %v3840_v18 = vmul.f32 %v11536_v9, %v9448_v1  ;;  %v9482_v13 = vrot.slane %v9403_v45, %v11223_v44  ;;  %v2699_v41 = vmul.f32 %v11537_v60, %v9193_v25  ;;  %v9488_v47 = vpop.permute.xlu1 %5182  ;;  %v11541_v0 = vld [vmem:[#allocation401_spill] sm:$0xff]  ;;  %v11542_v53 = vld [vmem:[#allocation144_spill] sm:$0xff]  ;;  %v9496_v19 = vpop.permute.xlu0 %5178  ;;  %v11545_v60 = vld [vmem:[#allocation23_spill] sm:$0xff] }
 0x589   : > { %v2674_v17 = vmul.f32 %v11538_v59, %v9411_v29  ;;  %11539 = vst [vmem:[#allocation172_spill] sm:$0xff] %v9488_v47  ;;  %v3008_v43 = vadd.f32 %v2976_v31, %v2704_v6  ;;  %v2421_v27 = vmul.f32 %v11540_v23, %v9162_v63  ;;  %v2396_v42 = vmul.f32 %v11542_v53, %v11541_v0  ;;  %v11546_v47 = vld [vmem:[#allocation52_spill] sm:$0xff] }
 0x58a   : > { %v2087_v14 = vmul.f32 %v11543_v48, %v9340_v58  ;;  %11544 = vst [vmem:[#allocation220_spill] sm:$0xff] %v9496_v19  ;;  %v3617_v52 = vadd.f32 %v9360_v62, %v3313_v39  ;;  %v1230_v59 = vmul.f32 %v11545_v60, %v11505_v51  ;;  %v1510_v31 = vmul.f32 %v11546_v47, %v11507_v36  ;;  %v11547_v48 = vld [vmem:[#allocation324_spill] sm:$0xff]  ;;  %v11548_v19 = vld [vmem:[#allocation234_spill] sm:$0xff]  ;;  %v11549_v39 = vld [vmem:[#allocation209_spill] sm:$0xff] }
 0x58b   : > { %v2706_v9 = vadd.f32 %v2674_v17, %v2426_v38  ;;  %v2731_v6 = vadd.f32 %v2699_v41, %v2451_v55  ;;  %v2453_v30 = vadd.f32 %v2421_v27, %v2149_v2  ;;  %v2428_v63 = vadd.f32 %v2396_v42, %v2124_v22  ;;  %v11551_v36 = vld [vmem:[#allocation201_spill] sm:$0xff]  ;;  %v11552_v2 = vld [vmem:[#allocation215_spill] sm:$0xff]  ;;  %v11556_v27 = vld [vmem:[#allocation264_spill] sm:$0xff] }
 0x58c   : > { %v2119_v23 = vadd.f32 %v2087_v14, %v1839_v56  ;;  %v9504_v53 = vadd.f32 %v9364_v28, %v3617_v52  ;;  %v4144_v35 = vmul.f32 %v11547_v48, %v9482_v13  ;;  %v3003_v62 = vmul.f32 %v11548_v19, %v9216_v57  ;;  %v9512_v51 = vpop.permute.xlu1 %5193  ;;  %v11553_v22 = vld [vmem:[#allocation175_spill] sm:$0xff]  ;;  %v11554_v28 = vld [vmem:[#allocation125_spill] sm:$0xff]  ;;  %v9520_v47 = vpop.permute.xlu0 %5189  ;;  %v11557_v14 = vld [vmem:[#allocation292_spill] sm:$0xff] }
 0x58d   : > { %v2978_v38 = vmul.f32 %v11549_v39, %v9415_v8  ;;  %11550 = vst [vmem:[#allocation108_spill] sm:$0xff] %v9512_v51  ;;  %v3288_v17 = vadd.f32 %v3256_v3, %v3008_v43  ;;  %v2701_v55 = vmul.f32 %v11551_v36, %v9193_v25  ;;  %v2676_v56 = vmul.f32 %v11553_v22, %v11552_v2  ;;  %v11558_v39 = vld [vmem:[#allocation321_spill] sm:$0xff]  ;;  %v11560_v51 = vld [vmem:[#allocation271_spill] sm:$0xff] }
 0x58e   : > { %v2391_v41 = vmul.f32 %v11554_v28, %v9372_v33  ;;  %11555 = vst [vmem:[#allocation159_spill] sm:$0xff] %v9520_v47  ;;  %v3283_v42 = vmul.f32 %v11556_v27, %v9228_v4  ;;  %v3587_v19 = vmul.f32 %v11557_v14, %v9243_v49  ;;  %v1542_v60 = vadd.f32 %v1510_v31, %v1230_v59  ;;  %v11559_v22 = vld [vmem:[#allocation245_spill] sm:$0xff]  ;;  %v11561_v27 = vld [vmem:[#allocation80_spill] sm:$0xff] }
 0x58f   : > { %v3010_v52 = vadd.f32 %v2978_v38, %v2706_v9  ;;  %v3035_v3 = vadd.f32 %v3003_v62, %v2731_v6  ;;  %v2733_v43 = vadd.f32 %v2701_v55, %v2453_v30  ;;  %v2708_v48 = vadd.f32 %v2676_v56, %v2428_v63  ;;  %v11563_v59 = vld [vmem:[#allocation236_spill] sm:$0xff]  ;;  %v11564_v31 = vld [vmem:[#allocation69_spill] sm:$0xff]  ;;  %v11565_v6 = vld [vmem:[#allocation211_spill] sm:$0xff] }
 0x590   : > { %v2423_v25 = vadd.f32 %v2391_v41, %v2119_v23  ;;  %v3867_v36 = vmul.f32 %v11558_v39, %v9257_v32  ;;  %v3258_v28 = vmul.f32 %v11559_v22, %v9426_v5  ;;  %v3562_v47 = vmul.f32 %v11560_v51, %v9444_v11  ;;  %v9534_v54 = vpop.permute.xlu1 %5201  ;;  %v11566_v23 = vld [vmem:[#allocation158_spill] sm:$0xff]  ;;  %v9542_v38 = vpop.permute.xlu0 %5197  ;;  %v11568_v51 = vld [vmem:[#allocation15_spill] sm:$0xff] }
 0x591   : > { %v1814_v7 = vmul.f32 %v11561_v27, %v11521_v26  ;;  %11562 = vst [vmem:[#allocation95_spill] sm:$0xff] %v9534_v54  ;;  %v3592_v9 = vadd.f32 %v3560_v46, %v3288_v17  ;;  %v3005_v30 = vmul.f32 %v11563_v59, %v9216_v57  ;;  %v2980_v63 = vmul.f32 %v11565_v6, %v11564_v31  ;;  %v11569_v26 = vld [vmem:[#allocation32_spill] sm:$0xff]  ;;  %v11570_v22 = vld [vmem:[#allocation299_spill] sm:$0xff]  ;;  %v11571_v59 = vld [vmem:[#allocation326_spill] sm:$0xff] }
 0x592   : > { %v2671_v62 = vmul.f32 %v11566_v23, %v9411_v29  ;;  %11567 = vst [vmem:[#allocation249_spill] sm:$0xff] %v9542_v38  ;;  %v3290_v55 = vadd.f32 %v3258_v28, %v3010_v52  ;;  %v1225_v41 = vmul.f32 %v11568_v51, %v9265_v34  ;;  %v1505_v14 = vmul.f32 %v11569_v26, %v9269_v50  ;;  %v11572_v23 = vld [vmem:[#allocation266_spill] sm:$0xff]  ;;  %v11637_v54 = vld [vmem:[#allocation396_spill] sm:$0xff] }
 0x593   : > { %v1846_v56 = vadd.f32 %v1814_v7, %v1542_v60  ;;  %v3315_v46 = vadd.f32 %v3283_v42, %v3035_v3  ;;  %v3037_v17 = vadd.f32 %v3005_v30, %v2733_v43  ;;  %v3012_v39 = vadd.f32 %v2980_v63, %v2708_v48  ;;  %v11573_v7 = vld [vmem:[#allocation114_spill] sm:$0xff]  ;;  %v11576_v3 = vld [vmem:[#allocation129_spill] sm:$0xff]  ;;  %v11577_v43 = vld [vmem:[#allocation247_spill] sm:$0xff] }
 0x594   : > { %v2703_v57 = vadd.f32 %v2671_v62, %v2423_v25  ;;  %v3842_v27 = vmul.f32 %v11570_v22, %v9448_v1  ;;  %v4146_v6 = vmul.f32 %v11571_v59, %v9482_v13  ;;  %v3285_v52 = vmul.f32 %v11572_v23, %v9228_v4  ;;  %v9556_v34 = vpop.permute.xlu1 %5212  ;;  %v11575_v50 = vld [vmem:[#allocation294_spill] sm:$0xff]  ;;  %v11578_v25 = vld [vmem:[#allocation204_spill] sm:$0xff]  ;;  %v9564_v63 = vpop.permute.xlu0 %5208  ;;  %v11580_v4 = vld [vmem:[#allocation323_spill] sm:$0xff] }
 0x595   : > { %v2094_v60 = vmul.f32 %v11573_v7, %v11531_v21  ;;  %11574 = vst [vmem:[#allocation19_spill] sm:$0xff] %v9556_v34  ;;  %v3872_v28 = vadd.f32 %v3840_v18, %v3592_v9  ;;  %v3589_v42 = vmul.f32 %v11575_v50, %v9243_v49  ;;  %v3260_v48 = vmul.f32 %v11577_v43, %v11576_v3  ;;  %v11581_v49 = vld [vmem:[#allocation395_spill] sm:$0xff]  ;;  %v11582_v50 = vld [vmem:[#allocation146_spill] sm:$0xff] }
 0x596   : > { %v2975_v30 = vmul.f32 %v11578_v25, %v9415_v8  ;;  %11579 = vst [vmem:[#allocation51_spill] sm:$0xff] %v9564_v63  ;;  %v3594_v62 = vadd.f32 %v3562_v47, %v3290_v55  ;;  %v3869_v51 = vmul.f32 %v11580_v4, %v9257_v32  ;;  %v1537_v21 = vadd.f32 %v1505_v14, %v1225_v41  ;;  %v11583_v25 = vld [vmem:[#allocation66_spill] sm:$0xff]  ;;  %v11587_v14 = vld [vmem:[#allocation103_spill] sm:$0xff]  ;;  %v11592_v4 = vld [vmem:[#allocation268_spill] sm:$0xff] }
 0x597   : > { %v2126_v26 = vadd.f32 %v2094_v60, %v1846_v56  ;;  %v3619_v22 = vadd.f32 %v3587_v19, %v3315_v46  ;;  %v3317_v59 = vadd.f32 %v3285_v52, %v3037_v17  ;;  %v3292_v18 = vadd.f32 %v3260_v48, %v3012_v39  ;;  %v11585_v56 = vld [vmem:[#allocation31_spill] sm:$0xff]  ;;  %v11586_v19 = vld [vmem:[#allocation272_spill] sm:$0xff]  ;;  %v11589_v17 = vld [vmem:[#allocation237_spill] sm:$0xff] }
 0x598   : > { %v3007_v9 = vadd.f32 %v2975_v30, %v2703_v57  ;;  %v9568_v23 = vadd.f32 %v4144_v35, %v3872_v28  ;;  %v3926_v7 = vrot.slane %v11581_v49, %v11223_v44  ;;  %v2398_v43 = vmul.f32 %v11582_v50, %v11541_v0  ;;  %v9576_v55 = vpop.permute.xlu1 %5220  ;;  %v11588_v46 = vld [vmem:[#allocation300_spill] sm:$0xff]  ;;  %v9586_v57 = vpop.permute.xlu0 %5216 }
 0x599   : > { %v1809_v47 = vmul.f32 %v11583_v25, %v9321_v12  ;;  %11584 = vst [vmem:[#allocation278_spill] sm:$0xff] %v9576_v55  ;;  %v9578_v32 = vadd.f32 %v3867_v36, %v3619_v22  ;;  %v3564_v41 = vmul.f32 %v11586_v19, %v11585_v56  ;;  %v3844_v35 = vmul.f32 %v11588_v46, %v11587_v14  ;;  %v11591_v0 = vld [vmem:[#allocation328_spill] sm:$0xff]  ;;  %v11594_v46 = vld [vmem:[#allocation177_spill] sm:$0xff] }
 0x59a   : > { %v3255_v39 = vmul.f32 %v11589_v17, %v9426_v5  ;;  %11590 = vst [vmem:[#allocation203_spill] sm:$0xff] %v9586_v57  ;;  %v3874_v52 = vadd.f32 %v3842_v27, %v3594_v62  ;;  %v4148_v60 = vmul.f32 %v11591_v0, %v3926_v7  ;;  %v2430_v28 = vadd.f32 %v2398_v43, %v2126_v26  ;;  %v11593_v25 = vld [vmem:[#allocation296_spill] sm:$0xff] }
 0x59b   : > { %v1841_v12 = vadd.f32 %v1809_v47, %v1537_v21  ;;  %v3621_v48 = vadd.f32 %v3589_v42, %v3317_v59  ;;  %v3596_v30 = vadd.f32 %v3564_v41, %v3292_v18  ;;  %v3559_v22 = vmul.f32 %v11592_v4, %v9444_v11  ;;  %v11595_v27 = vld [vmem:[#allocation96_spill] sm:$0xff]  ;;  %v11597_v42 = vld [vmem:[#allocation325_spill] sm:$0xff]  ;;  %v11603_v4 = vld [vmem:[#allocation330_spill] sm:$0xff] }
 0x59c   : > { %v3287_v36 = vadd.f32 %v3255_v39, %v3007_v9  ;;  %v9591_v50 = vadd.f32 %v4146_v6, %v3874_v52  ;;  %v3839_v19 = vmul.f32 %v11593_v25, %v9448_v1  ;;  %v2678_v17 = vmul.f32 %v11594_v46, %v11552_v2  ;;  %v9599_v0 = vpop.permute.xlu1 %5231  ;;  %v11598_v59 = vld [vmem:[#allocation213_spill] sm:$0xff]  ;;  %v11599_v18 = vld [vmem:[#allocation248_spill] sm:$0xff]  ;;  %v9609_v43 = vpop.permute.xlu0 %5227 }
 0x59d   : > { %v2089_v62 = vmul.f32 %v11595_v27, %v9340_v58  ;;  %11596 = vst [vmem:[#allocation143_spill] sm:$0xff] %v9599_v0  ;;  %v9601_v26 = vadd.f32 %v3869_v51, %v3621_v48  ;;  %v4143_v21 = vmul.f32 %v11597_v42, %v9482_v13  ;;  %v2982_v6 = vmul.f32 %v11598_v59, %v11564_v31  ;;  %v11601_v2 = vld [vmem:[#allocation273_spill] sm:$0xff]  ;;  %v11604_v31 = vld [vmem:[#allocation127_spill] sm:$0xff] }
 0x59e   : > { %v3262_v9 = vmul.f32 %v11599_v18, %v11576_v3  ;;  %11600 = vst [vmem:[#allocation190_spill] sm:$0xff] %v9609_v43  ;;  %v2710_v47 = vadd.f32 %v2678_v17, %v2430_v28  ;;  %v3566_v41 = vmul.f32 %v11601_v2, %v11585_v56  ;;  %v11602_v58 = vld [vmem:[#allocation301_spill] sm:$0xff]  ;;  %v3876_v52 = vadd.f32 %v3844_v35, %v3596_v30  ;;  %v11605_v3 = vld [vmem:[#allocation160_spill] sm:$0xff]  ;;  %v11607_v56 = vld [vmem:[#allocation394_spill] sm:$0xff] }
 0x59f   : > { %v9615_v39 = vmul.f32 %v11602_v58, %v11587_v14  ;;  %v2121_v51 = vadd.f32 %v2089_v62, %v1841_v12  ;;  %v3591_v48 = vadd.f32 %v3559_v22, %v3287_v36  ;;  %v9618_v25 = vmul.f32 %v11603_v4, %v3926_v7  ;;  %v11606_v28 = vld [vmem:[#allocation208_spill] sm:$0xff]  ;;  %v11608_v14 = vld [vmem:[#allocation329_spill] sm:$0xff]  ;;  %v11610_v36 = vld [vmem:[#allocation238_spill] sm:$0xff] }
 0x5a0   : > { %v2393_v46 = vmul.f32 %v11604_v31, %v9372_v33  ;;  %v2673_v27 = vmul.f32 %v11605_v3, %v9411_v29  ;;  %v2977_v17 = vmul.f32 %v11606_v28, %v9415_v8  ;;  %v9628_v42 = vrot.slane %v11607_v56, %v11223_v44  ;;  %v9631_v35 = vpop.permute.xlu1 %5239  ;;  %v11611_v33 = vld [vmem:[#allocation331_spill] sm:$0xff]  ;;  %v9640_v59 = vpop.permute.xlu0 %5235  ;;  %v11613_v2 = vld [vmem:[#allocation270_spill] sm:$0xff]  ;;  %v11614_v4 = vld [vmem:[#allocation332_spill] sm:$0xff] }
 0x5a1   : > { %v4147_v12 = vmul.f32 %v11608_v14, %v3926_v7  ;;  %11609 = vst [vmem:[#allocation132_spill] sm:$0xff] %v9631_v35  ;;  %v9633_v30 = vadd.f32 %v4148_v60, %v3876_v52  ;;  %v3257_v22 = vmul.f32 %v11610_v36, %v9426_v5  ;;  %v4149_v62 = vmul.f32 %v11611_v33, %v3926_v7  ;;  %v11615_v31 = vld [vmem:[#allocation298_spill] sm:$0xff]  ;;  %v11616_v7 = vld [vmem:[#allocation352_spill] sm:$0xff] }
 0x5a2   : > { %v3950_v29 = vrot.slane %v9201_v37, %v11223_v44  ;;  %11612 = vst [vmem:[#allocation307_spill] sm:$0xff] %v9640_v59  ;;  %v3014_v8 = vadd.f32 %v2982_v6, %v2710_v47  ;;  %v2425_v18 = vadd.f32 %v2393_v46, %v2121_v51  ;;  %v9644_v58 = vmul.f32 %v11613_v2, %v9444_v11  ;;  %v11617_v6 = vld [vmem:[#allocation327_spill] sm:$0xff]  ;;  %v11618_v51 = vld [vmem:[#allocation217_spill] sm:$0xff]  ;;  %v11619_v46 = vld [vmem:[#allocation334_spill] sm:$0xff] }
 0x5a3   : > { %v4152_v60 = vmul.f32 %v11614_v4, %v9628_v42  ;;  %v3871_v52 = vadd.f32 %v3839_v19, %v3591_v48  ;;  %v9650_v5 = vmul.f32 %v11615_v31, %v9448_v1  ;;  %v4238_v28 = vrot.slane %v9201_v37, %v11363_v16  ;;  %v11620_v19 = vld [vmem:[#allocation353_spill] sm:$0xff]  ;;  %v11622_v33 = vld [vmem:[#allocation212_spill] sm:$0xff]  ;;  %v11623_v4 = vld [vmem:[#allocation386_spill] sm:$0xff] }
 0x5a4   : > { %v4172_v3 = vmul.f32 %v11616_v7, %v3950_v29  ;;  %v9657_v47 = vmul.f32 %v11617_v6, %v9482_v13  ;;  %v9660_v11 = vadd.f32 %v4147_v12, %v11618_v51  ;;  %v9664_v14 = vmul.f32 %v11619_v46, %v9628_v42  ;;  %v9667_v1 = vpop.permute.xlu1 %5250  ;;  %v9677_v12 = vpop.permute.xlu0 %5246  ;;  %v11625_v51 = vld [vmem:[#allocation121_spill] sm:$0xff] }
 0x5a5   : > { %v4171_v48 = vmul.f32 %v11620_v19, %v3950_v29  ;;  %11621 = vst [vmem:[#allocation389_spill] sm:$0xff] %v9667_v1  ;;  %v9669_v36 = vadd.f32 %v4143_v21, %v3871_v52  ;;  %v9672_v2 = vadd.f32 %v4149_v62, %v11622_v33  ;;  %v4452_v31 = vmul.f32 %v11623_v4, %v4238_v28  ;;  %v11626_v19 = vld [vmem:[#allocation387_spill] sm:$0xff]  ;;  %v11627_v52 = vld [vmem:[#allocation354_spill] sm:$0xff]  ;;  %v11628_v62 = vld [vmem:[#allocation241_spill] sm:$0xff] }
 0x5a6   : > { %v4534_v13 = vrot.slane %v9201_v37, %v6924_v20  ;;  %11624 = vst [vmem:[#allocation193_spill] sm:$0xff] %v9677_v12  ;;  %v3294_v7 = vadd.f32 %v3262_v9, %v3014_v8  ;;  %v2705_v6 = vadd.f32 %v2673_v27, %v2425_v18  ;;  %v9680_v46 = vadd.f32 %v4152_v60, %v11625_v51  ;;  %v11629_v59 = vld [vmem:[#allocation397_spill] sm:$0xff]  ;;  %v11630_v27 = vld [vmem:[#allocation355_spill] sm:$0xff]  ;;  %v11631_v18 = vld [vmem:[#allocation274_spill] sm:$0xff] }
 0x5a7   : > { %v4451_v35 = vmul.f32 %v11626_v19, %v4238_v28  ;;  %v4204_v21 = vadd.f32 %v4172_v3, %v9368_v61  ;;  %v4174_v1 = vmul.f32 %v11627_v52, %v3950_v29  ;;  %v4822_v4 = vrot.slane %v9201_v37, %v7028_v10  ;;  %v11633_v61 = vld [vmem:[#allocation333_spill] sm:$0xff]  ;;  %v11635_v12 = vld [vmem:[#allocation246_spill] sm:$0xff] }
 0x5a8   : > { %v4756_v33 = vmul.f32 %v11628_v62, %v4534_v13  ;;  %v3934_v55 = vrot.slane %v11629_v59, %v11223_v44  ;;  %v4203_v9 = vadd.f32 %v4171_v48, %v9578_v32  ;;  %v4173_v8 = vmul.f32 %v11630_v27, %v3950_v29  ;;  %v9693_v51 = vpop.permute.xlu1 %5258  ;;  %v11634_v52 = vld [vmem:[#allocation393_spill] sm:$0xff]  ;;  %v9699_v57 = vpop.permute.xlu0 %5254  ;;  %v11638_v48 = vld [vmem:[#allocation107_spill] sm:$0xff] }
 0x5a9   : > { %v4755_v60 = vmul.f32 %v11631_v18, %v4534_v13  ;;  %11632 = vst [vmem:[#allocation174_spill] sm:$0xff] %v9693_v51  ;;  %v4151_v3 = vmul.f32 %v11633_v61, %v9628_v42  ;;  %v4484_v19 = vadd.f32 %v4452_v31, %v4204_v21  ;;  %v4454_v62 = vmul.f32 %v11634_v52, %v4238_v28  ;;  %v11639_v51 = vld [vmem:[#allocation105_spill] sm:$0xff]  ;;  %v11640_v52 = vld [vmem:[#allocation302_spill] sm:$0xff] }
 0x5aa   : > { %v5036_v0 = vmul.f32 %v11635_v12, %v4822_v4  ;;  %11636 = vst [vmem:[#allocation102_spill] sm:$0xff] %v9699_v57  ;;  %v3009_v43 = vadd.f32 %v2977_v17, %v2705_v6  ;;  %v4483_v34 = vadd.f32 %v4451_v35, %v4203_v9  ;;  %v4453_v32 = vmul.f32 %v11637_v54, %v4238_v28  ;;  %v11641_v54 = vld [vmem:[#allocation276_spill] sm:$0xff] }
 0x5ab   : > { %v5035_v29 = vmul.f32 %v11638_v48, %v4822_v4  ;;  %v4206_v27 = vadd.f32 %v4174_v1, %v9471_v40  ;;  %v4788_v18 = vadd.f32 %v4756_v33, %v4484_v19  ;;  %v4758_v38 = vmul.f32 %v11639_v51, %v4534_v13  ;;  %v11642_v33 = vld [vmem:[#allocation305_spill] sm:$0xff] }
 0x5ac   : > { %v5118_v31 = vrot.slane %v9201_v37, %v7220_v24  ;;  %v3598_v21 = vadd.f32 %v3566_v41, %v3294_v7  ;;  %v4205_v61 = vadd.f32 %v4173_v8, %v9601_v26  ;;  %v4787_v12 = vadd.f32 %v4755_v60, %v4483_v34  ;;  %v5270_v17 = vpop.permute.xlu1 %5269  ;;  %v5266_v48 = vpop.permute.xlu0 %5265  ;;  %v11643_v41 = vld [vmem:[#allocation200_spill] sm:$0xff] }
 0x5ad   : > { %v4757_v57 = vmul.f32 %v11640_v52, %v4534_v13  ;;  %v4486_v35 = vadd.f32 %v4454_v62, %v4206_v27  ;;  %v5068_v6 = vadd.f32 %v5036_v0, %v4788_v18  ;;  %v5038_v28 = vmul.f32 %v11641_v54, %v4822_v4  ;;  %v11645_v13 = vld [vmem:[#allocation336_spill] sm:$0xff]  ;;  %v11646_v0 = vld [vmem:[#allocation335_spill] sm:$0xff]  ;;  %v11650_v52 = vld [vmem:[#allocation337_spill] sm:$0xff] }
 0x5ae   : > { %v5340_v9 = vmul.f32 %v5270_v17, %v5118_v31  ;;  %v4485_v40 = vadd.f32 %v4453_v32, %v4205_v61  ;;  %v5067_v1 = vadd.f32 %v5035_v29, %v4787_v12  ;;  %v5037_v51 = vmul.f32 %v11642_v33, %v4822_v4  ;;  %v11648_v32 = vld [vmem:[#allocation338_spill] sm:$0xff]  ;;  %v11649_v4 = vld [vmem:[#allocation340_spill] sm:$0xff]  ;;  %v11651_v17 = vld [vmem:[#allocation29_spill] sm:$0xff] }
 0x5af   : > { %v5339_v19 = vmul.f32 %v5266_v48, %v5118_v31  ;;  %v3289_v63 = vadd.f32 %v3257_v22, %v3009_v43  ;;  %v3938_v7 = vrot.slane %v11643_v41, %v11223_v44  ;;  %v4790_v26 = vadd.f32 %v4758_v38, %v4486_v35 }
 0x5b0   : > { %v9713_v34 = vadd.f32 %v5340_v9, %v5068_v6  ;;  %v4156_v8 = vmul.f32 %v11645_v13, %v3934_v55  ;;  %v4153_v60 = vmul.f32 %v11646_v0, %v9628_v42  ;;  %v4789_v62 = vadd.f32 %v4757_v57, %v4485_v40  ;;  %v5278_v27 = vpop.permute.xlu1 %5277  ;;  %v5274_v12 = vpop.permute.xlu0 %5273  ;;  %v11652_v9 = vld [vmem:[#allocation342_spill] sm:$0xff] }
 0x5b1   : > { %v9718_v18 = vadd.f32 %v5339_v19, %v5067_v1  ;;  %v4158_v29 = vmul.f32 %v11648_v32, %v3934_v55  ;;  %v4160_v61 = vmul.f32 %v11649_v4, %v3938_v7  ;;  %v5070_v43 = vadd.f32 %v5038_v28, %v4790_v26  ;;  %v11654_v1 = vld [vmem:[#allocation339_spill] sm:$0xff]  ;;  %v11655_v28 = vld [vmem:[#allocation344_spill] sm:$0xff]  ;;  %v11656_v26 = vld [vmem:[#allocation341_spill] sm:$0xff] }
 0x5b2   : > { %11644 = vst [vmem:[#allocation227_spill] sm:$0xff] %v9713_v34  ;;  %v5342_v22 = vmul.f32 %v5278_v27, %v5118_v31  ;;  %v4155_v38 = vmul.f32 %v11650_v52, %v3934_v55  ;;  %v3942_v35 = vrot.slane %v11651_v17, %v11223_v44  ;;  %v5069_v6 = vadd.f32 %v5037_v51, %v4789_v62  ;;  %v11659_v51 = vld [vmem:[#allocation104_spill] sm:$0xff]  ;;  %v11662_v62 = vld [vmem:[#allocation153_spill] sm:$0xff]  ;;  %v11688_v34 = vld [vmem:[#allocation359_spill] sm:$0xff] }
 0x5b3   : > { %11647 = vst [vmem:[#allocation161_spill] sm:$0xff] %v9718_v18  ;;  %v5341_v54 = vmul.f32 %v5274_v12, %v5118_v31  ;;  %v3878_v42 = vadd.f32 %v9615_v39, %v3598_v21  ;;  %v3593_v57 = vadd.f32 %v9644_v58, %v3289_v63  ;;  %v4162_v48 = vmul.f32 %v11652_v9, %v3938_v7  ;;  %v11660_v39 = vld [vmem:[#allocation41_spill] sm:$0xff]  ;;  %v11661_v58 = vld [vmem:[#allocation251_spill] sm:$0xff]  ;;  %v11686_v18 = vld [vmem:[#allocation360_spill] sm:$0xff] }
 0x5b4   : > { %v9728_v40 = vadd.f32 %v5342_v22, %v5070_v43  ;;  %v4157_v33 = vmul.f32 %v11654_v1, %v3934_v55  ;;  %v4164_v19 = vmul.f32 %v11655_v28, %v3942_v35  ;;  %v4159_v13 = vmul.f32 %v11656_v26, %v3938_v7  ;;  %v9733_v0 = vpop.permute.xlu1 %5416  ;;  %v9750_v32 = vpop.permute.xlu0 %5412  ;;  %v11664_v43 = vld [vmem:[#allocation304_spill] sm:$0xff]  ;;  %v11665_v12 = vld [vmem:[#allocation11_spill] sm:$0xff] }
 0x5b5   : > { %11657 = vst [vmem:[#allocation258_spill] sm:$0xff] %v9733_v0  ;;  %v9735_v27 = vadd.f32 %v5341_v54, %v5069_v6  ;;  %v9739_v31 = vadd.f32 %v9664_v14, %v11659_v51  ;;  %v9742_v63 = vadd.f32 %v4156_v8, %v11660_v39  ;;  %v9745_v21 = vadd.f32 %v4151_v3, %v11661_v58  ;;  %v11666_v14 = vld [vmem:[#allocation44_spill] sm:$0xff]  ;;  %v11667_v3 = vld [vmem:[#allocation306_spill] sm:$0xff]  ;;  %v11669_v1 = vld [vmem:[#allocation303_spill] sm:$0xff] }
 0x5b6   : > { %11653 = vst [vmem:[#allocation81_spill] sm:$0xff] %v9728_v40  ;;  %v9748_v55 = vadd.f32 %v4153_v60, %v11662_v62  ;;  %11663 = vst [vmem:[#allocation222_spill] sm:$0xff] %v9750_v32  ;;  %v4182_v4 = vadd.f32 %v9618_v25, %v3878_v42  ;;  %v9754_v22 = vadd.f32 %v4158_v29, %v11664_v43  ;;  %v11668_v60 = vld [vmem:[#allocation346_spill] sm:$0xff]  ;;  %v11670_v25 = vld [vmem:[#allocation168_spill] sm:$0xff] }
 0x5b7   : > { %11658 = vst [vmem:[#allocation285_spill] sm:$0xff] %v9735_v27  ;;  %v9757_v52 = vadd.f32 %v4160_v61, %v11665_v12  ;;  %v9760_v6 = vadd.f32 %v4155_v38, %v11666_v14  ;;  %v3873_v8 = vadd.f32 %v9650_v5, %v3593_v57  ;;  %v9764_v54 = vadd.f32 %v4162_v48, %v11667_v3  ;;  %v11671_v29 = vld [vmem:[#allocation275_spill] sm:$0xff]  ;;  %v11675_v48 = vld [vmem:[#allocation348_spill] sm:$0xff]  ;;  %v11676_v62 = vld [vmem:[#allocation345_spill] sm:$0xff] }
 0x5b8   : > { %v4166_v9 = vmul.f32 %v11668_v60, %v3942_v35  ;;  %v3946_v28 = vrot.slane %v11669_v1, %v11223_v44  ;;  %v9770_v42 = vadd.f32 %v4157_v33, %v11670_v25  ;;  %v9773_v26 = vadd.f32 %v4164_v19, %v11671_v29  ;;  %v11672_v61 = vld [vmem:[#allocation155_spill] sm:$0xff]  ;;  %v9779_v5 = vpop.permute.xlu1 %5435  ;;  %v9786_v33 = vpop.permute.xlu0 %5431  ;;  %v11679_v14 = vld [vmem:[#allocation349_spill] sm:$0xff]  ;;  %v11681_v25 = vld [vmem:[#allocation16_spill] sm:$0xff] }
 0x5b9   : > { %v9776_v51 = vadd.f32 %v4159_v13, %v11672_v61  ;;  %v11673_v38 = vld [vmem:[#allocation343_spill] sm:$0xff]  ;;  %11674 = vst [vmem:[#allocation312_spill] sm:$0xff] %v9779_v5  ;;  %v4177_v57 = vadd.f32 %v9657_v47, %v3873_v8  ;;  %v4163_v43 = vmul.f32 %v11676_v62, %v3942_v35  ;;  %v4210_v44 = vrot.slane %v9403_v45, %v11363_v16  ;;  %v11682_v8 = vld [vmem:[#allocation356_spill] sm:$0xff]  ;;  %v11683_v61 = vld [vmem:[#allocation358_spill] sm:$0xff] }
 0x5ba   : > { %v4161_v39 = vmul.f32 %v11673_v38, %v3938_v7  ;;  %v4168_v58 = vmul.f32 %v11675_v48, %v3946_v28  ;;  %11677 = vst [vmem:[#allocation192_spill] sm:$0xff] %v9786_v33  ;;  %v11678_v19 = vld [vmem:[#allocation347_spill] sm:$0xff]  ;;  %v4167_v13 = vmul.f32 %v11679_v14, %v3946_v28  ;;  %v4214_v7 = vrot.slane %v11581_v49, %v11363_v16  ;;  %v11684_v48 = vld [vmem:[#allocation357_spill] sm:$0xff]  ;;  %v11685_v27 = vld [vmem:[#allocation128_spill] sm:$0xff] }
 0x5bb   : > { %v4165_v12 = vmul.f32 %v11678_v19, %v3942_v35  ;;  %v11680_v3 = vld [vmem:[#allocation351_spill] sm:$0xff]  ;;  %v9794_v47 = vadd.f32 %v4166_v9, %v11681_v25  ;;  %v4424_v29 = vmul.f32 %v11682_v8, %v4210_v44  ;;  %v4426_v38 = vmul.f32 %v11683_v61, %v4210_v44  ;;  %v11687_v19 = vld [vmem:[#allocation362_spill] sm:$0xff]  ;;  %v11690_v0 = vld [vmem:[#allocation49_spill] sm:$0xff] }
 0x5bc   : > { %v4169_v60 = vmul.f32 %v11680_v3, %v3946_v28  ;;  %v4423_v62 = vmul.f32 %v11684_v48, %v4210_v44  ;;  %v4193_v40 = vadd.f32 %v4161_v39, %v11685_v27  ;;  %v4428_v35 = vmul.f32 %v11686_v18, %v4214_v7  ;;  %v9803_v5 = vpop.permute.xlu1 %5439  ;;  %v11691_v9 = vld [vmem:[#allocation350_spill] sm:$0xff]  ;;  %v11693_v8 = vld [vmem:[#allocation361_spill] sm:$0xff]  ;;  %v11694_v61 = vld [vmem:[#allocation363_spill] sm:$0xff]  ;;  %v9811_v48 = vpop.permute.xlu0 %5420 }
 0x5bd   : > { %v4430_v14 = vmul.f32 %v11687_v19, %v4214_v7  ;;  %v4425_v3 = vmul.f32 %v11688_v34, %v4210_v44  ;;  %11689 = vst [vmem:[#allocation109_spill] sm:$0xff] %v9803_v5  ;;  %v4195_v33 = vadd.f32 %v4163_v43, %v11690_v0  ;;  %v9807_v25 = vmul.f32 %v11691_v9, %v3946_v28  ;;  %v11696_v27 = vld [vmem:[#allocation18_spill] sm:$0xff]  ;;  %v11697_v18 = vld [vmem:[#allocation187_spill] sm:$0xff] }
 0x5be   : > { %v4427_v32 = vmul.f32 %v11693_v8, %v4214_v7  ;;  %v4429_v37 = vmul.f32 %v11694_v61, %v4214_v7  ;;  %11695 = vst [vmem:[#allocation40_spill] sm:$0xff] %v9811_v48  ;;  %v9814_v39 = vadd.f32 %v4168_v58, %v11696_v27  ;;  %v4197_v19 = vadd.f32 %v4165_v12, %v11697_v18  ;;  %v11700_v7 = vld [vmem:[#allocation366_spill] sm:$0xff]  ;;  %v11707_v27 = vld [vmem:[#allocation371_spill] sm:$0xff] }
 0x5bf   : > { %11692 = vst [vmem:[#allocation250_spill] sm:$0xff] %v9807_v25  ;;  %v9818_v34 = vadd.f32 %v4167_v13, %v9399_v15  ;;  %v9821_v44 = vadd.f32 %v4169_v60, %v9504_v53  ;;  %v9824_v0 = vadd.f32 %v4424_v29, %v9568_v23  ;;  %v9827_v28 = vadd.f32 %v4426_v38, %v9591_v50  ;;  %v11699_v50 = vld [vmem:[#allocation364_spill] sm:$0xff]  ;;  %v11705_v8 = vld [vmem:[#allocation370_spill] sm:$0xff]  ;;  %v11710_v25 = vld [vmem:[#allocation373_spill] sm:$0xff] }
 0x5c0   : > { %v9830_v43 = vadd.f32 %v4423_v62, %v9669_v36  ;;  %v4218_v58 = vrot.slane %v11607_v56, %v11363_v16  ;;  %v9835_v12 = vadd.f32 %v4428_v35, %v9633_v30  ;;  %v9837_v15 = vadd.f32 %v4430_v14, %v4182_v4  ;;  %v9843_v23 = vpop.permute.xlu1 %5454  ;;  %v9853_v30 = vpop.permute.xlu0 %5450  ;;  %v11702_v4 = vld [vmem:[#allocation368_spill] sm:$0xff]  ;;  %v11703_v62 = vld [vmem:[#allocation365_spill] sm:$0xff]  ;;  %v11704_v14 = vld [vmem:[#allocation367_spill] sm:$0xff] }
 0x5c1   : > { %v9839_v13 = vadd.f32 %v4425_v3, %v4177_v57  ;;  %v4222_v53 = vrot.slane %v11629_v59, %v11363_v16  ;;  %11698 = vst [vmem:[#allocation67_spill] sm:$0xff] %v9843_v23  ;;  %v9847_v36 = vadd.f32 %v4427_v32, %v9660_v11  ;;  %v9851_v38 = vadd.f32 %v4429_v37, %v9672_v2  ;;  %v11706_v11 = vld [vmem:[#allocation369_spill] sm:$0xff]  ;;  %v11708_v2 = vld [vmem:[#allocation372_spill] sm:$0xff]  ;;  %v11711_v23 = vld [vmem:[#allocation375_spill] sm:$0xff] }
 0x5c2   : > { %v4432_v60 = vmul.f32 %v11699_v50, %v4218_v58  ;;  %v4434_v29 = vmul.f32 %v11700_v7, %v4218_v58  ;;  %11701 = vst [vmem:[#allocation280_spill] sm:$0xff] %v9853_v30  ;;  %v4431_v35 = vmul.f32 %v11703_v62, %v4218_v58  ;;  %v4433_v3 = vmul.f32 %v11704_v14, %v4218_v58  ;;  %v11709_v7 = vld [vmem:[#allocation374_spill] sm:$0xff] }
 0x5c3   : > { %v4436_v57 = vmul.f32 %v11702_v4, %v4222_v53  ;;  %v4226_v9 = vrot.slane %v11643_v41, %v11363_v16  ;;  %v4438_v61 = vmul.f32 %v11705_v8, %v4222_v53  ;;  %v4435_v32 = vmul.f32 %v11706_v11, %v4222_v53 }
 0x5c4   : > { %v4437_v18 = vmul.f32 %v11707_v27, %v4222_v53  ;;  %v4230_v37 = vrot.slane %v11651_v17, %v11363_v16  ;;  %v9869_v14 = vpop.permute.xlu1 %5443  ;;  %v9872_v30 = vadd.f32 %v4432_v60, %v9680_v46  ;;  %v9875_v8 = vadd.f32 %v4434_v29, %v9739_v31  ;;  %v11713_v53 = vld [vmem:[#allocation376_spill] sm:$0xff]  ;;  %v11714_v27 = vld [vmem:[#allocation378_spill] sm:$0xff]  ;;  %v9879_v48 = vpop.permute.xlu0 %5424 }
 0x5c5   : > { %v4440_v50 = vmul.f32 %v11708_v2, %v4226_v9  ;;  %v4442_v4 = vmul.f32 %v11709_v7, %v4226_v9  ;;  %v4439_v62 = vmul.f32 %v11710_v25, %v4226_v9  ;;  %v4441_v58 = vmul.f32 %v11711_v23, %v4226_v9  ;;  %11712 = vst [vmem:[#allocation309_spill] sm:$0xff] %v9869_v14  ;;  %v11716_v23 = vld [vmem:[#allocation377_spill] sm:$0xff]  ;;  %v11717_v7 = vld [vmem:[#allocation379_spill] sm:$0xff] }
 0x5c6   : > { %v4444_v11 = vmul.f32 %v11713_v53, %v4230_v37  ;;  %v4446_v5 = vmul.f32 %v11714_v27, %v4230_v37  ;;  %11715 = vst [vmem:[#allocation21_spill] sm:$0xff] %v9879_v48  ;;  %v9882_v2 = vadd.f32 %v4431_v35, %v9745_v21  ;;  %v9885_v25 = vadd.f32 %v4433_v3, %v9748_v55 }
 0x5c7   : > { %v4443_v9 = vmul.f32 %v11716_v23, %v4230_v37  ;;  %v4445_v46 = vmul.f32 %v11717_v7, %v4230_v37  ;;  %v9890_v60 = vadd.f32 %v4436_v57, %v9742_v63  ;;  %v9893_v31 = vadd.f32 %v4438_v61, %v9754_v22 }
 0x5c8   : > { %v9896_v29 = vadd.f32 %v4435_v32, %v9760_v6  ;;  %v9899_v53 = vadd.f32 %v4437_v18, %v9770_v42  ;;  %v9902_v21 = vadd.f32 %v4440_v50, %v9757_v52  ;;  %v9905_v55 = vadd.f32 %v4442_v4, %v9764_v54  ;;  %v9912_v57 = vpop.permute.xlu1 %5469  ;;  %v9926_v42 = vpop.permute.xlu0 %5458 }
 0x5c9   : > { %v9908_v35 = vadd.f32 %v4439_v62, %v9776_v51  ;;  %v9910_v63 = vadd.f32 %v4441_v58, %v4193_v40  ;;  %11718 = vst [vmem:[#allocation53_spill] sm:$0xff] %v9912_v57  ;;  %v9915_v22 = vadd.f32 %v4444_v11, %v9773_v26  ;;  %v9918_v6 = vadd.f32 %v4446_v5, %v9794_v47 }
 0x5ca   : > { %v9922_v52 = vrot.slane %v11669_v1, %v11363_v16  ;;  %v4506_v54 = vrot.slane %v9403_v45, %v6924_v20  ;;  %11720 = vst [vmem:[#allocation260_spill] sm:$0xff] %v9926_v42  ;;  %v9928_v51 = vadd.f32 %v4443_v9, %v4195_v33  ;;  %v9930_v40 = vadd.f32 %v4445_v46, %v4197_v19  ;;  %v11732_v46 = vld [vmem:[#allocation185_spill] sm:$0xff]  ;;  %v11738_v42 = vld [vmem:[#allocation400_spill] sm:$0xff] }
 0x5cb   : > { %v4510_v26 = vrot.slane %v11581_v49, %v6924_v20  ;;  %v9936_v5 = vrot.slane %v11607_v56, %v6924_v20  ;;  %v9940_v16 = vrot.slane %v11629_v59, %v6924_v20  ;;  %v9944_v47 = vrot.slane %v11643_v41, %v6924_v20 }
 0x5cc   : > { %11719 = vst [vmem:[#allocation229_spill] sm:$0xff] %v9922_v52  ;;  %11721 = vst [vmem:[#allocation145_spill] sm:$0xff] %v9930_v40  ;;  %v9948_v33 = vrot.slane %v11651_v17, %v6924_v20  ;;  %v9952_v19 = vrot.slane %v11669_v1, %v6924_v20  ;;  %v9956_v3 = vrot.slane %v9403_v45, %v7028_v10  ;;  %v9970_v37 = vpop.permute.xlu1 %5462  ;;  %v9988_v58 = vpop.permute.xlu0 %5473 }
 0x5cd   : > { %v9960_v61 = vrot.slane %v11581_v49, %v7028_v10  ;;  %v9964_v32 = vrot.slane %v11607_v56, %v7028_v10  ;;  %v9968_v18 = vrot.slane %v11629_v59, %v7028_v10  ;;  %11723 = vst [vmem:[#allocation314_spill] sm:$0xff] %v9970_v37  ;;  %v9974_v20 = vrot.slane %v11643_v41, %v7028_v10 }
 0x5ce   : > { %v9978_v50 = vrot.slane %v11651_v17, %v7028_v10  ;;  %v9982_v4 = vrot.slane %v11669_v1, %v7028_v10  ;;  %v9986_v62 = vrot.slane %v9403_v45, %v7220_v24  ;;  %11727 = vst [vmem:[#allocation85_spill] sm:$0xff] %v9988_v58  ;;  %v9992_v11 = vrot.slane %v11581_v49, %v7220_v24  ;;  %v11733_v58 = vld [vmem:[#allocation380_spill] sm:$0xff] }
 0x5cf   : > { %11722 = vst [vmem:[#allocation287_spill] sm:$0xff] %v9968_v18  ;;  %11724 = vst [vmem:[#allocation176_spill] sm:$0xff] %v9974_v20  ;;  %v9996_v27 = vrot.slane %v11607_v56, %v7220_v24  ;;  %v10000_v23 = vrot.slane %v11629_v59, %v7220_v24  ;;  %v10004_v10 = vrot.slane %v11643_v41, %v7220_v24  ;;  %v11743_v18 = vld [vmem:[#allocation55_spill] sm:$0xff] }
 0x5d0   : > { %11725 = vst [vmem:[#allocation97_spill] sm:$0xff] %v9978_v50  ;;  %11726 = vst [vmem:[#allocation34_spill] sm:$0xff] %v9982_v4  ;;  %v10008_v9 = vrot.slane %v11651_v17, %v7220_v24  ;;  %v10012_v7 = vrot.slane %v11669_v1, %v7220_v24  ;;  %v10016_v4 = vrot.slane %v9403_v45, %v11732_v46  ;;  %v10034_v45 = vpop.permute.xlu1 %5488  ;;  %v10044_v48 = vpop.permute.xlu0 %5477 }
 0x5d1   : > { %11728 = vst [vmem:[#allocation224_spill] sm:$0xff] %v10000_v23  ;;  %11729 = vst [vmem:[#allocation252_spill] sm:$0xff] %v10004_v10  ;;  %v10020_v50 = vrot.slane %v11581_v49, %v11732_v46  ;;  %v4448_v37 = vmul.f32 %v11733_v58, %v9922_v52  ;;  %v11734_v10 = vld [vmem:[#allocation381_spill] sm:$0xff]  ;;  %v10032_v24 = vrot.slane %v11629_v59, %v11732_v46  ;;  %v11739_v23 = vld [vmem:[#allocation402_spill] sm:$0xff] }
 0x5d2   : > { %11730 = vst [vmem:[#allocation42_spill] sm:$0xff] %v10008_v9  ;;  %11731 = vst [vmem:[#allocation68_spill] sm:$0xff] %v10012_v7  ;;  %v4447_v20 = vmul.f32 %v11734_v10, %v9922_v52  ;;  %v10028_v9 = vrot.slane %v11607_v56, %v11732_v46  ;;  %v11737_v7 = vld [vmem:[#allocation383_spill] sm:$0xff]  ;;  %v4728_v57 = vmul.f32 %v11738_v42, %v4506_v54 }
 0x5d3   : > { %11735 = vst [vmem:[#allocation82_spill] sm:$0xff] %v10032_v24  ;;  %11736 = vst [vmem:[#allocation282_spill] sm:$0xff] %v10034_v45  ;;  %v4449_v49 = vmul.f32 %v11737_v7, %v9922_v52  ;;  %v4727_v58 = vmul.f32 %v11739_v23, %v4506_v54  ;;  %v10042_v10 = vrot.slane %v11643_v41, %v11732_v46  ;;  %v11742_v56 = vld [vmem:[#allocation83_spill] sm:$0xff]  ;;  %v11746_v7 = vld [vmem:[#allocation118_spill] sm:$0xff] }
 0x5d4   : > { %11741 = vst [vmem:[#allocation205_spill] sm:$0xff] %v10044_v48  ;;  %v4730_v14 = vmul.f32 %v11742_v56, %v4506_v54  ;;  %v4732_v59 = vmul.f32 %v11743_v18, %v4510_v26  ;;  %v11744_v24 = vld [vmem:[#allocation179_spill] sm:$0xff]  ;;  %v10051_v45 = vrot.slane %v11651_v17, %v11732_v46  ;;  %v4731_v42 = vmul.f32 %v11746_v7, %v4510_v26  ;;  %v11751_v17 = vld [vmem:[#allocation14_spill] sm:$0xff] }
 0x5d5   : > { %11740 = vst [vmem:[#allocation311_spill] sm:$0xff] %v10042_v10  ;;  %v4729_v40 = vmul.f32 %v11744_v24, %v4506_v54  ;;  %v11747_v23 = vld [vmem:[#allocation59_spill] sm:$0xff]  ;;  %v10058_v41 = vrot.slane %v11669_v1, %v11732_v46  ;;  %v10065_v18 = vadd.f32 %v4448_v37, %v9814_v39  ;;  %v10068_v54 = vadd.f32 %v4447_v20, %v9818_v34  ;;  %v10072_v10 = vpop.permute.xlu1 %5481  ;;  %v10081_v37 = vpop.permute.xlu0 %5492 }
 0x5d6   : > { %11745 = vst [vmem:[#allocation134_spill] sm:$0xff] %v10051_v45  ;;  %v5007_v52 = vmul.f32 %v11747_v23, %v9956_v3  ;;  %v11749_v48 = vld [vmem:[#allocation63_spill] sm:$0xff]  ;;  %v4734_v24 = vmul.f32 %v11751_v17, %v4510_v26  ;;  %v10075_v23 = vadd.f32 %v4449_v49, %v9821_v44  ;;  %v4760_v1 = vadd.f32 %v4728_v57, %v9824_v0  ;;  %v11755_v17 = vld [vmem:[#allocation162_spill] sm:$0xff] }
 0x5d7   : > { %11748 = vst [vmem:[#allocation22_spill] sm:$0xff] %v10058_v41  ;;  %v10062_v56 = vrot.slane %v11749_v48, %v11732_v46  ;;  %11750 = vst [vmem:[#allocation54_spill] sm:$0xff] %v10065_v18  ;;  %v11752_v7 = vld [vmem:[#allocation39_spill] sm:$0xff]  ;;  %v4759_v48 = vadd.f32 %v4727_v58, %v9830_v43  ;;  %v11754_v46 = vld [vmem:[#allocation140_spill] sm:$0xff]  ;;  %v10084_v34 = vadd.f32 %v4730_v14, %v9827_v28 }
 0x5d8   : > { %v4733_v45 = vmul.f32 %v11752_v7, %v4510_v26  ;;  %11753 = vst [vmem:[#allocation391_spill] sm:$0xff] %v10075_v23  ;;  %v5311_v39 = vmul.f32 %v11754_v46, %v9986_v62  ;;  %v4764_v20 = vadd.f32 %v4732_v59, %v9835_v12  ;;  %v4761_v26 = vadd.f32 %v4729_v40, %v9839_v13  ;;  %v11756_v43 = vld [vmem:[#allocation135_spill] sm:$0xff]  ;;  %v11757_v58 = vld [vmem:[#allocation222_spill] sm:$0xff]  ;;  %v11758_v12 = vld [vmem:[#allocation149_spill] sm:$0xff] }
 0x5d9   : > { %v4736_v44 = vmul.f32 %v11755_v17, %v9936_v5  ;;  %v4763_v49 = vadd.f32 %v4731_v42, %v9847_v36  ;;  %v5039_v0 = vadd.f32 %v5007_v52, %v4759_v48  ;;  %v5011_v57 = vmul.f32 %v11756_v43, %v9960_v61  ;;  %v11759_v14 = vld [vmem:[#allocation35_spill] sm:$0xff]  ;;  %v10103_v59 = vpop.permute.xlu1 %5507  ;;  %v11761_v36 = vld [vmem:[#allocation210_spill] sm:$0xff]  ;;  %v10111_v43 = vpop.permute.xlu0 %5496  ;;  %v11770_v41 = vld [vmem:[#allocation253_spill] sm:$0xff] }
 0x5da   : > { %v5591_v7 = vmul.f32 %v11757_v58, %v10016_v4  ;;  %v10096_v46 = vadd.f32 %v4734_v24, %v9837_v15  ;;  %v4765_v28 = vadd.f32 %v4733_v45, %v9851_v38  ;;  %v4735_v13 = vmul.f32 %v11758_v12, %v9936_v5  ;;  %11760 = vst [vmem:[#allocation195_spill] sm:$0xff] %v10103_v59  ;;  %v11762_v42 = vld [vmem:[#allocation131_spill] sm:$0xff]  ;;  %v11766_v12 = vld [vmem:[#allocation181_spill] sm:$0xff] }
 0x5db   : > { %v5008_v40 = vmul.f32 %v11759_v14, %v9956_v3  ;;  %v4738_v52 = vmul.f32 %v11761_v36, %v9936_v5  ;;  %v4737_v48 = vmul.f32 %v11762_v42, %v9936_v5  ;;  %v5343_v17 = vadd.f32 %v5311_v39, %v5039_v0  ;;  %v11763_v15 = vld [vmem:[#allocation79_spill] sm:$0xff]  ;;  %11764 = vst [vmem:[#allocation163_spill] sm:$0xff] %v10111_v43  ;;  %v11767_v36 = vld [vmem:[#allocation93_spill] sm:$0xff]  ;;  %v11768_v5 = vld [vmem:[#allocation164_spill] sm:$0xff] }
 0x5dc   : > { %v5315_v24 = vmul.f32 %v11763_v15, %v9992_v11  ;;  %v10114_v38 = vadd.f32 %v4736_v44, %v9872_v30  ;;  %v11765_v45 = vld [vmem:[#allocation239_spill] sm:$0xff]  ;;  %v4739_v14 = vmul.f32 %v11766_v12, %v9940_v16  ;;  %v5312_v23 = vmul.f32 %v11767_v36, %v9986_v62  ;;  %v11769_v15 = vld [vmem:[#allocation192_spill] sm:$0xff]  ;;  %v11771_v43 = vld [vmem:[#allocation258_spill] sm:$0xff] }
 0x5dd   : > { %v4740_v58 = vmul.f32 %v11765_v45, %v9940_v16  ;;  %v4742_v39 = vmul.f32 %v11768_v5, %v9940_v16  ;;  %v5043_v0 = vadd.f32 %v5011_v57, %v4763_v49  ;;  %v5623_v42 = vadd.f32 %v5591_v7, %v5343_v17  ;;  %v10131_v59 = vpop.permute.xlu1 %5662  ;;  %v10140_v17 = vpop.permute.xlu0 %5511 }
 0x5de   : > { %v5595_v18 = vmul.f32 %v11769_v15, %v10020_v50  ;;  %v4767_v30 = vadd.f32 %v4735_v13, %v9882_v2  ;;  %v5040_v44 = vadd.f32 %v5008_v40, %v4760_v1  ;;  %v5012_v45 = vmul.f32 %v11770_v41, %v9960_v61  ;;  %v11772_v41 = vld [vmem:[#allocation151_spill] sm:$0xff]  ;;  %v11773_v40 = vld [vmem:[#allocation225_spill] sm:$0xff] }
 0x5df   : > { %v5592_v12 = vmul.f32 %v11771_v43, %v10016_v4  ;;  %v10134_v36 = vadd.f32 %v4738_v52, %v9875_v8  ;;  %v10137_v49 = vadd.f32 %v4737_v48, %v9885_v25  ;;  %v5347_v57 = vadd.f32 %v5315_v24, %v5043_v0  ;;  %v11774_v52 = vld [vmem:[#allocation221_spill] sm:$0xff] }
 0x5e0   : > { %v5680_v7 = vmul.f32 %v10131_v59, %v5623_v42  ;;  %v10143_v2 = vadd.f32 %v4740_v58, %v9890_v60  ;;  %v4741_v1 = vmul.f32 %v11772_v41, %v9940_v16  ;;  %v5344_v13 = vadd.f32 %v5312_v23, %v5040_v44  ;;  %v11775_v58 = vld [vmem:[#allocation89_spill] sm:$0xff]  ;;  %v11776_v23 = vld [vmem:[#allocation312_spill] sm:$0xff] }
 0x5e1   : > { %v5316_v43 = vmul.f32 %v11773_v40, %v9992_v11  ;;  %v10150_v8 = vadd.f32 %v4742_v39, %v9893_v31  ;;  %v10153_v25 = vadd.f32 %v4739_v14, %v9896_v29  ;;  %v5009_v48 = vmul.f32 %v11774_v52, %v9956_v3  ;;  %v10161_v42 = vpop.permute.xlu1 %5500  ;;  %v11777_v31 = vld [vmem:[#allocation33_spill] sm:$0xff]  ;;  %v10170_v44 = vpop.permute.xlu0 %5666 }
 0x5e2   : > { %v5627_v24 = vadd.f32 %v5595_v18, %v5347_v57  ;;  %5745 = vperm.xlu0 %6212, %v5680_v7   ;;  %v5044_v60 = vadd.f32 %v5012_v45, %v4764_v20  ;;  %v5013_v5 = vmul.f32 %v11775_v58, %v9960_v61  ;;  %v5624_v16 = vadd.f32 %v5592_v12, %v5344_v13  ;;  %v11778_v29 = vld [vmem:[#allocation57_spill] sm:$0xff]  ;;  %v11780_v57 = vld [vmem:[#allocation130_spill] sm:$0xff]  ;;  %v11781_v13 = vld [vmem:[#allocation183_spill] sm:$0xff] }
 0x5e3   : > { %v5596_v0 = vmul.f32 %v11776_v23, %v10020_v50  ;;  %v4744_v39 = vmul.f32 %v11777_v31, %v9944_v47  ;;  %v4743_v14 = vmul.f32 %v11778_v29, %v9944_v47  ;;  %v11779_v15 = vld [vmem:[#allocation65_spill] sm:$0xff]  ;;  %v10173_v45 = vadd.f32 %v4741_v1, %v9899_v53  ;;  %v11784_v53 = vld [vmem:[#allocation36_spill] sm:$0xff] }
 0x5e4   : > { %v5313_v18 = vmul.f32 %v11779_v15, %v9986_v62  ;;  %v5684_v20 = vmul.f32 %v10131_v59, %v5627_v24  ;;  %v5348_v12 = vadd.f32 %v5316_v43, %v5044_v60  ;;  %v5317_v7 = vmul.f32 %v11780_v57, %v9992_v11  ;;  %v11782_v58 = vld [vmem:[#allocation61_spill] sm:$0xff]  ;;  %v11783_v24 = vld [vmem:[#allocation40_spill] sm:$0xff] }
 0x5e5   : > { %v5681_v41 = vmul.f32 %v10170_v44, %v5624_v16  ;;  %v4746_v40 = vmul.f32 %v11781_v13, %v9944_v47  ;;  %v5041_v52 = vadd.f32 %v5009_v48, %v4761_v26  ;;  %v5015_v23 = vmul.f32 %v11782_v58, %v9964_v32  ;;  %v11785_v29 = vld [vmem:[#allocation109_spill] sm:$0xff]  ;;  %v10188_v16 = vpop.permute.xlu1 %5526  ;;  %v10198_v58 = vpop.permute.xlu0 %5515 }
 0x5e6   : > { %v5593_v31 = vmul.f32 %v11783_v24, %v10016_v4  ;;  %5757 = vperm.xlu0 %6212, %v5684_v20   ;;  %v5016_v1 = vmul.f32 %v11784_v53, %v9964_v32  ;;  %v5045_v43 = vadd.f32 %v5013_v5, %v4765_v28  ;;  %v5628_v60 = vadd.f32 %v5596_v0, %v5348_v12  ;;  %v11786_v20 = vld [vmem:[#allocation310_spill] sm:$0xff]  ;;  %v11787_v28 = vld [vmem:[#allocation133_spill] sm:$0xff]  ;;  %v11788_v0 = vld [vmem:[#allocation283_spill] sm:$0xff] }
 0x5e7   : > { %v5597_v15 = vmul.f32 %v11785_v29, %v10020_v50  ;;  %5748 = vperm.xlu1 %6211, %v5681_v41   ;;  %v10191_v26 = vadd.f32 %v4744_v39, %v9902_v21  ;;  %v10194_v48 = vadd.f32 %v4743_v14, %v9908_v35  ;;  %v5345_v57 = vadd.f32 %v5313_v18, %v5041_v52  ;;  %v11789_v21 = vld [vmem:[#allocation26_spill] sm:$0xff]  ;;  %v11790_v18 = vld [vmem:[#allocation280_spill] sm:$0xff] }
 0x5e8   : > { %v5319_v13 = vmul.f32 %v11786_v20, %v9996_v27  ;;  %v4745_v5 = vmul.f32 %v11787_v28, %v9944_v47  ;;  %v5320_v12 = vmul.f32 %v11788_v0, %v9996_v27  ;;  %v5349_v24 = vadd.f32 %v5317_v7, %v5045_v43  ;;  %v11791_v20 = vld [vmem:[#allocation67_spill] sm:$0xff]  ;;  %v11792_v43 = vld [vmem:[#allocation166_spill] sm:$0xff] }
 0x5e9   : > { %v5685_v41 = vmul.f32 %v10170_v44, %v5628_v60  ;;  %v4748_v39 = vmul.f32 %v11789_v21, %v9948_v33  ;;  %v5047_v35 = vadd.f32 %v5015_v23, %v4767_v30  ;;  %v5625_v14 = vadd.f32 %v5593_v31, %v5345_v57  ;;  %v10215_v7 = vpop.permute.xlu1 %5670  ;;  %v11793_v30 = vld [vmem:[#allocation87_spill] sm:$0xff] }
 0x5ea   : > { %v5599_v52 = vmul.f32 %v11790_v18, %v10028_v9  ;;  %v10210_v53 = vadd.f32 %v4746_v40, %v9905_v55  ;;  %v5048_v29 = vadd.f32 %v5016_v1, %v10114_v38  ;;  %v5629_v47 = vadd.f32 %v5597_v15, %v5349_v24  ;;  %v10222_v55 = vpop.permute.xlu0 %5530  ;;  %v11794_v40 = vld [vmem:[#allocation10_spill] sm:$0xff]  ;;  %v11798_v18 = vld [vmem:[#allocation216_spill] sm:$0xff] }
 0x5eb   : > { %v5600_v28 = vmul.f32 %v11791_v20, %v10028_v9  ;;  %5760 = vperm.xlu1 %6211, %v5685_v41   ;;  %v4750_v60 = vmul.f32 %v11792_v43, %v9948_v33  ;;  %v4747_v23 = vmul.f32 %v11793_v30, %v9948_v33  ;;  %v5351_v31 = vadd.f32 %v5319_v13, %v5047_v35  ;;  %v11795_v41 = vld [vmem:[#allocation73_spill] sm:$0xff]  ;;  %v11796_v13 = vld [vmem:[#allocation279_spill] sm:$0xff]  ;;  %v11801_v30 = vld [vmem:[#allocation124_spill] sm:$0xff] }
 0x5ec   : > { %v5682_v57 = vmul.f32 %v10215_v7, %v5625_v14  ;;  %v10225_v38 = vadd.f32 %v4745_v5, %v9910_v63  ;;  %v4749_v1 = vmul.f32 %v11794_v40, %v9948_v33  ;;  %v5352_v15 = vadd.f32 %v5320_v12, %v5048_v29  ;;  %v11797_v63 = vld [vmem:[#allocation184_spill] sm:$0xff]  ;;  %v11805_v40 = vld [vmem:[#allocation126_spill] sm:$0xff] }
 0x5ed   : > { %v5686_v0 = vmul.f32 %v10215_v7, %v5629_v47  ;;  %v10231_v24 = vadd.f32 %v4748_v39, %v9915_v22  ;;  %v4751_v21 = vmul.f32 %v11795_v41, %v9952_v19  ;;  %v5014_v35 = vmul.f32 %v11796_v13, %v9960_v61  ;;  %v11799_v12 = vld [vmem:[#allocation244_spill] sm:$0xff]  ;;  %v10243_v22 = vpop.permute.xlu1 %5534 }
 0x5ee   : > { %v5631_v14 = vadd.f32 %v5599_v52, %v5351_v31  ;;  %5751 = vperm.xlu0 %6212, %v5682_v57   ;;  %v5010_v5 = vmul.f32 %v11797_v63, %v9956_v3  ;;  %v5018_v33 = vmul.f32 %v11798_v18, %v9964_v32  ;;  %v5017_v29 = vmul.f32 %v11799_v12, %v9964_v32  ;;  %v11800_v52 = vld [vmem:[#allocation256_spill] sm:$0xff]  ;;  %v10254_v43 = vpop.permute.xlu0 %5519  ;;  %v11804_v57 = vld [vmem:[#allocation287_spill] sm:$0xff] }
 0x5ef   : > { %v5632_v47 = vadd.f32 %v5600_v28, %v5352_v15  ;;  %5763 = vperm.xlu1 %6211, %v5686_v0   ;;  %v10246_v39 = vadd.f32 %v4750_v60, %v9918_v6  ;;  %v10249_v61 = vadd.f32 %v4747_v23, %v9928_v51  ;;  %v5318_v20 = vmul.f32 %v11800_v52, %v9992_v11  ;;  %v11802_v28 = vld [vmem:[#allocation145_spill] sm:$0xff]  ;;  %v11803_v6 = vld [vmem:[#allocation38_spill] sm:$0xff] }
 0x5f0   : > { %v5688_v3 = vmul.f32 %v10131_v59, %v5631_v14  ;;  %v10258_v32 = vmul.f32 %v11801_v30, %v9952_v19  ;;  %v10261_v31 = vadd.f32 %v4749_v1, %v11802_v28  ;;  %v5314_v60 = vmul.f32 %v11803_v6, %v9986_v62  ;;  %v11806_v0 = vld [vmem:[#allocation309_spill] sm:$0xff]  ;;  %v11814_v6 = vld [vmem:[#allocation227_spill] sm:$0xff] }
 0x5f1   : > { %v5689_v51 = vmul.f32 %v10170_v44, %v5632_v47  ;;  %v10267_v23 = vadd.f32 %v4751_v21, %v10068_v54  ;;  %v5046_v11 = vadd.f32 %v5014_v35, %v10096_v46  ;;  %v5019_v15 = vmul.f32 %v11805_v40, %v11804_v57  ;;  %v11807_v14 = vld [vmem:[#allocation21_spill] sm:$0xff]  ;;  %v5550_v54 = vpop.permute.xlu1 %5549  ;;  %v11808_v46 = vld [vmem:[#allocation75_spill] sm:$0xff]  ;;  %v11809_v35 = vld [vmem:[#allocation388_spill] sm:$0xff] }
 0x5f2   : > { %v5598_v41 = vmul.f32 %v11806_v0, %v10020_v50  ;;  %5769 = vperm.xlu0 %6212, %v5688_v3   ;;  %v5042_v1 = vadd.f32 %v5010_v5, %v10084_v34  ;;  %v5050_v13 = vadd.f32 %v5018_v33, %v10134_v36  ;;  %v5049_v62 = vadd.f32 %v5017_v29, %v10137_v49  ;;  %v5546_v47 = vpop.permute.xlu0 %5545  ;;  %v11810_v36 = vld [vmem:[#allocation220_spill] sm:$0xff]  ;;  %v11812_v33 = vld [vmem:[#allocation159_spill] sm:$0xff] }
 0x5f3   : > { %v5594_v63 = vmul.f32 %v11807_v14, %v10016_v4  ;;  %5772 = vperm.xlu1 %6211, %v5689_v51   ;;  %v5020_v21 = vmul.f32 %v11808_v46, %v11804_v57  ;;  %v5022_v18 = vmul.f32 %v11809_v35, %v11804_v57  ;;  %v5350_v12 = vadd.f32 %v5318_v20, %v5046_v11  ;;  %v11811_v49 = vld [vmem:[#allocation224_spill] sm:$0xff]  ;;  %v11813_v3 = vld [vmem:[#allocation191_spill] sm:$0xff]  ;;  %v11815_v51 = vld [vmem:[#allocation82_spill] sm:$0xff] }
 0x5f4   : > { %v5620_v50 = vmul.f32 %v5550_v54, %v10062_v56  ;;  %v5346_v34 = vadd.f32 %v5314_v60, %v5042_v1  ;;  %v5321_v5 = vmul.f32 %v11810_v36, %v9996_v27  ;;  %v5323_v29 = vmul.f32 %v11812_v33, %v11811_v49  ;;  %v11816_v11 = vld [vmem:[#allocation53_spill] sm:$0xff]  ;;  %v11817_v0 = vld [vmem:[#allocation260_spill] sm:$0xff] }
 0x5f5   : > { %v5619_v4 = vmul.f32 %v5546_v47, %v10062_v56  ;;  %v5051_v52 = vadd.f32 %v5019_v15, %v10153_v25  ;;  %v5021_v30 = vmul.f32 %v11813_v3, %v11804_v57  ;;  %v5630_v28 = vadd.f32 %v5598_v41, %v5350_v12  ;;  %v10299_v14 = vpop.permute.xlu1 %5538  ;;  %v11818_v54 = vld [vmem:[#allocation161_spill] sm:$0xff]  ;;  %v11819_v15 = vld [vmem:[#allocation172_spill] sm:$0xff] }
 0x5f6   : > { %v10293_v20 = vadd.f32 %v5620_v50, %v11814_v6  ;;  %v5603_v60 = vmul.f32 %v11816_v11, %v11815_v51  ;;  %v5626_v40 = vadd.f32 %v5594_v63, %v5346_v34  ;;  %v5601_v1 = vmul.f32 %v11817_v0, %v10028_v9  ;;  %v11820_v35 = vld [vmem:[#allocation108_spill] sm:$0xff]  ;;  %v10310_v50 = vpop.permute.xlu0 %5674  ;;  %v11827_v0 = vld [vmem:[#allocation51_spill] sm:$0xff] }
 0x5f7   : > { %v10302_v46 = vadd.f32 %v5619_v4, %v11818_v54  ;;  %v5052_v25 = vadd.f32 %v5020_v21, %v10143_v2  ;;  %v5054_v57 = vadd.f32 %v5022_v18, %v10150_v8  ;;  %v5322_v41 = vmul.f32 %v11819_v15, %v9996_v27  ;;  %v11821_v33 = vld [vmem:[#allocation176_spill] sm:$0xff]  ;;  %v11822_v4 = vld [vmem:[#allocation106_spill] sm:$0xff]  ;;  %v11823_v8 = vld [vmem:[#allocation91_spill] sm:$0xff] }
 0x5f8   : > { %v5324_v12 = vmul.f32 %v11820_v35, %v11811_v49  ;;  %v5353_v63 = vadd.f32 %v5321_v5, %v5049_v62  ;;  %v5355_v47 = vadd.f32 %v5323_v29, %v5051_v52  ;;  %v5687_v34 = vmul.f32 %v10310_v50, %v5630_v28  ;;  %v11824_v27 = vld [vmem:[#allocation314_spill] sm:$0xff]  ;;  %v11825_v62 = vld [vmem:[#allocation85_spill] sm:$0xff] }
 0x5f9   : > { %v5683_v36 = vmul.f32 %v10310_v50, %v5626_v40  ;;  %v5024_v3 = vmul.f32 %v11822_v4, %v11821_v33  ;;  %v5053_v2 = vadd.f32 %v5021_v30, %v10173_v45  ;;  %v5023_v21 = vmul.f32 %v11823_v8, %v11821_v33  ;;  %v5558_v29 = vpop.permute.xlu1 %5557  ;;  %v11826_v40 = vld [vmem:[#allocation252_spill] sm:$0xff]  ;;  %v11828_v15 = vld [vmem:[#allocation249_spill] sm:$0xff] }
 0x5fa   : > { %v5602_v18 = vmul.f32 %v11824_v27, %v10028_v9  ;;  %v5635_v6 = vadd.f32 %v5603_v60, %v5355_v47  ;;  %v5633_v11 = vadd.f32 %v5601_v1, %v5353_v63  ;;  %v5604_v5 = vmul.f32 %v11825_v62, %v11815_v51  ;;  %5766 = vperm.xlu1 %6211, %v5687_v34   ;;  %v5554_v30 = vpop.permute.xlu0 %5553  ;;  %v11832_v4 = vld [vmem:[#allocation205_spill] sm:$0xff] }
 0x5fb   : > { %5754 = vperm.xlu0 %6212, %v5683_v36   ;;  %v5354_v52 = vadd.f32 %v5322_v41, %v5050_v13  ;;  %v5356_v28 = vadd.f32 %v5324_v12, %v5052_v25  ;;  %v5327_v54 = vmul.f32 %v11827_v0, %v11826_v40  ;;  %v5622_v45 = vmul.f32 %v5558_v29, %v10062_v56  ;;  %v11829_v13 = vld [vmem:[#allocation311_spill] sm:$0xff]  ;;  %v11830_v25 = vld [vmem:[#allocation282_spill] sm:$0xff]  ;;  %v11831_v12 = vld [vmem:[#allocation81_spill] sm:$0xff] }
 0x5fc   : > { %v5325_v35 = vmul.f32 %v11828_v15, %v11811_v49  ;;  %v5621_v9 = vmul.f32 %v5554_v30, %v10062_v56  ;;  %v5692_v60 = vmul.f32 %v10131_v59, %v5635_v6  ;;  %v5690_v1 = vmul.f32 %v10215_v7, %v5633_v11  ;;  %v11833_v27 = vld [vmem:[#allocation285_spill] sm:$0xff]  ;;  %v11835_v6 = vld [vmem:[#allocation138_spill] sm:$0xff] }
 0x5fd   : > { %v5055_v63 = vadd.f32 %v5023_v21, %v10194_v48  ;;  %v5634_v47 = vadd.f32 %v5602_v18, %v5354_v52  ;;  %v5607_v41 = vmul.f32 %v11830_v25, %v11829_v13  ;;  %v10335_v34 = vadd.f32 %v5622_v45, %v11831_v12  ;;  %v11834_v56 = vld [vmem:[#allocation97_spill] sm:$0xff]  ;;  %v11836_v48 = vld [vmem:[#allocation95_spill] sm:$0xff]  ;;  %v11838_v30 = vld [vmem:[#allocation46_spill] sm:$0xff] }
 0x5fe   : > { %v5636_v36 = vadd.f32 %v5604_v5, %v5356_v28  ;;  %v5605_v8 = vmul.f32 %v11832_v4, %v11815_v51  ;;  %v10340_v62 = vadd.f32 %v5621_v9, %v11833_v27  ;;  %5781 = vperm.xlu1 %6211, %v5692_v60   ;;  %v5027_v11 = vmul.f32 %v11835_v6, %v11834_v56  ;;  %v11837_v18 = vld [vmem:[#allocation19_spill] sm:$0xff]  ;;  %v11839_v9 = vld [vmem:[#allocation186_spill] sm:$0xff] }
 0x5ff   : > { %5775 = vperm.xlu0 %6212, %v5690_v1   ;;  %v5326_v21 = vmul.f32 %v11836_v48, %v11811_v49  ;;  %v5328_v29 = vmul.f32 %v11837_v18, %v11826_v40  ;;  %v5359_v52 = vadd.f32 %v5327_v54, %v5055_v63  ;;  %v5056_v5 = vadd.f32 %v5024_v3, %v10191_v26  ;;  %v11840_v1 = vld [vmem:[#allocation42_spill] sm:$0xff]  ;;  %v11842_v3 = vld [vmem:[#allocation223_spill] sm:$0xff] }
 0x600   : > { %v5357_v28 = vadd.f32 %v5325_v35, %v5053_v2  ;;  %v5691_v0 = vmul.f32 %v10310_v50, %v5634_v47  ;;  %v5693_v45 = vmul.f32 %v10170_v44, %v5636_v36  ;;  %v5026_v15 = vmul.f32 %v11838_v30, %v11821_v33  ;;  %v11841_v25 = vld [vmem:[#allocation190_spill] sm:$0xff]  ;;  %v11843_v36 = vld [vmem:[#allocation203_spill] sm:$0xff] }
 0x601   : > { %v5025_v60 = vmul.f32 %v11839_v9, %v11821_v33  ;;  %v5331_v49 = vmul.f32 %v11841_v25, %v11840_v1  ;;  %v5639_v12 = vadd.f32 %v5607_v41, %v5359_v52  ;;  %v5606_v54 = vmul.f32 %v10072_v10, %v11815_v51  ;;  %v11844_v41 = vld [vmem:[#allocation134_spill] sm:$0xff]  ;;  %v11845_v27 = vld [vmem:[#allocation195_spill] sm:$0xff] }
 0x602   : > { %v5637_v63 = vadd.f32 %v5605_v8, %v5357_v28  ;;  %v5608_v26 = vmul.f32 %v10081_v37, %v11829_v13  ;;  %5778 = vperm.xlu1 %6211, %v5691_v0   ;;  %v5028_v2 = vmul.f32 %v11842_v3, %v11834_v56  ;;  %v5059_v35 = vadd.f32 %v5027_v11, %v10249_v61  ;;  %v11846_v8 = vld [vmem:[#allocation281_spill] sm:$0xff]  ;;  %v11847_v18 = vld [vmem:[#allocation143_spill] sm:$0xff]  ;;  %v11849_v28 = vld [vmem:[#allocation34_spill] sm:$0xff] }
 0x603   : > { %5784 = vperm.xlu0 %6212, %v5693_v45   ;;  %v5358_v47 = vadd.f32 %v5326_v21, %v5054_v57  ;;  %v5360_v33 = vadd.f32 %v5328_v29, %v5056_v5  ;;  %v5329_v4 = vmul.f32 %v11843_v36, %v11826_v40  ;;  %v5611_v6 = vmul.f32 %v11845_v27, %v11844_v41  ;;  %v11848_v29 = vld [vmem:[#allocation163_spill] sm:$0xff]  ;;  %v11850_v0 = vld [vmem:[#allocation37_spill] sm:$0xff] }
 0x604   : > { %v5696_v10 = vmul.f32 %v10131_v59, %v5639_v12  ;;  %v5694_v51 = vmul.f32 %v10215_v7, %v5637_v63  ;;  %v5057_v37 = vadd.f32 %v5025_v60, %v10225_v38  ;;  %v5029_v48 = vmul.f32 %v11846_v8, %v11834_v56  ;;  %v11851_v38 = vld [vmem:[#allocation278_spill] sm:$0xff] }
 0x605   : > { %v5332_v61 = vmul.f32 %v11847_v18, %v11840_v1  ;;  %v5363_v57 = vadd.f32 %v5331_v49, %v5059_v35  ;;  %v5638_v11 = vadd.f32 %v5606_v54, %v5358_v47  ;;  %v5640_v21 = vadd.f32 %v5608_v26, %v5360_v33  ;;  %v11852_v26 = vld [vmem:[#allocation307_spill] sm:$0xff]  ;;  %v11854_v35 = vld [vmem:[#allocation193_spill] sm:$0xff] }
 0x606   : > { %v5609_v52 = vmul.f32 %v11848_v29, %v11829_v13  ;;  %5793 = vperm.xlu1 %6211, %v5696_v10   ;;  %v5060_v5 = vadd.f32 %v5028_v2, %v10231_v24  ;;  %v5031_v45 = vmul.f32 %v11850_v0, %v11849_v28  ;;  %v5330_v30 = vmul.f32 %v11851_v38, %v11826_v40  ;;  %v11853_v2 = vld [vmem:[#allocation68_spill] sm:$0xff]  ;;  %v11855_v33 = vld [vmem:[#allocation77_spill] sm:$0xff] }
 0x607   : > { %5787 = vperm.xlu0 %6212, %v5694_v51   ;;  %v5612_v9 = vmul.f32 %v10140_v17, %v11844_v41  ;;  %v5361_v60 = vadd.f32 %v5329_v4, %v5057_v37  ;;  %v5643_v25 = vadd.f32 %v5611_v6, %v5363_v57  ;;  %v5695_v49 = vmul.f32 %v10310_v50, %v5638_v11  ;;  %v11856_v4 = vld [vmem:[#allocation22_spill] sm:$0xff] }
 0x608   : > { %v5697_v12 = vmul.f32 %v10170_v44, %v5640_v21  ;;  %v5058_v54 = vadd.f32 %v5026_v15, %v10210_v53  ;;  %v5061_v63 = vadd.f32 %v5029_v48, %v10261_v31  ;;  %v5364_v24 = vadd.f32 %v5332_v61, %v5060_v5  ;;  %v11858_v37 = vld [vmem:[#allocation214_spill] sm:$0xff]  ;;  %v11860_v61 = vld [vmem:[#allocation389_spill] sm:$0xff] }
 0x609   : > { %v5333_v3 = vmul.f32 %v11852_v26, %v11840_v1  ;;  %v5335_v40 = vmul.f32 %v11854_v35, %v11853_v2  ;;  %v5610_v17 = vmul.f32 %v10161_v42, %v11829_v13  ;;  %v5641_v47 = vadd.f32 %v5609_v52, %v5361_v60  ;;  %v11857_v13 = vld [vmem:[#allocation54_spill] sm:$0xff]  ;;  %v11861_v21 = vld [vmem:[#allocation157_spill] sm:$0xff] }
 0x60a   : > { %5790 = vperm.xlu1 %6211, %v5695_v49   ;;  %v5032_v36 = vmul.f32 %v11855_v33, %v11849_v28  ;;  %v5063_v53 = vadd.f32 %v5031_v45, %v10267_v23  ;;  %v5362_v15 = vadd.f32 %v5330_v30, %v5058_v54  ;;  %v5644_v31 = vadd.f32 %v5612_v9, %v5364_v24  ;;  %v11859_v23 = vld [vmem:[#allocation255_spill] sm:$0xff]  ;;  %v11863_v30 = vld [vmem:[#allocation218_spill] sm:$0xff]  ;;  %v11864_v9 = vld [vmem:[#allocation308_spill] sm:$0xff] }
 0x60b   : > { %5796 = vperm.xlu0 %6212, %v5697_v12   ;;  %v5615_v27 = vmul.f32 %v10188_v16, %v11856_v4  ;;  %v5613_v6 = vmul.f32 %v10198_v58, %v11844_v41  ;;  %v5700_v10 = vmul.f32 %v10131_v59, %v5643_v25  ;;  %v5698_v42 = vmul.f32 %v10215_v7, %v5641_v47  ;;  %v11865_v25 = vld [vmem:[#allocation229_spill] sm:$0xff]  ;;  %v11866_v49 = vld [vmem:[#allocation382_spill] sm:$0xff]  ;;  %v11867_v54 = vld [vmem:[#allocation391_spill] sm:$0xff] }
 0x60c   : > { %v4784_v51 = vadd.f32 %v10258_v32, %v11857_v13  ;;  %v4753_v8 = vmul.f32 %v11858_v37, %v9952_v19  ;;  %v5030_v48 = vmul.f32 %v11859_v23, %v11834_v56  ;;  %v5365_v18 = vadd.f32 %v5333_v3, %v5061_v63  ;;  %v11862_v32 = vld [vmem:[#allocation132_spill] sm:$0xff]  ;;  %v11868_v26 = vld [vmem:[#allocation102_spill] sm:$0xff] }
 0x60d   : > { %v5336_v16 = vmul.f32 %v11860_v61, %v11853_v2  ;;  %v5367_v57 = vadd.f32 %v5335_v40, %v5063_v53  ;;  %v5642_v11 = vadd.f32 %v5610_v17, %v5362_v15  ;;  %v5033_v29 = vmul.f32 %v11861_v21, %v11849_v28  ;;  %v11870_v17 = vld [vmem:[#allocation398_spill] sm:$0xff] }
 0x60e   : > { %5805 = vperm.xlu1 %6211, %v5700_v10   ;;  %v5064_v58 = vadd.f32 %v5032_v36, %v4784_v51  ;;  %v5334_v52 = vmul.f32 %v11862_v32, %v11840_v1  ;;  %v5701_v5 = vmul.f32 %v10170_v44, %v5644_v31  ;;  %v5645_v45 = vadd.f32 %v5613_v6, %v5365_v18 }
 0x60f   : > { %5799 = vperm.xlu0 %6212, %v5698_v42   ;;  %v5647_v0 = vadd.f32 %v5615_v27, %v5367_v57  ;;  %v5616_v56 = vmul.f32 %v10222_v55, %v11856_v4  ;;  %v5699_v38 = vmul.f32 %v10310_v50, %v5642_v11  ;;  %v3898_v60 = vadd.f32 %v11864_v9, %v11863_v30  ;;  %v11869_v55 = vld [vmem:[#allocation250_spill] sm:$0xff]  ;;  %v11873_v30 = vld [vmem:[#allocation116_spill] sm:$0xff] }
 0x610   : > { %v4450_v12 = vmul.f32 %v11866_v49, %v11865_v25  ;;  %v4785_v63 = vadd.f32 %v4753_v8, %v11867_v54  ;;  %v5062_v24 = vadd.f32 %v5030_v48, %v10246_v39  ;;  %v5368_v1 = vadd.f32 %v5336_v16, %v5064_v58 }
 0x611   : > { %v5337_v3 = vmul.f32 %v11868_v26, %v11853_v2  ;;  %v5614_v35 = vmul.f32 %v10254_v43, %v11844_v41  ;;  %v4202_v40 = vadd.f32 %v11869_v55, %v3898_v60  ;;  %v4754_v47 = vmul.f32 %v11870_v17, %v9952_v19  ;;  %v11871_v43 = vld [vmem:[#allocation170_spill] sm:$0xff] }
 0x612   : > { %5802 = vperm.xlu1 %6211, %v5699_v38   ;;  %v5065_v33 = vadd.f32 %v5033_v29, %v4785_v63  ;;  %v5366_v36 = vadd.f32 %v5334_v52, %v5062_v24  ;;  %v5704_v53 = vmul.f32 %v10131_v59, %v5647_v0  ;;  %v5617_v39 = vmul.f32 %v10243_v22, %v11856_v4  ;;  %v11872_v19 = vld [vmem:[#allocation174_spill] sm:$0xff]  ;;  %v11875_v63 = vld [vmem:[#allocation9_spill] sm:$0xff] }
 0x613   : > { %5808 = vperm.xlu0 %6212, %v5701_v5   ;;  %v5702_v15 = vmul.f32 %v10215_v7, %v5645_v45  ;;  %v5648_v31 = vadd.f32 %v5616_v56, %v5368_v1  ;;  %v4482_v27 = vadd.f32 %v4450_v12, %v4202_v40  ;;  %v5034_v41 = vmul.f32 %v11871_v43, %v11849_v28  ;;  %v11874_v12 = vld [vmem:[#allocation119_spill] sm:$0xff] }
 0x614   : > { %v5369_v6 = vadd.f32 %v5337_v3, %v5065_v33  ;;  %v5646_v10 = vadd.f32 %v5614_v35, %v5366_v36  ;;  %v5338_v13 = vmul.f32 %v11872_v19, %v11853_v2  ;;  %v5618_v23 = vmul.f32 %v10299_v14, %v11856_v4  ;;  %v11876_v35 = vld [vmem:[#allocation122_spill] sm:$0xff] }
 0x615   : > { %v4786_v42 = vadd.f32 %v4754_v47, %v4482_v27  ;;  %v5705_v37 = vmul.f32 %v10170_v44, %v5648_v31  ;;  %v5708_v18 = vmul.f32 %v10131_v59, %v10302_v46  ;;  %v5709_v2 = vmul.f32 %v10170_v44, %v10293_v20 }
 0x616   : > { %5817 = vperm.xlu1 %6211, %v5704_v53   ;;  %v5649_v51 = vadd.f32 %v5617_v39, %v5369_v6  ;;  %v5703_v22 = vmul.f32 %v10310_v50, %v5646_v10  ;;  %v5710_v14 = vmul.f32 %v10215_v7, %v10340_v62  ;;  %v5711_v4 = vmul.f32 %v10310_v50, %v10335_v34 }
 0x617   : > { %5811 = vperm.xlu0 %6212, %v5702_v15   ;;  %v5066_v8 = vadd.f32 %v5034_v41, %v4786_v42  ;;  %v5856_v9 = vadd.s32 4294967272, %v11873_v30  ;;  %v5849_v49 = vadd.s32 4294967280, %v11873_v30 }
 0x618   : > { %v5706_v48 = vmul.f32 %v10215_v7, %v5649_v51 }
 0x619   : > { %v5370_v28 = vadd.f32 %v5338_v13, %v5066_v8  ;;  %v10458_v24 = vsub.s32 %v5856_v9, %v11875_v63  ;;  %v10461_v3 = vsub.s32 %v5849_v49, %v11875_v63 }
 0x61a   : > { %5814 = vperm.xlu1 %6211, %v5703_v22  }
 0x61b   : > { %5820 = vperm.xlu0 %6212, %v5705_v37   ;;  %v5650_v61 = vadd.f32 %v5618_v23, %v5370_v28 }
 0x61d   : > { %v5707_v16 = vmul.f32 %v10310_v50, %v5650_v61 }
 0x61e   : > { %5829 = vperm.xlu1 %6211, %v5708_v18  }
 0x61f   : > { %5823 = vperm.xlu0 %6212, %v5706_v48  }
 0x622   : > { %5826 = vperm.xlu1 %6211, %v5707_v16  }
 0x623   : > { %5832 = vperm.xlu0 %6212, %v5709_v2  }
 0x626   : > { %5838 = vperm.xlu1 %6211, %v5711_v4  }
 0x627   : > { %5835 = vperm.xlu0 %6212, %v5710_v14  }
 0x661   : > { %v5746_v57 = vpop.permute.xlu0 %5745 }
 0x662   : > { %v5843_v55 = vrot.slane %v5746_v57, %v11876_v35 }
 0x665   : > { %v5758_v11 = vpop.permute.xlu0 %5757 }
 0x666   : > { %v5749_v59 = vpop.permute.xlu1 %5748  ;;  %v5866_v17 = vrot.slane %v5758_v11, %v11876_v35 }
 0x667   : > { %v5847_v54 = vrot.slane %v5749_v59, %v11874_v12 }
 0x669   : > { %v5848_v33 = vsel %vm605_vm2, %v5847_v54, %v5843_v55 }
 0x66a   : > { %v5761_v46 = vpop.permute.xlu1 %5760 }
 0x66b   : > { %v5870_v40 = vrot.slane %v5761_v46, %v11874_v12 }
 0x66d   : > { %v5752_v58 = vpop.permute.xlu0 %5751  ;;  %v5871_v6 = vsel %vm605_vm2, %v5870_v40, %v5866_v17 }
 0x66e   : > { %v5764_v21 = vpop.permute.xlu1 %5763  ;;  %v5853_v27 = vrot.slane %v5752_v58, %v10461_v3 }
 0x66f   : > { %v5875_v47 = vrot.slane %v5764_v21, %v10461_v3 }
 0x670   : > { %v5855_v19 = vsel %vm5854_vm11, %v5853_v27, %v5848_v33 }
 0x671   : > { %v5770_v29 = vpop.permute.xlu0 %5769  ;;  %v5876_v42 = vsel %vm5854_vm11, %v5875_v47, %v5871_v6 }
 0x672   : > { %v5773_v44 = vpop.permute.xlu1 %5772  ;;  %v5885_v41 = vrot.slane %v5770_v29, %v11876_v35 }
 0x673   : > { %v5889_v36 = vrot.slane %v5773_v44, %v11874_v12 }
 0x675   : > { %v5890_v13 = vsel %vm605_vm2, %v5889_v36, %v5885_v41 }
 0x679   : > { %v5767_v20 = vpop.permute.xlu1 %5766 }
 0x67a   : > { %v5755_v32 = vpop.permute.xlu0 %5754  ;;  %v5880_v53 = vrot.slane %v5767_v20, %v10458_v24 }
 0x67b   : > { %v5860_v39 = vrot.slane %v5755_v32, %v10458_v24 }
 0x67c   : > { %v5881_v51 = vsel %vm5861_vm12, %v5880_v53, %v5876_v42 }
 0x67d   : > { %v5782_v52 = vpop.permute.xlu1 %5781  ;;  %v5862_v37 = vsel %vm5861_vm12, %v5860_v39, %v5855_v19 }
 0x67e   : > { %v5776_v5 = vpop.permute.xlu0 %5775  ;;  %v5904_v28 = vrot.slane %v5782_v52, %v11876_v35 }
 0x67f   : > { %v5894_v43 = vrot.slane %v5776_v5, %v10461_v3 }
 0x681   : > { %v5779_v0 = vpop.permute.xlu1 %5778  ;;  %v5895_v48 = vsel %vm5854_vm11, %v5894_v43, %v5890_v13 }
 0x682   : > { %v5785_v45 = vpop.permute.xlu0 %5784  ;;  %v5899_v10 = vrot.slane %v5779_v0, %v10458_v24 }
 0x683   : > { %v5908_v22 = vrot.slane %v5785_v45, %v11874_v12 }
 0x684   : > { %v5900_v2 = vsel %vm5861_vm12, %v5899_v10, %v5895_v48 }
 0x685   : > { %v5794_v7 = vpop.permute.xlu1 %5793  ;;  %v5909_v58 = vsel %vm605_vm2, %v5908_v22, %v5904_v28 }
 0x686   : > { %v5788_v62 = vpop.permute.xlu0 %5787  ;;  %v5923_v57 = vrot.slane %v5794_v7, %v11876_v35 }
 0x687   : > { %v5913_v18 = vrot.slane %v5788_v62, %v10461_v3 }
 0x689   : > { %v5791_v56 = vpop.permute.xlu1 %5790  ;;  %v5914_v52 = vsel %vm5854_vm11, %v5913_v18, %v5909_v58 }
 0x68a   : > { %v5797_v50 = vpop.permute.xlu0 %5796  ;;  %v5918_v16 = vrot.slane %v5791_v56, %v10458_v24 }
 0x68b   : > { %v5927_v61 = vrot.slane %v5797_v50, %v11874_v12 }
 0x68c   : > { %v5919_v7 = vsel %vm5861_vm12, %v5918_v16, %v5914_v52 }
 0x68d   : > { %v5806_v34 = vpop.permute.xlu1 %5805  ;;  %v5928_v5 = vsel %vm605_vm2, %v5927_v61, %v5923_v57 }
 0x68e   : > { %v5800_v38 = vpop.permute.xlu0 %5799  ;;  %v5942_v21 = vrot.slane %v5806_v34, %v11876_v35  ;;  %v5996_v34 = vsel %vm670_vm3, %v5881_v51, %v5862_v37 }
 0x68f   : > { %v5932_v14 = vrot.slane %v5800_v38, %v10461_v3 }
 0x691   : > { %v5803_v60 = vpop.permute.xlu1 %5802  ;;  %v5933_v62 = vsel %vm5854_vm11, %v5932_v14, %v5928_v5 }
 0x692   : > { %v5809_v25 = vpop.permute.xlu0 %5808  ;;  %v5937_v59 = vrot.slane %v5803_v60, %v10458_v24  ;;  %v5997_v60 = vsel %vm672_vm4, %v5900_v2, %v5996_v34 }
 0x693   : > { %v5946_v4 = vrot.slane %v5809_v25, %v11874_v12 }
 0x694   : > { %v5938_v38 = vsel %vm5861_vm12, %v5937_v59, %v5933_v62 }
 0x695   : > { %v5818_v1 = vpop.permute.xlu1 %5817  ;;  %v5947_v56 = vsel %vm605_vm2, %v5946_v4, %v5942_v21 }
 0x696   : > { %v5812_v26 = vpop.permute.xlu0 %5811  ;;  %v5961_v0 = vrot.slane %v5818_v1, %v11876_v35 }
 0x697   : > { %v5951_v46 = vrot.slane %v5812_v26, %v10461_v3 }
 0x699   : > { %v5815_v15 = vpop.permute.xlu1 %5814  ;;  %v5952_v30 = vsel %vm5854_vm11, %v5951_v46, %v5947_v56 }
 0x69a   : > { %v5821_v31 = vpop.permute.xlu0 %5820  ;;  %v5956_v29 = vrot.slane %v5815_v15, %v10458_v24 }
 0x69b   : > { %v5965_v11 = vrot.slane %v5821_v31, %v11874_v12 }
 0x69c   : > { %v5957_v25 = vsel %vm5861_vm12, %v5956_v29, %v5952_v30 }
 0x69d   : > { %v5830_v8 = vpop.permute.xlu1 %5829  ;;  %v5966_v9 = vsel %vm605_vm2, %v5965_v11, %v5961_v0 }
 0x69e   : > { %v5824_v23 = vpop.permute.xlu0 %5823  ;;  %v5980_v49 = vrot.slane %v5830_v8, %v11876_v35 }
 0x69f   : > { %v5970_v44 = vrot.slane %v5824_v23, %v10461_v3 }
 0x6a1   : > { %v5827_v20 = vpop.permute.xlu1 %5826  ;;  %v5971_v54 = vsel %vm5854_vm11, %v5970_v44, %v5966_v9 }
 0x6a2   : > { %v5833_v32 = vpop.permute.xlu0 %5832  ;;  %v5975_v45 = vrot.slane %v5827_v20, %v10458_v24 }
 0x6a3   : > { %v5984_v50 = vrot.slane %v5833_v32, %v11874_v12  ;;  %v5998_v12 = vsel %vm674_vm5, %v5919_v7, %v5997_v60 }
 0x6a4   : > { %v5976_v26 = vsel %vm5861_vm12, %v5975_v45, %v5971_v54  ;;  %v5999_v17 = vsel %vm676_vm6, %v5938_v38, %v5998_v12 }
 0x6a5   : > { %v5839_v63 = vpop.permute.xlu1 %5838  ;;  %v5985_v47 = vsel %vm605_vm2, %v5984_v50, %v5980_v49  ;;  %v6000_v33 = vsel %vm678_vm7, %v5957_v25, %v5999_v17 }
 0x6a6   : > { %v5836_v1 = vpop.permute.xlu0 %5835  ;;  %v5994_v55 = vrot.slane %v5839_v63, %v10458_v24  ;;  %v6001_v53 = vsel %vm680_vm8, %v5976_v26, %v6000_v33  ;;  %v6008_v24 = vstv %s6007_s9 }
 0x6a7   : > { %v5989_v40 = vrot.slane %v5836_v1, %v10461_v3 }
 0x6a9   : > { %v5990_v35 = vsel %vm5854_vm11, %v5989_v40, %v5985_v47 }
 0x6aa   : > { %v5995_v36 = vsel %vm5861_vm12, %v5994_v55, %v5990_v35 }
 0x6ab   : > { %v6002_v39 = vsel %vm682_vm9, %v5995_v36, %v6001_v53 }
 0x6ac   : > { %v6004_v15 = vsel %vm368_vm0, %v6002_v39, 0.0 }
 0x6ad   : > { %6005 = vadd.xlane.f32.xlu0 %v6004_v15 }
 0x73a   : > { %v6006_v3 = vpop.xlane.xlu0 %6005 }
 0x73b   : > { %v6009_v31 = vadd.f32 %v6008_v24, %v6006_v3 }
 0x73d   : > { %6011 = vst.msk [vmem:[%s287_s21] sm:$0xff] %vm6010_vm13, %v6009_v31 }
 0x73e PF: > { %s11877_s22 = smov %s6471_s23  ;;  %p18_p1 = scmp.ge.s32.totalorder %s6442_s8, 4  }
 0x73f   : > { %s11878_s23 = smov %s6345_s24  ;;  %s11879_s24 = smov %s6349_s25 }
 0x740   : > { %s11880_s25 = smov %s11877_s22  ;;  %s11881_s26 = smov %s6442_s8 }
 0x741   :  { %20 = sbr.rel (!%p18_p1) target bundleno = 6 (0x6), region = 88 }
 0x748   :  { %6031 = vsyncpa [#allocation4], 1 }
 0x749   :  { %6033 = vsyncpa [#allocation4 + $0x1], 1 }
 0x74a   :  { %6034 = vsyncpa [#allocation6], 1 }

</bundles_post_ra>
